<compile_context>
chip_gen: v6e
topology: v6e:2x2x1
jax: 0.10.0
libtpu: 0.0.40
codegen_flags: <defaults>
</compile_context>

<pallas_src>
import functools
import math

import numpy as np
import jax
import jax.numpy as jnp
from jax.experimental import pallas as pl
from jax.experimental.pallas import tpu as pltpu

# ----------------------------- config (small, consistent with the module) ----
NFFT = 64          # module default 1024, scaled down for the test
HOP = 32           # module default 512
NUM_MELS = 16      # module default 128
LENGTH = 16        # module default 1024 (time crop)
SAMPLE_RATE = 22050
NUM_CLASSES = 10
EPS_LOG = 1e-6
BN_EPS = 1e-5

_K_SINGLE_MAX = 2304   # largest padded K handled as one MXU shot (no k grid)


def _round_up(x, m):
    return (x + m - 1) // m * m


def _pad_k(k):
    """Padded-K rule shared by init-time weight padding and the GEMM wrapper."""
    kp = _round_up(k, 128)
    if kp > _K_SINGLE_MAX:
        kp = _round_up(k, 512)     # multi-k path uses tk=512
    return kp


# ----------------------------- fused GEMM kernels -----------------------------
# y = [relu]( a @ b + bias [+ residual] );  bias already contains the BN shift,
# the BN scale is folded into b at init.

def _gemm_bias_kernel(a_ref, b_ref, s_ref, o_ref, *, relu):
    y = jnp.dot(a_ref[...], b_ref[...],
                preferred_element_type=jnp.float32) + s_ref[...]
    if relu:
        y = jnp.maximum(y, 0.0)
    o_ref[...] = y.astype(o_ref.dtype)


def _gemm_bias_res_kernel(a_ref, b_ref, s_ref, r_ref, o_ref, *, relu):
    y = (jnp.dot(a_ref[...], b_ref[...], preferred_element_type=jnp.float32)
         + s_ref[...] + r_ref[...].astype(jnp.float32))
    if relu:
        y = jnp.maximum(y, 0.0)
    o_ref[...] = y.astype(o_ref.dtype)


def _gemm_bias_acc_kernel(a_ref, b_ref, s_ref, o_ref, acc_ref, *, relu):
    @pl.when(pl.program_id(2) == 0)
    def _():
        acc_ref[...] = jnp.zeros_like(acc_ref)

    acc_ref[...] += jnp.dot(a_ref[...], b_ref[...],
                            preferred_element_type=jnp.float32)

    @pl.when(pl.program_id(2) == pl.num_programs(2) - 1)
    def _():
        y = acc_ref[...] + s_ref[...]
        if relu:
            y = jnp.maximum(y, 0.0)
        o_ref[...] = y.astype(o_ref.dtype)


def _gemm_bias_res_acc_kernel(a_ref, b_ref, s_ref, r_ref, o_ref, acc_ref, *,
                              relu):
    @pl.when(pl.program_id(2) == 0)
    def _():
        acc_ref[...] = jnp.zeros_like(acc_ref)

    acc_ref[...] += jnp.dot(a_ref[...], b_ref[...],
                            preferred_element_type=jnp.float32)

    @pl.when(pl.program_id(2) == pl.num_programs(2) - 1)
    def _():
        y = acc_ref[...] + s_ref[...] + r_ref[...].astype(jnp.float32)
        if relu:
            y = jnp.maximum(y, 0.0)
        o_ref[...] = y.astype(o_ref.dtype)


def fused_gemm(a, b, bias, *, residual=None, relu=False,
               out_dtype=jnp.bfloat16):
    """a: [M, K] activations, b: [Kp, N] bf16 pre-padded weights (BN scale
    folded in), bias: [N] f32.  Adaptive tiling, bf16 MXU, fused epilogue."""
    M, K = a.shape
    Kp, N = b.shape

    # M: pad only to the 8-sublane granule (real M here is 2..128).
    if M <= 128:
        Mp = _round_up(M, 8)
        tm = Mp
    else:
        Mp = _round_up(M, 128)
        tm = 128
    # N: never padded; lane-dense 128-wide column tiles when Cout allows
    # (gives a >1 "parallel" j axis so both v7x TensorCores get work).
    tn = 128 if N % 128 == 0 else N

    a_p = a.astype(jnp.bfloat16)
    if Mp != M or Kp != K:
        a_p = jnp.pad(a_p, ((0, Mp - M), (0, Kp - K)))
    bias2 = bias.reshape(1, N).astype(jnp.float32)
    r_p = None
    if residual is not None:
        r_p = residual
        if Mp != M:
            r_p = jnp.pad(r_p, ((0, Mp - M), (0, 0)))

    if Kp <= _K_SINGLE_MAX:
        # Single K shot: no k grid axis, no accumulator scratch, no init pass.
        grid = (Mp // tm, N // tn)
        a_spec = pl.BlockSpec((tm, Kp), lambda i, j: (i, 0))
        b_spec = pl.BlockSpec((Kp, tn), lambda i, j: (0, j))
        s_spec = pl.BlockSpec((1, tn), lambda i, j: (0, j))
        o_spec = pl.BlockSpec((tm, tn), lambda i, j: (i, j))
        sems = ("parallel", "parallel")
        scratch = []
        if r_p is None:
            kern = functools.partial(_gemm_bias_kernel, relu=relu)
            ins, in_specs = (a_p, b, bias2), [a_spec, b_spec, s_spec]
        else:
            kern = functools.partial(_gemm_bias_res_kernel, relu=relu)
            ins, in_specs = (a_p, b, bias2, r_p), [a_spec, b_spec, s_spec,
                                                   o_spec]
    else:
        # K reduction over a grid axis; output stored only on the last k step.
        tk = 512
        grid = (Mp // tm, N // tn, Kp // tk)
        a_spec = pl.BlockSpec((tm, tk), lambda i, j, k: (i, k))
        b_spec = pl.BlockSpec((tk, tn), lambda i, j, k: (k, j))
        s_spec = pl.BlockSpec((1, tn), lambda i, j, k: (0, j))
        o_spec = pl.BlockSpec((tm, tn), lambda i, j, k: (i, j))
        sems = ("parallel", "parallel", "arbitrary")
        scratch = [pltpu.VMEM((tm, tn), jnp.float32)]
        if r_p is None:
            kern = functools.partial(_gemm_bias_acc_kernel, relu=relu)
            ins, in_specs = (a_p, b, bias2), [a_spec, b_spec, s_spec]
        else:
            kern = functools.partial(_gemm_bias_res_acc_kernel, relu=relu)
            ins, in_specs = (a_p, b, bias2, r_p), [a_spec, b_spec, s_spec,
                                                   o_spec]

    out = pl.pallas_call(
        kern,
        out_shape=jax.ShapeDtypeStruct((Mp, N), out_dtype),
        grid_spec=pltpu.PrefetchScalarGridSpec(
            num_scalar_prefetch=0, grid=grid,
            in_specs=in_specs, out_specs=o_spec, scratch_shapes=scratch),
        compiler_params=pltpu.CompilerParams(dimension_semantics=sems),
    )(*ins)
    return out[:M] if Mp != M else out


# ----------------------------- fused STFT -> log-mel kernel -------------------
# TODO(synk): the original STFT submodule source is not provided; it is
# re-implemented as hann-windowed real DFT + HTK mel filterbank + log10.
def _stft_kernel(frames_ref, dft_ref, mel_ref, o_ref, *, nbp, eps):
    ri = jnp.dot(frames_ref[...], dft_ref[...],
                 preferred_element_type=jnp.float32)      # [tm, 2*nbp]
    re = ri[:, :nbp]
    im = ri[:, nbp:]
    power = re * re + im * im                              # padded bins are 0
    mel = jnp.dot(power, mel_ref[...], preferred_element_type=jnp.float32)
    o_ref[...] = jnp.log10(mel + eps)


def make_stft_consts(nfft=NFFT, num_mels=NUM_MELS, sample_rate=SAMPLE_RATE):
    nbins = nfft // 2 + 1
    nbp = _round_up(nbins, 128)          # lane-aligned split point in kernel
    n = np.arange(nfft)[:, None]
    k = np.arange(nbins)[None, :]
    ang = 2.0 * np.pi * n * k / nfft
    dft = np.zeros((nfft, 2 * nbp), np.float32)   # [cos | -sin], zero-padded
    dft[:, :nbins] = np.cos(ang)
    dft[:, nbp:nbp + nbins] = -np.sin(ang)

    def hz_to_mel(f):
        return 2595.0 * np.log10(1.0 + f / 700.0)

    def mel_to_hz(m):
        return 700.0 * (10.0 ** (m / 2595.0) - 1.0)

    fmax = sample_rate / 2.0
    mel_pts = np.linspace(hz_to_mel(0.0), hz_to_mel(fmax), num_mels + 2)
    hz_pts = mel_to_hz(mel_pts)
    bin_freqs = np.linspace(0.0, fmax, nbins)
    fb = np.zeros((nbp, num_mels), np.float32)    # zero rows for padded bins
    for m in range(num_mels):
        f_l, f_c, f_r = hz_pts[m], hz_pts[m + 1], hz_pts[m + 2]
        up = (bin_freqs - f_l) / max(f_c - f_l, 1e-6)
        down = (f_r - bin_freqs) / max(f_r - f_c, 1e-6)
        fb[:nbins, m] = np.maximum(0.0, np.minimum(up, down))
    win = (0.5 - 0.5 * np.cos(2.0 * np.pi * np.arange(nfft) / nfft)
           ).astype(np.float32)
    return {'dft': jnp.asarray(dft), 'mel': jnp.asarray(fb),
            'win': jnp.asarray(win), 'nbp': nbp}


def stft_log_mel(x, consts):
    """x: [B, T] waveform -> [B, num_mels, n_frames] log10 mel spectrogram."""
    B, T = x.shape
    nfft, hop = NFFT, HOP
    n_frames = (T - nfft) // hop + 1
    idx = np.arange(n_frames)[:, None] * hop + np.arange(nfft)[None, :]
    frames = (x[:, idx] * consts['win']).reshape(B * n_frames, nfft)
    frames = frames.astype(jnp.float32)

    M = B * n_frames
    if M <= 128:
        Mp = _round_up(M, 8)
        tm = Mp
    else:
        Mp = _round_up(M, 128)
        tm = 128
    if Mp != M:
        frames = jnp.pad(frames, ((0, Mp - M), (0, 0)))

    nbp = consts['nbp']
    num_mels = consts['mel'].shape[1]
    out = pl.pallas_call(
        functools.partial(_stft_kernel, nbp=nbp, eps=EPS_LOG),
        out_shape=jax.ShapeDtypeStruct((Mp, num_mels), jnp.float32),
        grid_spec=pltpu.PrefetchScalarGridSpec(
            num_scalar_prefetch=0, grid=(Mp // tm,),
            in_specs=[pl.BlockSpec((tm, nfft), lambda i: (i, 0)),
                      pl.BlockSpec((nfft, 2 * nbp), lambda i: (0, 0)),
                      pl.BlockSpec((nbp, num_mels), lambda i: (0, 0))],
            out_specs=pl.BlockSpec((tm, num_mels), lambda i: (i, 0))),
        compiler_params=pltpu.CompilerParams(
            dimension_semantics=("parallel",)),
    )(frames, consts['dft'], consts['mel'])
    logmel = out[:M].reshape(B, n_frames, num_mels)
    return jnp.transpose(logmel, (0, 2, 1))                # [B, mels, time]


# ----------------------------- conv / pooling ---------------------------------
def conv2d_fused(x, cp, *, stride, padding, relu, residual=None):
    """x: [B,H,W,Cin] bf16 NHWC; cp holds pre-padded bf16 [Kp,Cout] weights with
    BN scale folded in and the f32 BN bias.  im2col + fused-epilogue GEMM."""
    B, H, W, cin = x.shape
    kh, kw, cout = cp['kh'], cp['kw'], cp['cout']
    Hout = (H + 2 * padding - kh) // stride + 1
    Wout = (W + 2 * padding - kw) // stride + 1
    xp = x if padding == 0 else jnp.pad(
        x, ((0, 0), (padding, padding), (padding, padding), (0, 0)))
    # TODO(synk): im2col stays as JAX strided-slice glue; at full-size inputs it
    # should become a kh*kw grid axis with per-tap index_maps to avoid the 9x
    # patch materialization in HBM.
    cols = [xp[:, i:i + Hout * stride:stride, j:j + Wout * stride:stride, :]
            for i in range(kh) for j in range(kw)]
    patches = cols[0] if len(cols) == 1 else jnp.concatenate(cols, axis=-1)
    a = patches.reshape(B * Hout * Wout, kh * kw * cin)
    res = None if residual is None else residual.reshape(B * Hout * Wout, cout)
    out = fused_gemm(a, cp['w'], cp['bias'], residual=res, relu=relu,
                     out_dtype=jnp.bfloat16)
    return out.reshape(B, Hout, Wout, cout)


def maxpool3x3s2p1(x):
    # TODO(synk): 3x3/s2 maxpool kept as JAX max-of-9-shifted-slices glue.
    B, H, W, C = x.shape
    xp = jnp.pad(x, ((0, 0), (1, 1), (1, 1), (0, 0)),
                 constant_values=-jnp.inf)
    Hout = (H + 2 - 3) // 2 + 1
    Wout = (W + 2 - 3) // 2 + 1
    out = None
    for i in range(3):
        for j in range(3):
            s = xp[:, i:i + Hout * 2:2, j:j + Wout * 2:2, :]
            out = s if out is None else jnp.maximum(out, s)
    return out


# ----------------------------- ResNet-18 --------------------------------------
def _basic_block(x, blk):
    stride = blk['stride']
    identity = x
    out = conv2d_fused(x, blk['conv1'], stride=stride, padding=1, relu=True)
    if 'down' in blk:
        identity = conv2d_fused(x, blk['down'], stride=stride, padding=0,
                                relu=False)
    # conv2 + BN bias + residual + ReLU fused into one GEMM epilogue.
    out = conv2d_fused(out, blk['conv2'], stride=1, padding=1, relu=True,
                       residual=identity)
    return out


def classifier_forward(x, params):
    # three_windows=False branch of Classifier.forward
    spec = stft_log_mel(x, params['stft'])                # [B, mels, time]
    spec = spec[..., :LENGTH]                             # resize_array (crop)
    img = jnp.repeat(spec[:, :, :, None], 3, axis=-1)     # monochrome2RGB (NHWC)
    h = img.astype(jnp.bfloat16)

    h = conv2d_fused(h, params['conv1'], stride=2, padding=3, relu=True)
    h = maxpool3x3s2p1(h)
    for layer in ('layer1', 'layer2', 'layer3', 'layer4'):
        for blk in params[layer]:
            h = _basic_block(h, blk)
    feat = jnp.mean(h.astype(jnp.float32), axis=(1, 2))   # adaptive avgpool 1x1
    logits = fused_gemm(feat, params['fc']['w'], params['fc']['bias'],
                        relu=False, out_dtype=jnp.float32)
    return logits


def init_classifier_params(key, num_classes=NUM_CLASSES):
    keys = iter(jax.random.split(key, 64))

    def conv_bn(kh, kw, cin, cout):
        fan_in = kh * kw * cin
        w = (jax.random.normal(next(keys), (kh, kw, cin, cout), jnp.float32)
             * np.float32(math.sqrt(2.0 / fan_in)))
        gamma = jnp.ones((cout,), jnp.float32)
        beta = jnp.zeros((cout,), jnp.float32)
        mean = jnp.zeros((cout,), jnp.float32)
        var = jnp.ones((cout,), jnp.float32)
        scale = gamma / jnp.sqrt(var + BN_EPS)
        bias = beta - mean * scale
        w = w * scale                          # fold BN scale into the weights
        K = kh * kw * cin
        Kp = _pad_k(K)
        w2 = w.reshape(K, cout)                # matches im2col (kh, kw, cin) order
        if Kp != K:
            w2 = jnp.pad(w2, ((0, Kp - K), (0, 0)))
        return {'w': w2.astype(jnp.bfloat16), 'bias': bias,
                'kh': kh, 'kw': kw, 'cout': cout}

    params = {'stft': make_stft_consts(),
              'conv1': conv_bn(7, 7, 3, 64)}
    stage_defs = [('layer1', 64, 64, 1), ('layer2', 64, 128, 2),
                  ('layer3', 128, 256, 2), ('layer4', 256, 512, 2)]
    for name, cin, cout, stride in stage_defs:
        blocks = []
        for b in range(2):
            s = stride if b == 0 else 1
            in_c = cin if b == 0 else cout
            blk = {'stride': s,
                   'conv1': conv_bn(3, 3, in_c, cout),
                   'conv2': conv_bn(3, 3, cout, cout)}
            if s != 1 or in_c != cout:
                blk['down'] = conv_bn(1, 1, in_c, cout)
            blocks.append(blk)
        params[name] = blocks
    fc_w = (jax.random.normal(next(keys), (512, num_classes), jnp.float32)
            * np.float32(1.0 / math.sqrt(512)))
    params['fc'] = {'w': fc_w.astype(jnp.bfloat16),
                    'bias': jnp.zeros((num_classes,), jnp.float32)}
    return params


if __name__ == "__main__":
    key = jax.random.PRNGKey(0)
    k_x, k_p = jax.random.split(key)
    B, T = 2, 608                  # (608 - 64)//32 + 1 = 18 frames -> crop 16
    x = jax.random.normal(k_x, (B, T), jnp.float32)
    params = init_classifier_params(k_p, num_classes=NUM_CLASSES)
    fwd = jax.jit(lambda inp: classifier_forward(inp, params))
    logits = jax.block_until_ready(fwd(x))
    assert logits.shape == (B, NUM_CLASSES)
    assert bool(jnp.all(jnp.isfinite(logits)))
    print("KERNEL_OK")
</pallas_src>

<mosaic_0001>
module attributes {stable_mosaic.version = 11 : i64} {
  func.func @_stft_kernel(%arg0: i32, %arg1: memref<40x64xf32, #tpu.memory_space<vmem>>, %arg2: memref<64x256xf32, #tpu.memory_space<vmem>>, %arg3: memref<128x16xf32, #tpu.memory_space<vmem>>, %arg4: memref<40x16xf32, #tpu.memory_space<vmem>>) attributes {dimension_semantics = [#tpu.dimension_semantics<parallel>], iteration_bounds = array<i64: 1>, scalar_prefetch = 0 : i64, scratch_operands = 0 : i64, tpu.core_type = #tpu.core_type<tc>, window_params = [{transform_indices = @transform_0, window_bounds = array<i64: 40, 64>}, {pipeline_mode = #tpu.pipeline_mode<synchronous>, transform_indices = @transform_1, window_bounds = array<i64: 64, 256>}, {pipeline_mode = #tpu.pipeline_mode<synchronous>, transform_indices = @transform_2, window_bounds = array<i64: 128, 16>}, {transform_indices = @transform_3, window_bounds = array<i64: 40, 16>}]} {
    %c0 = arith.constant 0 : index
    %c0_0 = arith.constant 0 : index
    %0 = vector.load %arg1[%c0, %c0_0] : memref<40x64xf32, #tpu.memory_space<vmem>>, vector<40x64xf32>
    %c0_1 = arith.constant 0 : index
    %c0_2 = arith.constant 0 : index
    %1 = vector.load %arg2[%c0_1, %c0_2] : memref<64x256xf32, #tpu.memory_space<vmem>>, vector<64x256xf32>
    %cst = arith.constant dense<0.000000e+00> : vector<40x256xf32>
    %2 = tpu.matmul %0, %1, %cst {dimension_numbers = #tpu.dot_dimension_numbers<[1], [0], [0], [1], [0, 0, 1, 1], [], []>} : vector<40x64xf32>, vector<64x256xf32>, vector<40x256xf32> -> vector<40x256xf32>
    %3 = vector.extract_strided_slice %2 {offsets = [0, 0], sizes = [40, 128], strides = [1, 1]} : vector<40x256xf32> to vector<40x128xf32>
    %4 = vector.extract_strided_slice %2 {offsets = [0, 128], sizes = [40, 128], strides = [1, 1]} : vector<40x256xf32> to vector<40x128xf32>
    %5 = arith.mulf %3, %3 : vector<40x128xf32>
    %6 = arith.mulf %4, %4 : vector<40x128xf32>
    %7 = arith.addf %5, %6 : vector<40x128xf32>
    %c0_3 = arith.constant 0 : index
    %c0_4 = arith.constant 0 : index
    %8 = vector.load %arg3[%c0_3, %c0_4] : memref<128x16xf32, #tpu.memory_space<vmem>>, vector<128x16xf32>
    %cst_5 = arith.constant dense<0.000000e+00> : vector<40x16xf32>
    %9 = tpu.matmul %7, %8, %cst_5 {dimension_numbers = #tpu.dot_dimension_numbers<[1], [0], [0], [1], [0, 0, 1, 1], [], []>} : vector<40x128xf32>, vector<128x16xf32>, vector<40x16xf32> -> vector<40x16xf32>
    %cst_6 = arith.constant 9.99999997E-7 : f32
    %10 = vector.broadcast %cst_6 : f32 to vector<40x16xf32>
    %11 = arith.addf %9, %10 : vector<40x16xf32>
    %12 = math.log %11 : vector<40x16xf32>
    %cst_7 = arith.constant 0.434294492 : f32
    %13 = vector.broadcast %cst_7 : f32 to vector<40x16xf32>
    %14 = arith.mulf %12, %13 : vector<40x16xf32>
    %c0_8 = arith.constant 0 : index
    %c0_9 = arith.constant 0 : index
    %15 = vector.load %arg4[%c0_8, %c0_9] : memref<40x16xf32, #tpu.memory_space<vmem>>, vector<40x16xf32>
    tpu.vector_store %arg4[%c0_8, %c0_9], %14 {strides = array<i32>} : memref<40x16xf32, #tpu.memory_space<vmem>>, vector<40x16xf32>,
    return
  }
  func.func @transform_0(%arg0: i32) -> (i32, i32) {
    %c0_i32 = arith.constant 0 : i32
    %c0_i32_0 = arith.constant 0 : i32
    return %arg0, %c0_i32 : i32, i32
  }
  func.func @transform_1(%arg0: i32) -> (i32, i32) {
    %c0_i32 = arith.constant 0 : i32
    %c0_i32_0 = arith.constant 0 : i32
    %c0_i32_1 = arith.constant 0 : i32
    return %c0_i32, %c0_i32_0 : i32, i32
  }
  func.func @transform_2(%arg0: i32) -> (i32, i32) {
    %c0_i32 = arith.constant 0 : i32
    %c0_i32_0 = arith.constant 0 : i32
    %c0_i32_1 = arith.constant 0 : i32
    return %c0_i32, %c0_i32_0 : i32, i32
  }
  func.func @transform_3(%arg0: i32) -> (i32, i32) {
    %c0_i32 = arith.constant 0 : i32
    %c0_i32_0 = arith.constant 0 : i32
    return %arg0, %c0_i32 : i32, i32
  }
}

module attributes {stable_mosaic.version = 11 : i64} {
  func.func @_gemm_bias_kernel(%arg0: i32, %arg1: i32, %arg2: memref<128x256xbf16, #tpu.memory_space<vmem>>, %arg3: memref<256x64xbf16, #tpu.memory_space<vmem>>, %arg4: memref<1x64xf32, #tpu.memory_space<vmem>>, %arg5: memref<128x64xbf16, #tpu.memory_space<vmem>>) attributes {dimension_semantics = [#tpu.dimension_semantics<parallel>, #tpu.dimension_semantics<parallel>], iteration_bounds = array<i64: 1, 1>, scalar_prefetch = 0 : i64, scratch_operands = 0 : i64, tpu.core_type = #tpu.core_type<tc>, window_params = [{transform_indices = @transform_0, window_bounds = array<i64: 128, 256>}, {transform_indices = @transform_1, window_bounds = array<i64: 256, 64>}, {transform_indices = @transform_2, window_bounds = array<i64: 1, 64>}, {transform_indices = @transform_3, window_bounds = array<i64: 128, 64>}]} {
    %c0 = arith.constant 0 : index
    %c0_0 = arith.constant 0 : index
    %0 = vector.load %arg2[%c0, %c0_0] : memref<128x256xbf16, #tpu.memory_space<vmem>>, vector<128x256xbf16>
    %c0_1 = arith.constant 0 : index
    %c0_2 = arith.constant 0 : index
    %1 = vector.load %arg3[%c0_1, %c0_2] : memref<256x64xbf16, #tpu.memory_space<vmem>>, vector<256x64xbf16>
    %cst = arith.constant dense<0.000000e+00> : vector<128x64xf32>
    %2 = tpu.matmul %0, %1, %cst {dimension_numbers = #tpu.dot_dimension_numbers<[1], [0], [0], [1], [0, 0, 1, 1], [], []>} : vector<128x256xbf16>, vector<256x64xbf16>, vector<128x64xf32> -> vector<128x64xf32>
    %c0_3 = arith.constant 0 : index
    %c0_4 = arith.constant 0 : index
    %3 = vector.load %arg4[%c0_3, %c0_4] : memref<1x64xf32, #tpu.memory_space<vmem>>, vector<1x64xf32>
    %4 = vector.broadcast %3 : vector<1x64xf32> to vector<128x64xf32>
    %5 = arith.addf %2, %4 : vector<128x64xf32>
    %cst_5 = arith.constant 0.000000e+00 : f32
    %6 = vector.broadcast %cst_5 : f32 to vector<128x64xf32>
    %7 = arith.maximumf %5, %6 : vector<128x64xf32>
    %8 = arith.truncf %7 : vector<128x64xf32> to vector<128x64xbf16>
    %c0_6 = arith.constant 0 : index
    %c0_7 = arith.constant 0 : index
    %9 = vector.load %arg5[%c0_6, %c0_7] : memref<128x64xbf16, #tpu.memory_space<vmem>>, vector<128x64xbf16>
    tpu.vector_store %arg5[%c0_6, %c0_7], %8 {strides = array<i32>} : memref<128x64xbf16, #tpu.memory_space<vmem>>, vector<128x64xbf16>,
    return
  }
  func.func @transform_0(%arg0: i32, %arg1: i32) -> (i32, i32) {
    %c0_i32 = arith.constant 0 : i32
    %c0_i32_0 = arith.constant 0 : i32
    return %arg0, %c0_i32 : i32, i32
  }
  func.func @transform_1(%arg0: i32, %arg1: i32) -> (i32, i32) {
    %c0_i32 = arith.constant 0 : i32
    %c0_i32_0 = arith.constant 0 : i32
    return %c0_i32, %arg1 : i32, i32
  }
  func.func @transform_2(%arg0: i32, %arg1: i32) -> (i32, i32) {
    %c0_i32 = arith.constant 0 : i32
    %c0_i32_0 = arith.constant 0 : i32
    return %c0_i32, %arg1 : i32, i32
  }
  func.func @transform_3(%arg0: i32, %arg1: i32) -> (i32, i32) {
    %c0_i32 = arith.constant 0 : i32
    return %arg0, %arg1 : i32, i32
  }
}

module attributes {stable_mosaic.version = 11 : i64} {
  func.func @_gemm_bias_res_kernel(%arg0: i32, %arg1: i32, %arg2: memref<32x640xbf16, #tpu.memory_space<vmem>>, %arg3: memref<640x64xbf16, #tpu.memory_space<vmem>>, %arg4: memref<1x64xf32, #tpu.memory_space<vmem>>, %arg5: memref<32x64xbf16, #tpu.memory_space<vmem>>, %arg6: memref<32x64xbf16, #tpu.memory_space<vmem>>) attributes {dimension_semantics = [#tpu.dimension_semantics<parallel>, #tpu.dimension_semantics<parallel>], iteration_bounds = array<i64: 1, 1>, scalar_prefetch = 0 : i64, scratch_operands = 0 : i64, tpu.core_type = #tpu.core_type<tc>, window_params = [{transform_indices = @transform_0, window_bounds = array<i64: 32, 640>}, {transform_indices = @transform_1, window_bounds = array<i64: 640, 64>}, {transform_indices = @transform_2, window_bounds = array<i64: 1, 64>}, {transform_indices = @transform_3, window_bounds = array<i64: 32, 64>}, {transform_indices = @transform_4, window_bounds = array<i64: 32, 64>}]} {
    %c0 = arith.constant 0 : index
    %c0_0 = arith.constant 0 : index
    %0 = vector.load %arg2[%c0, %c0_0] : memref<32x640xbf16, #tpu.memory_space<vmem>>, vector<32x640xbf16>
    %c0_1 = arith.constant 0 : index
    %c0_2 = arith.constant 0 : index
    %1 = vector.load %arg3[%c0_1, %c0_2] : memref<640x64xbf16, #tpu.memory_space<vmem>>, vector<640x64xbf16>
    %cst = arith.constant dense<0.000000e+00> : vector<32x64xf32>
    %2 = tpu.matmul %0, %1, %cst {dimension_numbers = #tpu.dot_dimension_numbers<[1], [0], [0], [1], [0, 0, 1, 1], [], []>} : vector<32x640xbf16>, vector<640x64xbf16>, vector<32x64xf32> -> vector<32x64xf32>
    %c0_3 = arith.constant 0 : index
    %c0_4 = arith.constant 0 : index
    %3 = vector.load %arg4[%c0_3, %c0_4] : memref<1x64xf32, #tpu.memory_space<vmem>>, vector<1x64xf32>
    %4 = vector.broadcast %3 : vector<1x64xf32> to vector<32x64xf32>
    %5 = arith.addf %2, %4 : vector<32x64xf32>
    %c0_5 = arith.constant 0 : index
    %c0_6 = arith.constant 0 : index
    %6 = vector.load %arg5[%c0_5, %c0_6] : memref<32x64xbf16, #tpu.memory_space<vmem>>, vector<32x64xbf16>
    %7 = arith.extf %6 : vector<32x64xbf16> to vector<32x64xf32>
    %8 = arith.addf %5, %7 : vector<32x64xf32>
    %cst_7 = arith.constant 0.000000e+00 : f32
    %9 = vector.broadcast %cst_7 : f32 to vector<32x64xf32>
    %10 = arith.maximumf %8, %9 : vector<32x64xf32>
    %11 = arith.truncf %10 : vector<32x64xf32> to vector<32x64xbf16>
    %c0_8 = arith.constant 0 : index
    %c0_9 = arith.constant 0 : index
    %12 = vector.load %arg6[%c0_8, %c0_9] : memref<32x64xbf16, #tpu.memory_space<vmem>>, vector<32x64xbf16>
    tpu.vector_store %arg6[%c0_8, %c0_9], %11 {strides = array<i32>} : memref<32x64xbf16, #tpu.memory_space<vmem>>, vector<32x64xbf16>,
    return
  }
  func.func @transform_0(%arg0: i32, %arg1: i32) -> (i32, i32) {
    %c0_i32 = arith.constant 0 : i32
    %c0_i32_0 = arith.constant 0 : i32
    return %arg0, %c0_i32 : i32, i32
  }
  func.func @transform_1(%arg0: i32, %arg1: i32) -> (i32, i32) {
    %c0_i32 = arith.constant 0 : i32
    %c0_i32_0 = arith.constant 0 : i32
    return %c0_i32, %arg1 : i32, i32
  }
  func.func @transform_2(%arg0: i32, %arg1: i32) -> (i32, i32) {
    %c0_i32 = arith.constant 0 : i32
    %c0_i32_0 = arith.constant 0 : i32
    return %c0_i32, %arg1 : i32, i32
  }
  func.func @transform_3(%arg0: i32, %arg1: i32) -> (i32, i32) {
    %c0_i32 = arith.constant 0 : i32
    return %arg0, %arg1 : i32, i32
  }
  func.func @transform_4(%arg0: i32, %arg1: i32) -> (i32, i32) {
    %c0_i32 = arith.constant 0 : i32
    return %arg0, %arg1 : i32, i32
  }
}

module attributes {stable_mosaic.version = 11 : i64} {
  func.func @_gemm_bias_kernel(%arg0: i32, %arg1: i32, %arg2: memref<8x640xbf16, #tpu.memory_space<vmem>>, %arg3: memref<640x128xbf16, #tpu.memory_space<vmem>>, %arg4: memref<1x128xf32, #tpu.memory_space<vmem>>, %arg5: memref<8x128xbf16, #tpu.memory_space<vmem>>) attributes {dimension_semantics = [#tpu.dimension_semantics<parallel>, #tpu.dimension_semantics<parallel>], iteration_bounds = array<i64: 1, 1>, scalar_prefetch = 0 : i64, scratch_operands = 0 : i64, tpu.core_type = #tpu.core_type<tc>, window_params = [{transform_indices = @transform_0, window_bounds = array<i64: 8, 640>}, {transform_indices = @transform_1, window_bounds = array<i64: 640, 128>}, {transform_indices = @transform_2, window_bounds = array<i64: 1, 128>}, {transform_indices = @transform_3, window_bounds = array<i64: 8, 128>}]} {
    %c0 = arith.constant 0 : index
    %c0_0 = arith.constant 0 : index
    %0 = vector.load %arg2[%c0, %c0_0] : memref<8x640xbf16, #tpu.memory_space<vmem>>, vector<8x640xbf16>
    %c0_1 = arith.constant 0 : index
    %c0_2 = arith.constant 0 : index
    %1 = vector.load %arg3[%c0_1, %c0_2] : memref<640x128xbf16, #tpu.memory_space<vmem>>, vector<640x128xbf16>
    %cst = arith.constant dense<0.000000e+00> : vector<8x128xf32>
    %2 = tpu.matmul %0, %1, %cst {dimension_numbers = #tpu.dot_dimension_numbers<[1], [0], [0], [1], [0, 0, 1, 1], [], []>} : vector<8x640xbf16>, vector<640x128xbf16>, vector<8x128xf32> -> vector<8x128xf32>
    %c0_3 = arith.constant 0 : index
    %c0_4 = arith.constant 0 : index
    %3 = vector.load %arg4[%c0_3, %c0_4] : memref<1x128xf32, #tpu.memory_space<vmem>>, vector<1x128xf32>
    %4 = vector.broadcast %3 : vector<1x128xf32> to vector<8x128xf32>
    %5 = arith.addf %2, %4 : vector<8x128xf32>
    %cst_5 = arith.constant 0.000000e+00 : f32
    %6 = vector.broadcast %cst_5 : f32 to vector<8x128xf32>
    %7 = arith.maximumf %5, %6 : vector<8x128xf32>
    %8 = arith.truncf %7 : vector<8x128xf32> to vector<8x128xbf16>
    %c0_6 = arith.constant 0 : index
    %c0_7 = arith.constant 0 : index
    %9 = vector.load %arg5[%c0_6, %c0_7] : memref<8x128xbf16, #tpu.memory_space<vmem>>, vector<8x128xbf16>
    tpu.vector_store %arg5[%c0_6, %c0_7], %8 {strides = array<i32>} : memref<8x128xbf16, #tpu.memory_space<vmem>>, vector<8x128xbf16>,
    return
  }
  func.func @transform_0(%arg0: i32, %arg1: i32) -> (i32, i32) {
    %c0_i32 = arith.constant 0 : i32
    %c0_i32_0 = arith.constant 0 : i32
    return %arg0, %c0_i32 : i32, i32
  }
  func.func @transform_1(%arg0: i32, %arg1: i32) -> (i32, i32) {
    %c0_i32 = arith.constant 0 : i32
    %c0_i32_0 = arith.constant 0 : i32
    return %c0_i32, %arg1 : i32, i32
  }
  func.func @transform_2(%arg0: i32, %arg1: i32) -> (i32, i32) {
    %c0_i32 = arith.constant 0 : i32
    %c0_i32_0 = arith.constant 0 : i32
    return %c0_i32, %arg1 : i32, i32
  }
  func.func @transform_3(%arg0: i32, %arg1: i32) -> (i32, i32) {
    %c0_i32 = arith.constant 0 : i32
    return %arg0, %arg1 : i32, i32
  }
}

module attributes {stable_mosaic.version = 11 : i64} {
  func.func @_gemm_bias_kernel(%arg0: i32, %arg1: i32, %arg2: memref<32x640xbf16, #tpu.memory_space<vmem>>, %arg3: memref<640x64xbf16, #tpu.memory_space<vmem>>, %arg4: memref<1x64xf32, #tpu.memory_space<vmem>>, %arg5: memref<32x64xbf16, #tpu.memory_space<vmem>>) attributes {dimension_semantics = [#tpu.dimension_semantics<parallel>, #tpu.dimension_semantics<parallel>], iteration_bounds = array<i64: 1, 1>, scalar_prefetch = 0 : i64, scratch_operands = 0 : i64, tpu.core_type = #tpu.core_type<tc>, window_params = [{transform_indices = @transform_0, window_bounds = array<i64: 32, 640>}, {transform_indices = @transform_1, window_bounds = array<i64: 640, 64>}, {transform_indices = @transform_2, window_bounds = array<i64: 1, 64>}, {transform_indices = @transform_3, window_bounds = array<i64: 32, 64>}]} {
    %c0 = arith.constant 0 : index
    %c0_0 = arith.constant 0 : index
    %0 = vector.load %arg2[%c0, %c0_0] : memref<32x640xbf16, #tpu.memory_space<vmem>>, vector<32x640xbf16>
    %c0_1 = arith.constant 0 : index
    %c0_2 = arith.constant 0 : index
    %1 = vector.load %arg3[%c0_1, %c0_2] : memref<640x64xbf16, #tpu.memory_space<vmem>>, vector<640x64xbf16>
    %cst = arith.constant dense<0.000000e+00> : vector<32x64xf32>
    %2 = tpu.matmul %0, %1, %cst {dimension_numbers = #tpu.dot_dimension_numbers<[1], [0], [0], [1], [0, 0, 1, 1], [], []>} : vector<32x640xbf16>, vector<640x64xbf16>, vector<32x64xf32> -> vector<32x64xf32>
    %c0_3 = arith.constant 0 : index
    %c0_4 = arith.constant 0 : index
    %3 = vector.load %arg4[%c0_3, %c0_4] : memref<1x64xf32, #tpu.memory_space<vmem>>, vector<1x64xf32>
    %4 = vector.broadcast %3 : vector<1x64xf32> to vector<32x64xf32>
    %5 = arith.addf %2, %4 : vector<32x64xf32>
    %cst_5 = arith.constant 0.000000e+00 : f32
    %6 = vector.broadcast %cst_5 : f32 to vector<32x64xf32>
    %7 = arith.maximumf %5, %6 : vector<32x64xf32>
    %8 = arith.truncf %7 : vector<32x64xf32> to vector<32x64xbf16>
    %c0_6 = arith.constant 0 : index
    %c0_7 = arith.constant 0 : index
    %9 = vector.load %arg5[%c0_6, %c0_7] : memref<32x64xbf16, #tpu.memory_space<vmem>>, vector<32x64xbf16>
    tpu.vector_store %arg5[%c0_6, %c0_7], %8 {strides = array<i32>} : memref<32x64xbf16, #tpu.memory_space<vmem>>, vector<32x64xbf16>,
    return
  }
  func.func @transform_0(%arg0: i32, %arg1: i32) -> (i32, i32) {
    %c0_i32 = arith.constant 0 : i32
    %c0_i32_0 = arith.constant 0 : i32
    return %arg0, %c0_i32 : i32, i32
  }
  func.func @transform_1(%arg0: i32, %arg1: i32) -> (i32, i32) {
    %c0_i32 = arith.constant 0 : i32
    %c0_i32_0 = arith.constant 0 : i32
    return %c0_i32, %arg1 : i32, i32
  }
  func.func @transform_2(%arg0: i32, %arg1: i32) -> (i32, i32) {
    %c0_i32 = arith.constant 0 : i32
    %c0_i32_0 = arith.constant 0 : i32
    return %c0_i32, %arg1 : i32, i32
  }
  func.func @transform_3(%arg0: i32, %arg1: i32) -> (i32, i32) {
    %c0_i32 = arith.constant 0 : i32
    return %arg0, %arg1 : i32, i32
  }
}

module attributes {stable_mosaic.version = 11 : i64} {
  func.func @_gemm_bias_res_kernel(%arg0: i32, %arg1: i32, %arg2: memref<8x1152xbf16, #tpu.memory_space<vmem>>, %arg3: memref<1152x128xbf16, #tpu.memory_space<vmem>>, %arg4: memref<1x128xf32, #tpu.memory_space<vmem>>, %arg5: memref<8x128xbf16, #tpu.memory_space<vmem>>, %arg6: memref<8x128xbf16, #tpu.memory_space<vmem>>) attributes {dimension_semantics = [#tpu.dimension_semantics<parallel>, #tpu.dimension_semantics<parallel>], iteration_bounds = array<i64: 1, 1>, scalar_prefetch = 0 : i64, scratch_operands = 0 : i64, tpu.core_type = #tpu.core_type<tc>, window_params = [{transform_indices = @transform_0, window_bounds = array<i64: 8, 1152>}, {transform_indices = @transform_1, window_bounds = array<i64: 1152, 128>}, {transform_indices = @transform_2, window_bounds = array<i64: 1, 128>}, {transform_indices = @transform_3, window_bounds = array<i64: 8, 128>}, {transform_indices = @transform_4, window_bounds = array<i64: 8, 128>}]} {
    %c0 = arith.constant 0 : index
    %c0_0 = arith.constant 0 : index
    %0 = vector.load %arg2[%c0, %c0_0] : memref<8x1152xbf16, #tpu.memory_space<vmem>>, vector<8x1152xbf16>
    %c0_1 = arith.constant 0 : index
    %c0_2 = arith.constant 0 : index
    %1 = vector.load %arg3[%c0_1, %c0_2] : memref<1152x128xbf16, #tpu.memory_space<vmem>>, vector<1152x128xbf16>
    %cst = arith.constant dense<0.000000e+00> : vector<8x128xf32>
    %2 = tpu.matmul %0, %1, %cst {dimension_numbers = #tpu.dot_dimension_numbers<[1], [0], [0], [1], [0, 0, 1, 1], [], []>} : vector<8x1152xbf16>, vector<1152x128xbf16>, vector<8x128xf32> -> vector<8x128xf32>
    %c0_3 = arith.constant 0 : index
    %c0_4 = arith.constant 0 : index
    %3 = vector.load %arg4[%c0_3, %c0_4] : memref<1x128xf32, #tpu.memory_space<vmem>>, vector<1x128xf32>
    %4 = vector.broadcast %3 : vector<1x128xf32> to vector<8x128xf32>
    %5 = arith.addf %2, %4 : vector<8x128xf32>
    %c0_5 = arith.constant 0 : index
    %c0_6 = arith.constant 0 : index
    %6 = vector.load %arg5[%c0_5, %c0_6] : memref<8x128xbf16, #tpu.memory_space<vmem>>, vector<8x128xbf16>
    %7 = arith.extf %6 : vector<8x128xbf16> to vector<8x128xf32>
    %8 = arith.addf %5, %7 : vector<8x128xf32>
    %cst_7 = arith.constant 0.000000e+00 : f32
    %9 = vector.broadcast %cst_7 : f32 to vector<8x128xf32>
    %10 = arith.maximumf %8, %9 : vector<8x128xf32>
    %11 = arith.truncf %10 : vector<8x128xf32> to vector<8x128xbf16>
    %c0_8 = arith.constant 0 : index
    %c0_9 = arith.constant 0 : index
    %12 = vector.load %arg6[%c0_8, %c0_9] : memref<8x128xbf16, #tpu.memory_space<vmem>>, vector<8x128xbf16>
    tpu.vector_store %arg6[%c0_8, %c0_9], %11 {strides = array<i32>} : memref<8x128xbf16, #tpu.memory_space<vmem>>, vector<8x128xbf16>,
    return
  }
  func.func @transform_0(%arg0: i32, %arg1: i32) -> (i32, i32) {
    %c0_i32 = arith.constant 0 : i32
    %c0_i32_0 = arith.constant 0 : i32
    return %arg0, %c0_i32 : i32, i32
  }
  func.func @transform_1(%arg0: i32, %arg1: i32) -> (i32, i32) {
    %c0_i32 = arith.constant 0 : i32
    %c0_i32_0 = arith.constant 0 : i32
    return %c0_i32, %arg1 : i32, i32
  }
  func.func @transform_2(%arg0: i32, %arg1: i32) -> (i32, i32) {
    %c0_i32 = arith.constant 0 : i32
    %c0_i32_0 = arith.constant 0 : i32
    return %c0_i32, %arg1 : i32, i32
  }
  func.func @transform_3(%arg0: i32, %arg1: i32) -> (i32, i32) {
    %c0_i32 = arith.constant 0 : i32
    return %arg0, %arg1 : i32, i32
  }
  func.func @transform_4(%arg0: i32, %arg1: i32) -> (i32, i32) {
    %c0_i32 = arith.constant 0 : i32
    return %arg0, %arg1 : i32, i32
  }
}

module attributes {stable_mosaic.version = 11 : i64} {
  func.func @_gemm_bias_kernel(%arg0: i32, %arg1: i32, %arg2: memref<8x128xbf16, #tpu.memory_space<vmem>>, %arg3: memref<128x128xbf16, #tpu.memory_space<vmem>>, %arg4: memref<1x128xf32, #tpu.memory_space<vmem>>, %arg5: memref<8x128xbf16, #tpu.memory_space<vmem>>) attributes {dimension_semantics = [#tpu.dimension_semantics<parallel>, #tpu.dimension_semantics<parallel>], iteration_bounds = array<i64: 1, 1>, scalar_prefetch = 0 : i64, scratch_operands = 0 : i64, tpu.core_type = #tpu.core_type<tc>, window_params = [{transform_indices = @transform_0, window_bounds = array<i64: 8, 128>}, {transform_indices = @transform_1, window_bounds = array<i64: 128, 128>}, {transform_indices = @transform_2, window_bounds = array<i64: 1, 128>}, {transform_indices = @transform_3, window_bounds = array<i64: 8, 128>}]} {
    %c0 = arith.constant 0 : index
    %c0_0 = arith.constant 0 : index
    %0 = vector.load %arg2[%c0, %c0_0] : memref<8x128xbf16, #tpu.memory_space<vmem>>, vector<8x128xbf16>
    %c0_1 = arith.constant 0 : index
    %c0_2 = arith.constant 0 : index
    %1 = vector.load %arg3[%c0_1, %c0_2] : memref<128x128xbf16, #tpu.memory_space<vmem>>, vector<128x128xbf16>
    %cst = arith.constant dense<0.000000e+00> : vector<8x128xf32>
    %2 = tpu.matmul %0, %1, %cst {dimension_numbers = #tpu.dot_dimension_numbers<[1], [0], [0], [1], [0, 0, 1, 1], [], []>} : vector<8x128xbf16>, vector<128x128xbf16>, vector<8x128xf32> -> vector<8x128xf32>
    %c0_3 = arith.constant 0 : index
    %c0_4 = arith.constant 0 : index
    %3 = vector.load %arg4[%c0_3, %c0_4] : memref<1x128xf32, #tpu.memory_space<vmem>>, vector<1x128xf32>
    %4 = vector.broadcast %3 : vector<1x128xf32> to vector<8x128xf32>
    %5 = arith.addf %2, %4 : vector<8x128xf32>
    %6 = arith.truncf %5 : vector<8x128xf32> to vector<8x128xbf16>
    %c0_5 = arith.constant 0 : index
    %c0_6 = arith.constant 0 : index
    %7 = vector.load %arg5[%c0_5, %c0_6] : memref<8x128xbf16, #tpu.memory_space<vmem>>, vector<8x128xbf16>
    tpu.vector_store %arg5[%c0_5, %c0_6], %6 {strides = array<i32>} : memref<8x128xbf16, #tpu.memory_space<vmem>>, vector<8x128xbf16>,
    return
  }
  func.func @transform_0(%arg0: i32, %arg1: i32) -> (i32, i32) {
    %c0_i32 = arith.constant 0 : i32
    %c0_i32_0 = arith.constant 0 : i32
    return %arg0, %c0_i32 : i32, i32
  }
  func.func @transform_1(%arg0: i32, %arg1: i32) -> (i32, i32) {
    %c0_i32 = arith.constant 0 : i32
    %c0_i32_0 = arith.constant 0 : i32
    return %c0_i32, %arg1 : i32, i32
  }
  func.func @transform_2(%arg0: i32, %arg1: i32) -> (i32, i32) {
    %c0_i32 = arith.constant 0 : i32
    %c0_i32_0 = arith.constant 0 : i32
    return %c0_i32, %arg1 : i32, i32
  }
  func.func @transform_3(%arg0: i32, %arg1: i32) -> (i32, i32) {
    %c0_i32 = arith.constant 0 : i32
    return %arg0, %arg1 : i32, i32
  }
}

module attributes {stable_mosaic.version = 11 : i64} {
  func.func @_gemm_bias_kernel(%arg0: i32, %arg1: i32, %arg2: memref<8x1152xbf16, #tpu.memory_space<vmem>>, %arg3: memref<1152x128xbf16, #tpu.memory_space<vmem>>, %arg4: memref<1x128xf32, #tpu.memory_space<vmem>>, %arg5: memref<8x128xbf16, #tpu.memory_space<vmem>>) attributes {dimension_semantics = [#tpu.dimension_semantics<parallel>, #tpu.dimension_semantics<parallel>], iteration_bounds = array<i64: 1, 1>, scalar_prefetch = 0 : i64, scratch_operands = 0 : i64, tpu.core_type = #tpu.core_type<tc>, window_params = [{transform_indices = @transform_0, window_bounds = array<i64: 8, 1152>}, {transform_indices = @transform_1, window_bounds = array<i64: 1152, 128>}, {transform_indices = @transform_2, window_bounds = array<i64: 1, 128>}, {transform_indices = @transform_3, window_bounds = array<i64: 8, 128>}]} {
    %c0 = arith.constant 0 : index
    %c0_0 = arith.constant 0 : index
    %0 = vector.load %arg2[%c0, %c0_0] : memref<8x1152xbf16, #tpu.memory_space<vmem>>, vector<8x1152xbf16>
    %c0_1 = arith.constant 0 : index
    %c0_2 = arith.constant 0 : index
    %1 = vector.load %arg3[%c0_1, %c0_2] : memref<1152x128xbf16, #tpu.memory_space<vmem>>, vector<1152x128xbf16>
    %cst = arith.constant dense<0.000000e+00> : vector<8x128xf32>
    %2 = tpu.matmul %0, %1, %cst {dimension_numbers = #tpu.dot_dimension_numbers<[1], [0], [0], [1], [0, 0, 1, 1], [], []>} : vector<8x1152xbf16>, vector<1152x128xbf16>, vector<8x128xf32> -> vector<8x128xf32>
    %c0_3 = arith.constant 0 : index
    %c0_4 = arith.constant 0 : index
    %3 = vector.load %arg4[%c0_3, %c0_4] : memref<1x128xf32, #tpu.memory_space<vmem>>, vector<1x128xf32>
    %4 = vector.broadcast %3 : vector<1x128xf32> to vector<8x128xf32>
    %5 = arith.addf %2, %4 : vector<8x128xf32>
    %cst_5 = arith.constant 0.000000e+00 : f32
    %6 = vector.broadcast %cst_5 : f32 to vector<8x128xf32>
    %7 = arith.maximumf %5, %6 : vector<8x128xf32>
    %8 = arith.truncf %7 : vector<8x128xf32> to vector<8x128xbf16>
    %c0_6 = arith.constant 0 : index
    %c0_7 = arith.constant 0 : index
    %9 = vector.load %arg5[%c0_6, %c0_7] : memref<8x128xbf16, #tpu.memory_space<vmem>>, vector<8x128xbf16>
    tpu.vector_store %arg5[%c0_6, %c0_7], %8 {strides = array<i32>} : memref<8x128xbf16, #tpu.memory_space<vmem>>, vector<8x128xbf16>,
    return
  }
  func.func @transform_0(%arg0: i32, %arg1: i32) -> (i32, i32) {
    %c0_i32 = arith.constant 0 : i32
    %c0_i32_0 = arith.constant 0 : i32
    return %arg0, %c0_i32 : i32, i32
  }
  func.func @transform_1(%arg0: i32, %arg1: i32) -> (i32, i32) {
    %c0_i32 = arith.constant 0 : i32
    %c0_i32_0 = arith.constant 0 : i32
    return %c0_i32, %arg1 : i32, i32
  }
  func.func @transform_2(%arg0: i32, %arg1: i32) -> (i32, i32) {
    %c0_i32 = arith.constant 0 : i32
    %c0_i32_0 = arith.constant 0 : i32
    return %c0_i32, %arg1 : i32, i32
  }
  func.func @transform_3(%arg0: i32, %arg1: i32) -> (i32, i32) {
    %c0_i32 = arith.constant 0 : i32
    return %arg0, %arg1 : i32, i32
  }
}

module attributes {stable_mosaic.version = 11 : i64} {
  func.func @_gemm_bias_kernel(%arg0: i32, %arg1: i32, %arg2: memref<8x1152xbf16, #tpu.memory_space<vmem>>, %arg3: memref<1152x128xbf16, #tpu.memory_space<vmem>>, %arg4: memref<1x128xf32, #tpu.memory_space<vmem>>, %arg5: memref<8x128xbf16, #tpu.memory_space<vmem>>) attributes {dimension_semantics = [#tpu.dimension_semantics<parallel>, #tpu.dimension_semantics<parallel>], iteration_bounds = array<i64: 1, 2>, scalar_prefetch = 0 : i64, scratch_operands = 0 : i64, tpu.core_type = #tpu.core_type<tc>, window_params = [{transform_indices = @transform_0, window_bounds = array<i64: 8, 1152>}, {transform_indices = @transform_1, window_bounds = array<i64: 1152, 128>}, {transform_indices = @transform_2, window_bounds = array<i64: 1, 128>}, {transform_indices = @transform_3, window_bounds = array<i64: 8, 128>}]} {
    %c0 = arith.constant 0 : index
    %c0_0 = arith.constant 0 : index
    %0 = vector.load %arg2[%c0, %c0_0] : memref<8x1152xbf16, #tpu.memory_space<vmem>>, vector<8x1152xbf16>
    %c0_1 = arith.constant 0 : index
    %c0_2 = arith.constant 0 : index
    %1 = vector.load %arg3[%c0_1, %c0_2] : memref<1152x128xbf16, #tpu.memory_space<vmem>>, vector<1152x128xbf16>
    %cst = arith.constant dense<0.000000e+00> : vector<8x128xf32>
    %2 = tpu.matmul %0, %1, %cst {dimension_numbers = #tpu.dot_dimension_numbers<[1], [0], [0], [1], [0, 0, 1, 1], [], []>} : vector<8x1152xbf16>, vector<1152x128xbf16>, vector<8x128xf32> -> vector<8x128xf32>
    %c0_3 = arith.constant 0 : index
    %c0_4 = arith.constant 0 : index
    %3 = vector.load %arg4[%c0_3, %c0_4] : memref<1x128xf32, #tpu.memory_space<vmem>>, vector<1x128xf32>
    %4 = vector.broadcast %3 : vector<1x128xf32> to vector<8x128xf32>
    %5 = arith.addf %2, %4 : vector<8x128xf32>
    %cst_5 = arith.constant 0.000000e+00 : f32
    %6 = vector.broadcast %cst_5 : f32 to vector<8x128xf32>
    %7 = arith.maximumf %5, %6 : vector<8x128xf32>
    %8 = arith.truncf %7 : vector<8x128xf32> to vector<8x128xbf16>
    %c0_6 = arith.constant 0 : index
    %c0_7 = arith.constant 0 : index
    %9 = vector.load %arg5[%c0_6, %c0_7] : memref<8x128xbf16, #tpu.memory_space<vmem>>, vector<8x128xbf16>
    tpu.vector_store %arg5[%c0_6, %c0_7], %8 {strides = array<i32>} : memref<8x128xbf16, #tpu.memory_space<vmem>>, vector<8x128xbf16>,
    return
  }
  func.func @transform_0(%arg0: i32, %arg1: i32) -> (i32, i32) {
    %c0_i32 = arith.constant 0 : i32
    %c0_i32_0 = arith.constant 0 : i32
    return %arg0, %c0_i32 : i32, i32
  }
  func.func @transform_1(%arg0: i32, %arg1: i32) -> (i32, i32) {
    %c0_i32 = arith.constant 0 : i32
    %c0_i32_0 = arith.constant 0 : i32
    return %c0_i32, %arg1 : i32, i32
  }
  func.func @transform_2(%arg0: i32, %arg1: i32) -> (i32, i32) {
    %c0_i32 = arith.constant 0 : i32
    %c0_i32_0 = arith.constant 0 : i32
    return %c0_i32, %arg1 : i32, i32
  }
  func.func @transform_3(%arg0: i32, %arg1: i32) -> (i32, i32) {
    %c0_i32 = arith.constant 0 : i32
    return %arg0, %arg1 : i32, i32
  }
}

module attributes {stable_mosaic.version = 11 : i64} {
  func.func @_gemm_bias_kernel(%arg0: i32, %arg1: i32, %arg2: memref<8x128xbf16, #tpu.memory_space<vmem>>, %arg3: memref<128x128xbf16, #tpu.memory_space<vmem>>, %arg4: memref<1x128xf32, #tpu.memory_space<vmem>>, %arg5: memref<8x128xbf16, #tpu.memory_space<vmem>>) attributes {dimension_semantics = [#tpu.dimension_semantics<parallel>, #tpu.dimension_semantics<parallel>], iteration_bounds = array<i64: 1, 2>, scalar_prefetch = 0 : i64, scratch_operands = 0 : i64, tpu.core_type = #tpu.core_type<tc>, window_params = [{transform_indices = @transform_0, window_bounds = array<i64: 8, 128>}, {transform_indices = @transform_1, window_bounds = array<i64: 128, 128>}, {transform_indices = @transform_2, window_bounds = array<i64: 1, 128>}, {transform_indices = @transform_3, window_bounds = array<i64: 8, 128>}]} {
    %c0 = arith.constant 0 : index
    %c0_0 = arith.constant 0 : index
    %0 = vector.load %arg2[%c0, %c0_0] : memref<8x128xbf16, #tpu.memory_space<vmem>>, vector<8x128xbf16>
    %c0_1 = arith.constant 0 : index
    %c0_2 = arith.constant 0 : index
    %1 = vector.load %arg3[%c0_1, %c0_2] : memref<128x128xbf16, #tpu.memory_space<vmem>>, vector<128x128xbf16>
    %cst = arith.constant dense<0.000000e+00> : vector<8x128xf32>
    %2 = tpu.matmul %0, %1, %cst {dimension_numbers = #tpu.dot_dimension_numbers<[1], [0], [0], [1], [0, 0, 1, 1], [], []>} : vector<8x128xbf16>, vector<128x128xbf16>, vector<8x128xf32> -> vector<8x128xf32>
    %c0_3 = arith.constant 0 : index
    %c0_4 = arith.constant 0 : index
    %3 = vector.load %arg4[%c0_3, %c0_4] : memref<1x128xf32, #tpu.memory_space<vmem>>, vector<1x128xf32>
    %4 = vector.broadcast %3 : vector<1x128xf32> to vector<8x128xf32>
    %5 = arith.addf %2, %4 : vector<8x128xf32>
    %6 = arith.truncf %5 : vector<8x128xf32> to vector<8x128xbf16>
    %c0_5 = arith.constant 0 : index
    %c0_6 = arith.constant 0 : index
    %7 = vector.load %arg5[%c0_5, %c0_6] : memref<8x128xbf16, #tpu.memory_space<vmem>>, vector<8x128xbf16>
    tpu.vector_store %arg5[%c0_5, %c0_6], %6 {strides = array<i32>} : memref<8x128xbf16, #tpu.memory_space<vmem>>, vector<8x128xbf16>,
    return
  }
  func.func @transform_0(%arg0: i32, %arg1: i32) -> (i32, i32) {
    %c0_i32 = arith.constant 0 : i32
    %c0_i32_0 = arith.constant 0 : i32
    return %arg0, %c0_i32 : i32, i32
  }
  func.func @transform_1(%arg0: i32, %arg1: i32) -> (i32, i32) {
    %c0_i32 = arith.constant 0 : i32
    %c0_i32_0 = arith.constant 0 : i32
    return %c0_i32, %arg1 : i32, i32
  }
  func.func @transform_2(%arg0: i32, %arg1: i32) -> (i32, i32) {
    %c0_i32 = arith.constant 0 : i32
    %c0_i32_0 = arith.constant 0 : i32
    return %c0_i32, %arg1 : i32, i32
  }
  func.func @transform_3(%arg0: i32, %arg1: i32) -> (i32, i32) {
    %c0_i32 = arith.constant 0 : i32
    return %arg0, %arg1 : i32, i32
  }
}

module attributes {stable_mosaic.version = 11 : i64} {
  func.func @_gemm_bias_res_kernel(%arg0: i32, %arg1: i32, %arg2: memref<8x2304xbf16, #tpu.memory_space<vmem>>, %arg3: memref<2304x128xbf16, #tpu.memory_space<vmem>>, %arg4: memref<1x128xf32, #tpu.memory_space<vmem>>, %arg5: memref<8x128xbf16, #tpu.memory_space<vmem>>, %arg6: memref<8x128xbf16, #tpu.memory_space<vmem>>) attributes {dimension_semantics = [#tpu.dimension_semantics<parallel>, #tpu.dimension_semantics<parallel>], iteration_bounds = array<i64: 1, 2>, scalar_prefetch = 0 : i64, scratch_operands = 0 : i64, tpu.core_type = #tpu.core_type<tc>, window_params = [{transform_indices = @transform_0, window_bounds = array<i64: 8, 2304>}, {transform_indices = @transform_1, window_bounds = array<i64: 2304, 128>}, {transform_indices = @transform_2, window_bounds = array<i64: 1, 128>}, {transform_indices = @transform_3, window_bounds = array<i64: 8, 128>}, {transform_indices = @transform_4, window_bounds = array<i64: 8, 128>}]} {
    %c0 = arith.constant 0 : index
    %c0_0 = arith.constant 0 : index
    %0 = vector.load %arg2[%c0, %c0_0] : memref<8x2304xbf16, #tpu.memory_space<vmem>>, vector<8x2304xbf16>
    %c0_1 = arith.constant 0 : index
    %c0_2 = arith.constant 0 : index
    %1 = vector.load %arg3[%c0_1, %c0_2] : memref<2304x128xbf16, #tpu.memory_space<vmem>>, vector<2304x128xbf16>
    %cst = arith.constant dense<0.000000e+00> : vector<8x128xf32>
    %2 = tpu.matmul %0, %1, %cst {dimension_numbers = #tpu.dot_dimension_numbers<[1], [0], [0], [1], [0, 0, 1, 1], [], []>} : vector<8x2304xbf16>, vector<2304x128xbf16>, vector<8x128xf32> -> vector<8x128xf32>
    %c0_3 = arith.constant 0 : index
    %c0_4 = arith.constant 0 : index
    %3 = vector.load %arg4[%c0_3, %c0_4] : memref<1x128xf32, #tpu.memory_space<vmem>>, vector<1x128xf32>
    %4 = vector.broadcast %3 : vector<1x128xf32> to vector<8x128xf32>
    %5 = arith.addf %2, %4 : vector<8x128xf32>
    %c0_5 = arith.constant 0 : index
    %c0_6 = arith.constant 0 : index
    %6 = vector.load %arg5[%c0_5, %c0_6] : memref<8x128xbf16, #tpu.memory_space<vmem>>, vector<8x128xbf16>
    %7 = arith.extf %6 : vector<8x128xbf16> to vector<8x128xf32>
    %8 = arith.addf %5, %7 : vector<8x128xf32>
    %cst_7 = arith.constant 0.000000e+00 : f32
    %9 = vector.broadcast %cst_7 : f32 to vector<8x128xf32>
    %10 = arith.maximumf %8, %9 : vector<8x128xf32>
    %11 = arith.truncf %10 : vector<8x128xf32> to vector<8x128xbf16>
    %c0_8 = arith.constant 0 : index
    %c0_9 = arith.constant 0 : index
    %12 = vector.load %arg6[%c0_8, %c0_9] : memref<8x128xbf16, #tpu.memory_space<vmem>>, vector<8x128xbf16>
    tpu.vector_store %arg6[%c0_8, %c0_9], %11 {strides = array<i32>} : memref<8x128xbf16, #tpu.memory_space<vmem>>, vector<8x128xbf16>,
    return
  }
  func.func @transform_0(%arg0: i32, %arg1: i32) -> (i32, i32) {
    %c0_i32 = arith.constant 0 : i32
    %c0_i32_0 = arith.constant 0 : i32
    return %arg0, %c0_i32 : i32, i32
  }
  func.func @transform_1(%arg0: i32, %arg1: i32) -> (i32, i32) {
    %c0_i32 = arith.constant 0 : i32
    %c0_i32_0 = arith.constant 0 : i32
    return %c0_i32, %arg1 : i32, i32
  }
  func.func @transform_2(%arg0: i32, %arg1: i32) -> (i32, i32) {
    %c0_i32 = arith.constant 0 : i32
    %c0_i32_0 = arith.constant 0 : i32
    return %c0_i32, %arg1 : i32, i32
  }
  func.func @transform_3(%arg0: i32, %arg1: i32) -> (i32, i32) {
    %c0_i32 = arith.constant 0 : i32
    return %arg0, %arg1 : i32, i32
  }
  func.func @transform_4(%arg0: i32, %arg1: i32) -> (i32, i32) {
    %c0_i32 = arith.constant 0 : i32
    return %arg0, %arg1 : i32, i32
  }
}

module attributes {stable_mosaic.version = 11 : i64} {
  func.func @_gemm_bias_kernel(%arg0: i32, %arg1: i32, %arg2: memref<8x2304xbf16, #tpu.memory_space<vmem>>, %arg3: memref<2304x128xbf16, #tpu.memory_space<vmem>>, %arg4: memref<1x128xf32, #tpu.memory_space<vmem>>, %arg5: memref<8x128xbf16, #tpu.memory_space<vmem>>) attributes {dimension_semantics = [#tpu.dimension_semantics<parallel>, #tpu.dimension_semantics<parallel>], iteration_bounds = array<i64: 1, 2>, scalar_prefetch = 0 : i64, scratch_operands = 0 : i64, tpu.core_type = #tpu.core_type<tc>, window_params = [{transform_indices = @transform_0, window_bounds = array<i64: 8, 2304>}, {transform_indices = @transform_1, window_bounds = array<i64: 2304, 128>}, {transform_indices = @transform_2, window_bounds = array<i64: 1, 128>}, {transform_indices = @transform_3, window_bounds = array<i64: 8, 128>}]} {
    %c0 = arith.constant 0 : index
    %c0_0 = arith.constant 0 : index
    %0 = vector.load %arg2[%c0, %c0_0] : memref<8x2304xbf16, #tpu.memory_space<vmem>>, vector<8x2304xbf16>
    %c0_1 = arith.constant 0 : index
    %c0_2 = arith.constant 0 : index
    %1 = vector.load %arg3[%c0_1, %c0_2] : memref<2304x128xbf16, #tpu.memory_space<vmem>>, vector<2304x128xbf16>
    %cst = arith.constant dense<0.000000e+00> : vector<8x128xf32>
    %2 = tpu.matmul %0, %1, %cst {dimension_numbers = #tpu.dot_dimension_numbers<[1], [0], [0], [1], [0, 0, 1, 1], [], []>} : vector<8x2304xbf16>, vector<2304x128xbf16>, vector<8x128xf32> -> vector<8x128xf32>
    %c0_3 = arith.constant 0 : index
    %c0_4 = arith.constant 0 : index
    %3 = vector.load %arg4[%c0_3, %c0_4] : memref<1x128xf32, #tpu.memory_space<vmem>>, vector<1x128xf32>
    %4 = vector.broadcast %3 : vector<1x128xf32> to vector<8x128xf32>
    %5 = arith.addf %2, %4 : vector<8x128xf32>
    %cst_5 = arith.constant 0.000000e+00 : f32
    %6 = vector.broadcast %cst_5 : f32 to vector<8x128xf32>
    %7 = arith.maximumf %5, %6 : vector<8x128xf32>
    %8 = arith.truncf %7 : vector<8x128xf32> to vector<8x128xbf16>
    %c0_6 = arith.constant 0 : index
    %c0_7 = arith.constant 0 : index
    %9 = vector.load %arg5[%c0_6, %c0_7] : memref<8x128xbf16, #tpu.memory_space<vmem>>, vector<8x128xbf16>
    tpu.vector_store %arg5[%c0_6, %c0_7], %8 {strides = array<i32>} : memref<8x128xbf16, #tpu.memory_space<vmem>>, vector<8x128xbf16>,
    return
  }
  func.func @transform_0(%arg0: i32, %arg1: i32) -> (i32, i32) {
    %c0_i32 = arith.constant 0 : i32
    %c0_i32_0 = arith.constant 0 : i32
    return %arg0, %c0_i32 : i32, i32
  }
  func.func @transform_1(%arg0: i32, %arg1: i32) -> (i32, i32) {
    %c0_i32 = arith.constant 0 : i32
    %c0_i32_0 = arith.constant 0 : i32
    return %c0_i32, %arg1 : i32, i32
  }
  func.func @transform_2(%arg0: i32, %arg1: i32) -> (i32, i32) {
    %c0_i32 = arith.constant 0 : i32
    %c0_i32_0 = arith.constant 0 : i32
    return %c0_i32, %arg1 : i32, i32
  }
  func.func @transform_3(%arg0: i32, %arg1: i32) -> (i32, i32) {
    %c0_i32 = arith.constant 0 : i32
    return %arg0, %arg1 : i32, i32
  }
}

module attributes {stable_mosaic.version = 11 : i64} {
  func.func @_gemm_bias_kernel(%arg0: i32, %arg1: i32, %arg2: memref<8x2304xbf16, #tpu.memory_space<vmem>>, %arg3: memref<2304x128xbf16, #tpu.memory_space<vmem>>, %arg4: memref<1x128xf32, #tpu.memory_space<vmem>>, %arg5: memref<8x128xbf16, #tpu.memory_space<vmem>>) attributes {dimension_semantics = [#tpu.dimension_semantics<parallel>, #tpu.dimension_semantics<parallel>], iteration_bounds = array<i64: 1, 4>, scalar_prefetch = 0 : i64, scratch_operands = 0 : i64, tpu.core_type = #tpu.core_type<tc>, window_params = [{transform_indices = @transform_0, window_bounds = array<i64: 8, 2304>}, {transform_indices = @transform_1, window_bounds = array<i64: 2304, 128>}, {transform_indices = @transform_2, window_bounds = array<i64: 1, 128>}, {transform_indices = @transform_3, window_bounds = array<i64: 8, 128>}]} {
    %c0 = arith.constant 0 : index
    %c0_0 = arith.constant 0 : index
    %0 = vector.load %arg2[%c0, %c0_0] : memref<8x2304xbf16, #tpu.memory_space<vmem>>, vector<8x2304xbf16>
    %c0_1 = arith.constant 0 : index
    %c0_2 = arith.constant 0 : index
    %1 = vector.load %arg3[%c0_1, %c0_2] : memref<2304x128xbf16, #tpu.memory_space<vmem>>, vector<2304x128xbf16>
    %cst = arith.constant dense<0.000000e+00> : vector<8x128xf32>
    %2 = tpu.matmul %0, %1, %cst {dimension_numbers = #tpu.dot_dimension_numbers<[1], [0], [0], [1], [0, 0, 1, 1], [], []>} : vector<8x2304xbf16>, vector<2304x128xbf16>, vector<8x128xf32> -> vector<8x128xf32>
    %c0_3 = arith.constant 0 : index
    %c0_4 = arith.constant 0 : index
    %3 = vector.load %arg4[%c0_3, %c0_4] : memref<1x128xf32, #tpu.memory_space<vmem>>, vector<1x128xf32>
    %4 = vector.broadcast %3 : vector<1x128xf32> to vector<8x128xf32>
    %5 = arith.addf %2, %4 : vector<8x128xf32>
    %cst_5 = arith.constant 0.000000e+00 : f32
    %6 = vector.broadcast %cst_5 : f32 to vector<8x128xf32>
    %7 = arith.maximumf %5, %6 : vector<8x128xf32>
    %8 = arith.truncf %7 : vector<8x128xf32> to vector<8x128xbf16>
    %c0_6 = arith.constant 0 : index
    %c0_7 = arith.constant 0 : index
    %9 = vector.load %arg5[%c0_6, %c0_7] : memref<8x128xbf16, #tpu.memory_space<vmem>>, vector<8x128xbf16>
    tpu.vector_store %arg5[%c0_6, %c0_7], %8 {strides = array<i32>} : memref<8x128xbf16, #tpu.memory_space<vmem>>, vector<8x128xbf16>,
    return
  }
  func.func @transform_0(%arg0: i32, %arg1: i32) -> (i32, i32) {
    %c0_i32 = arith.constant 0 : i32
    %c0_i32_0 = arith.constant 0 : i32
    return %arg0, %c0_i32 : i32, i32
  }
  func.func @transform_1(%arg0: i32, %arg1: i32) -> (i32, i32) {
    %c0_i32 = arith.constant 0 : i32
    %c0_i32_0 = arith.constant 0 : i32
    return %c0_i32, %arg1 : i32, i32
  }
  func.func @transform_2(%arg0: i32, %arg1: i32) -> (i32, i32) {
    %c0_i32 = arith.constant 0 : i32
    %c0_i32_0 = arith.constant 0 : i32
    return %c0_i32, %arg1 : i32, i32
  }
  func.func @transform_3(%arg0: i32, %arg1: i32) -> (i32, i32) {
    %c0_i32 = arith.constant 0 : i32
    return %arg0, %arg1 : i32, i32
  }
}

module attributes {stable_mosaic.version = 11 : i64} {
  func.func @_gemm_bias_kernel(%arg0: i32, %arg1: i32, %arg2: memref<8x256xbf16, #tpu.memory_space<vmem>>, %arg3: memref<256x128xbf16, #tpu.memory_space<vmem>>, %arg4: memref<1x128xf32, #tpu.memory_space<vmem>>, %arg5: memref<8x128xbf16, #tpu.memory_space<vmem>>) attributes {dimension_semantics = [#tpu.dimension_semantics<parallel>, #tpu.dimension_semantics<parallel>], iteration_bounds = array<i64: 1, 4>, scalar_prefetch = 0 : i64, scratch_operands = 0 : i64, tpu.core_type = #tpu.core_type<tc>, window_params = [{transform_indices = @transform_0, window_bounds = array<i64: 8, 256>}, {transform_indices = @transform_1, window_bounds = array<i64: 256, 128>}, {transform_indices = @transform_2, window_bounds = array<i64: 1, 128>}, {transform_indices = @transform_3, window_bounds = array<i64: 8, 128>}]} {
    %c0 = arith.constant 0 : index
    %c0_0 = arith.constant 0 : index
    %0 = vector.load %arg2[%c0, %c0_0] : memref<8x256xbf16, #tpu.memory_space<vmem>>, vector<8x256xbf16>
    %c0_1 = arith.constant 0 : index
    %c0_2 = arith.constant 0 : index
    %1 = vector.load %arg3[%c0_1, %c0_2] : memref<256x128xbf16, #tpu.memory_space<vmem>>, vector<256x128xbf16>
    %cst = arith.constant dense<0.000000e+00> : vector<8x128xf32>
    %2 = tpu.matmul %0, %1, %cst {dimension_numbers = #tpu.dot_dimension_numbers<[1], [0], [0], [1], [0, 0, 1, 1], [], []>} : vector<8x256xbf16>, vector<256x128xbf16>, vector<8x128xf32> -> vector<8x128xf32>
    %c0_3 = arith.constant 0 : index
    %c0_4 = arith.constant 0 : index
    %3 = vector.load %arg4[%c0_3, %c0_4] : memref<1x128xf32, #tpu.memory_space<vmem>>, vector<1x128xf32>
    %4 = vector.broadcast %3 : vector<1x128xf32> to vector<8x128xf32>
    %5 = arith.addf %2, %4 : vector<8x128xf32>
    %6 = arith.truncf %5 : vector<8x128xf32> to vector<8x128xbf16>
    %c0_5 = arith.constant 0 : index
    %c0_6 = arith.constant 0 : index
    %7 = vector.load %arg5[%c0_5, %c0_6] : memref<8x128xbf16, #tpu.memory_space<vmem>>, vector<8x128xbf16>
    tpu.vector_store %arg5[%c0_5, %c0_6], %6 {strides = array<i32>} : memref<8x128xbf16, #tpu.memory_space<vmem>>, vector<8x128xbf16>,
    return
  }
  func.func @transform_0(%arg0: i32, %arg1: i32) -> (i32, i32) {
    %c0_i32 = arith.constant 0 : i32
    %c0_i32_0 = arith.constant 0 : i32
    return %arg0, %c0_i32 : i32, i32
  }
  func.func @transform_1(%arg0: i32, %arg1: i32) -> (i32, i32) {
    %c0_i32 = arith.constant 0 : i32
    %c0_i32_0 = arith.constant 0 : i32
    return %c0_i32, %arg1 : i32, i32
  }
  func.func @transform_2(%arg0: i32, %arg1: i32) -> (i32, i32) {
    %c0_i32 = arith.constant 0 : i32
    %c0_i32_0 = arith.constant 0 : i32
    return %c0_i32, %arg1 : i32, i32
  }
  func.func @transform_3(%arg0: i32, %arg1: i32) -> (i32, i32) {
    %c0_i32 = arith.constant 0 : i32
    return %arg0, %arg1 : i32, i32
  }
}

module attributes {stable_mosaic.version = 11 : i64} {
  func.func @_gemm_bias_res_acc_kernel(%arg0: i32, %arg1: i32, %arg2: i32, %arg3: memref<8x512xbf16, #tpu.memory_space<vmem>>, %arg4: memref<512x128xbf16, #tpu.memory_space<vmem>>, %arg5: memref<1x128xf32, #tpu.memory_space<vmem>>, %arg6: memref<8x128xbf16, #tpu.memory_space<vmem>>, %arg7: memref<8x128xbf16, #tpu.memory_space<vmem>>, %arg8: memref<8x128xf32, #tpu.memory_space<vmem>>) attributes {dimension_semantics = [#tpu.dimension_semantics<parallel>, #tpu.dimension_semantics<parallel>, #tpu.dimension_semantics<arbitrary>], iteration_bounds = array<i64: 1, 4, 9>, scalar_prefetch = 0 : i64, scratch_operands = 1 : i64, tpu.core_type = #tpu.core_type<tc>, window_params = [{transform_indices = @transform_0, window_bounds = array<i64: 8, 512>}, {transform_indices = @transform_1, window_bounds = array<i64: 512, 128>}, {transform_indices = @transform_2, window_bounds = array<i64: 1, 128>}, {transform_indices = @transform_3, window_bounds = array<i64: 8, 128>}, {transform_indices = @transform_4, window_bounds = array<i64: 8, 128>}]} {
    %c0_i32 = arith.constant 0 : i32
    %0 = arith.cmpi eq, %arg2, %c0_i32 : i32
    %1 = arith.extui %0 : i1 to i32
    %c0_i32_0 = arith.constant 0 : i32
    %2 = arith.cmpi ne, %1, %c0_i32_0 : i32
    scf.if %2 {
      %cst_9 = arith.constant 0.000000e+00 : f32
      %12 = vector.broadcast %cst_9 : f32 to vector<8x128xf32>
      %c0_10 = arith.constant 0 : index
      %c0_11 = arith.constant 0 : index
      %13 = vector.load %arg8[%c0_10, %c0_11] : memref<8x128xf32, #tpu.memory_space<vmem>>, vector<8x128xf32>
      tpu.vector_store %arg8[%c0_10, %c0_11], %12 {strides = array<i32>} : memref<8x128xf32, #tpu.memory_space<vmem>>, vector<8x128xf32>,
    } else {
    }
    %c0 = arith.constant 0 : index
    %c0_1 = arith.constant 0 : index
    %3 = vector.load %arg8[%c0, %c0_1] : memref<8x128xf32, #tpu.memory_space<vmem>>, vector<8x128xf32>
    %c0_2 = arith.constant 0 : index
    %c0_3 = arith.constant 0 : index
    %4 = vector.load %arg3[%c0_2, %c0_3] : memref<8x512xbf16, #tpu.memory_space<vmem>>, vector<8x512xbf16>
    %c0_4 = arith.constant 0 : index
    %c0_5 = arith.constant 0 : index
    %5 = vector.load %arg4[%c0_4, %c0_5] : memref<512x128xbf16, #tpu.memory_space<vmem>>, vector<512x128xbf16>
    %cst = arith.constant dense<0.000000e+00> : vector<8x128xf32>
    %6 = tpu.matmul %4, %5, %cst {dimension_numbers = #tpu.dot_dimension_numbers<[1], [0], [0], [1], [0, 0, 1, 1], [], []>} : vector<8x512xbf16>, vector<512x128xbf16>, vector<8x128xf32> -> vector<8x128xf32>
    %7 = arith.addf %3, %6 : vector<8x128xf32>
    %c0_6 = arith.constant 0 : index
    %c0_7 = arith.constant 0 : index
    %8 = vector.load %arg8[%c0_6, %c0_7] : memref<8x128xf32, #tpu.memory_space<vmem>>, vector<8x128xf32>
    tpu.vector_store %arg8[%c0_6, %c0_7], %7 {strides = array<i32>} : memref<8x128xf32, #tpu.memory_space<vmem>>, vector<8x128xf32>,
    %c8_i32 = arith.constant 8 : i32
    %9 = arith.cmpi eq, %arg2, %c8_i32 : i32
    %10 = arith.extui %9 : i1 to i32
    %c0_i32_8 = arith.constant 0 : i32
    %11 = arith.cmpi ne, %10, %c0_i32_8 : i32
    scf.if %11 {
      %c0_9 = arith.constant 0 : index
      %c0_10 = arith.constant 0 : index
      %12 = vector.load %arg8[%c0_9, %c0_10] : memref<8x128xf32, #tpu.memory_space<vmem>>, vector<8x128xf32>
      %c0_11 = arith.constant 0 : index
      %c0_12 = arith.constant 0 : index
      %13 = vector.load %arg5[%c0_11, %c0_12] : memref<1x128xf32, #tpu.memory_space<vmem>>, vector<1x128xf32>
      %14 = vector.broadcast %13 : vector<1x128xf32> to vector<8x128xf32>
      %15 = arith.addf %12, %14 : vector<8x128xf32>
      %c0_13 = arith.constant 0 : index
      %c0_14 = arith.constant 0 : index
      %16 = vector.load %arg6[%c0_13, %c0_14] : memref<8x128xbf16, #tpu.memory_space<vmem>>, vector<8x128xbf16>
      %17 = arith.extf %16 : vector<8x128xbf16> to vector<8x128xf32>
      %18 = arith.addf %15, %17 : vector<8x128xf32>
      %cst_15 = arith.constant 0.000000e+00 : f32
      %19 = vector.broadcast %cst_15 : f32 to vector<8x128xf32>
      %20 = arith.maximumf %18, %19 : vector<8x128xf32>
      %21 = arith.truncf %20 : vector<8x128xf32> to vector<8x128xbf16>
      %c0_16 = arith.constant 0 : index
      %c0_17 = arith.constant 0 : index
      %22 = vector.load %arg7[%c0_16, %c0_17] : memref<8x128xbf16, #tpu.memory_space<vmem>>, vector<8x128xbf16>
      tpu.vector_store %arg7[%c0_16, %c0_17], %21 {strides = array<i32>} : memref<8x128xbf16, #tpu.memory_space<vmem>>, vector<8x128xbf16>,
    } else {
    }
    return
  }
  func.func @transform_0(%arg0: i32, %arg1: i32, %arg2: i32) -> (i32, i32) {
    %c0_i32 = arith.constant 0 : i32
    return %arg0, %arg2 : i32, i32
  }
  func.func @transform_1(%arg0: i32, %arg1: i32, %arg2: i32) -> (i32, i32) {
    %c0_i32 = arith.constant 0 : i32
    return %arg2, %arg1 : i32, i32
  }
  func.func @transform_2(%arg0: i32, %arg1: i32, %arg2: i32) -> (i32, i32) {
    %c0_i32 = arith.constant 0 : i32
    %c0_i32_0 = arith.constant 0 : i32
    return %c0_i32, %arg1 : i32, i32
  }
  func.func @transform_3(%arg0: i32, %arg1: i32, %arg2: i32) -> (i32, i32) {
    %c0_i32 = arith.constant 0 : i32
    return %arg0, %arg1 : i32, i32
  }
  func.func @transform_4(%arg0: i32, %arg1: i32, %arg2: i32) -> (i32, i32) {
    %c0_i32 = arith.constant 0 : i32
    return %arg0, %arg1 : i32, i32
  }
}

module attributes {stable_mosaic.version = 11 : i64} {
  func.func @_gemm_bias_acc_kernel(%arg0: i32, %arg1: i32, %arg2: i32, %arg3: memref<8x512xbf16, #tpu.memory_space<vmem>>, %arg4: memref<512x128xbf16, #tpu.memory_space<vmem>>, %arg5: memref<1x128xf32, #tpu.memory_space<vmem>>, %arg6: memref<8x128xbf16, #tpu.memory_space<vmem>>, %arg7: memref<8x128xf32, #tpu.memory_space<vmem>>) attributes {dimension_semantics = [#tpu.dimension_semantics<parallel>, #tpu.dimension_semantics<parallel>, #tpu.dimension_semantics<arbitrary>], iteration_bounds = array<i64: 1, 4, 9>, scalar_prefetch = 0 : i64, scratch_operands = 1 : i64, tpu.core_type = #tpu.core_type<tc>, window_params = [{transform_indices = @transform_0, window_bounds = array<i64: 8, 512>}, {transform_indices = @transform_1, window_bounds = array<i64: 512, 128>}, {transform_indices = @transform_2, window_bounds = array<i64: 1, 128>}, {transform_indices = @transform_3, window_bounds = array<i64: 8, 128>}]} {
    %c0_i32 = arith.constant 0 : i32
    %0 = arith.cmpi eq, %arg2, %c0_i32 : i32
    %1 = arith.extui %0 : i1 to i32
    %c0_i32_0 = arith.constant 0 : i32
    %2 = arith.cmpi ne, %1, %c0_i32_0 : i32
    scf.if %2 {
      %cst_9 = arith.constant 0.000000e+00 : f32
      %12 = vector.broadcast %cst_9 : f32 to vector<8x128xf32>
      %c0_10 = arith.constant 0 : index
      %c0_11 = arith.constant 0 : index
      %13 = vector.load %arg7[%c0_10, %c0_11] : memref<8x128xf32, #tpu.memory_space<vmem>>, vector<8x128xf32>
      tpu.vector_store %arg7[%c0_10, %c0_11], %12 {strides = array<i32>} : memref<8x128xf32, #tpu.memory_space<vmem>>, vector<8x128xf32>,
    } else {
    }
    %c0 = arith.constant 0 : index
    %c0_1 = arith.constant 0 : index
    %3 = vector.load %arg7[%c0, %c0_1] : memref<8x128xf32, #tpu.memory_space<vmem>>, vector<8x128xf32>
    %c0_2 = arith.constant 0 : index
    %c0_3 = arith.constant 0 : index
    %4 = vector.load %arg3[%c0_2, %c0_3] : memref<8x512xbf16, #tpu.memory_space<vmem>>, vector<8x512xbf16>
    %c0_4 = arith.constant 0 : index
    %c0_5 = arith.constant 0 : index
    %5 = vector.load %arg4[%c0_4, %c0_5] : memref<512x128xbf16, #tpu.memory_space<vmem>>, vector<512x128xbf16>
    %cst = arith.constant dense<0.000000e+00> : vector<8x128xf32>
    %6 = tpu.matmul %4, %5, %cst {dimension_numbers = #tpu.dot_dimension_numbers<[1], [0], [0], [1], [0, 0, 1, 1], [], []>} : vector<8x512xbf16>, vector<512x128xbf16>, vector<8x128xf32> -> vector<8x128xf32>
    %7 = arith.addf %3, %6 : vector<8x128xf32>
    %c0_6 = arith.constant 0 : index
    %c0_7 = arith.constant 0 : index
    %8 = vector.load %arg7[%c0_6, %c0_7] : memref<8x128xf32, #tpu.memory_space<vmem>>, vector<8x128xf32>
    tpu.vector_store %arg7[%c0_6, %c0_7], %7 {strides = array<i32>} : memref<8x128xf32, #tpu.memory_space<vmem>>, vector<8x128xf32>,
    %c8_i32 = arith.constant 8 : i32
    %9 = arith.cmpi eq, %arg2, %c8_i32 : i32
    %10 = arith.extui %9 : i1 to i32
    %c0_i32_8 = arith.constant 0 : i32
    %11 = arith.cmpi ne, %10, %c0_i32_8 : i32
    scf.if %11 {
      %c0_9 = arith.constant 0 : index
      %c0_10 = arith.constant 0 : index
      %12 = vector.load %arg7[%c0_9, %c0_10] : memref<8x128xf32, #tpu.memory_space<vmem>>, vector<8x128xf32>
      %c0_11 = arith.constant 0 : index
      %c0_12 = arith.constant 0 : index
      %13 = vector.load %arg5[%c0_11, %c0_12] : memref<1x128xf32, #tpu.memory_space<vmem>>, vector<1x128xf32>
      %14 = vector.broadcast %13 : vector<1x128xf32> to vector<8x128xf32>
      %15 = arith.addf %12, %14 : vector<8x128xf32>
      %cst_13 = arith.constant 0.000000e+00 : f32
      %16 = vector.broadcast %cst_13 : f32 to vector<8x128xf32>
      %17 = arith.maximumf %15, %16 : vector<8x128xf32>
      %18 = arith.truncf %17 : vector<8x128xf32> to vector<8x128xbf16>
      %c0_14 = arith.constant 0 : index
      %c0_15 = arith.constant 0 : index
      %19 = vector.load %arg6[%c0_14, %c0_15] : memref<8x128xbf16, #tpu.memory_space<vmem>>, vector<8x128xbf16>
      tpu.vector_store %arg6[%c0_14, %c0_15], %18 {strides = array<i32>} : memref<8x128xbf16, #tpu.memory_space<vmem>>, vector<8x128xbf16>,
    } else {
    }
    return
  }
  func.func @transform_0(%arg0: i32, %arg1: i32, %arg2: i32) -> (i32, i32) {
    %c0_i32 = arith.constant 0 : i32
    return %arg0, %arg2 : i32, i32
  }
  func.func @transform_1(%arg0: i32, %arg1: i32, %arg2: i32) -> (i32, i32) {
    %c0_i32 = arith.constant 0 : i32
    return %arg2, %arg1 : i32, i32
  }
  func.func @transform_2(%arg0: i32, %arg1: i32, %arg2: i32) -> (i32, i32) {
    %c0_i32 = arith.constant 0 : i32
    %c0_i32_0 = arith.constant 0 : i32
    return %c0_i32, %arg1 : i32, i32
  }
  func.func @transform_3(%arg0: i32, %arg1: i32, %arg2: i32) -> (i32, i32) {
    %c0_i32 = arith.constant 0 : i32
    return %arg0, %arg1 : i32, i32
  }
}

module attributes {stable_mosaic.version = 11 : i64} {
  func.func @_gemm_bias_kernel(%arg0: i32, %arg1: i32, %arg2: memref<8x512xbf16, #tpu.memory_space<vmem>>, %arg3: memref<512x10xbf16, #tpu.memory_space<vmem>>, %arg4: memref<1x10xf32, #tpu.memory_space<vmem>>, %arg5: memref<8x10xf32, #tpu.memory_space<vmem>>) attributes {dimension_semantics = [#tpu.dimension_semantics<parallel>, #tpu.dimension_semantics<parallel>], iteration_bounds = array<i64: 1, 1>, scalar_prefetch = 0 : i64, scratch_operands = 0 : i64, tpu.core_type = #tpu.core_type<tc>, window_params = [{transform_indices = @transform_0, window_bounds = array<i64: 8, 512>}, {transform_indices = @transform_1, window_bounds = array<i64: 512, 10>}, {transform_indices = @transform_2, window_bounds = array<i64: 1, 10>}, {transform_indices = @transform_3, window_bounds = array<i64: 8, 10>}]} {
    %c0 = arith.constant 0 : index
    %c0_0 = arith.constant 0 : index
    %0 = vector.load %arg2[%c0, %c0_0] : memref<8x512xbf16, #tpu.memory_space<vmem>>, vector<8x512xbf16>
    %c0_1 = arith.constant 0 : index
    %c0_2 = arith.constant 0 : index
    %1 = vector.load %arg3[%c0_1, %c0_2] : memref<512x10xbf16, #tpu.memory_space<vmem>>, vector<512x10xbf16>
    %cst = arith.constant dense<0.000000e+00> : vector<8x10xf32>
    %2 = tpu.matmul %0, %1, %cst {dimension_numbers = #tpu.dot_dimension_numbers<[1], [0], [0], [1], [0, 0, 1, 1], [], []>} : vector<8x512xbf16>, vector<512x10xbf16>, vector<8x10xf32> -> vector<8x10xf32>
    %c0_3 = arith.constant 0 : index
    %c0_4 = arith.constant 0 : index
    %3 = vector.load %arg4[%c0_3, %c0_4] : memref<1x10xf32, #tpu.memory_space<vmem>>, vector<1x10xf32>
    %4 = vector.broadcast %3 : vector<1x10xf32> to vector<8x10xf32>
    %5 = arith.addf %2, %4 : vector<8x10xf32>
    %c0_5 = arith.constant 0 : index
    %c0_6 = arith.constant 0 : index
    %6 = vector.load %arg5[%c0_5, %c0_6] : memref<8x10xf32, #tpu.memory_space<vmem>>, vector<8x10xf32>
    tpu.vector_store %arg5[%c0_5, %c0_6], %5 {strides = array<i32>} : memref<8x10xf32, #tpu.memory_space<vmem>>, vector<8x10xf32>,
    return
  }
  func.func @transform_0(%arg0: i32, %arg1: i32) -> (i32, i32) {
    %c0_i32 = arith.constant 0 : i32
    %c0_i32_0 = arith.constant 0 : i32
    return %arg0, %c0_i32 : i32, i32
  }
  func.func @transform_1(%arg0: i32, %arg1: i32) -> (i32, i32) {
    %c0_i32 = arith.constant 0 : i32
    %c0_i32_0 = arith.constant 0 : i32
    return %c0_i32, %arg1 : i32, i32
  }
  func.func @transform_2(%arg0: i32, %arg1: i32) -> (i32, i32) {
    %c0_i32 = arith.constant 0 : i32
    %c0_i32_0 = arith.constant 0 : i32
    return %c0_i32, %arg1 : i32, i32
  }
  func.func @transform_3(%arg0: i32, %arg1: i32) -> (i32, i32) {
    %c0_i32 = arith.constant 0 : i32
    return %arg0, %arg1 : i32, i32
  }
}

</mosaic_0001>

<bundles_post_ra>
// kernel: _lambda_.22
= control target key start
LH: loop header
LB: loop body
LE: loop exit
PB: predicated region body
PF: predicated region fallthrough
CT: control target
= control target key end

     0   :  { %8 = vsyncpa [#allocation3], 0  ;;  %s562_s0 = inlined_call_operand.vmem [shape: f32[40,64], index: 0, kind: input, shape index: {}]   ;;  %s563_s1 = inlined_call_operand.hbm [shape: f32[64,256], index: 1, kind: input, shape index: {}]   ;;  %s564_s2 = inlined_call_operand.hbm [shape: f32[128,16], index: 2, kind: input, shape index: {}]   ;;  %s565_s3 = inlined_call_operand.vmem [shape: f32[40,16], index: 3, kind: output, shape index: {}]  }
   0x1   :  { %9 = vsyncpa [#allocation5], 0  ;;  %s457_s12 = smov [#allocation2]  }
   0x2   :  { %s17_s13 = sshll.u32 %s457_s12, 4  ;;  %s18_s13 = int_to_ptr.vmem [resolvable:$true] %s17_s13 }
   0x3   :  { %s421_s14 = scalar_lea.vmem %s18_s13, 2048  ;;  %p426_p1 = scmp.lt.s32.totalorder %s18_s13, %s18_s13 }
   0x4   :  { %p422_p0 = scmp.ne.s32.totalorder %s18_s13, %s421_s14  ;;  %p427_p2 = scmp.lt.s32.totalorder %s421_s14, %s421_s14 }
   0x6   :  { %p428_p3 = por %p427_p2, %p426_p1 }
   0x8   :  { %p429_p4 = pnand %p428_p3, %p422_p0 }
   0xa   :  { %432 = shalt.err (!%p429_p4)
}
   0xb   :  { %s458_s15 = smov 256   ;;  %s459_s16 = smov 16  }
   0xc   :  { %23 = dma.hbm_to_vmem [thread:$0]  %s563_s1, 2048, %s18_s13, [#allocation3], %s458_s15, %s458_s15, %s459_s16  }
   0xd   :  { %s460_s19 = smov [#allocation4]  }
   0xe   :  { %s29_s20 = sshll.u32 %s460_s19, 4  ;;  %s30_s20 = int_to_ptr.vmem [resolvable:$true] %s29_s20 }
   0xf   :  { %s441_s21 = scalar_lea.vmem %s30_s20, 2048  ;;  %p446_p6 = scmp.lt.s32.totalorder %s30_s20, %s30_s20 }
  0x10   :  { %p442_p5 = scmp.ne.s32.totalorder %s30_s20, %s441_s21  ;;  %p447_p7 = scmp.lt.s32.totalorder %s441_s21, %s441_s21 }
  0x12   :  { %p448_p8 = por %p447_p7, %p446_p6 }
  0x14   :  { %p449_p9 = pnand %p448_p8, %p442_p5 }
  0x16   :  { %452 = shalt.err (!%p449_p9)
}
  0x17   :  { %s461_s22 = smov 128   ;;  %s462_s23 = smov 8  }
  0x18   :  { %35 = dma.hbm_to_vmem [thread:$0]  %s564_s2, 2048, %s30_s20, [#allocation5], %s461_s22, %s461_s22, %s462_s23  }
  0x19   :  { %453 = dma.done.wait [#allocation3], 2048  }
  0x1a   :  { %454 = vsyncadd [#allocation3], 4294965248 }
  0x1b   :  { %455 = dma.done.wait [#allocation5], 2048  }
  0x1c   :  { %456 = vsyncadd [#allocation5], 4294965248  ;;  %v463_v0 = vmov 0.0   ;;  %v62_v1 = vld [vmem:[#allocation2 + $0x78] sm:$0xff]  ;;  %v61_v2 = vld [vmem:[#allocation2 + $0x70] sm:$0xff]  ;;  %vm63_vm0 = vcmask 523264  }
  0x1d   :  { %143 = vmatprep.mubr.f32.mxu0 %v463_v0  ;;  %348 = vmatprep.subr.mxu1 %v463_v0  ;;  %v60_v3 = vld [vmem:[#allocation2 + $0x68] sm:$0xff]  ;;  %v59_v4 = vld [vmem:[#allocation2 + $0x60] sm:$0xff]  ;;  %v58_v5 = vld [vmem:[#allocation2 + $0x58] sm:$0xff]  ;;  %vm464_vm1 = vmmov 0   ;;  %vm310_vm2 = vcmask 130048  }
  0x1e   :  { %95 = vmatprep.subr.mxu0 %v62_v1  ;;  %v57_v6 = vld [vmem:[#allocation2 + $0x50] sm:$0xff]  ;;  %v56_v7 = vld [vmem:[#allocation2 + $0x48] sm:$0xff]  ;;  %v55_v8 = vld [vmem:[#allocation2 + $0x40] sm:$0xff]  ;;  %380 = vmatprep.mubr.msk.f32.mxu1 %vm464_vm1, %v463_v0 }
  0x1f   :  { %96 = vmatpush1.msra.mxu0 %v61_v2  ;;  %v54_v9 = vld [vmem:[#allocation2 + $0x38] sm:$0xff]  ;;  %v53_v10 = vld [vmem:[#allocation2 + $0x30] sm:$0xff]  ;;  %v52_v13 = vld [vmem:[#allocation2 + $0x28] sm:$0xff] }
  0x20   :  { %97 = vmatprep.subr.mxu0 %v60_v3  ;;  %v204_v11 = vld [vmem:[#allocation4 + $0x78] sm:$0xff]  ;;  %v203_v12 = vld [vmem:[#allocation4 + $0x70] sm:$0xff]  ;;  %v51_v14 = vld [vmem:[#allocation2 + $0x20] sm:$0xff] }
  0x21   :  { %98 = vmatpush1.msra.mxu0 %v59_v4  ;;  %349 = vmatpush3.msra.mxu1 %v204_v11  ;;  %v202_v15 = vld [vmem:[#allocation4 + $0x68] sm:$0xff]  ;;  %v50_v16 = vld [vmem:[#allocation2 + $0x18] sm:$0xff]  ;;  %v49_v17 = vld [vmem:[#allocation2 + $0x10] sm:$0xff] }
  0x22   :  { %99 = vmatprep.subr.mxu0 %v58_v5  ;;  %350 = vmatprep.subr.mxu1 %v463_v0  ;;  %v201_v18 = vld [vmem:[#allocation4 + $0x60] sm:$0xff]  ;;  %v48_v19 = vld [vmem:[#allocation2 + $0x8] sm:$0xff]  ;;  %v200_v21 = vld [vmem:[#allocation4 + $0x58] sm:$0xff] }
  0x23   :  { %100 = vmatpush1.msra.mxu0 %v57_v6  ;;  %351 = vmatpush3.msra.mxu1 %v203_v12  ;;  %v47_v20 = vld [vmem:[#allocation2] sm:$0xff]  ;;  %v199_v23 = vld [vmem:[#allocation4 + $0x50] sm:$0xff]  ;;  %v198_v24 = vld [vmem:[#allocation4 + $0x48] sm:$0xff] }
  0x24   :  { %101 = vmatprep.subr.mxu0 %v56_v7  ;;  %352 = vmatprep.subr.mxu1 %v463_v0  ;;  %v42_v22 = vld [vmem:[%s562_s0] sm:$0xff]  ;;  %v43_v25 = vld [vmem:[%s562_s0 + $0x8] sm:$0xff]  ;;  %v196_v27 = vld [vmem:[#allocation4 + $0x38] sm:$0xff] }
  0x25   :  { %102 = vmatpush1.msra.mxu0 %v55_v8  ;;  %353 = vmatpush3.msra.mxu1 %v202_v15  ;;  %v197_v26 = vld [vmem:[#allocation4 + $0x40] sm:$0xff]  ;;  %v44_v28 = vld [vmem:[%s562_s0 + $0x10] sm:$0xff]  ;;  %v194_v30 = vld [vmem:[#allocation4 + $0x28] sm:$0xff] }
  0x26   :  { %103 = vmatprep.subr.mxu0 %v54_v9  ;;  %354 = vmatprep.subr.mxu1 %v463_v0  ;;  %v195_v29 = vld [vmem:[#allocation4 + $0x30] sm:$0xff]  ;;  %v45_v31 = vld [vmem:[%s562_s0 + $0x18] sm:$0xff]  ;;  %v193_v32 = vld [vmem:[#allocation4 + $0x20] sm:$0xff] }
  0x27   :  { %104 = vmatpush1.msra.mxu0 %v53_v10  ;;  %355 = vmatpush3.msra.mxu1 %v201_v18  ;;  %v46_v33 = vld [vmem:[%s562_s0 + $0x20] sm:$0xff]  ;;  %v192_v34 = vld [vmem:[#allocation4 + $0x18] sm:$0xff]  ;;  %v191_v35 = vld [vmem:[#allocation4 + $0x10] sm:$0xff] }
  0x28   :  { %105 = vmatprep.subr.mxu0 %v52_v13  ;;  %356 = vmatprep.subr.mxu1 %v463_v0  ;;  %v190_v36 = vld [vmem:[#allocation4 + $0x8] sm:$0xff]  ;;  %v189_v37 = vld [vmem:[#allocation4] sm:$0xff] }
  0x29   :  { %106 = vmatpush1.msra.mxu0 %v51_v14  ;;  %357 = vmatpush3.msra.mxu1 %v200_v21 }
  0x2a   :  { %107 = vmatprep.subr.mxu0 %v50_v16  ;;  %358 = vmatprep.subr.mxu1 %v463_v0 }
  0x2b   :  { %108 = vmatpush1.msra.mxu0 %v49_v17  ;;  %359 = vmatpush3.msra.mxu1 %v199_v23 }
  0x2c   :  { %109 = vmatprep.subr.mxu0 %v48_v19  ;;  %360 = vmatprep.subr.mxu1 %v463_v0 }
  0x2d   :  { %110 = vmatpush1.msra.mxu0 %v47_v20  ;;  %361 = vmatpush3.msra.mxu1 %v198_v24 }
  0x2e   :  { %322 = vmatmul.mubr.msk.f32.vlgmr.msra.gmra.mxu0 %vm63_vm0, %v42_v22  ;;  %362 = vmatprep.subr.mxu1 %v463_v0 }
  0x2f   :  { %149 = vmatprep.mubr.f32.mxu0 %v463_v0  ;;  %363 = vmatpush3.msra.mxu1 %v197_v26 }
  0x30   :  { %364 = vmatprep.subr.mxu1 %v463_v0 }
  0x31   :  { %365 = vmatpush3.msra.mxu1 %v196_v27 }
  0x32   :  { %323 = vmatmul.mubr.msk.f32.gmra.mxu0 %vm63_vm0, %v43_v25  ;;  %366 = vmatprep.subr.mxu1 %v463_v0 }
  0x33   :  { %155 = vmatprep.mubr.f32.mxu0 %v463_v0  ;;  %367 = vmatpush3.msra.mxu1 %v195_v29 }
  0x34   :  { %368 = vmatprep.subr.mxu1 %v463_v0 }
  0x35   :  { %369 = vmatpush3.msra.mxu1 %v194_v30 }
  0x36   :  { %324 = vmatmul.mubr.msk.f32.gmra.mxu0 %vm63_vm0, %v44_v28  ;;  %370 = vmatprep.subr.mxu1 %v463_v0 }
  0x37   :  { %161 = vmatprep.mubr.f32.mxu0 %v463_v0  ;;  %371 = vmatpush3.msra.mxu1 %v193_v32 }
  0x38   :  { %372 = vmatprep.subr.mxu1 %v463_v0 }
  0x39   :  { %373 = vmatpush3.msra.mxu1 %v192_v34 }
  0x3a   :  { %325 = vmatmul.mubr.msk.f32.gmra.mxu0 %vm63_vm0, %v45_v31  ;;  %374 = vmatprep.subr.mxu1 %v463_v0 }
  0x3b   :  { %167 = vmatprep.mubr.f32.mxu0 %v463_v0  ;;  %375 = vmatpush3.msra.mxu1 %v191_v35 }
  0x3c   :  { %376 = vmatprep.subr.mxu1 %v463_v0 }
  0x3d   :  { %377 = vmatpush3.msra.mxu1 %v190_v36 }
  0x3e   :  { %326 = vmatmul.mubr.msk.f32.gmra.mxu0 %vm63_vm0, %v46_v33  ;;  %378 = vmatprep.subr.mxu1 %v463_v0 }
  0x3f   :  { %379 = vmatpush3.msra.mxu1 %v189_v37 }
  0xee   :  { %v145_v38 = vpop.f32.mrf.mxu0 }
  0xef   :  { %v174_v40 = vmul.f32 %v145_v38, %v145_v38 }
  0xf0   :  { %v147_v39 = vpop.f32.mrf.mxu0 }
  0xf1   :  { %v179_v41 = vmul.f32 %v147_v39, %v147_v39 }
  0xf2   :  { %v151_v42 = vpop.f32.mrf.mxu0 }
  0xf3   :  { %v184_v43 = vadd.f32 %v179_v41, %v174_v40  ;;  %v175_v45 = vmul.f32 %v151_v42, %v151_v42 }
  0xf4   :  { %v153_v44 = vpop.f32.mrf.mxu0 }
  0xf5   :  { %v180_v46 = vmul.f32 %v153_v44, %v153_v44  ;;  %381 = vmatmul.mubr.f32.vlgmr.msra.gmra.mxu1 %v184_v43 }
  0xf6   :  { %v157_v47 = vpop.f32.mrf.mxu0  ;;  %383 = vmatprep.mubr.msk.f32.mxu1 %vm464_vm1, %v463_v0 }
  0xf7   :  { %v185_v48 = vadd.f32 %v180_v46, %v175_v45  ;;  %v176_v50 = vmul.f32 %v157_v47, %v157_v47 }
  0xf8   :  { %v159_v49 = vpop.f32.mrf.mxu0 }
  0xf9   :  { %v181_v51 = vmul.f32 %v159_v49, %v159_v49  ;;  %384 = vmatmul.mubr.f32.gmra.mxu1 %v185_v48 }
  0xfa   :  { %v163_v52 = vpop.f32.mrf.mxu0  ;;  %386 = vmatprep.mubr.msk.f32.mxu1 %vm464_vm1, %v463_v0 }
  0xfb   :  { %v186_v53 = vadd.f32 %v181_v51, %v176_v50  ;;  %v177_v55 = vmul.f32 %v163_v52, %v163_v52 }
  0xfc   :  { %v165_v54 = vpop.f32.mrf.mxu0 }
  0xfd   :  { %v182_v56 = vmul.f32 %v165_v54, %v165_v54  ;;  %387 = vmatmul.mubr.f32.gmra.mxu1 %v186_v53 }
  0xfe   :  { %v169_v57 = vpop.f32.mrf.mxu0  ;;  %389 = vmatprep.mubr.msk.f32.mxu1 %vm464_vm1, %v463_v0 }
  0xff   :  { %v187_v58 = vadd.f32 %v182_v56, %v177_v55  ;;  %v178_v60 = vmul.f32 %v169_v57, %v169_v57 }
 0x100   :  { %v171_v59 = vpop.f32.mrf.mxu0 }
 0x101   :  { %v183_v61 = vmul.f32 %v171_v59, %v171_v59  ;;  %390 = vmatmul.mubr.f32.gmra.mxu1 %v187_v58 }
 0x102   :  { %392 = vmatprep.mubr.msk.f32.mxu1 %vm464_vm1, %v463_v0 }
 0x103   :  { %v188_v62 = vadd.f32 %v183_v61, %v178_v60 }
 0x105   :  { %393 = vmatmul.mubr.f32.gmra.mxu1 %v188_v62 }
 0x1b5   :  { %v271_v63 = vpop.f32.mrf.mxu1 }
 0x1b6   :  { %v272_v1 = vadd.f32 1e-06, %v271_v63 }
 0x1b7   :  { %v382_v2 = vpop.f32.mrf.mxu1 }
 0x1b8   :  { %403 = vlog2.f32 %v272_v1 }
 0x1b9   :  { %v276_v3 = vpop.f32.mrf.mxu1 }
 0x1ba   :  { %v277_v4 = vadd.f32 1e-06, %v276_v3 }
 0x1bb   :  { %v385_v5 = vpop.f32.mrf.mxu1 }
 0x1bc   :  { %405 = vlog2.f32 %v277_v4 }
 0x1bd   :  { %v281_v6 = vpop.f32.mrf.mxu1 }
 0x1be   :  { %v282_v7 = vadd.f32 1e-06, %v281_v6 }
 0x1bf   :  { %v388_v8 = vpop.f32.mrf.mxu1 }
 0x1c0   :  { %407 = vlog2.f32 %v282_v7 }
 0x1c1   :  { %v286_v9 = vpop.f32.mrf.mxu1 }
 0x1c2   :  { %v287_v10 = vadd.f32 1e-06, %v286_v9 }
 0x1c3   :  { %v391_v11 = vpop.f32.mrf.mxu1 }
 0x1c4   :  { %409 = vlog2.f32 %v287_v10 }
 0x1c5   :  { %v404_v12 = vpop.eup %403  ;;  %v291_v0 = vpop.f32.mrf.mxu1 }
 0x1c6   :  { %v296_v13 = vmul.f32 0.6931472, %v404_v12  ;;  %v292_v14 = vadd.f32 1e-06, %v291_v0 }
 0x1c7   :  { %v394_v15 = vpop.f32.mrf.mxu1 }
 0x1c8   :  { %v305_v16 = vmul.f32 0.4342945, %v296_v13  ;;  %411 = vlog2.f32 %v292_v14 }
 0x1c9   :  { %v406_v17 = vpop.eup %405 }
 0x1ca   :  { %311 = vst.msk [vmem:[%s565_s3] sm:$0xff] %vm310_vm2, %v305_v16  ;;  %v298_v18 = vmul.f32 0.6931472, %v406_v17 }
 0x1cc   :  { %v306_v19 = vmul.f32 0.4342945, %v298_v18 }
 0x1cd   :  { %v408_v20 = vpop.eup %407 }
 0x1ce   :  { %312 = vst.msk [vmem:[%s565_s3 + $0x8] sm:$0xff] %vm310_vm2, %v306_v19  ;;  %v300_v21 = vmul.f32 0.6931472, %v408_v20 }
 0x1d0   :  { %v307_v22 = vmul.f32 0.4342945, %v300_v21 }
 0x1d1   :  { %v410_v23 = vpop.eup %409 }
 0x1d2   :  { %313 = vst.msk [vmem:[%s565_s3 + $0x10] sm:$0xff] %vm310_vm2, %v307_v22  ;;  %v302_v24 = vmul.f32 0.6931472, %v410_v23 }
 0x1d4   :  { %v308_v25 = vmul.f32 0.4342945, %v302_v24 }
 0x1d5   :  { %v412_v26 = vpop.eup %411 }
 0x1d6   :  { %314 = vst.msk [vmem:[%s565_s3 + $0x18] sm:$0xff] %vm310_vm2, %v308_v25  ;;  %v304_v27 = vmul.f32 0.6931472, %v412_v26 }
 0x1d8   :  { %v309_v28 = vmul.f32 0.4342945, %v304_v27 }
 0x1da   :  { %315 = vst.msk [vmem:[%s565_s3 + $0x20] sm:$0xff] %vm310_vm2, %v309_v28 }
 0x1db   :  { %320 = vsyncpa [#allocation3], 1 }
 0x1dc   :  { %321 = vsyncpa [#allocation5], 1 }

// kernel: _lambda_.23
= control target key start
LH: loop header
LB: loop body
LE: loop exit
PB: predicated region body
PF: predicated region fallthrough
CT: control target
= control target key end

     0   :  { %vm423_vm0 = vcmask 519168   ;;  %s830_s1 = inlined_call_operand.vmem [shape: bf16[256,64], index: 1, kind: input, shape index: {}]   ;;  %s831_s0 = inlined_call_operand.vmem [shape: bf16[128,256], index: 0, kind: input, shape index: {}]   ;;  %s832_s2 = inlined_call_operand.vmem [shape: f32[1,64], index: 2, kind: input, shape index: {}]   ;;  %s833_s3 = inlined_call_operand.vmem [shape: bf16[128,64], index: 3, kind: output, shape index: {}]  }
   0x1   :  { %v589_v0 = vld [vmem:[%s830_s1 + $0x78] sm:$0xff]   ;;  %v591_v2 = vld [vmem:[%s830_s1 + $0x70] sm:$0xff]   ;;  %v593_v4 = vld [vmem:[%s830_s1 + $0x68] sm:$0xff]  }
   0x2   :  { %v590_v1 = vld [vmem:[%s830_s1 + $0x38] sm:$0xff]   ;;  %509 = vmatprep.subr.bf16.mxu0 %v589_v0  ;;  %573 = vmatprep.subr.bf16.mxu1 %v589_v0  ;;  %v592_v3 = vld [vmem:[%s830_s1 + $0x30] sm:$0xff]   ;;  %v594_v5 = vld [vmem:[%s830_s1 + $0x28] sm:$0xff]  }
   0x3   :  { %510 = vmatpush3.bf16.msra.mxu0 %v590_v1  ;;  %581 = vmatpush3.bf16.msra.mxu1 %v590_v1  ;;  %v595_v6 = vld [vmem:[%s830_s1 + $0x60] sm:$0xff]   ;;  %v597_v8 = vld [vmem:[%s830_s1 + $0x58] sm:$0xff]   ;;  %v599_v10 = vld [vmem:[%s830_s1 + $0x50] sm:$0xff]  }
   0x4   :  { %511 = vmatprep.subr.bf16.mxu0 %v591_v2  ;;  %574 = vmatprep.subr.bf16.mxu1 %v591_v2  ;;  %v596_v7 = vld [vmem:[%s830_s1 + $0x20] sm:$0xff]   ;;  %v598_v9 = vld [vmem:[%s830_s1 + $0x18] sm:$0xff]   ;;  %v600_v13 = vld [vmem:[%s830_s1 + $0x10] sm:$0xff]  }
   0x5   :  { %v607_v11 = vld [vmem:[%s831_s0 + $0x4] ss:$8 sps:$4 sm:$0xff]   ;;  %v605_v18 = vld [vmem:[%s831_s0] ss:$8 sps:$4 sm:$0xff]   ;;  %v611_v20 = vld [vmem:[%s831_s0 + $0x14] ss:$8 sps:$4 sm:$0xff]  }
   0x6   :  { %v610_v12 = vld [vmem:[%s831_s0 + $0x44] ss:$8 sps:$4 sm:$0xff]   ;;  %278 = vmatprep.mubr.bf16.mxu0 %v607_v11  ;;  %v608_v19 = vld [vmem:[%s831_s0 + $0x40] ss:$8 sps:$4 sm:$0xff]   ;;  %v613_v21 = vld [vmem:[%s831_s0 + $0x54] ss:$8 sps:$4 sm:$0xff]  }
   0x7   :  { %512 = vmatpush3.bf16.msra.mxu0 %v592_v3  ;;  %582 = vmatpush3.bf16.msra.mxu1 %v592_v3  ;;  %v601_v14 = vld [vmem:[%s830_s1 + $0x48] sm:$0xff]   ;;  %v603_v16 = vld [vmem:[%s830_s1 + $0x40] sm:$0xff]   ;;  %v615_v22 = vld [vmem:[%s831_s0 + $0x10] ss:$8 sps:$4 sm:$0xff]  }
   0x8   :  { %513 = vmatprep.subr.bf16.mxu0 %v593_v4  ;;  %575 = vmatprep.subr.bf16.mxu1 %v593_v4  ;;  %v602_v15 = vld [vmem:[%s830_s1 + $0x8] sm:$0xff]   ;;  %v604_v17 = vld [vmem:[%s830_s1] sm:$0xff]   ;;  %v616_v23 = vld [vmem:[%s831_s0 + $0x50] ss:$8 sps:$4 sm:$0xff]  }
   0x9   :  { %310 = vmatprep.mubr.bf16.mxu1 %v610_v12  ;;  %v617_v24 = vld [vmem:[%s831_s0 + $0x24] ss:$8 sps:$4 sm:$0xff]   ;;  %v621_v26 = vld [vmem:[%s831_s0 + $0x20] ss:$8 sps:$4 sm:$0xff]   ;;  %v623_v28 = vld [vmem:[%s831_s0 + $0x34] ss:$8 sps:$4 sm:$0xff]  }
   0xa   :  { %v619_v25 = vld [vmem:[%s831_s0 + $0x64] ss:$8 sps:$4 sm:$0xff]   ;;  %v622_v27 = vld [vmem:[%s831_s0 + $0x60] ss:$8 sps:$4 sm:$0xff]   ;;  %v625_v29 = vld [vmem:[%s831_s0 + $0x74] ss:$8 sps:$4 sm:$0xff]  }
   0xb   :  { %514 = vmatpush3.bf16.msra.mxu0 %v594_v5  ;;  %583 = vmatpush3.bf16.msra.mxu1 %v594_v5  ;;  %v627_v30 = vld [vmem:[%s831_s0 + $0x30] ss:$8 sps:$4 sm:$0xff]   ;;  %v748_v34 = vld [vmem:[%s832_s2] ss:$0 sm:$0xff] }
   0xc   :  { %515 = vmatprep.subr.bf16.mxu0 %v595_v6  ;;  %576 = vmatprep.subr.bf16.mxu1 %v595_v6  ;;  %v628_v31 = vld [vmem:[%s831_s0 + $0x70] ss:$8 sps:$4 sm:$0xff]  }
   0xf   :  { %516 = vmatpush3.bf16.msra.mxu0 %v596_v7  ;;  %584 = vmatpush3.bf16.msra.mxu1 %v596_v7 }
  0x10   :  { %517 = vmatprep.subr.bf16.mxu0 %v597_v8  ;;  %577 = vmatprep.subr.bf16.mxu1 %v597_v8 }
  0x13   :  { %518 = vmatpush3.bf16.msra.mxu0 %v598_v9  ;;  %585 = vmatpush3.bf16.msra.mxu1 %v598_v9 }
  0x14   :  { %519 = vmatprep.subr.bf16.mxu0 %v599_v10  ;;  %578 = vmatprep.subr.bf16.mxu1 %v599_v10 }
  0x17   :  { %520 = vmatpush3.bf16.msra.mxu0 %v600_v13  ;;  %586 = vmatpush3.bf16.msra.mxu1 %v600_v13 }
  0x18   :  { %521 = vmatprep.subr.bf16.mxu0 %v601_v14  ;;  %579 = vmatprep.subr.bf16.mxu1 %v601_v14 }
  0x1b   :  { %522 = vmatpush3.bf16.msra.mxu0 %v602_v15  ;;  %587 = vmatpush3.bf16.msra.mxu1 %v602_v15 }
  0x1c   :  { %523 = vmatprep.subr.bf16.mxu0 %v603_v16  ;;  %580 = vmatprep.subr.bf16.mxu1 %v603_v16 }
  0x1f   :  { %524 = vmatpush3.bf16.msra.mxu0 %v604_v17  ;;  %588 = vmatpush3.bf16.msra.mxu1 %v604_v17 }
  0x22   :  { %279 = vmatmul.mubr.bf16.vlgmr.msra.gmra.mxu0 %v605_v18  ;;  %311 = vmatmul.mubr.bf16.vlgmr.msra.gmra.mxu1 %v608_v19 }
  0x23   :  { %286 = vmatprep.mubr.bf16.mxu0 %v611_v20  ;;  %318 = vmatprep.mubr.bf16.mxu1 %v613_v21 }
  0x2a   :  { %287 = vmatmul.mubr.bf16.gmra.mxu0 %v615_v22  ;;  %319 = vmatmul.mubr.bf16.gmra.mxu1 %v616_v23 }
  0x2b   :  { %294 = vmatprep.mubr.bf16.mxu0 %v617_v24  ;;  %326 = vmatprep.mubr.bf16.mxu1 %v619_v25 }
  0x32   :  { %295 = vmatmul.mubr.bf16.gmra.mxu0 %v621_v26  ;;  %327 = vmatmul.mubr.bf16.gmra.mxu1 %v622_v27 }
  0x33   :  { %302 = vmatprep.mubr.bf16.mxu0 %v623_v28  ;;  %334 = vmatprep.mubr.bf16.mxu1 %v625_v29 }
  0x3a   :  { %303 = vmatmul.mubr.bf16.gmra.mxu0 %v627_v30  ;;  %335 = vmatmul.mubr.bf16.gmra.mxu1 %v628_v31 }
  0xe2   :  { %v525_v32 = vpop.f32.mrf.mxu0  ;;  %v549_v33 = vpop.f32.mrf.mxu1 }
  0xe4   :  { %v526_v35 = vpop.f32.mrf.mxu0  ;;  %v550_v36 = vpop.f32.mrf.mxu1 }
  0xe5   :  { %v527_v37 = vadd.f32 %v526_v35, %v525_v32  ;;  %v551_v38 = vadd.f32 %v550_v36, %v549_v33 }
  0xe6   :  { %v528_v39 = vpop.f32.mrf.mxu0  ;;  %v552_v40 = vpop.f32.mrf.mxu1 }
  0xe7   :  { %v281_v41 = vadd.f32 %v527_v37, %v748_v34  ;;  %v313_v42 = vadd.f32 %v551_v38, %v748_v34 }
  0xe8   :  { %v529_v43 = vpop.f32.mrf.mxu0  ;;  %v553_v44 = vpop.f32.mrf.mxu1 }
  0xe9   :  { %v343_v45 = vmax.f32 %v281_v41, 0.0  ;;  %v351_v46 = vmax.f32 %v313_v42, 0.0  ;;  %v530_v47 = vadd.f32 %v529_v43, %v528_v39  ;;  %v554_v48 = vadd.f32 %v553_v44, %v552_v40 }
  0xea   :  { %v531_v49 = vpop.f32.mrf.mxu0  ;;  %v555_v50 = vpop.f32.mrf.mxu1 }
  0xeb   :  { %v493_v51 = vpack.c.bf16 %v343_v45, %v343_v45  ;;  %v501_v52 = vpack.c.bf16 %v351_v46, %v351_v46  ;;  %v284_v53 = vadd.f32 %v530_v47, %v748_v34  ;;  %v316_v54 = vadd.f32 %v554_v48, %v748_v34 }
  0xec   :  { %v532_v55 = vpop.f32.mrf.mxu0  ;;  %v556_v56 = vpop.f32.mrf.mxu1 }
  0xed   :  { %424 = vst.msk [vmem:[%s833_s3] sm:$0xf] %vm423_vm0, %v493_v51  ;;  %432 = vst.msk [vmem:[%s833_s3 + $0x20] sm:$0xf] %vm423_vm0, %v501_v52  ;;  %v344_v57 = vmax.f32 %v284_v53, 0.0  ;;  %v352_v58 = vmax.f32 %v316_v54, 0.0  ;;  %v533_v59 = vadd.f32 %v532_v55, %v531_v49  ;;  %v557_v60 = vadd.f32 %v556_v56, %v555_v50 }
  0xee   :  { %v534_v61 = vpop.f32.mrf.mxu0  ;;  %v558_v62 = vpop.f32.mrf.mxu1 }
  0xef   :  { %v494_v63 = vpack.c.bf16 %v344_v57, %v344_v57  ;;  %v502_v0 = vpack.c.bf16 %v352_v58, %v352_v58  ;;  %v289_v1 = vadd.f32 %v533_v59, %v748_v34  ;;  %v321_v2 = vadd.f32 %v557_v60, %v748_v34 }
  0xf0   :  { %v535_v3 = vpop.f32.mrf.mxu0  ;;  %v559_v4 = vpop.f32.mrf.mxu1 }
  0xf1   :  { %425 = vst.msk [vmem:[%s833_s3 + $0x4] sm:$0xf] %vm423_vm0, %v494_v63  ;;  %433 = vst.msk [vmem:[%s833_s3 + $0x24] sm:$0xf] %vm423_vm0, %v502_v0  ;;  %v345_v5 = vmax.f32 %v289_v1, 0.0  ;;  %v353_v6 = vmax.f32 %v321_v2, 0.0  ;;  %v536_v7 = vadd.f32 %v535_v3, %v534_v61  ;;  %v560_v8 = vadd.f32 %v559_v4, %v558_v62 }
  0xf2   :  { %v537_v9 = vpop.f32.mrf.mxu0  ;;  %v561_v10 = vpop.f32.mrf.mxu1 }
  0xf3   :  { %v495_v11 = vpack.c.bf16 %v345_v5, %v345_v5  ;;  %v503_v12 = vpack.c.bf16 %v353_v6, %v353_v6  ;;  %v292_v13 = vadd.f32 %v536_v7, %v748_v34  ;;  %v324_v14 = vadd.f32 %v560_v8, %v748_v34 }
  0xf4   :  { %v538_v15 = vpop.f32.mrf.mxu0  ;;  %v562_v16 = vpop.f32.mrf.mxu1 }
  0xf5   :  { %426 = vst.msk [vmem:[%s833_s3 + $0x8] sm:$0xf] %vm423_vm0, %v495_v11  ;;  %434 = vst.msk [vmem:[%s833_s3 + $0x28] sm:$0xf] %vm423_vm0, %v503_v12  ;;  %v346_v17 = vmax.f32 %v292_v13, 0.0  ;;  %v354_v18 = vmax.f32 %v324_v14, 0.0  ;;  %v539_v19 = vadd.f32 %v538_v15, %v537_v9  ;;  %v563_v20 = vadd.f32 %v562_v16, %v561_v10 }
  0xf6   :  { %v540_v21 = vpop.f32.mrf.mxu0  ;;  %v564_v22 = vpop.f32.mrf.mxu1 }
  0xf7   :  { %v496_v23 = vpack.c.bf16 %v346_v17, %v346_v17  ;;  %v504_v24 = vpack.c.bf16 %v354_v18, %v354_v18  ;;  %v297_v25 = vadd.f32 %v539_v19, %v748_v34  ;;  %v329_v26 = vadd.f32 %v563_v20, %v748_v34 }
  0xf8   :  { %v541_v27 = vpop.f32.mrf.mxu0  ;;  %v565_v28 = vpop.f32.mrf.mxu1 }
  0xf9   :  { %427 = vst.msk [vmem:[%s833_s3 + $0xc] sm:$0xf] %vm423_vm0, %v496_v23  ;;  %435 = vst.msk [vmem:[%s833_s3 + $0x2c] sm:$0xf] %vm423_vm0, %v504_v24  ;;  %v347_v29 = vmax.f32 %v297_v25, 0.0  ;;  %v355_v30 = vmax.f32 %v329_v26, 0.0  ;;  %v542_v31 = vadd.f32 %v541_v27, %v540_v21  ;;  %v566_v32 = vadd.f32 %v565_v28, %v564_v22 }
  0xfa   :  { %v543_v33 = vpop.f32.mrf.mxu0  ;;  %v567_v35 = vpop.f32.mrf.mxu1 }
  0xfb   :  { %v497_v36 = vpack.c.bf16 %v347_v29, %v347_v29  ;;  %v505_v37 = vpack.c.bf16 %v355_v30, %v355_v30  ;;  %v300_v38 = vadd.f32 %v542_v31, %v748_v34  ;;  %v332_v39 = vadd.f32 %v566_v32, %v748_v34 }
  0xfc   :  { %v544_v40 = vpop.f32.mrf.mxu0  ;;  %v568_v41 = vpop.f32.mrf.mxu1 }
  0xfd   :  { %428 = vst.msk [vmem:[%s833_s3 + $0x10] sm:$0xf] %vm423_vm0, %v497_v36  ;;  %436 = vst.msk [vmem:[%s833_s3 + $0x30] sm:$0xf] %vm423_vm0, %v505_v37  ;;  %v348_v42 = vmax.f32 %v300_v38, 0.0  ;;  %v356_v43 = vmax.f32 %v332_v39, 0.0  ;;  %v545_v44 = vadd.f32 %v544_v40, %v543_v33  ;;  %v569_v45 = vadd.f32 %v568_v41, %v567_v35 }
  0xfe   :  { %v546_v46 = vpop.f32.mrf.mxu0  ;;  %v570_v47 = vpop.f32.mrf.mxu1 }
  0xff   :  { %v498_v48 = vpack.c.bf16 %v348_v42, %v348_v42  ;;  %v506_v49 = vpack.c.bf16 %v356_v43, %v356_v43  ;;  %v305_v50 = vadd.f32 %v545_v44, %v748_v34  ;;  %v337_v51 = vadd.f32 %v569_v45, %v748_v34 }
 0x100   :  { %v547_v52 = vpop.f32.mrf.mxu0  ;;  %v571_v53 = vpop.f32.mrf.mxu1 }
 0x101   :  { %429 = vst.msk [vmem:[%s833_s3 + $0x14] sm:$0xf] %vm423_vm0, %v498_v48  ;;  %437 = vst.msk [vmem:[%s833_s3 + $0x34] sm:$0xf] %vm423_vm0, %v506_v49  ;;  %v349_v54 = vmax.f32 %v305_v50, 0.0  ;;  %v357_v55 = vmax.f32 %v337_v51, 0.0  ;;  %v548_v56 = vadd.f32 %v547_v52, %v546_v46  ;;  %v572_v57 = vadd.f32 %v571_v53, %v570_v47 }
 0x103   :  { %v499_v58 = vpack.c.bf16 %v349_v54, %v349_v54  ;;  %v507_v59 = vpack.c.bf16 %v357_v55, %v357_v55  ;;  %v308_v60 = vadd.f32 %v548_v56, %v748_v34  ;;  %v340_v61 = vadd.f32 %v572_v57, %v748_v34 }
 0x105   :  { %430 = vst.msk [vmem:[%s833_s3 + $0x18] sm:$0xf] %vm423_vm0, %v499_v58  ;;  %438 = vst.msk [vmem:[%s833_s3 + $0x38] sm:$0xf] %vm423_vm0, %v507_v59  ;;  %v350_v62 = vmax.f32 %v308_v60, 0.0  ;;  %v358_v63 = vmax.f32 %v340_v61, 0.0 }
 0x107   :  { %v500_v0 = vpack.c.bf16 %v350_v62, %v350_v62  ;;  %v508_v1 = vpack.c.bf16 %v358_v63, %v358_v63 }
 0x109   :  { %431 = vst.msk [vmem:[%s833_s3 + $0x1c] sm:$0xf] %vm423_vm0, %v500_v0  ;;  %439 = vst.msk [vmem:[%s833_s3 + $0x3c] sm:$0xf] %vm423_vm0, %v508_v1 }

// kernel: _lambda_.25
= control target key start
LH: loop header
LB: loop body
LE: loop exit
PB: predicated region body
PF: predicated region fallthrough
CT: control target
= control target key end

     0   :  { %vm588_vm0 = vcmask 519168   ;;  %s1001_s1 = inlined_call_operand.vmem [shape: bf16[640,64], index: 1, kind: input, shape index: {}]   ;;  %s1002_s0 = inlined_call_operand.vmem [shape: bf16[32,640], index: 0, kind: input, shape index: {}]   ;;  %s1003_s2 = inlined_call_operand.vmem [shape: f32[1,64], index: 2, kind: input, shape index: {}]   ;;  %s1004_s3 = inlined_call_operand.vmem [shape: bf16[32,64], index: 3, kind: input, shape index: {}]   ;;  %s1005_s4 = inlined_call_operand.vmem [shape: bf16[32,64], index: 4, kind: output, shape index: {}]  }
   0x1   :  { %v751_v0 = vld [vmem:[%s1001_s1 + $0x78] sm:$0xff]   ;;  %v755_v4 = vld [vmem:[%s1001_s1 + $0x70] sm:$0xff]   ;;  %v759_v8 = vld [vmem:[%s1001_s1 + $0x68] sm:$0xff]  }
   0x2   :  { %v752_v1 = vld [vmem:[%s1001_s1 + $0x38] sm:$0xff]   ;;  %665 = vmatprep.subr.bf16.mxu0 %v751_v0  ;;  %v756_v5 = vld [vmem:[%s1001_s1 + $0x30] sm:$0xff]   ;;  %v760_v9 = vld [vmem:[%s1001_s1 + $0x28] sm:$0xff]  }
   0x3   :  { %v753_v2 = vld [vmem:[%s1001_s1 + $0xf8] sm:$0xff]   ;;  %666 = vmatpush3.bf16.msra.mxu0 %v752_v1  ;;  %v757_v6 = vld [vmem:[%s1001_s1 + $0xf0] sm:$0xff]   ;;  %v761_v10 = vld [vmem:[%s1001_s1 + $0xe8] sm:$0xff]  }
   0x4   :  { %v754_v3 = vld [vmem:[%s1001_s1 + $0xb8] sm:$0xff]   ;;  %693 = vmatprep.subr.bf16.mxu1 %v753_v2  ;;  %667 = vmatprep.subr.bf16.mxu0 %v755_v4  ;;  %v758_v7 = vld [vmem:[%s1001_s1 + $0xb0] sm:$0xff]   ;;  %v762_v11 = vld [vmem:[%s1001_s1 + $0xa8] sm:$0xff]  }
   0x5   :  { %694 = vmatpush3.bf16.msra.mxu1 %v754_v3  ;;  %v763_v12 = vld [vmem:[%s1001_s1 + $0x60] sm:$0xff]   ;;  %v767_v16 = vld [vmem:[%s1001_s1 + $0x58] sm:$0xff]   ;;  %v771_v20 = vld [vmem:[%s1001_s1 + $0x50] sm:$0xff]  }
   0x6   :  { %695 = vmatprep.subr.bf16.mxu1 %v757_v6  ;;  %v764_v13 = vld [vmem:[%s1001_s1 + $0x20] sm:$0xff]   ;;  %v768_v17 = vld [vmem:[%s1001_s1 + $0x18] sm:$0xff]   ;;  %v772_v21 = vld [vmem:[%s1001_s1 + $0x10] sm:$0xff]  }
   0x7   :  { %668 = vmatpush3.bf16.msra.mxu0 %v756_v5  ;;  %v765_v14 = vld [vmem:[%s1001_s1 + $0xe0] sm:$0xff]   ;;  %v769_v18 = vld [vmem:[%s1001_s1 + $0xd8] sm:$0xff]   ;;  %v773_v22 = vld [vmem:[%s1001_s1 + $0xd0] sm:$0xff]  }
   0x8   :  { %669 = vmatprep.subr.bf16.mxu0 %v759_v8  ;;  %v766_v15 = vld [vmem:[%s1001_s1 + $0xa0] sm:$0xff]   ;;  %v770_v19 = vld [vmem:[%s1001_s1 + $0x98] sm:$0xff]   ;;  %v774_v23 = vld [vmem:[%s1001_s1 + $0x90] sm:$0xff]  }
   0x9   :  { %696 = vmatpush3.bf16.msra.mxu1 %v758_v7  ;;  %v775_v24 = vld [vmem:[%s1001_s1 + $0x48] sm:$0xff]   ;;  %v779_v28 = vld [vmem:[%s1001_s1 + $0x40] sm:$0xff]   ;;  %v786_v34 = vld [vmem:[%s1001_s1 + $0x138] sm:$0xff]  }
   0xa   :  { %697 = vmatprep.subr.bf16.mxu1 %v761_v10  ;;  %v776_v25 = vld [vmem:[%s1001_s1 + $0x8] sm:$0xff]   ;;  %v780_v29 = vld [vmem:[%s1001_s1] sm:$0xff]   ;;  %v790_v37 = vld [vmem:[%s1001_s1 + $0x130] sm:$0xff]  }
   0xb   :  { %670 = vmatpush3.bf16.msra.mxu0 %v760_v9  ;;  %v777_v26 = vld [vmem:[%s1001_s1 + $0xc8] sm:$0xff]   ;;  %v781_v30 = vld [vmem:[%s1001_s1 + $0xc0] sm:$0xff]   ;;  %v793_v44 = vld [vmem:[%s1001_s1 + $0x118] sm:$0xff]  }
   0xc   :  { %671 = vmatprep.subr.bf16.mxu0 %v763_v12  ;;  %v778_v27 = vld [vmem:[%s1001_s1 + $0x88] sm:$0xff]   ;;  %v782_v31 = vld [vmem:[%s1002_s0] ss:$20 sps:$4 sm:$0xff]   ;;  %v784_v32 = vld [vmem:[%s1002_s0 + $0x4] ss:$20 sps:$4 sm:$0xff]  }
   0xd   :  { %698 = vmatpush3.bf16.msra.mxu1 %v762_v11  ;;  %v785_v33 = vld [vmem:[%s1001_s1 + $0x80] sm:$0xff]   ;;  %441 = vmatprep.mubr.bf16.mxu0 %v784_v32  ;;  %v787_v35 = vld [vmem:[%s1002_s0 + $0x8] ss:$20 sps:$4 sm:$0xff]   ;;  %v800_v46 = vld [vmem:[%s1001_s1 + $0x110] sm:$0xff]  }
   0xe   :  { %699 = vmatprep.subr.bf16.mxu1 %v765_v14  ;;  %v789_v36 = vld [vmem:[%s1002_s0 + $0xc] ss:$20 sps:$4 sm:$0xff]   ;;  %v796_v41 = vld [vmem:[%s1002_s0 + $0x28] ss:$20 sps:$4 sm:$0xff]   ;;  %v799_v43 = vld [vmem:[%s1002_s0 + $0x30] ss:$20 sps:$4 sm:$0xff]  }
   0xf   :  { %672 = vmatpush3.bf16.msra.mxu0 %v764_v13  ;;  %490 = vmatprep.mubr.bf16.mxu1 %v789_v36  ;;  %v791_v38 = vld [vmem:[%s1001_s1 + $0x128] sm:$0xff]   ;;  %v792_v39 = vld [vmem:[%s1001_s1 + $0x120] sm:$0xff]  }
  0x10   :  { %673 = vmatprep.subr.bf16.mxu0 %v767_v16  ;;  %v794_v40 = vld [vmem:[%s1002_s0 + $0x2c] ss:$20 sps:$4 sm:$0xff]   ;;  %v797_v42 = vld [vmem:[%s1002_s0 + $0x34] ss:$20 sps:$4 sm:$0xff]   ;;  %v803_v45 = vld [vmem:[%s1002_s0 + $0x10] ss:$20 sps:$4 sm:$0xff]  }
  0x11   :  { %700 = vmatpush3.bf16.msra.mxu1 %v766_v15  ;;  %v801_v47 = vld [vmem:[%s1001_s1 + $0x108] sm:$0xff]   ;;  %v802_v48 = vld [vmem:[%s1001_s1 + $0x100] sm:$0xff]  }
  0x12   :  { %701 = vmatprep.subr.bf16.mxu1 %v769_v18  ;;  %v804_v49 = vld [vmem:[%s1002_s0 + $0x38] ss:$20 sps:$4 sm:$0xff]   ;;  %v597_v3 = vld [vmem:[%s1003_s2] ss:$0 sm:$0xff] }
  0x13   :  { %674 = vmatpush3.bf16.msra.mxu0 %v768_v17  ;;  %v664_v8 = vld [vmem:[%s1004_s3 + $0x8] sm:$0xff]   ;;  %v657_v12 = vld [vmem:[%s1004_s3] sm:$0xff]  }
  0x14   :  { %675 = vmatprep.subr.bf16.mxu0 %v771_v20  ;;  %v662_v16 = vunpack.c.l.bf16 %v664_v8  ;;  %v658_v18 = vunpack.c.l.bf16 %v657_v12 }
  0x15   :  { %702 = vmatpush3.bf16.msra.mxu1 %v770_v19 }
  0x16   :  { %703 = vmatprep.subr.bf16.mxu1 %v773_v22 }
  0x17   :  { %676 = vmatpush3.bf16.msra.mxu0 %v772_v21 }
  0x18   :  { %677 = vmatprep.subr.bf16.mxu0 %v775_v24 }
  0x19   :  { %704 = vmatpush3.bf16.msra.mxu1 %v774_v23 }
  0x1a   :  { %705 = vmatprep.subr.bf16.mxu1 %v777_v26 }
  0x1b   :  { %678 = vmatpush3.bf16.msra.mxu0 %v776_v25 }
  0x1c   :  { %679 = vmatprep.subr.bf16.mxu0 %v779_v28 }
  0x1d   :  { %706 = vmatpush3.bf16.msra.mxu1 %v778_v27  ;;  %v663_v27 = vunpack.c.h.bf16 %v664_v8 }
  0x1e   :  { %707 = vmatprep.subr.bf16.mxu1 %v781_v30 }
  0x1f   :  { %680 = vmatpush3.bf16.msra.mxu0 %v780_v29  ;;  %v659_v29 = vunpack.c.h.bf16 %v657_v12 }
  0x20   :  { %731 = vmatprep.subr.bf16.mxu0 %v786_v34 }
  0x21   :  { %708 = vmatpush3.bf16.msra.mxu1 %v785_v33 }
  0x22   :  { %442 = vmatmul.mubr.bf16.vlgmr.msra.gmra.mxu0 %v782_v31 }
  0x23   :  { %732 = vmatpush3.bf16.msra.mxu0 %v786_v34  ;;  %449 = vmatprep.mubr.bf16.mxu0 %v794_v40 }
  0x24   :  { %491 = vmatmul.mubr.bf16.vlgmr.msra.gmra.mxu1 %v787_v35  ;;  %733 = vmatprep.subr.bf16.mxu0 %v790_v37 }
  0x25   :  { %498 = vmatprep.mubr.bf16.mxu1 %v797_v42 }
  0x27   :  { %734 = vmatpush3.bf16.msra.mxu0 %v790_v37 }
  0x28   :  { %735 = vmatprep.subr.bf16.mxu0 %v791_v38 }
  0x2a   :  { %450 = vmatmul.mubr.bf16.gmra.mxu0 %v796_v41 }
  0x2b   :  { %736 = vmatpush3.bf16.msra.mxu0 %v791_v38  ;;  %747 = vmatprep.mubr.bf16.mxu0 %v803_v45 }
  0x2c   :  { %737 = vmatprep.subr.bf16.mxu0 %v792_v39  ;;  %499 = vmatmul.mubr.bf16.gmra.mxu1 %v799_v43 }
  0x2f   :  { %738 = vmatpush3.bf16.msra.mxu0 %v792_v39 }
  0x30   :  { %739 = vmatprep.subr.bf16.mxu0 %v793_v44 }
  0x33   :  { %740 = vmatpush3.bf16.msra.mxu0 %v793_v44 }
  0x34   :  { %741 = vmatprep.subr.bf16.mxu0 %v800_v46 }
  0x37   :  { %742 = vmatpush3.bf16.msra.mxu0 %v800_v46 }
  0x38   :  { %743 = vmatprep.subr.bf16.mxu0 %v801_v47 }
  0x3b   :  { %744 = vmatpush3.bf16.msra.mxu0 %v801_v47 }
  0x3c   :  { %745 = vmatprep.subr.bf16.mxu0 %v802_v48 }
  0x3f   :  { %746 = vmatpush3.bf16.msra.mxu0 %v802_v48 }
  0x42   :  { %748 = vmatmul.mubr.bf16.vlgmr.msra.gmra.mxu0 %v804_v49 }
  0xe2   :  { %v681_v50 = vpop.f32.mrf.mxu0 }
  0xe4   :  { %v682_v51 = vpop.f32.mrf.mxu0  ;;  %v709_v52 = vpop.f32.mrf.mxu1 }
  0xe5   :  { %v683_v2 = vadd.f32 %v682_v51, %v681_v50 }
  0xe6   :  { %v684_v53 = vpop.f32.mrf.mxu0  ;;  %v710_v54 = vpop.f32.mrf.mxu1 }
  0xe7   :  { %v444_v9 = vadd.f32 %v683_v2, %v597_v3  ;;  %v711_v10 = vadd.f32 %v710_v54, %v709_v52 }
  0xe8   :  { %v685_v55 = vpop.f32.mrf.mxu0  ;;  %v712_v56 = vpop.f32.mrf.mxu1 }
  0xe9   :  { %v686_v11 = vadd.f32 %v685_v55, %v684_v53  ;;  %v493_v22 = vadd.f32 %v711_v10, %v444_v9 }
  0xea   :  { %v687_v57 = vpop.f32.mrf.mxu0  ;;  %v713_v58 = vpop.f32.mrf.mxu1 }
  0xeb   :  { %v447_v19 = vadd.f32 %v686_v11, %v597_v3  ;;  %v714_v20 = vadd.f32 %v713_v58, %v712_v56 }
  0xec   :  { %v688_v59 = vpop.f32.mrf.mxu0  ;;  %v715_v60 = vpop.f32.mrf.mxu1 }
  0xed   :  { %v689_v63 = vadd.f32 %v688_v59, %v687_v57  ;;  %v496_v33 = vadd.f32 %v714_v20, %v447_v19 }
  0xee   :  { %v690_v61 = vpop.f32.mrf.mxu0  ;;  %v716_v62 = vpop.f32.mrf.mxu1 }
  0xef   :  { %v452_v4 = vadd.f32 %v689_v63, %v597_v3  ;;  %v717_v5 = vadd.f32 %v716_v62, %v715_v60 }
  0xf0   :  { %v691_v0 = vpop.f32.mrf.mxu0  ;;  %v718_v1 = vpop.f32.mrf.mxu1 }
  0xf1   :  { %v692_v6 = vadd.f32 %v691_v0, %v690_v61  ;;  %v501_v15 = vadd.f32 %v717_v5, %v452_v4 }
  0xf2   :  { %v719_v7 = vpop.f32.mrf.mxu1 }
  0xf3   :  { %v455_v13 = vadd.f32 %v692_v6, %v597_v3  ;;  %v720_v14 = vadd.f32 %v719_v7, %v718_v1 }
  0xf5   :  { %v504_v26 = vadd.f32 %v720_v14, %v455_v13 }
 0x102   :  { %v749_v17 = vpop.f32.mrf.mxu0 }
 0x103   :  { %v550_v21 = vadd.f32 %v749_v17, %v501_v15 }
 0x104   :  { %v541_v23 = vpop.f32.mrf.mxu0 }
 0x105   :  { %v566_v24 = vadd.f32 %v662_v16, %v550_v21  ;;  %v542_v25 = vadd.f32 %v541_v23, %v493_v22 }
 0x106   :  { %v750_v28 = vpop.f32.mrf.mxu0 }
 0x107   :  { %v570_v30 = vmax.f32 %v566_v24, 0.0  ;;  %v564_v31 = vadd.f32 %v658_v18, %v542_v25  ;;  %v553_v32 = vadd.f32 %v750_v28, %v504_v26 }
 0x108   :  { %v544_v34 = vpop.f32.mrf.mxu0 }
 0x109   :  { %v654_v35 = vpack.c.bf16 %v570_v30, %v570_v30  ;;  %v568_v36 = vmax.f32 %v564_v31, 0.0  ;;  %v567_v37 = vadd.f32 %v663_v27, %v553_v32  ;;  %v545_v38 = vadd.f32 %v544_v34, %v496_v33 }
 0x10b   :  { %591 = vst.msk [vmem:[%s1005_s4 + $0x8] sm:$0xf] %vm588_vm0, %v654_v35  ;;  %v652_v39 = vpack.c.bf16 %v568_v36, %v568_v36  ;;  %v571_v40 = vmax.f32 %v567_v37, 0.0  ;;  %v565_v41 = vadd.f32 %v659_v29, %v545_v38 }
 0x10d   :  { %589 = vst.msk [vmem:[%s1005_s4] sm:$0xf] %vm588_vm0, %v652_v39  ;;  %v655_v42 = vpack.c.bf16 %v571_v40, %v571_v40  ;;  %v569_v43 = vmax.f32 %v565_v41, 0.0 }
 0x10f   :  { %592 = vst.msk [vmem:[%s1005_s4 + $0xc] sm:$0xf] %vm588_vm0, %v655_v42  ;;  %v653_v44 = vpack.c.bf16 %v569_v43, %v569_v43 }
 0x111   :  { %590 = vst.msk [vmem:[%s1005_s4 + $0x4] sm:$0xf] %vm588_vm0, %v653_v44 }

// kernel: _lambda_.28
= control target key start
LH: loop header
LB: loop body
LE: loop exit
PB: predicated region body
PF: predicated region fallthrough
CT: control target
= control target key end

     0   :  { %v656_v35 = vmov 0.0   ;;  %vm657_vm0 = vmmov 0   ;;  %s813_s1 = inlined_call_operand.vmem [shape: bf16[640,128], index: 1, kind: input, shape index: {}]   ;;  %s814_s0 = inlined_call_operand.vmem [shape: bf16[8,640], index: 0, kind: input, shape index: {}]   ;;  %s815_s2 = inlined_call_operand.vmem [shape: f32[1,128], index: 2, kind: input, shape index: {}]   ;;  %s816_s3 = inlined_call_operand.vmem [shape: bf16[8,128], index: 3, kind: output, shape index: {}]  }
   0x1   :  { %v611_v0 = vld [vmem:[%s813_s1 + $0x78] sm:$0xff]   ;;  %v615_v4 = vld [vmem:[%s813_s1 + $0x70] sm:$0xff]   ;;  %v619_v8 = vld [vmem:[%s813_s1 + $0x68] sm:$0xff]  }
   0x2   :  { %v612_v1 = vld [vmem:[%s813_s1 + $0x38] sm:$0xff]   ;;  %536 = vmatprep.subr.bf16.mxu0 %v611_v0  ;;  %v616_v5 = vld [vmem:[%s813_s1 + $0x30] sm:$0xff]   ;;  %v620_v9 = vld [vmem:[%s813_s1 + $0x28] sm:$0xff]  }
   0x3   :  { %v613_v2 = vld [vmem:[%s813_s1 + $0xf8] sm:$0xff]   ;;  %537 = vmatpush3.bf16.msra.mxu0 %v612_v1  ;;  %v617_v6 = vld [vmem:[%s813_s1 + $0xf0] sm:$0xff]   ;;  %v621_v10 = vld [vmem:[%s813_s1 + $0xe8] sm:$0xff]  }
   0x4   :  { %v614_v3 = vld [vmem:[%s813_s1 + $0xb8] sm:$0xff]   ;;  %558 = vmatprep.subr.bf16.mxu1 %v613_v2  ;;  %538 = vmatprep.subr.bf16.mxu0 %v615_v4  ;;  %v618_v7 = vld [vmem:[%s813_s1 + $0xb0] sm:$0xff]   ;;  %v622_v11 = vld [vmem:[%s813_s1 + $0xa8] sm:$0xff]  }
   0x5   :  { %559 = vmatpush3.bf16.msra.mxu1 %v614_v3  ;;  %v623_v12 = vld [vmem:[%s813_s1 + $0x60] sm:$0xff]   ;;  %v627_v16 = vld [vmem:[%s813_s1 + $0x58] sm:$0xff]   ;;  %v631_v20 = vld [vmem:[%s813_s1 + $0x50] sm:$0xff]  }
   0x6   :  { %560 = vmatprep.subr.bf16.mxu1 %v617_v6  ;;  %v624_v13 = vld [vmem:[%s813_s1 + $0x20] sm:$0xff]   ;;  %v628_v17 = vld [vmem:[%s813_s1 + $0x18] sm:$0xff]   ;;  %v632_v21 = vld [vmem:[%s813_s1 + $0x10] sm:$0xff]  }
   0x7   :  { %539 = vmatpush3.bf16.msra.mxu0 %v616_v5  ;;  %v625_v14 = vld [vmem:[%s813_s1 + $0xe0] sm:$0xff]   ;;  %v629_v18 = vld [vmem:[%s813_s1 + $0xd8] sm:$0xff]   ;;  %v633_v22 = vld [vmem:[%s813_s1 + $0xd0] sm:$0xff]  }
   0x8   :  { %540 = vmatprep.subr.bf16.mxu0 %v619_v8  ;;  %v626_v15 = vld [vmem:[%s813_s1 + $0xa0] sm:$0xff]   ;;  %v630_v19 = vld [vmem:[%s813_s1 + $0x98] sm:$0xff]   ;;  %v634_v23 = vld [vmem:[%s813_s1 + $0x90] sm:$0xff]  }
   0x9   :  { %561 = vmatpush3.bf16.msra.mxu1 %v618_v7  ;;  %v635_v24 = vld [vmem:[%s813_s1 + $0x48] sm:$0xff]   ;;  %v639_v28 = vld [vmem:[%s813_s1 + $0x40] sm:$0xff]   ;;  %v648_v39 = vld [vmem:[%s813_s1 + $0x138] sm:$0xff]  }
   0xa   :  { %562 = vmatprep.subr.bf16.mxu1 %v621_v10  ;;  %v636_v25 = vld [vmem:[%s813_s1 + $0x8] sm:$0xff]   ;;  %v640_v29 = vld [vmem:[%s813_s1] sm:$0xff]   ;;  %v649_v40 = vld [vmem:[%s813_s1 + $0x130] sm:$0xff]  }
   0xb   :  { %541 = vmatpush3.bf16.msra.mxu0 %v620_v9  ;;  %v637_v26 = vld [vmem:[%s813_s1 + $0xc8] sm:$0xff]   ;;  %v641_v30 = vld [vmem:[%s813_s1 + $0xc0] sm:$0xff]   ;;  %v652_v43 = vld [vmem:[%s813_s1 + $0x118] sm:$0xff]  }
   0xc   :  { %542 = vmatprep.subr.bf16.mxu0 %v623_v12  ;;  %v638_v27 = vld [vmem:[%s813_s1 + $0x88] sm:$0xff]   ;;  %v15_v31 = vld [vmem:[%s814_s0] sm:$0xff]  ;;  %v653_v44 = vld [vmem:[%s813_s1 + $0x110] sm:$0xff]  }
   0xd   :  { %563 = vmatpush3.bf16.msra.mxu1 %v622_v11  ;;  %v491_v32 = vcombine.low %v15_v31, %v15_v31  ;;  %v492_v33 = vcombine.high %v15_v31, %v15_v31  ;;  %v645_v34 = vld [vmem:[%s813_s1 + $0x80] sm:$0xff]   ;;  %v16_v36 = vld [vmem:[%s814_s0 + $0x8] sm:$0xff]  ;;  %v644_v47 = vld [vmem:[%s814_s0 + $0x10] ss:$0 sps:$4 sm:$0xff]  }
   0xe   :  { %564 = vmatprep.subr.bf16.mxu1 %v625_v14  ;;  %v493_v37 = vcombine.low %v16_v36, %v16_v36  ;;  %v494_v38 = vcombine.high %v16_v36, %v16_v36  ;;  %v650_v41 = vld [vmem:[%s813_s1 + $0x128] sm:$0xff]   ;;  %v651_v42 = vld [vmem:[%s813_s1 + $0x120] sm:$0xff]  }
   0xf   :  { %543 = vmatpush3.bf16.msra.mxu0 %v624_v13  ;;  %395 = vmatprep.mubr.bf16.mxu0 %v492_v33  ;;  %v654_v45 = vld [vmem:[%s813_s1 + $0x108] sm:$0xff]   ;;  %v655_v46 = vld [vmem:[%s813_s1 + $0x100] sm:$0xff]  }
  0x10   :  { %544 = vmatprep.subr.bf16.mxu0 %v627_v16  ;;  %435 = vmatprep.mubr.bf16.mxu1 %v494_v38  ;;  %v490_v57 = vld [vmem:[%s815_s2] ss:$0 sm:$0xff] }
  0x11   :  { %565 = vmatpush3.bf16.msra.mxu1 %v626_v15 }
  0x12   :  { %566 = vmatprep.subr.bf16.mxu1 %v629_v18 }
  0x13   :  { %545 = vmatpush3.bf16.msra.mxu0 %v628_v17 }
  0x14   :  { %546 = vmatprep.subr.bf16.mxu0 %v631_v20 }
  0x15   :  { %567 = vmatpush3.bf16.msra.mxu1 %v630_v19 }
  0x16   :  { %568 = vmatprep.subr.bf16.mxu1 %v633_v22 }
  0x17   :  { %547 = vmatpush3.bf16.msra.mxu0 %v632_v21 }
  0x18   :  { %548 = vmatprep.subr.bf16.mxu0 %v635_v24 }
  0x19   :  { %569 = vmatpush3.bf16.msra.mxu1 %v634_v23 }
  0x1a   :  { %570 = vmatprep.subr.bf16.mxu1 %v637_v26 }
  0x1b   :  { %549 = vmatpush3.bf16.msra.mxu0 %v636_v25 }
  0x1c   :  { %550 = vmatprep.subr.bf16.mxu0 %v639_v28 }
  0x1d   :  { %571 = vmatpush3.bf16.msra.mxu1 %v638_v27 }
  0x1e   :  { %572 = vmatprep.subr.bf16.mxu1 %v641_v30 }
  0x1f   :  { %551 = vmatpush3.bf16.msra.mxu0 %v640_v29 }
  0x20   :  { %589 = vmatprep.subr.bf16.mxu0 %v656_v35 }
  0x21   :  { %573 = vmatpush3.bf16.msra.mxu1 %v645_v34 }
  0x22   :  { %396 = vmatmul.mubr.bf16.vlgmr.msra.gmra.mxu0 %v491_v32 }
  0x23   :  { %590 = vmatpush3.bf16.msra.mxu0 %v648_v39  ;;  %605 = vmatprep.mubr.msk.bf16.mxu0 %vm657_vm0, %v656_v35 }
  0x24   :  { %436 = vmatmul.mubr.bf16.vlgmr.msra.gmra.mxu1 %v493_v37  ;;  %591 = vmatprep.subr.bf16.mxu0 %v656_v35 }
  0x27   :  { %592 = vmatpush3.bf16.msra.mxu0 %v649_v40 }
  0x28   :  { %593 = vmatprep.subr.bf16.mxu0 %v656_v35 }
  0x2b   :  { %594 = vmatpush3.bf16.msra.mxu0 %v650_v41 }
  0x2c   :  { %595 = vmatprep.subr.bf16.mxu0 %v656_v35 }
  0x2f   :  { %596 = vmatpush3.bf16.msra.mxu0 %v651_v42 }
  0x30   :  { %597 = vmatprep.subr.bf16.mxu0 %v656_v35 }
  0x33   :  { %598 = vmatpush3.bf16.msra.mxu0 %v652_v43 }
  0x34   :  { %599 = vmatprep.subr.bf16.mxu0 %v656_v35 }
  0x37   :  { %600 = vmatpush3.bf16.msra.mxu0 %v653_v44 }
  0x38   :  { %601 = vmatprep.subr.bf16.mxu0 %v656_v35 }
  0x3b   :  { %602 = vmatpush3.bf16.msra.mxu0 %v654_v45 }
  0x3c   :  { %603 = vmatprep.subr.bf16.mxu0 %v656_v35 }
  0x3f   :  { %604 = vmatpush3.bf16.msra.mxu0 %v655_v46 }
  0x42   :  { %606 = vmatmul.mubr.bf16.vlgmr.msra.gmra.mxu0 %v644_v47 }
  0xe2   :  { %v552_v48 = vpop.f32.mrf.mxu0 }
  0xe4   :  { %v553_v49 = vpop.f32.mrf.mxu0  ;;  %v574_v50 = vpop.f32.mrf.mxu1 }
  0xe5   :  { %v554_v56 = vadd.f32 %v553_v49, %v552_v48 }
  0xe6   :  { %v555_v51 = vpop.f32.mrf.mxu0  ;;  %v575_v52 = vpop.f32.mrf.mxu1 }
  0xe7   :  { %v398_v58 = vadd.f32 %v554_v56, %v490_v57  ;;  %v576_v59 = vadd.f32 %v575_v52, %v574_v50 }
  0xe8   :  { %v556_v53 = vpop.f32.mrf.mxu0  ;;  %v577_v54 = vpop.f32.mrf.mxu1 }
  0xe9   :  { %v438_v60 = vadd.f32 %v576_v59, %v398_v58 }
  0xea   :  { %v578_v55 = vpop.f32.mrf.mxu1 }
 0x102   :  { %v477_v61 = vpop.f32.mrf.mxu0 }
 0x103   :  { %v478_v62 = vadd.f32 %v477_v61, %v438_v60 }
 0x104   :  { %v607_v63 = vpop.f32.mrf.mxu0 }
 0x105   :  { %v483_v0 = vmax.f32 %v478_v62, 0.0 }
 0x106   :  { %v480_v1 = vpop.f32.mrf.mxu0 }
 0x107   :  { %v484_v2 = vpack.c.bf16 %v483_v0, %v483_v0 }
 0x108   :  { %v608_v3 = vpop.f32.mrf.mxu0 }
 0x109   :  { %485 = vst [vmem:[%s816_s3] sm:$0xf] %v484_v2 }

// kernel: _lambda_.24
= control target key start
LH: loop header
LB: loop body
LE: loop exit
PB: predicated region body
PF: predicated region fallthrough
CT: control target
= control target key end

     0   :  { %vm573_vm0 = vcmask 519168   ;;  %s970_s1 = inlined_call_operand.vmem [shape: bf16[640,64], index: 1, kind: input, shape index: {}]   ;;  %s971_s0 = inlined_call_operand.vmem [shape: bf16[32,640], index: 0, kind: input, shape index: {}]   ;;  %s972_s2 = inlined_call_operand.vmem [shape: f32[1,64], index: 2, kind: input, shape index: {}]   ;;  %s973_s3 = inlined_call_operand.vmem [shape: bf16[32,64], index: 3, kind: output, shape index: {}]  }
   0x1   :  { %v727_v0 = vld [vmem:[%s970_s1 + $0x78] sm:$0xff]   ;;  %v731_v4 = vld [vmem:[%s970_s1 + $0x70] sm:$0xff]   ;;  %v735_v8 = vld [vmem:[%s970_s1 + $0x68] sm:$0xff]  }
   0x2   :  { %v728_v1 = vld [vmem:[%s970_s1 + $0x38] sm:$0xff]   ;;  %641 = vmatprep.subr.bf16.mxu0 %v727_v0  ;;  %v732_v5 = vld [vmem:[%s970_s1 + $0x30] sm:$0xff]   ;;  %v736_v9 = vld [vmem:[%s970_s1 + $0x28] sm:$0xff]  }
   0x3   :  { %v729_v2 = vld [vmem:[%s970_s1 + $0xf8] sm:$0xff]   ;;  %642 = vmatpush3.bf16.msra.mxu0 %v728_v1  ;;  %v733_v6 = vld [vmem:[%s970_s1 + $0xf0] sm:$0xff]   ;;  %v737_v10 = vld [vmem:[%s970_s1 + $0xe8] sm:$0xff]  }
   0x4   :  { %v730_v3 = vld [vmem:[%s970_s1 + $0xb8] sm:$0xff]   ;;  %669 = vmatprep.subr.bf16.mxu1 %v729_v2  ;;  %643 = vmatprep.subr.bf16.mxu0 %v731_v4  ;;  %v734_v7 = vld [vmem:[%s970_s1 + $0xb0] sm:$0xff]   ;;  %v738_v11 = vld [vmem:[%s970_s1 + $0xa8] sm:$0xff]  }
   0x5   :  { %670 = vmatpush3.bf16.msra.mxu1 %v730_v3  ;;  %v739_v12 = vld [vmem:[%s970_s1 + $0x60] sm:$0xff]   ;;  %v743_v16 = vld [vmem:[%s970_s1 + $0x58] sm:$0xff]   ;;  %v747_v20 = vld [vmem:[%s970_s1 + $0x50] sm:$0xff]  }
   0x6   :  { %671 = vmatprep.subr.bf16.mxu1 %v733_v6  ;;  %v740_v13 = vld [vmem:[%s970_s1 + $0x20] sm:$0xff]   ;;  %v744_v17 = vld [vmem:[%s970_s1 + $0x18] sm:$0xff]   ;;  %v748_v21 = vld [vmem:[%s970_s1 + $0x10] sm:$0xff]  }
   0x7   :  { %644 = vmatpush3.bf16.msra.mxu0 %v732_v5  ;;  %v741_v14 = vld [vmem:[%s970_s1 + $0xe0] sm:$0xff]   ;;  %v745_v18 = vld [vmem:[%s970_s1 + $0xd8] sm:$0xff]   ;;  %v749_v22 = vld [vmem:[%s970_s1 + $0xd0] sm:$0xff]  }
   0x8   :  { %645 = vmatprep.subr.bf16.mxu0 %v735_v8  ;;  %v742_v15 = vld [vmem:[%s970_s1 + $0xa0] sm:$0xff]   ;;  %v746_v19 = vld [vmem:[%s970_s1 + $0x98] sm:$0xff]   ;;  %v750_v23 = vld [vmem:[%s970_s1 + $0x90] sm:$0xff]  }
   0x9   :  { %672 = vmatpush3.bf16.msra.mxu1 %v734_v7  ;;  %v751_v24 = vld [vmem:[%s970_s1 + $0x48] sm:$0xff]   ;;  %v755_v28 = vld [vmem:[%s970_s1 + $0x40] sm:$0xff]   ;;  %v762_v34 = vld [vmem:[%s970_s1 + $0x138] sm:$0xff]  }
   0xa   :  { %673 = vmatprep.subr.bf16.mxu1 %v737_v10  ;;  %v752_v25 = vld [vmem:[%s970_s1 + $0x8] sm:$0xff]   ;;  %v756_v29 = vld [vmem:[%s970_s1] sm:$0xff]   ;;  %v766_v37 = vld [vmem:[%s970_s1 + $0x130] sm:$0xff]  }
   0xb   :  { %646 = vmatpush3.bf16.msra.mxu0 %v736_v9  ;;  %v753_v26 = vld [vmem:[%s970_s1 + $0xc8] sm:$0xff]   ;;  %v757_v30 = vld [vmem:[%s970_s1 + $0xc0] sm:$0xff]   ;;  %v769_v44 = vld [vmem:[%s970_s1 + $0x118] sm:$0xff]  }
   0xc   :  { %647 = vmatprep.subr.bf16.mxu0 %v739_v12  ;;  %v754_v27 = vld [vmem:[%s970_s1 + $0x88] sm:$0xff]   ;;  %v758_v31 = vld [vmem:[%s971_s0] ss:$20 sps:$4 sm:$0xff]   ;;  %v760_v32 = vld [vmem:[%s971_s0 + $0x4] ss:$20 sps:$4 sm:$0xff]  }
   0xd   :  { %674 = vmatpush3.bf16.msra.mxu1 %v738_v11  ;;  %v761_v33 = vld [vmem:[%s970_s1 + $0x80] sm:$0xff]   ;;  %438 = vmatprep.mubr.bf16.mxu0 %v760_v32  ;;  %v763_v35 = vld [vmem:[%s971_s0 + $0x8] ss:$20 sps:$4 sm:$0xff]   ;;  %v776_v46 = vld [vmem:[%s970_s1 + $0x110] sm:$0xff]  }
   0xe   :  { %675 = vmatprep.subr.bf16.mxu1 %v741_v14  ;;  %v765_v36 = vld [vmem:[%s971_s0 + $0xc] ss:$20 sps:$4 sm:$0xff]   ;;  %v772_v41 = vld [vmem:[%s971_s0 + $0x28] ss:$20 sps:$4 sm:$0xff]   ;;  %v775_v43 = vld [vmem:[%s971_s0 + $0x30] ss:$20 sps:$4 sm:$0xff]  }
   0xf   :  { %648 = vmatpush3.bf16.msra.mxu0 %v740_v13  ;;  %487 = vmatprep.mubr.bf16.mxu1 %v765_v36  ;;  %v767_v38 = vld [vmem:[%s970_s1 + $0x128] sm:$0xff]   ;;  %v768_v39 = vld [vmem:[%s970_s1 + $0x120] sm:$0xff]  }
  0x10   :  { %649 = vmatprep.subr.bf16.mxu0 %v743_v16  ;;  %v770_v40 = vld [vmem:[%s971_s0 + $0x2c] ss:$20 sps:$4 sm:$0xff]   ;;  %v773_v42 = vld [vmem:[%s971_s0 + $0x34] ss:$20 sps:$4 sm:$0xff]   ;;  %v779_v45 = vld [vmem:[%s971_s0 + $0x10] ss:$20 sps:$4 sm:$0xff]  }
  0x11   :  { %676 = vmatpush3.bf16.msra.mxu1 %v742_v15  ;;  %v777_v47 = vld [vmem:[%s970_s1 + $0x108] sm:$0xff]   ;;  %v778_v48 = vld [vmem:[%s970_s1 + $0x100] sm:$0xff]  }
  0x12   :  { %677 = vmatprep.subr.bf16.mxu1 %v745_v18  ;;  %v780_v49 = vld [vmem:[%s971_s0 + $0x38] ss:$20 sps:$4 sm:$0xff]   ;;  %v582_v3 = vld [vmem:[%s972_s2] ss:$0 sm:$0xff] }
  0x13   :  { %650 = vmatpush3.bf16.msra.mxu0 %v744_v17 }
  0x14   :  { %651 = vmatprep.subr.bf16.mxu0 %v747_v20 }
  0x15   :  { %678 = vmatpush3.bf16.msra.mxu1 %v746_v19 }
  0x16   :  { %679 = vmatprep.subr.bf16.mxu1 %v749_v22 }
  0x17   :  { %652 = vmatpush3.bf16.msra.mxu0 %v748_v21 }
  0x18   :  { %653 = vmatprep.subr.bf16.mxu0 %v751_v24 }
  0x19   :  { %680 = vmatpush3.bf16.msra.mxu1 %v750_v23 }
  0x1a   :  { %681 = vmatprep.subr.bf16.mxu1 %v753_v26 }
  0x1b   :  { %654 = vmatpush3.bf16.msra.mxu0 %v752_v25 }
  0x1c   :  { %655 = vmatprep.subr.bf16.mxu0 %v755_v28 }
  0x1d   :  { %682 = vmatpush3.bf16.msra.mxu1 %v754_v27 }
  0x1e   :  { %683 = vmatprep.subr.bf16.mxu1 %v757_v30 }
  0x1f   :  { %656 = vmatpush3.bf16.msra.mxu0 %v756_v29 }
  0x20   :  { %707 = vmatprep.subr.bf16.mxu0 %v762_v34 }
  0x21   :  { %684 = vmatpush3.bf16.msra.mxu1 %v761_v33 }
  0x22   :  { %439 = vmatmul.mubr.bf16.vlgmr.msra.gmra.mxu0 %v758_v31 }
  0x23   :  { %708 = vmatpush3.bf16.msra.mxu0 %v762_v34  ;;  %446 = vmatprep.mubr.bf16.mxu0 %v770_v40 }
  0x24   :  { %488 = vmatmul.mubr.bf16.vlgmr.msra.gmra.mxu1 %v763_v35  ;;  %709 = vmatprep.subr.bf16.mxu0 %v766_v37 }
  0x25   :  { %495 = vmatprep.mubr.bf16.mxu1 %v773_v42 }
  0x27   :  { %710 = vmatpush3.bf16.msra.mxu0 %v766_v37 }
  0x28   :  { %711 = vmatprep.subr.bf16.mxu0 %v767_v38 }
  0x2a   :  { %447 = vmatmul.mubr.bf16.gmra.mxu0 %v772_v41 }
  0x2b   :  { %712 = vmatpush3.bf16.msra.mxu0 %v767_v38  ;;  %723 = vmatprep.mubr.bf16.mxu0 %v779_v45 }
  0x2c   :  { %713 = vmatprep.subr.bf16.mxu0 %v768_v39  ;;  %496 = vmatmul.mubr.bf16.gmra.mxu1 %v775_v43 }
  0x2f   :  { %714 = vmatpush3.bf16.msra.mxu0 %v768_v39 }
  0x30   :  { %715 = vmatprep.subr.bf16.mxu0 %v769_v44 }
  0x33   :  { %716 = vmatpush3.bf16.msra.mxu0 %v769_v44 }
  0x34   :  { %717 = vmatprep.subr.bf16.mxu0 %v776_v46 }
  0x37   :  { %718 = vmatpush3.bf16.msra.mxu0 %v776_v46 }
  0x38   :  { %719 = vmatprep.subr.bf16.mxu0 %v777_v47 }
  0x3b   :  { %720 = vmatpush3.bf16.msra.mxu0 %v777_v47 }
  0x3c   :  { %721 = vmatprep.subr.bf16.mxu0 %v778_v48 }
  0x3f   :  { %722 = vmatpush3.bf16.msra.mxu0 %v778_v48 }
  0x42   :  { %724 = vmatmul.mubr.bf16.vlgmr.msra.gmra.mxu0 %v780_v49 }
  0xe2   :  { %v657_v50 = vpop.f32.mrf.mxu0 }
  0xe4   :  { %v658_v51 = vpop.f32.mrf.mxu0  ;;  %v685_v52 = vpop.f32.mrf.mxu1 }
  0xe5   :  { %v659_v2 = vadd.f32 %v658_v51, %v657_v50 }
  0xe6   :  { %v660_v53 = vpop.f32.mrf.mxu0  ;;  %v686_v54 = vpop.f32.mrf.mxu1 }
  0xe7   :  { %v441_v8 = vadd.f32 %v659_v2, %v582_v3  ;;  %v687_v9 = vadd.f32 %v686_v54, %v685_v52 }
  0xe8   :  { %v661_v55 = vpop.f32.mrf.mxu0  ;;  %v688_v56 = vpop.f32.mrf.mxu1 }
  0xe9   :  { %v662_v10 = vadd.f32 %v661_v55, %v660_v53  ;;  %v490_v18 = vadd.f32 %v687_v9, %v441_v8 }
  0xea   :  { %v663_v57 = vpop.f32.mrf.mxu0  ;;  %v689_v58 = vpop.f32.mrf.mxu1 }
  0xeb   :  { %v444_v15 = vadd.f32 %v662_v10, %v582_v3  ;;  %v690_v16 = vadd.f32 %v689_v58, %v688_v56 }
  0xec   :  { %v664_v59 = vpop.f32.mrf.mxu0  ;;  %v691_v60 = vpop.f32.mrf.mxu1 }
  0xed   :  { %v665_v63 = vadd.f32 %v664_v59, %v663_v57  ;;  %v493_v27 = vadd.f32 %v690_v16, %v444_v15 }
  0xee   :  { %v666_v61 = vpop.f32.mrf.mxu0  ;;  %v692_v62 = vpop.f32.mrf.mxu1 }
  0xef   :  { %v449_v4 = vadd.f32 %v665_v63, %v582_v3  ;;  %v693_v5 = vadd.f32 %v692_v62, %v691_v60 }
  0xf0   :  { %v667_v0 = vpop.f32.mrf.mxu0  ;;  %v694_v1 = vpop.f32.mrf.mxu1 }
  0xf1   :  { %v668_v6 = vadd.f32 %v667_v0, %v666_v61  ;;  %v498_v13 = vadd.f32 %v693_v5, %v449_v4 }
  0xf2   :  { %v695_v7 = vpop.f32.mrf.mxu1 }
  0xf3   :  { %v452_v11 = vadd.f32 %v668_v6, %v582_v3  ;;  %v696_v12 = vadd.f32 %v695_v7, %v694_v1 }
  0xf5   :  { %v501_v22 = vadd.f32 %v696_v12, %v452_v11 }
 0x102   :  { %v725_v14 = vpop.f32.mrf.mxu0 }
 0x103   :  { %v547_v17 = vadd.f32 %v725_v14, %v498_v13 }
 0x104   :  { %v538_v19 = vpop.f32.mrf.mxu0 }
 0x105   :  { %v555_v20 = vmax.f32 %v547_v17, 0.0  ;;  %v539_v21 = vadd.f32 %v538_v19, %v490_v18 }
 0x106   :  { %v726_v23 = vpop.f32.mrf.mxu0 }
 0x107   :  { %v639_v24 = vpack.c.bf16 %v555_v20, %v555_v20  ;;  %v553_v25 = vmax.f32 %v539_v21, 0.0  ;;  %v550_v26 = vadd.f32 %v726_v23, %v501_v22 }
 0x108   :  { %v541_v28 = vpop.f32.mrf.mxu0 }
 0x109   :  { %576 = vst.msk [vmem:[%s973_s3 + $0x8] sm:$0xf] %vm573_vm0, %v639_v24  ;;  %v637_v29 = vpack.c.bf16 %v553_v25, %v553_v25  ;;  %v556_v30 = vmax.f32 %v550_v26, 0.0  ;;  %v542_v31 = vadd.f32 %v541_v28, %v493_v27 }
 0x10b   :  { %574 = vst.msk [vmem:[%s973_s3] sm:$0xf] %vm573_vm0, %v637_v29  ;;  %v640_v32 = vpack.c.bf16 %v556_v30, %v556_v30  ;;  %v554_v33 = vmax.f32 %v542_v31, 0.0 }
 0x10d   :  { %577 = vst.msk [vmem:[%s973_s3 + $0xc] sm:$0xf] %vm573_vm0, %v640_v32  ;;  %v638_v34 = vpack.c.bf16 %v554_v33, %v554_v33 }
 0x10f   :  { %575 = vst.msk [vmem:[%s973_s3 + $0x4] sm:$0xf] %vm573_vm0, %v638_v34 }

// kernel: _lambda_.29
= control target key start
LH: loop header
LB: loop body
LE: loop exit
PB: predicated region body
PF: predicated region fallthrough
CT: control target
= control target key end

     0   :  { %v181_v0 = vmov 0.0   ;;  %vm182_vm0 = vmmov 0   ;;  %s236_s1 = inlined_call_operand.vmem [shape: bf16[128,128], index: 1, kind: input, shape index: {}]   ;;  %s237_s0 = inlined_call_operand.vmem [shape: bf16[8,128], index: 0, kind: input, shape index: {}]   ;;  %s238_s2 = inlined_call_operand.vmem [shape: f32[1,128], index: 2, kind: input, shape index: {}]   ;;  %s239_s3 = inlined_call_operand.vmem [shape: bf16[8,128], index: 3, kind: output, shape index: {}]  }
   0x1   :  { %151 = vmatprep.subr.bf16.mxu0 %v181_v0  ;;  %v173_v1 = vld [vmem:[%s236_s1 + $0x38] sm:$0xff]   ;;  %167 = vmatprep.mubr.msk.bf16.mxu0 %vm182_vm0, %v181_v0  ;;  %v174_v2 = vld [vmem:[%s236_s1 + $0x30] sm:$0xff]   ;;  %v175_v3 = vld [vmem:[%s236_s1 + $0x28] sm:$0xff]  }
   0x2   :  { %152 = vmatpush3.bf16.msra.mxu0 %v173_v1  ;;  %v176_v4 = vld [vmem:[%s236_s1 + $0x20] sm:$0xff]   ;;  %v177_v5 = vld [vmem:[%s236_s1 + $0x18] sm:$0xff]   ;;  %v178_v6 = vld [vmem:[%s236_s1 + $0x10] sm:$0xff]  }
   0x3   :  { %153 = vmatprep.subr.bf16.mxu0 %v181_v0  ;;  %v179_v7 = vld [vmem:[%s236_s1 + $0x8] sm:$0xff]   ;;  %v180_v8 = vld [vmem:[%s236_s1] sm:$0xff]  }
   0x4   :  { %v15_v9 = vld [vmem:[%s237_s0] sm:$0xf] }
   0x5   :  { %v133_v10 = vld [vmem:[%s238_s2] ss:$0 sm:$0xff] }
   0x6   :  { %154 = vmatpush3.bf16.msra.mxu0 %v174_v2 }
   0x7   :  { %155 = vmatprep.subr.bf16.mxu0 %v181_v0 }
   0xa   :  { %156 = vmatpush3.bf16.msra.mxu0 %v175_v3 }
   0xb   :  { %157 = vmatprep.subr.bf16.mxu0 %v181_v0 }
   0xe   :  { %158 = vmatpush3.bf16.msra.mxu0 %v176_v4 }
   0xf   :  { %159 = vmatprep.subr.bf16.mxu0 %v181_v0 }
  0x12   :  { %160 = vmatpush3.bf16.msra.mxu0 %v177_v5 }
  0x13   :  { %161 = vmatprep.subr.bf16.mxu0 %v181_v0 }
  0x16   :  { %162 = vmatpush3.bf16.msra.mxu0 %v178_v6 }
  0x17   :  { %163 = vmatprep.subr.bf16.mxu0 %v181_v0 }
  0x1a   :  { %164 = vmatpush3.bf16.msra.mxu0 %v179_v7 }
  0x1b   :  { %165 = vmatprep.subr.bf16.mxu0 %v181_v0 }
  0x1e   :  { %166 = vmatpush3.bf16.msra.mxu0 %v180_v8 }
  0x21   :  { %168 = vmatmul.mubr.bf16.vlgmr.msra.gmra.mxu0 %v15_v9 }
  0xe1   :  { %v121_v11 = vpop.f32.mrf.mxu0 }
  0xe2   :  { %v122_v12 = vadd.f32 %v133_v10, %v121_v11 }
  0xe3   :  { %v169_v13 = vpop.f32.mrf.mxu0 }
  0xe4   :  { %v127_v14 = vpack.c.bf16 %v122_v12, %v122_v12 }
  0xe5   :  { %v124_v15 = vpop.f32.mrf.mxu0 }
  0xe6   :  { %128 = vst [vmem:[%s239_s3] sm:$0xf] %v127_v14 }
  0xe7   :  { %v170_v16 = vpop.f32.mrf.mxu0 }

// kernel: _lambda_.30
= control target key start
LH: loop header
LB: loop body
LE: loop exit
PB: predicated region body
PF: predicated region fallthrough
CT: control target
= control target key end

     0   :  { %vm1131_vm0 = vmmov 0   ;;  %s1397_s1 = inlined_call_operand.vmem [shape: bf16[1152,128], index: 1, kind: input, shape index: {}]   ;;  %s1398_s0 = inlined_call_operand.vmem [shape: bf16[8,1152], index: 0, kind: input, shape index: {}]   ;;  %s1399_s2 = inlined_call_operand.vmem [shape: f32[1,128], index: 2, kind: input, shape index: {}]   ;;  %s1400_s3 = inlined_call_operand.vmem [shape: bf16[8,128], index: 3, kind: input, shape index: {}]   ;;  %s1401_s4 = inlined_call_operand.vmem [shape: bf16[8,128], index: 4, kind: output, shape index: {}]  }
   0x1   :  { %v1049_v0 = vld [vmem:[%s1397_s1 + $0x78] sm:$0xff]   ;;  %v1053_v4 = vld [vmem:[%s1397_s1 + $0x70] sm:$0xff]   ;;  %v1057_v8 = vld [vmem:[%s1397_s1 + $0x68] sm:$0xff]  }
   0x2   :  { %v1050_v1 = vld [vmem:[%s1397_s1 + $0x38] sm:$0xff]   ;;  %930 = vmatprep.subr.bf16.mxu0 %v1049_v0  ;;  %v1054_v5 = vld [vmem:[%s1397_s1 + $0x30] sm:$0xff]   ;;  %v1058_v9 = vld [vmem:[%s1397_s1 + $0x28] sm:$0xff]  }
   0x3   :  { %v1051_v2 = vld [vmem:[%s1397_s1 + $0xf8] sm:$0xff]   ;;  %931 = vmatpush3.bf16.msra.mxu0 %v1050_v1  ;;  %v1055_v6 = vld [vmem:[%s1397_s1 + $0xf0] sm:$0xff]   ;;  %v1059_v10 = vld [vmem:[%s1397_s1 + $0xe8] sm:$0xff]  }
   0x4   :  { %v1052_v3 = vld [vmem:[%s1397_s1 + $0xb8] sm:$0xff]   ;;  %952 = vmatprep.subr.bf16.mxu1 %v1051_v2  ;;  %932 = vmatprep.subr.bf16.mxu0 %v1053_v4  ;;  %v1056_v7 = vld [vmem:[%s1397_s1 + $0xb0] sm:$0xff]   ;;  %v1060_v11 = vld [vmem:[%s1397_s1 + $0xa8] sm:$0xff]  }
   0x5   :  { %953 = vmatpush3.bf16.msra.mxu1 %v1052_v3  ;;  %v1061_v12 = vld [vmem:[%s1397_s1 + $0x60] sm:$0xff]   ;;  %v1065_v16 = vld [vmem:[%s1397_s1 + $0x58] sm:$0xff]   ;;  %v1069_v20 = vld [vmem:[%s1397_s1 + $0x50] sm:$0xff]  }
   0x6   :  { %954 = vmatprep.subr.bf16.mxu1 %v1055_v6  ;;  %v1062_v13 = vld [vmem:[%s1397_s1 + $0x20] sm:$0xff]   ;;  %v1066_v17 = vld [vmem:[%s1397_s1 + $0x18] sm:$0xff]   ;;  %v1070_v21 = vld [vmem:[%s1397_s1 + $0x10] sm:$0xff]  }
   0x7   :  { %933 = vmatpush3.bf16.msra.mxu0 %v1054_v5  ;;  %v1063_v14 = vld [vmem:[%s1397_s1 + $0xe0] sm:$0xff]   ;;  %v1067_v18 = vld [vmem:[%s1397_s1 + $0xd8] sm:$0xff]   ;;  %v1071_v22 = vld [vmem:[%s1397_s1 + $0xd0] sm:$0xff]  }
   0x8   :  { %934 = vmatprep.subr.bf16.mxu0 %v1057_v8  ;;  %v1064_v15 = vld [vmem:[%s1397_s1 + $0xa0] sm:$0xff]   ;;  %v1068_v19 = vld [vmem:[%s1397_s1 + $0x98] sm:$0xff]   ;;  %v1072_v23 = vld [vmem:[%s1397_s1 + $0x90] sm:$0xff]  }
   0x9   :  { %955 = vmatpush3.bf16.msra.mxu1 %v1056_v7  ;;  %v1073_v24 = vld [vmem:[%s1397_s1 + $0x48] sm:$0xff]   ;;  %v1077_v28 = vld [vmem:[%s1397_s1 + $0x40] sm:$0xff]   ;;  %v1083_v35 = vld [vmem:[%s1397_s1 + $0x178] sm:$0xff]  }
   0xa   :  { %956 = vmatprep.subr.bf16.mxu1 %v1059_v10  ;;  %v1074_v25 = vld [vmem:[%s1397_s1 + $0x8] sm:$0xff]   ;;  %v1078_v29 = vld [vmem:[%s1397_s1] sm:$0xff]   ;;  %v1086_v39 = vld [vmem:[%s1397_s1 + $0x138] sm:$0xff]  }
   0xb   :  { %935 = vmatpush3.bf16.msra.mxu0 %v1058_v9  ;;  %v1075_v26 = vld [vmem:[%s1397_s1 + $0xc8] sm:$0xff]   ;;  %v1079_v30 = vld [vmem:[%s1397_s1 + $0xc0] sm:$0xff]   ;;  %v1087_v40 = vld [vmem:[%s1397_s1 + $0x1f8] sm:$0xff]   ;;  %v1130_v9 = vmov 0.0  }
   0xc   :  { %936 = vmatprep.subr.bf16.mxu0 %v1061_v12  ;;  %v1076_v27 = vld [vmem:[%s1397_s1 + $0x88] sm:$0xff]   ;;  %v18_v31 = vld [vmem:[%s1398_s0] sm:$0xff]  ;;  %v1088_v41 = vld [vmem:[%s1397_s1 + $0x1b8] sm:$0xff]  }
   0xd   :  { %957 = vmatpush3.bf16.msra.mxu1 %v1060_v11  ;;  %v849_v32 = vcombine.low %v18_v31, %v18_v31  ;;  %v850_v33 = vcombine.high %v18_v31, %v18_v31  ;;  %v1082_v34 = vld [vmem:[%s1397_s1 + $0x80] sm:$0xff]   ;;  %v19_v36 = vld [vmem:[%s1398_s0 + $0x8] sm:$0xff]  ;;  %v1089_v42 = vld [vmem:[%s1397_s1 + $0x170] sm:$0xff]  }
   0xe   :  { %958 = vmatprep.subr.bf16.mxu1 %v1063_v14  ;;  %v851_v37 = vcombine.low %v19_v36, %v19_v36  ;;  %v852_v38 = vcombine.high %v19_v36, %v19_v36  ;;  %v1090_v43 = vld [vmem:[%s1397_s1 + $0x130] sm:$0xff]   ;;  %v1093_v46 = vld [vmem:[%s1397_s1 + $0x168] sm:$0xff]   ;;  %v1097_v50 = vld [vmem:[%s1397_s1 + $0x160] sm:$0xff]  }
   0xf   :  { %937 = vmatpush3.bf16.msra.mxu0 %v1062_v13  ;;  %670 = vmatprep.mubr.bf16.mxu0 %v850_v33  ;;  %v1091_v44 = vld [vmem:[%s1397_s1 + $0x1f0] sm:$0xff]   ;;  %v1094_v47 = vld [vmem:[%s1397_s1 + $0x128] sm:$0xff]   ;;  %v1098_v51 = vld [vmem:[%s1397_s1 + $0x120] sm:$0xff]  }
  0x10   :  { %938 = vmatprep.subr.bf16.mxu0 %v1065_v16  ;;  %710 = vmatprep.mubr.bf16.mxu1 %v852_v38  ;;  %v1092_v45 = vld [vmem:[%s1397_s1 + $0x1b0] sm:$0xff]   ;;  %v1095_v48 = vld [vmem:[%s1397_s1 + $0x1e8] sm:$0xff]   ;;  %v1099_v52 = vld [vmem:[%s1397_s1 + $0x1e0] sm:$0xff]  }
  0x11   :  { %959 = vmatpush3.bf16.msra.mxu1 %v1064_v15  ;;  %v1096_v49 = vld [vmem:[%s1397_s1 + $0x1a8] sm:$0xff]   ;;  %v1100_v53 = vld [vmem:[%s1397_s1 + $0x1a0] sm:$0xff]   ;;  %v1101_v54 = vld [vmem:[%s1397_s1 + $0x158] sm:$0xff]  }
  0x12   :  { %960 = vmatprep.subr.bf16.mxu1 %v1067_v18  ;;  %v1102_v55 = vld [vmem:[%s1397_s1 + $0x118] sm:$0xff]   ;;  %v1105_v58 = vld [vmem:[%s1397_s1 + $0x150] sm:$0xff]   ;;  %v1109_v62 = vld [vmem:[%s1397_s1 + $0x148] sm:$0xff]  }
  0x13   :  { %939 = vmatpush3.bf16.msra.mxu0 %v1066_v17  ;;  %v1103_v56 = vld [vmem:[%s1397_s1 + $0x1d8] sm:$0xff]   ;;  %v1106_v59 = vld [vmem:[%s1397_s1 + $0x110] sm:$0xff]   ;;  %v1110_v63 = vld [vmem:[%s1397_s1 + $0x108] sm:$0xff]  }
  0x14   :  { %940 = vmatprep.subr.bf16.mxu0 %v1069_v20  ;;  %v1104_v57 = vld [vmem:[%s1397_s1 + $0x198] sm:$0xff]   ;;  %v1107_v60 = vld [vmem:[%s1397_s1 + $0x1d0] sm:$0xff]   ;;  %v1111_v0 = vld [vmem:[%s1397_s1 + $0x1c8] sm:$0xff]  }
  0x15   :  { %961 = vmatpush3.bf16.msra.mxu1 %v1068_v19  ;;  %v1108_v61 = vld [vmem:[%s1397_s1 + $0x190] sm:$0xff]   ;;  %v1112_v1 = vld [vmem:[%s1397_s1 + $0x188] sm:$0xff]   ;;  %v1113_v2 = vld [vmem:[%s1397_s1 + $0x140] sm:$0xff]  }
  0x16   :  { %962 = vmatprep.subr.bf16.mxu1 %v1071_v22  ;;  %v1114_v3 = vld [vmem:[%s1397_s1 + $0x100] sm:$0xff]   ;;  %v20_v5 = vld [vmem:[%s1398_s0 + $0x10] sm:$0xff]  ;;  %v21_v10 = vld [vmem:[%s1398_s0 + $0x18] sm:$0xff] }
  0x17   :  { %941 = vmatpush3.bf16.msra.mxu0 %v1070_v21  ;;  %v1115_v4 = vld [vmem:[%s1397_s1 + $0x1c0] sm:$0xff]   ;;  %v853_v6 = vcombine.low %v20_v5, %v20_v5  ;;  %v854_v7 = vcombine.high %v20_v5, %v20_v5  ;;  %v855_v11 = vcombine.low %v21_v10, %v21_v10  ;;  %v856_v12 = vcombine.high %v21_v10, %v21_v10  ;;  %v1121_v13 = vld [vmem:[%s1397_s1 + $0x238] sm:$0xff]   ;;  %v1122_v14 = vld [vmem:[%s1397_s1 + $0x230] sm:$0xff]  }
  0x18   :  { %942 = vmatprep.subr.bf16.mxu0 %v1073_v24  ;;  %v1118_v8 = vld [vmem:[%s1397_s1 + $0x180] sm:$0xff]   ;;  %v1123_v15 = vld [vmem:[%s1397_s1 + $0x228] sm:$0xff]   ;;  %v1125_v17 = vld [vmem:[%s1397_s1 + $0x218] sm:$0xff]  }
  0x19   :  { %963 = vmatpush3.bf16.msra.mxu1 %v1072_v23  ;;  %v1124_v16 = vld [vmem:[%s1397_s1 + $0x220] sm:$0xff]   ;;  %v1126_v18 = vld [vmem:[%s1397_s1 + $0x210] sm:$0xff]   ;;  %v1127_v19 = vld [vmem:[%s1397_s1 + $0x208] sm:$0xff]  }
  0x1a   :  { %964 = vmatprep.subr.bf16.mxu1 %v1075_v26  ;;  %v1128_v20 = vld [vmem:[%s1397_s1 + $0x200] sm:$0xff]  }
  0x1b   :  { %943 = vmatpush3.bf16.msra.mxu0 %v1074_v25  ;;  %v1129_v21 = vld [vmem:[%s1398_s0 + $0x20] ss:$0 sps:$4 sm:$0xff]  }
  0x1c   :  { %944 = vmatprep.subr.bf16.mxu0 %v1077_v28 }
  0x1d   :  { %965 = vmatpush3.bf16.msra.mxu1 %v1076_v27 }
  0x1e   :  { %966 = vmatprep.subr.bf16.mxu1 %v1079_v30 }
  0x1f   :  { %945 = vmatpush3.bf16.msra.mxu0 %v1078_v29 }
  0x20   :  { %974 = vmatprep.subr.bf16.mxu0 %v1083_v35 }
  0x21   :  { %967 = vmatpush3.bf16.msra.mxu1 %v1082_v34 }
  0x22   :  { %671 = vmatmul.mubr.bf16.vlgmr.msra.gmra.mxu0 %v849_v32  ;;  %996 = vmatprep.subr.bf16.mxu1 %v1087_v40 }
  0x23   :  { %975 = vmatpush3.bf16.msra.mxu0 %v1086_v39  ;;  %750 = vmatprep.mubr.bf16.mxu0 %v854_v7  ;;  %v848_v39 = vld [vmem:[%s1399_s2] ss:$0 sm:$0xff] }
  0x24   :  { %711 = vmatmul.mubr.bf16.vlgmr.msra.gmra.mxu1 %v851_v37  ;;  %976 = vmatprep.subr.bf16.mxu0 %v1089_v42 }
  0x25   :  { %997 = vmatpush3.bf16.msra.mxu1 %v1088_v41  ;;  %790 = vmatprep.mubr.bf16.mxu1 %v856_v12 }
  0x26   :  { %998 = vmatprep.subr.bf16.mxu1 %v1091_v44 }
  0x27   :  { %977 = vmatpush3.bf16.msra.mxu0 %v1090_v43 }
  0x28   :  { %978 = vmatprep.subr.bf16.mxu0 %v1093_v46  ;;  %v838_v46 = vld [vmem:[%s1400_s3] sm:$0xf] }
  0x29   :  { %999 = vmatpush3.bf16.msra.mxu1 %v1092_v45 }
  0x2a   :  { %1000 = vmatprep.subr.bf16.mxu1 %v1095_v48  ;;  %v839_v48 = vunpack.c.l.bf16 %v838_v46 }
  0x2b   :  { %979 = vmatpush3.bf16.msra.mxu0 %v1094_v47 }
  0x2c   :  { %980 = vmatprep.subr.bf16.mxu0 %v1097_v50 }
  0x2d   :  { %1001 = vmatpush3.bf16.msra.mxu1 %v1096_v49 }
  0x2e   :  { %1002 = vmatprep.subr.bf16.mxu1 %v1099_v52 }
  0x2f   :  { %981 = vmatpush3.bf16.msra.mxu0 %v1098_v51 }
  0x30   :  { %982 = vmatprep.subr.bf16.mxu0 %v1101_v54 }
  0x31   :  { %1003 = vmatpush3.bf16.msra.mxu1 %v1100_v53 }
  0x32   :  { %1004 = vmatprep.subr.bf16.mxu1 %v1103_v56 }
  0x33   :  { %983 = vmatpush3.bf16.msra.mxu0 %v1102_v55 }
  0x34   :  { %984 = vmatprep.subr.bf16.mxu0 %v1105_v58 }
  0x35   :  { %1005 = vmatpush3.bf16.msra.mxu1 %v1104_v57 }
  0x36   :  { %1006 = vmatprep.subr.bf16.mxu1 %v1107_v60 }
  0x37   :  { %985 = vmatpush3.bf16.msra.mxu0 %v1106_v59 }
  0x38   :  { %986 = vmatprep.subr.bf16.mxu0 %v1109_v62 }
  0x39   :  { %1007 = vmatpush3.bf16.msra.mxu1 %v1108_v61 }
  0x3a   :  { %1008 = vmatprep.subr.bf16.mxu1 %v1111_v0 }
  0x3b   :  { %987 = vmatpush3.bf16.msra.mxu0 %v1110_v63 }
  0x3c   :  { %988 = vmatprep.subr.bf16.mxu0 %v1113_v2 }
  0x3d   :  { %1009 = vmatpush3.bf16.msra.mxu1 %v1112_v1 }
  0x3e   :  { %1010 = vmatprep.subr.bf16.mxu1 %v1115_v4 }
  0x3f   :  { %989 = vmatpush3.bf16.msra.mxu0 %v1114_v3 }
  0x40   :  { %1027 = vmatprep.subr.bf16.mxu0 %v1130_v9 }
  0x41   :  { %1011 = vmatpush3.bf16.msra.mxu1 %v1118_v8 }
  0x42   :  { %751 = vmatmul.mubr.bf16.vlgmr.msra.gmra.mxu0 %v853_v6 }
  0x43   :  { %1028 = vmatpush3.bf16.msra.mxu0 %v1121_v13  ;;  %1043 = vmatprep.mubr.msk.bf16.mxu0 %vm1131_vm0, %v1130_v9 }
  0x44   :  { %791 = vmatmul.mubr.bf16.vlgmr.msra.gmra.mxu1 %v855_v11  ;;  %1029 = vmatprep.subr.bf16.mxu0 %v1130_v9 }
  0x47   :  { %1030 = vmatpush3.bf16.msra.mxu0 %v1122_v14 }
  0x48   :  { %1031 = vmatprep.subr.bf16.mxu0 %v1130_v9 }
  0x4b   :  { %1032 = vmatpush3.bf16.msra.mxu0 %v1123_v15 }
  0x4c   :  { %1033 = vmatprep.subr.bf16.mxu0 %v1130_v9 }
  0x4f   :  { %1034 = vmatpush3.bf16.msra.mxu0 %v1124_v16 }
  0x50   :  { %1035 = vmatprep.subr.bf16.mxu0 %v1130_v9 }
  0x53   :  { %1036 = vmatpush3.bf16.msra.mxu0 %v1125_v17 }
  0x54   :  { %1037 = vmatprep.subr.bf16.mxu0 %v1130_v9 }
  0x57   :  { %1038 = vmatpush3.bf16.msra.mxu0 %v1126_v18 }
  0x58   :  { %1039 = vmatprep.subr.bf16.mxu0 %v1130_v9 }
  0x5b   :  { %1040 = vmatpush3.bf16.msra.mxu0 %v1127_v19 }
  0x5c   :  { %1041 = vmatprep.subr.bf16.mxu0 %v1130_v9 }
  0x5f   :  { %1042 = vmatpush3.bf16.msra.mxu0 %v1128_v20 }
  0x62   :  { %1044 = vmatmul.mubr.bf16.vlgmr.msra.gmra.mxu0 %v1129_v21 }
  0xe2   :  { %v946_v22 = vpop.f32.mrf.mxu0 }
  0xe4   :  { %v947_v23 = vpop.f32.mrf.mxu0  ;;  %v968_v24 = vpop.f32.mrf.mxu1 }
  0xe5   :  { %v948_v38 = vadd.f32 %v947_v23, %v946_v22 }
  0xe6   :  { %v949_v25 = vpop.f32.mrf.mxu0  ;;  %v969_v26 = vpop.f32.mrf.mxu1 }
  0xe7   :  { %v673_v40 = vadd.f32 %v948_v38, %v848_v39  ;;  %v970_v41 = vadd.f32 %v969_v26, %v968_v24 }
  0xe8   :  { %v950_v27 = vpop.f32.mrf.mxu0  ;;  %v971_v28 = vpop.f32.mrf.mxu1 }
  0xe9   :  { %v713_v43 = vadd.f32 %v970_v41, %v673_v40 }
  0xea   :  { %v972_v29 = vpop.f32.mrf.mxu1 }
 0x102   :  { %v990_v30 = vpop.f32.mrf.mxu0 }
 0x104   :  { %v991_v31 = vpop.f32.mrf.mxu0  ;;  %v1012_v32 = vpop.f32.mrf.mxu1 }
 0x105   :  { %v992_v42 = vadd.f32 %v991_v31, %v990_v30 }
 0x106   :  { %v993_v33 = vpop.f32.mrf.mxu0  ;;  %v1013_v34 = vpop.f32.mrf.mxu1 }
 0x107   :  { %v753_v44 = vadd.f32 %v992_v42, %v713_v43  ;;  %v1014_v45 = vadd.f32 %v1013_v34, %v1012_v32 }
 0x108   :  { %v994_v35 = vpop.f32.mrf.mxu0  ;;  %v1015_v36 = vpop.f32.mrf.mxu1 }
 0x109   :  { %v793_v47 = vadd.f32 %v1014_v45, %v753_v44 }
 0x10a   :  { %v1016_v37 = vpop.f32.mrf.mxu1 }
 0x122   :  { %v832_v49 = vpop.f32.mrf.mxu0 }
 0x123   :  { %v833_v50 = vadd.f32 %v832_v49, %v793_v47 }
 0x124   :  { %v1045_v51 = vpop.f32.mrf.mxu0 }
 0x125   :  { %v840_v52 = vadd.f32 %v839_v48, %v833_v50 }
 0x126   :  { %v835_v53 = vpop.f32.mrf.mxu0 }
 0x127   :  { %v841_v54 = vmax.f32 %v840_v52, 0.0 }
 0x128   :  { %v1046_v55 = vpop.f32.mrf.mxu0 }
 0x129   :  { %v842_v56 = vpack.c.bf16 %v841_v54, %v841_v54 }
 0x12b   :  { %843 = vst [vmem:[%s1401_s4] sm:$0xf] %v842_v56 }

// kernel: _lambda_.31
= control target key start
LH: loop header
LB: loop body
LE: loop exit
PB: predicated region body
PF: predicated region fallthrough
CT: control target
= control target key end

     0   :  { %vm1125_vm0 = vmmov 0   ;;  %s1383_s1 = inlined_call_operand.vmem [shape: bf16[1152,128], index: 1, kind: input, shape index: {}]   ;;  %s1384_s0 = inlined_call_operand.vmem [shape: bf16[8,1152], index: 0, kind: input, shape index: {}]   ;;  %s1385_s2 = inlined_call_operand.vmem [shape: f32[1,128], index: 2, kind: input, shape index: {}]   ;;  %s1386_s3 = inlined_call_operand.vmem [shape: bf16[8,128], index: 3, kind: output, shape index: {}]  }
   0x1   :  { %v1043_v0 = vld [vmem:[%s1383_s1 + $0x78] sm:$0xff]   ;;  %v1047_v4 = vld [vmem:[%s1383_s1 + $0x70] sm:$0xff]   ;;  %v1051_v8 = vld [vmem:[%s1383_s1 + $0x68] sm:$0xff]  }
   0x2   :  { %v1044_v1 = vld [vmem:[%s1383_s1 + $0x38] sm:$0xff]   ;;  %924 = vmatprep.subr.bf16.mxu0 %v1043_v0  ;;  %v1048_v5 = vld [vmem:[%s1383_s1 + $0x30] sm:$0xff]   ;;  %v1052_v9 = vld [vmem:[%s1383_s1 + $0x28] sm:$0xff]  }
   0x3   :  { %v1045_v2 = vld [vmem:[%s1383_s1 + $0xf8] sm:$0xff]   ;;  %925 = vmatpush3.bf16.msra.mxu0 %v1044_v1  ;;  %v1049_v6 = vld [vmem:[%s1383_s1 + $0xf0] sm:$0xff]   ;;  %v1053_v10 = vld [vmem:[%s1383_s1 + $0xe8] sm:$0xff]  }
   0x4   :  { %v1046_v3 = vld [vmem:[%s1383_s1 + $0xb8] sm:$0xff]   ;;  %946 = vmatprep.subr.bf16.mxu1 %v1045_v2  ;;  %926 = vmatprep.subr.bf16.mxu0 %v1047_v4  ;;  %v1050_v7 = vld [vmem:[%s1383_s1 + $0xb0] sm:$0xff]   ;;  %v1054_v11 = vld [vmem:[%s1383_s1 + $0xa8] sm:$0xff]  }
   0x5   :  { %947 = vmatpush3.bf16.msra.mxu1 %v1046_v3  ;;  %v1055_v12 = vld [vmem:[%s1383_s1 + $0x60] sm:$0xff]   ;;  %v1059_v16 = vld [vmem:[%s1383_s1 + $0x58] sm:$0xff]   ;;  %v1063_v20 = vld [vmem:[%s1383_s1 + $0x50] sm:$0xff]  }
   0x6   :  { %948 = vmatprep.subr.bf16.mxu1 %v1049_v6  ;;  %v1056_v13 = vld [vmem:[%s1383_s1 + $0x20] sm:$0xff]   ;;  %v1060_v17 = vld [vmem:[%s1383_s1 + $0x18] sm:$0xff]   ;;  %v1064_v21 = vld [vmem:[%s1383_s1 + $0x10] sm:$0xff]  }
   0x7   :  { %927 = vmatpush3.bf16.msra.mxu0 %v1048_v5  ;;  %v1057_v14 = vld [vmem:[%s1383_s1 + $0xe0] sm:$0xff]   ;;  %v1061_v18 = vld [vmem:[%s1383_s1 + $0xd8] sm:$0xff]   ;;  %v1065_v22 = vld [vmem:[%s1383_s1 + $0xd0] sm:$0xff]  }
   0x8   :  { %928 = vmatprep.subr.bf16.mxu0 %v1051_v8  ;;  %v1058_v15 = vld [vmem:[%s1383_s1 + $0xa0] sm:$0xff]   ;;  %v1062_v19 = vld [vmem:[%s1383_s1 + $0x98] sm:$0xff]   ;;  %v1066_v23 = vld [vmem:[%s1383_s1 + $0x90] sm:$0xff]  }
   0x9   :  { %949 = vmatpush3.bf16.msra.mxu1 %v1050_v7  ;;  %v1067_v24 = vld [vmem:[%s1383_s1 + $0x48] sm:$0xff]   ;;  %v1071_v28 = vld [vmem:[%s1383_s1 + $0x40] sm:$0xff]   ;;  %v1077_v35 = vld [vmem:[%s1383_s1 + $0x178] sm:$0xff]  }
   0xa   :  { %950 = vmatprep.subr.bf16.mxu1 %v1053_v10  ;;  %v1068_v25 = vld [vmem:[%s1383_s1 + $0x8] sm:$0xff]   ;;  %v1072_v29 = vld [vmem:[%s1383_s1] sm:$0xff]   ;;  %v1080_v39 = vld [vmem:[%s1383_s1 + $0x138] sm:$0xff]  }
   0xb   :  { %929 = vmatpush3.bf16.msra.mxu0 %v1052_v9  ;;  %v1069_v26 = vld [vmem:[%s1383_s1 + $0xc8] sm:$0xff]   ;;  %v1073_v30 = vld [vmem:[%s1383_s1 + $0xc0] sm:$0xff]   ;;  %v1081_v40 = vld [vmem:[%s1383_s1 + $0x1f8] sm:$0xff]   ;;  %v1124_v9 = vmov 0.0  }
   0xc   :  { %930 = vmatprep.subr.bf16.mxu0 %v1055_v12  ;;  %v1070_v27 = vld [vmem:[%s1383_s1 + $0x88] sm:$0xff]   ;;  %v15_v31 = vld [vmem:[%s1384_s0] sm:$0xff]  ;;  %v1082_v41 = vld [vmem:[%s1383_s1 + $0x1b8] sm:$0xff]  }
   0xd   :  { %951 = vmatpush3.bf16.msra.mxu1 %v1054_v11  ;;  %v843_v32 = vcombine.low %v15_v31, %v15_v31  ;;  %v844_v33 = vcombine.high %v15_v31, %v15_v31  ;;  %v1076_v34 = vld [vmem:[%s1383_s1 + $0x80] sm:$0xff]   ;;  %v16_v36 = vld [vmem:[%s1384_s0 + $0x8] sm:$0xff]  ;;  %v1083_v42 = vld [vmem:[%s1383_s1 + $0x170] sm:$0xff]  }
   0xe   :  { %952 = vmatprep.subr.bf16.mxu1 %v1057_v14  ;;  %v845_v37 = vcombine.low %v16_v36, %v16_v36  ;;  %v846_v38 = vcombine.high %v16_v36, %v16_v36  ;;  %v1084_v43 = vld [vmem:[%s1383_s1 + $0x130] sm:$0xff]   ;;  %v1087_v46 = vld [vmem:[%s1383_s1 + $0x168] sm:$0xff]   ;;  %v1091_v50 = vld [vmem:[%s1383_s1 + $0x160] sm:$0xff]  }
   0xf   :  { %931 = vmatpush3.bf16.msra.mxu0 %v1056_v13  ;;  %667 = vmatprep.mubr.bf16.mxu0 %v844_v33  ;;  %v1085_v44 = vld [vmem:[%s1383_s1 + $0x1f0] sm:$0xff]   ;;  %v1088_v47 = vld [vmem:[%s1383_s1 + $0x128] sm:$0xff]   ;;  %v1092_v51 = vld [vmem:[%s1383_s1 + $0x120] sm:$0xff]  }
  0x10   :  { %932 = vmatprep.subr.bf16.mxu0 %v1059_v16  ;;  %707 = vmatprep.mubr.bf16.mxu1 %v846_v38  ;;  %v1086_v45 = vld [vmem:[%s1383_s1 + $0x1b0] sm:$0xff]   ;;  %v1089_v48 = vld [vmem:[%s1383_s1 + $0x1e8] sm:$0xff]   ;;  %v1093_v52 = vld [vmem:[%s1383_s1 + $0x1e0] sm:$0xff]  }
  0x11   :  { %953 = vmatpush3.bf16.msra.mxu1 %v1058_v15  ;;  %v1090_v49 = vld [vmem:[%s1383_s1 + $0x1a8] sm:$0xff]   ;;  %v1094_v53 = vld [vmem:[%s1383_s1 + $0x1a0] sm:$0xff]   ;;  %v1095_v54 = vld [vmem:[%s1383_s1 + $0x158] sm:$0xff]  }
  0x12   :  { %954 = vmatprep.subr.bf16.mxu1 %v1061_v18  ;;  %v1096_v55 = vld [vmem:[%s1383_s1 + $0x118] sm:$0xff]   ;;  %v1099_v58 = vld [vmem:[%s1383_s1 + $0x150] sm:$0xff]   ;;  %v1103_v62 = vld [vmem:[%s1383_s1 + $0x148] sm:$0xff]  }
  0x13   :  { %933 = vmatpush3.bf16.msra.mxu0 %v1060_v17  ;;  %v1097_v56 = vld [vmem:[%s1383_s1 + $0x1d8] sm:$0xff]   ;;  %v1100_v59 = vld [vmem:[%s1383_s1 + $0x110] sm:$0xff]   ;;  %v1104_v63 = vld [vmem:[%s1383_s1 + $0x108] sm:$0xff]  }
  0x14   :  { %934 = vmatprep.subr.bf16.mxu0 %v1063_v20  ;;  %v1098_v57 = vld [vmem:[%s1383_s1 + $0x198] sm:$0xff]   ;;  %v1101_v60 = vld [vmem:[%s1383_s1 + $0x1d0] sm:$0xff]   ;;  %v1105_v0 = vld [vmem:[%s1383_s1 + $0x1c8] sm:$0xff]  }
  0x15   :  { %955 = vmatpush3.bf16.msra.mxu1 %v1062_v19  ;;  %v1102_v61 = vld [vmem:[%s1383_s1 + $0x190] sm:$0xff]   ;;  %v1106_v1 = vld [vmem:[%s1383_s1 + $0x188] sm:$0xff]   ;;  %v1107_v2 = vld [vmem:[%s1383_s1 + $0x140] sm:$0xff]  }
  0x16   :  { %956 = vmatprep.subr.bf16.mxu1 %v1065_v22  ;;  %v1108_v3 = vld [vmem:[%s1383_s1 + $0x100] sm:$0xff]   ;;  %v17_v5 = vld [vmem:[%s1384_s0 + $0x10] sm:$0xff]  ;;  %v18_v10 = vld [vmem:[%s1384_s0 + $0x18] sm:$0xff] }
  0x17   :  { %935 = vmatpush3.bf16.msra.mxu0 %v1064_v21  ;;  %v1109_v4 = vld [vmem:[%s1383_s1 + $0x1c0] sm:$0xff]   ;;  %v847_v6 = vcombine.low %v17_v5, %v17_v5  ;;  %v848_v7 = vcombine.high %v17_v5, %v17_v5  ;;  %v849_v11 = vcombine.low %v18_v10, %v18_v10  ;;  %v850_v12 = vcombine.high %v18_v10, %v18_v10  ;;  %v1115_v13 = vld [vmem:[%s1383_s1 + $0x238] sm:$0xff]   ;;  %v1116_v14 = vld [vmem:[%s1383_s1 + $0x230] sm:$0xff]  }
  0x18   :  { %936 = vmatprep.subr.bf16.mxu0 %v1067_v24  ;;  %v1112_v8 = vld [vmem:[%s1383_s1 + $0x180] sm:$0xff]   ;;  %v1117_v15 = vld [vmem:[%s1383_s1 + $0x228] sm:$0xff]   ;;  %v1119_v17 = vld [vmem:[%s1383_s1 + $0x218] sm:$0xff]  }
  0x19   :  { %957 = vmatpush3.bf16.msra.mxu1 %v1066_v23  ;;  %v1118_v16 = vld [vmem:[%s1383_s1 + $0x220] sm:$0xff]   ;;  %v1120_v18 = vld [vmem:[%s1383_s1 + $0x210] sm:$0xff]   ;;  %v1121_v19 = vld [vmem:[%s1383_s1 + $0x208] sm:$0xff]  }
  0x1a   :  { %958 = vmatprep.subr.bf16.mxu1 %v1069_v26  ;;  %v1122_v20 = vld [vmem:[%s1383_s1 + $0x200] sm:$0xff]  }
  0x1b   :  { %937 = vmatpush3.bf16.msra.mxu0 %v1068_v25  ;;  %v1123_v21 = vld [vmem:[%s1384_s0 + $0x20] ss:$0 sps:$4 sm:$0xff]  }
  0x1c   :  { %938 = vmatprep.subr.bf16.mxu0 %v1071_v28 }
  0x1d   :  { %959 = vmatpush3.bf16.msra.mxu1 %v1070_v27 }
  0x1e   :  { %960 = vmatprep.subr.bf16.mxu1 %v1073_v30 }
  0x1f   :  { %939 = vmatpush3.bf16.msra.mxu0 %v1072_v29 }
  0x20   :  { %968 = vmatprep.subr.bf16.mxu0 %v1077_v35 }
  0x21   :  { %961 = vmatpush3.bf16.msra.mxu1 %v1076_v34 }
  0x22   :  { %668 = vmatmul.mubr.bf16.vlgmr.msra.gmra.mxu0 %v843_v32  ;;  %990 = vmatprep.subr.bf16.mxu1 %v1081_v40 }
  0x23   :  { %969 = vmatpush3.bf16.msra.mxu0 %v1080_v39  ;;  %747 = vmatprep.mubr.bf16.mxu0 %v848_v7  ;;  %v842_v39 = vld [vmem:[%s1385_s2] ss:$0 sm:$0xff] }
  0x24   :  { %708 = vmatmul.mubr.bf16.vlgmr.msra.gmra.mxu1 %v845_v37  ;;  %970 = vmatprep.subr.bf16.mxu0 %v1083_v42 }
  0x25   :  { %991 = vmatpush3.bf16.msra.mxu1 %v1082_v41  ;;  %787 = vmatprep.mubr.bf16.mxu1 %v850_v12 }
  0x26   :  { %992 = vmatprep.subr.bf16.mxu1 %v1085_v44 }
  0x27   :  { %971 = vmatpush3.bf16.msra.mxu0 %v1084_v43 }
  0x28   :  { %972 = vmatprep.subr.bf16.mxu0 %v1087_v46 }
  0x29   :  { %993 = vmatpush3.bf16.msra.mxu1 %v1086_v45 }
  0x2a   :  { %994 = vmatprep.subr.bf16.mxu1 %v1089_v48 }
  0x2b   :  { %973 = vmatpush3.bf16.msra.mxu0 %v1088_v47 }
  0x2c   :  { %974 = vmatprep.subr.bf16.mxu0 %v1091_v50 }
  0x2d   :  { %995 = vmatpush3.bf16.msra.mxu1 %v1090_v49 }
  0x2e   :  { %996 = vmatprep.subr.bf16.mxu1 %v1093_v52 }
  0x2f   :  { %975 = vmatpush3.bf16.msra.mxu0 %v1092_v51 }
  0x30   :  { %976 = vmatprep.subr.bf16.mxu0 %v1095_v54 }
  0x31   :  { %997 = vmatpush3.bf16.msra.mxu1 %v1094_v53 }
  0x32   :  { %998 = vmatprep.subr.bf16.mxu1 %v1097_v56 }
  0x33   :  { %977 = vmatpush3.bf16.msra.mxu0 %v1096_v55 }
  0x34   :  { %978 = vmatprep.subr.bf16.mxu0 %v1099_v58 }
  0x35   :  { %999 = vmatpush3.bf16.msra.mxu1 %v1098_v57 }
  0x36   :  { %1000 = vmatprep.subr.bf16.mxu1 %v1101_v60 }
  0x37   :  { %979 = vmatpush3.bf16.msra.mxu0 %v1100_v59 }
  0x38   :  { %980 = vmatprep.subr.bf16.mxu0 %v1103_v62 }
  0x39   :  { %1001 = vmatpush3.bf16.msra.mxu1 %v1102_v61 }
  0x3a   :  { %1002 = vmatprep.subr.bf16.mxu1 %v1105_v0 }
  0x3b   :  { %981 = vmatpush3.bf16.msra.mxu0 %v1104_v63 }
  0x3c   :  { %982 = vmatprep.subr.bf16.mxu0 %v1107_v2 }
  0x3d   :  { %1003 = vmatpush3.bf16.msra.mxu1 %v1106_v1 }
  0x3e   :  { %1004 = vmatprep.subr.bf16.mxu1 %v1109_v4 }
  0x3f   :  { %983 = vmatpush3.bf16.msra.mxu0 %v1108_v3 }
  0x40   :  { %1021 = vmatprep.subr.bf16.mxu0 %v1124_v9 }
  0x41   :  { %1005 = vmatpush3.bf16.msra.mxu1 %v1112_v8 }
  0x42   :  { %748 = vmatmul.mubr.bf16.vlgmr.msra.gmra.mxu0 %v847_v6 }
  0x43   :  { %1022 = vmatpush3.bf16.msra.mxu0 %v1115_v13  ;;  %1037 = vmatprep.mubr.msk.bf16.mxu0 %vm1125_vm0, %v1124_v9 }
  0x44   :  { %788 = vmatmul.mubr.bf16.vlgmr.msra.gmra.mxu1 %v849_v11  ;;  %1023 = vmatprep.subr.bf16.mxu0 %v1124_v9 }
  0x47   :  { %1024 = vmatpush3.bf16.msra.mxu0 %v1116_v14 }
  0x48   :  { %1025 = vmatprep.subr.bf16.mxu0 %v1124_v9 }
  0x4b   :  { %1026 = vmatpush3.bf16.msra.mxu0 %v1117_v15 }
  0x4c   :  { %1027 = vmatprep.subr.bf16.mxu0 %v1124_v9 }
  0x4f   :  { %1028 = vmatpush3.bf16.msra.mxu0 %v1118_v16 }
  0x50   :  { %1029 = vmatprep.subr.bf16.mxu0 %v1124_v9 }
  0x53   :  { %1030 = vmatpush3.bf16.msra.mxu0 %v1119_v17 }
  0x54   :  { %1031 = vmatprep.subr.bf16.mxu0 %v1124_v9 }
  0x57   :  { %1032 = vmatpush3.bf16.msra.mxu0 %v1120_v18 }
  0x58   :  { %1033 = vmatprep.subr.bf16.mxu0 %v1124_v9 }
  0x5b   :  { %1034 = vmatpush3.bf16.msra.mxu0 %v1121_v19 }
  0x5c   :  { %1035 = vmatprep.subr.bf16.mxu0 %v1124_v9 }
  0x5f   :  { %1036 = vmatpush3.bf16.msra.mxu0 %v1122_v20 }
  0x62   :  { %1038 = vmatmul.mubr.bf16.vlgmr.msra.gmra.mxu0 %v1123_v21 }
  0xe2   :  { %v940_v22 = vpop.f32.mrf.mxu0 }
  0xe4   :  { %v941_v23 = vpop.f32.mrf.mxu0  ;;  %v962_v24 = vpop.f32.mrf.mxu1 }
  0xe5   :  { %v942_v38 = vadd.f32 %v941_v23, %v940_v22 }
  0xe6   :  { %v943_v25 = vpop.f32.mrf.mxu0  ;;  %v963_v26 = vpop.f32.mrf.mxu1 }
  0xe7   :  { %v670_v40 = vadd.f32 %v942_v38, %v842_v39  ;;  %v964_v41 = vadd.f32 %v963_v26, %v962_v24 }
  0xe8   :  { %v944_v27 = vpop.f32.mrf.mxu0  ;;  %v965_v28 = vpop.f32.mrf.mxu1 }
  0xe9   :  { %v710_v43 = vadd.f32 %v964_v41, %v670_v40 }
  0xea   :  { %v966_v29 = vpop.f32.mrf.mxu1 }
 0x102   :  { %v984_v30 = vpop.f32.mrf.mxu0 }
 0x104   :  { %v985_v31 = vpop.f32.mrf.mxu0  ;;  %v1006_v32 = vpop.f32.mrf.mxu1 }
 0x105   :  { %v986_v42 = vadd.f32 %v985_v31, %v984_v30 }
 0x106   :  { %v987_v33 = vpop.f32.mrf.mxu0  ;;  %v1007_v34 = vpop.f32.mrf.mxu1 }
 0x107   :  { %v750_v44 = vadd.f32 %v986_v42, %v710_v43  ;;  %v1008_v45 = vadd.f32 %v1007_v34, %v1006_v32 }
 0x108   :  { %v988_v35 = vpop.f32.mrf.mxu0  ;;  %v1009_v36 = vpop.f32.mrf.mxu1 }
 0x109   :  { %v790_v46 = vadd.f32 %v1008_v45, %v750_v44 }
 0x10a   :  { %v1010_v37 = vpop.f32.mrf.mxu1 }
 0x122   :  { %v829_v47 = vpop.f32.mrf.mxu0 }
 0x123   :  { %v830_v48 = vadd.f32 %v829_v47, %v790_v46 }
 0x124   :  { %v1039_v49 = vpop.f32.mrf.mxu0 }
 0x125   :  { %v835_v50 = vmax.f32 %v830_v48, 0.0 }
 0x126   :  { %v832_v51 = vpop.f32.mrf.mxu0 }
 0x127   :  { %v836_v52 = vpack.c.bf16 %v835_v50, %v835_v50 }
 0x128   :  { %v1040_v53 = vpop.f32.mrf.mxu0 }
 0x129   :  { %837 = vst [vmem:[%s1386_s3] sm:$0xf] %v836_v52 }

// kernel: _lambda_.34
= control target key start
LH: loop header
LB: loop body
LE: loop exit
PB: predicated region body
PF: predicated region fallthrough
CT: control target
= control target key end

     0   :  { %s710_s12 = smov 0   ;;  %s712_s13 = smov 0   ;;  %s800_s0 = inlined_call_operand.vmem [shape: bf16[8,128], index: 0, kind: input, shape index: {}]   ;;  %s801_s1 = inlined_call_operand.vmem [shape: bf16[128,256], index: 1, kind: input, shape index: {}]   ;;  %s802_s2 = inlined_call_operand.vmem [shape: f32[1,256], index: 2, kind: input, shape index: {}]   ;;  %s803_s3 = inlined_call_operand.vmem [shape: bf16[8,256], index: 3, kind: output, shape index: {}]  }
   0x1   :  { %s714_s14 = smov 0   ;;  %s716_s15 = smov 0  }
   0x2   :  { %s718_s16 = smov 0  }
   0x3 LB: > { %s22_s17 = sadd.s32 1, %s682_s15  ;;  %p65_p1 = scmp.ne.s32.totalorder %s674_s13, %s670_s12  ;;  %s686_s16 = sphi %s718_s16, %s13_s16   ;;  %s682_s15 = sphi %s716_s15, %s807_s15   ;;  %s678_s14 = sphi %s714_s14, %s806_s14   ;;  %s674_s13 = sphi %s712_s13, %s805_s13   ;;  %s670_s12 = sphi %s710_s12, %s804_s12  }
   0x4   : > { %p23_p0 = scmp.ge.s32.totalorder %s22_s17, 2  ;;  %p66_p2 = scmp.eq.s32.totalorder %s686_s16, 0 }
   0x5   : > { %s58_s19 = sadd.s32 1, %s674_s13  ;;  %p552_p5 = scmp.ge.s32.totalorder %s686_s16, 2 }
   0x6   : > { %s809_s17 = smov (%p23_p0, %s22_s17), 0  ;;  %p67_p3 = por %p66_p2, %p65_p1 }
   0x7   : > { %s55_s18 = ssub.s32 %s682_s15, %s809_s17  ;;  %152 = sbr.rel (%p552_p5) target bundleno = 26 (0x1a), region = 20 }
   0x8   : > { %p56_p4 = scmp.eq.s32.totalorder %s55_s18, 0 }
   0xa   : > { %s745_s20 = scalar_select %p56_p4, %s674_s13, %s58_s19  }
   0xc   : > { %155 = sbr.rel (!%p67_p3) target bundleno = 26 (0x1a), region = 24  ;;  %s157_s21 = sand.u32 (%p67_p3), 1, %s674_s13  }
   0xd   : > { %s554_s22 = sshll.u32 (%p67_p3), %s682_s15, 2  ;;  %s553_s23 = sshll.u32 (%p67_p3), %s157_s21, 6 }
   0xe   : > { %s753_s26 = scalar_lea.vmem (%p67_p3), %s801_s1, %s554_s22  ;;  %s159_s27 = scalar_lea.vmem (%p67_p3), [#allocation2], %s553_s23 }
   0xf   : > { %v178_v0 = vld [vmem:[%s753_s26] sm:$0xf] (%p67_p3)  ;;  %v180_v1 = vld [vmem:[%s753_s26 + $0x8] sm:$0xf] (%p67_p3)  ;;  %v182_v2 = vld [vmem:[%s753_s26 + $0x10] sm:$0xf] (%p67_p3) }
  0x10   : > { %179 = vst [vmem:[%s159_s27] sm:$0xf] (%p67_p3), %v178_v0  ;;  %181 = vst [vmem:[%s159_s27 + $0x4] sm:$0xf] (%p67_p3), %v180_v1  ;;  %v184_v3 = vld [vmem:[%s753_s26 + $0x18] sm:$0xf] (%p67_p3) }
  0x11   : > { %v186_v4 = vld [vmem:[%s753_s26 + $0x20] sm:$0xf]  ;;  %183 = vst [vmem:[%s159_s27 + $0x8] sm:$0xf] %v182_v2  ;;  %185 = vst [vmem:[%s159_s27 + $0xc] sm:$0xf] %v184_v3 }
  0x12   : > { %187 = vst [vmem:[%s159_s27 + $0x10] sm:$0xf] %v186_v4  ;;  %v188_v5 = vld [vmem:[%s753_s26 + $0x28] sm:$0xf]  ;;  %v190_v6 = vld [vmem:[%s753_s26 + $0x30] sm:$0xf] }
  0x13   : > { %v192_v7 = vld [vmem:[%s753_s26 + $0x38] sm:$0xf]  ;;  %189 = vst [vmem:[%s159_s27 + $0x14] sm:$0xf] %v188_v5  ;;  %191 = vst [vmem:[%s159_s27 + $0x18] sm:$0xf] %v190_v6 }
  0x14   : > { %193 = vst [vmem:[%s159_s27 + $0x1c] sm:$0xf] %v192_v7  ;;  %v194_v8 = vld [vmem:[%s753_s26 + $0x40] sm:$0xf]  ;;  %v196_v9 = vld [vmem:[%s753_s26 + $0x48] sm:$0xf] }
  0x15   : > { %v198_v10 = vld [vmem:[%s753_s26 + $0x50] sm:$0xf]  ;;  %195 = vst [vmem:[%s159_s27 + $0x20] sm:$0xf] %v194_v8  ;;  %197 = vst [vmem:[%s159_s27 + $0x24] sm:$0xf] %v196_v9 }
  0x16   : > { %199 = vst [vmem:[%s159_s27 + $0x28] sm:$0xf] %v198_v10  ;;  %v200_v11 = vld [vmem:[%s753_s26 + $0x58] sm:$0xf]  ;;  %v202_v12 = vld [vmem:[%s753_s26 + $0x60] sm:$0xf] }
  0x17   : > { %v204_v13 = vld [vmem:[%s753_s26 + $0x68] sm:$0xf]  ;;  %201 = vst [vmem:[%s159_s27 + $0x2c] sm:$0xf] %v200_v11  ;;  %203 = vst [vmem:[%s159_s27 + $0x30] sm:$0xf] %v202_v12 }
  0x18   : > { %205 = vst [vmem:[%s159_s27 + $0x34] sm:$0xf] %v204_v13  ;;  %v206_v14 = vld [vmem:[%s753_s26 + $0x70] sm:$0xf]  ;;  %v208_v15 = vld [vmem:[%s753_s26 + $0x78] sm:$0xf] }
  0x19   : > { %207 = vst [vmem:[%s159_s27 + $0x38] sm:$0xf] %v206_v14  ;;  %209 = vst [vmem:[%s159_s27 + $0x3c] sm:$0xf] %v208_v15 }
  0x1a PF: > { %p555_p6 = scmp.ge.s32.totalorder %s686_s16, 1  ;;  %p270_p7 = scmp.lt.s32.totalorder %s686_s16, 3 }
  0x1c   : > { %p271_p8 = pnand %p555_p6, %p270_p7 }
  0x1d   : > { %s277_s28 = sand.u32 (!%p271_p8), 1, %s670_s12   ;;  %p314_p9 = scmp.lt.s32.totalorder (!%p271_p8), %s678_s14, 1 }
  0x1e   : > { %274 = sbr.rel (%p271_p8) target bundleno = 267 (0x10b), region = 69  ;;  %s556_s29 = sshll.u32 (!%p271_p8), %s277_s28, 6 }
  0x1f   : > { %s279_s30 = scalar_lea.vmem (!%p271_p8), [#allocation2], %s556_s29 }
  0x23   : > { %v688_v16 = vmov 0.0   ;;  %vm689_vm0 = vmmov 0   ;;  %v640_v17 = vld [vmem:[%s279_s30 + $0x38] sm:$0xff]   ;;  %v641_v18 = vld [vmem:[%s279_s30 + $0x30] sm:$0xff]   ;;  %v642_v19 = vld [vmem:[%s279_s30 + $0x28] sm:$0xff]   ;;  %s811_s14 = smov (!%p314_p9, %s678_s14), 1 }
  0x24   : > { %578 = vmatprep.subr.bf16.mxu0 %v688_v16  ;;  %594 = vmatprep.mubr.msk.bf16.mxu0 %vm689_vm0, %v688_v16  ;;  %v643_v20 = vld [vmem:[%s279_s30 + $0x20] sm:$0xff]   ;;  %v644_v21 = vld [vmem:[%s279_s30 + $0x18] sm:$0xff]   ;;  %v645_v22 = vld [vmem:[%s279_s30 + $0x10] sm:$0xff]   ;;  %s316_s8 = scalar_lea.vmem %s802_s2, %s811_s14  ;;  %s557_s9 = sshll.u32 %s811_s14, 2 }
  0x25   : > { %579 = vmatpush3.bf16.msra.mxu0 %v640_v17  ;;  %v646_v23 = vld [vmem:[%s279_s30 + $0x8] sm:$0xff]   ;;  %v647_v24 = vld [vmem:[%s279_s30] sm:$0xff]   ;;  %s324_s12 = scalar_lea.vmem %s803_s3, %s557_s9 }
  0x26   : > { %580 = vmatprep.subr.bf16.mxu0 %v688_v16  ;;  %v326_v25 = vld [vmem:[%s800_s0] sm:$0xf] }
  0x27   : > { %v558_v26 = vld [vmem:[%s316_s8] ss:$0 sm:$0xff] }
  0x29   : > { %581 = vmatpush3.bf16.msra.mxu0 %v641_v18 }
  0x2a   : > { %582 = vmatprep.subr.bf16.mxu0 %v688_v16 }
  0x2d   : > { %583 = vmatpush3.bf16.msra.mxu0 %v642_v19 }
  0x2e   : > { %584 = vmatprep.subr.bf16.mxu0 %v688_v16 }
  0x31   : > { %585 = vmatpush3.bf16.msra.mxu0 %v643_v20 }
  0x32   : > { %586 = vmatprep.subr.bf16.mxu0 %v688_v16 }
  0x35   : > { %587 = vmatpush3.bf16.msra.mxu0 %v644_v21 }
  0x36   : > { %588 = vmatprep.subr.bf16.mxu0 %v688_v16 }
  0x39   : > { %589 = vmatpush3.bf16.msra.mxu0 %v645_v22 }
  0x3a   : > { %590 = vmatprep.subr.bf16.mxu0 %v688_v16 }
  0x3d   : > { %591 = vmatpush3.bf16.msra.mxu0 %v646_v23 }
  0x3e   : > { %592 = vmatprep.subr.bf16.mxu0 %v688_v16 }
  0x41   : > { %593 = vmatpush3.bf16.msra.mxu0 %v647_v24 }
  0x44   : > { %595 = vmatmul.mubr.bf16.vlgmr.msra.gmra.mxu0 %v326_v25 }
 0x104   : > { %v432_v27 = vpop.f32.mrf.mxu0 }
 0x105   : > { %v433_v28 = vadd.f32 %v558_v26, %v432_v27 }
 0x106   : > { %v596_v29 = vpop.f32.mrf.mxu0 }
 0x107   : > { %v438_v30 = vpack.c.bf16 %v433_v28, %v433_v28 }
 0x108   : > { %v435_v31 = vpop.f32.mrf.mxu0 }
 0x109   : > { %439 = vst [vmem:[%s324_s12] sm:$0xf] %v438_v30 }
 0x10a   : > { %v597_v32 = vpop.f32.mrf.mxu0 }
 0x10b PF: > { %s13_s16 = sadd.s32 1, %s686_s16   ;;  %s804_s12 = smov %s674_s13 }
 0x10c   : > { %p10_p10 = scmp.ge.s32.totalorder %s13_s16, 4   ;;  %s805_s13 = smov %s745_s20 }
 0x10d   : > { %s806_s14 = smov %s682_s15  ;;  %s807_s15 = smov %s809_s17 }
 0x10e   :  { %12 = sbr.rel (!%p10_p10) target bundleno = 3 (0x3), region = 114 }

// kernel: _lambda_.33
= control target key start
LH: loop header
LB: loop body
LE: loop exit
PB: predicated region body
PF: predicated region fallthrough
CT: control target
= control target key end

     0   :  { %s2168_s12 = smov 0   ;;  %s2170_s13 = smov 0   ;;  %s2642_s0 = inlined_call_operand.vmem [shape: bf16[8,1152], index: 0, kind: input, shape index: {}]   ;;  %s2643_s1 = inlined_call_operand.vmem [shape: bf16[1152,256], index: 1, kind: input, shape index: {}]   ;;  %s2644_s2 = inlined_call_operand.vmem [shape: f32[1,256], index: 2, kind: input, shape index: {}]   ;;  %s2645_s3 = inlined_call_operand.vmem [shape: bf16[8,256], index: 3, kind: output, shape index: {}]  }
   0x1   :  { %s2172_s14 = smov 0   ;;  %s2174_s15 = smov 0  }
   0x2   :  { %s2176_s16 = smov 0  }
   0x3 LB: > { %s22_s17 = sadd.s32 1, %s2140_s15  ;;  %p65_p1 = scmp.ne.s32.totalorder %s2132_s13, %s2128_s12  ;;  %s2144_s16 = sphi %s2176_s16, %s13_s16   ;;  %s2140_s15 = sphi %s2174_s15, %s2649_s15   ;;  %s2136_s14 = sphi %s2172_s14, %s2648_s14   ;;  %s2132_s13 = sphi %s2170_s13, %s2647_s13   ;;  %s2128_s12 = sphi %s2168_s12, %s2646_s12  }
   0x4   : > { %p23_p0 = scmp.ge.s32.totalorder %s22_s17, 2  ;;  %p66_p2 = scmp.eq.s32.totalorder %s2144_s16, 0 }
   0x5   : > { %s58_s19 = sadd.s32 1, %s2132_s13  ;;  %p1776_p5 = scmp.ge.s32.totalorder %s2144_s16, 2 }
   0x6   : > { %s2651_s17 = smov (%p23_p0, %s22_s17), 0  ;;  %p67_p3 = por %p66_p2, %p65_p1 }
   0x7   : > { %s55_s18 = ssub.s32 %s2140_s15, %s2651_s17  ;;  %153 = sbr.rel (%p1776_p5) target bundleno = 112 (0x70), region = 20 }
   0x8   : > { %p56_p4 = scmp.eq.s32.totalorder %s55_s18, 0 }
   0xa   : > { %s2203_s20 = scalar_select %p56_p4, %s2132_s13, %s58_s19  }
   0xc   : > { %156 = sbr.rel (!%p67_p3) target bundleno = 112 (0x70), region = 24  ;;  %s158_s21 = sand.u32 (%p67_p3), 1, %s2132_s13  }
   0xd   : > { %s1777_s22 = sshll.u32 (%p67_p3), %s2140_s15, 2  ;;  %s1981_s23 = smul.u32 (%p67_p3), 576, %s158_s21 }
   0xe   : > { %s2211_s26 = scalar_lea.vmem (%p67_p3), %s2643_s1, %s1777_s22 }
   0xf   : > { %v179_v0 = vld [vmem:[%s2211_s26] sm:$0xf] (%p67_p3)  ;;  %v181_v1 = vld [vmem:[%s2211_s26 + $0x8] sm:$0xf] (%p67_p3)  ;;  %v183_v2 = vld [vmem:[%s2211_s26 + $0x10] sm:$0xf] (%p67_p3) }
  0x10   : > { %v185_v3 = vld [vmem:[%s2211_s26 + $0x18] sm:$0xf] (%p67_p3)  ;;  %v187_v4 = vld [vmem:[%s2211_s26 + $0x20] sm:$0xf] (%p67_p3)  ;;  %s2218_s27 = scalar_lea.vmem (%p67_p3), [#allocation2], %s1981_s23 }
  0x11   : > { %180 = vst [vmem:[%s2218_s27] sm:$0xf] %v179_v0  ;;  %182 = vst [vmem:[%s2218_s27 + $0x4] sm:$0xf] %v181_v1  ;;  %v189_v5 = vld [vmem:[%s2211_s26 + $0x28] sm:$0xf] }
  0x12   : > { %184 = vst [vmem:[%s2218_s27 + $0x8] sm:$0xf] %v183_v2  ;;  %186 = vst [vmem:[%s2218_s27 + $0xc] sm:$0xf] %v185_v3  ;;  %v191_v6 = vld [vmem:[%s2211_s26 + $0x30] sm:$0xf] }
  0x13   : > { %188 = vst [vmem:[%s2218_s27 + $0x10] sm:$0xf] %v187_v4  ;;  %v193_v7 = vld [vmem:[%s2211_s26 + $0x38] sm:$0xf]  ;;  %190 = vst [vmem:[%s2218_s27 + $0x14] sm:$0xf] %v189_v5 }
  0x14   : > { %192 = vst [vmem:[%s2218_s27 + $0x18] sm:$0xf] %v191_v6  ;;  %194 = vst [vmem:[%s2218_s27 + $0x1c] sm:$0xf] %v193_v7  ;;  %v195_v8 = vld [vmem:[%s2211_s26 + $0x40] sm:$0xf] }
  0x15   : > { %v197_v9 = vld [vmem:[%s2211_s26 + $0x48] sm:$0xf]  ;;  %v199_v10 = vld [vmem:[%s2211_s26 + $0x50] sm:$0xf]  ;;  %196 = vst [vmem:[%s2218_s27 + $0x20] sm:$0xf] %v195_v8 }
  0x16   : > { %198 = vst [vmem:[%s2218_s27 + $0x24] sm:$0xf] %v197_v9  ;;  %200 = vst [vmem:[%s2218_s27 + $0x28] sm:$0xf] %v199_v10  ;;  %v201_v11 = vld [vmem:[%s2211_s26 + $0x58] sm:$0xf] }
  0x17   : > { %v203_v12 = vld [vmem:[%s2211_s26 + $0x60] sm:$0xf]  ;;  %v205_v13 = vld [vmem:[%s2211_s26 + $0x68] sm:$0xf]  ;;  %202 = vst [vmem:[%s2218_s27 + $0x2c] sm:$0xf] %v201_v11 }
  0x18   : > { %204 = vst [vmem:[%s2218_s27 + $0x30] sm:$0xf] %v203_v12  ;;  %206 = vst [vmem:[%s2218_s27 + $0x34] sm:$0xf] %v205_v13  ;;  %v207_v14 = vld [vmem:[%s2211_s26 + $0x70] sm:$0xf] }
  0x19   : > { %v209_v15 = vld [vmem:[%s2211_s26 + $0x78] sm:$0xf]  ;;  %v211_v16 = vld [vmem:[%s2211_s26 + $0x80] sm:$0xf]  ;;  %208 = vst [vmem:[%s2218_s27 + $0x38] sm:$0xf] %v207_v14 }
  0x1a   : > { %210 = vst [vmem:[%s2218_s27 + $0x3c] sm:$0xf] %v209_v15  ;;  %212 = vst [vmem:[%s2218_s27 + $0x40] sm:$0xf] %v211_v16  ;;  %v213_v17 = vld [vmem:[%s2211_s26 + $0x88] sm:$0xf] }
  0x1b   : > { %v215_v18 = vld [vmem:[%s2211_s26 + $0x90] sm:$0xf]  ;;  %v217_v19 = vld [vmem:[%s2211_s26 + $0x98] sm:$0xf]  ;;  %214 = vst [vmem:[%s2218_s27 + $0x44] sm:$0xf] %v213_v17 }
  0x1c   : > { %216 = vst [vmem:[%s2218_s27 + $0x48] sm:$0xf] %v215_v18  ;;  %218 = vst [vmem:[%s2218_s27 + $0x4c] sm:$0xf] %v217_v19  ;;  %v219_v20 = vld [vmem:[%s2211_s26 + $0xa0] sm:$0xf] }
  0x1d   : > { %v221_v21 = vld [vmem:[%s2211_s26 + $0xa8] sm:$0xf]  ;;  %v223_v22 = vld [vmem:[%s2211_s26 + $0xb0] sm:$0xf]  ;;  %220 = vst [vmem:[%s2218_s27 + $0x50] sm:$0xf] %v219_v20 }
  0x1e   : > { %222 = vst [vmem:[%s2218_s27 + $0x54] sm:$0xf] %v221_v21  ;;  %224 = vst [vmem:[%s2218_s27 + $0x58] sm:$0xf] %v223_v22  ;;  %v225_v23 = vld [vmem:[%s2211_s26 + $0xb8] sm:$0xf] }
  0x1f   : > { %v227_v24 = vld [vmem:[%s2211_s26 + $0xc0] sm:$0xf]  ;;  %v229_v25 = vld [vmem:[%s2211_s26 + $0xc8] sm:$0xf]  ;;  %226 = vst [vmem:[%s2218_s27 + $0x5c] sm:$0xf] %v225_v23 }
  0x20   : > { %228 = vst [vmem:[%s2218_s27 + $0x60] sm:$0xf] %v227_v24  ;;  %230 = vst [vmem:[%s2218_s27 + $0x64] sm:$0xf] %v229_v25  ;;  %v231_v26 = vld [vmem:[%s2211_s26 + $0xd0] sm:$0xf] }
  0x21   : > { %v233_v27 = vld [vmem:[%s2211_s26 + $0xd8] sm:$0xf]  ;;  %v235_v28 = vld [vmem:[%s2211_s26 + $0xe0] sm:$0xf]  ;;  %232 = vst [vmem:[%s2218_s27 + $0x68] sm:$0xf] %v231_v26 }
  0x22   : > { %234 = vst [vmem:[%s2218_s27 + $0x6c] sm:$0xf] %v233_v27  ;;  %236 = vst [vmem:[%s2218_s27 + $0x70] sm:$0xf] %v235_v28  ;;  %v237_v29 = vld [vmem:[%s2211_s26 + $0xe8] sm:$0xf] }
  0x23   : > { %v239_v30 = vld [vmem:[%s2211_s26 + $0xf0] sm:$0xf]  ;;  %v241_v31 = vld [vmem:[%s2211_s26 + $0xf8] sm:$0xf]  ;;  %238 = vst [vmem:[%s2218_s27 + $0x74] sm:$0xf] %v237_v29 }
  0x24   : > { %240 = vst [vmem:[%s2218_s27 + $0x78] sm:$0xf] %v239_v30  ;;  %242 = vst [vmem:[%s2218_s27 + $0x7c] sm:$0xf] %v241_v31  ;;  %v243_v32 = vld [vmem:[%s2211_s26 + $0x100] sm:$0xf] }
  0x25   : > { %v245_v33 = vld [vmem:[%s2211_s26 + $0x108] sm:$0xf]  ;;  %v247_v34 = vld [vmem:[%s2211_s26 + $0x110] sm:$0xf]  ;;  %244 = vst [vmem:[%s2218_s27 + $0x80] sm:$0xf] %v243_v32 }
  0x26   : > { %246 = vst [vmem:[%s2218_s27 + $0x84] sm:$0xf] %v245_v33  ;;  %248 = vst [vmem:[%s2218_s27 + $0x88] sm:$0xf] %v247_v34  ;;  %v249_v35 = vld [vmem:[%s2211_s26 + $0x118] sm:$0xf] }
  0x27   : > { %v251_v36 = vld [vmem:[%s2211_s26 + $0x120] sm:$0xf]  ;;  %v253_v37 = vld [vmem:[%s2211_s26 + $0x128] sm:$0xf]  ;;  %250 = vst [vmem:[%s2218_s27 + $0x8c] sm:$0xf] %v249_v35 }
  0x28   : > { %252 = vst [vmem:[%s2218_s27 + $0x90] sm:$0xf] %v251_v36  ;;  %254 = vst [vmem:[%s2218_s27 + $0x94] sm:$0xf] %v253_v37  ;;  %v255_v38 = vld [vmem:[%s2211_s26 + $0x130] sm:$0xf] }
  0x29   : > { %v257_v39 = vld [vmem:[%s2211_s26 + $0x138] sm:$0xf]  ;;  %v259_v40 = vld [vmem:[%s2211_s26 + $0x140] sm:$0xf]  ;;  %256 = vst [vmem:[%s2218_s27 + $0x98] sm:$0xf] %v255_v38 }
  0x2a   : > { %258 = vst [vmem:[%s2218_s27 + $0x9c] sm:$0xf] %v257_v39  ;;  %260 = vst [vmem:[%s2218_s27 + $0xa0] sm:$0xf] %v259_v40  ;;  %v261_v41 = vld [vmem:[%s2211_s26 + $0x148] sm:$0xf] }
  0x2b   : > { %v263_v42 = vld [vmem:[%s2211_s26 + $0x150] sm:$0xf]  ;;  %v265_v43 = vld [vmem:[%s2211_s26 + $0x158] sm:$0xf]  ;;  %262 = vst [vmem:[%s2218_s27 + $0xa4] sm:$0xf] %v261_v41 }
  0x2c   : > { %264 = vst [vmem:[%s2218_s27 + $0xa8] sm:$0xf] %v263_v42  ;;  %266 = vst [vmem:[%s2218_s27 + $0xac] sm:$0xf] %v265_v43  ;;  %v267_v44 = vld [vmem:[%s2211_s26 + $0x160] sm:$0xf] }
  0x2d   : > { %v269_v45 = vld [vmem:[%s2211_s26 + $0x168] sm:$0xf]  ;;  %v271_v46 = vld [vmem:[%s2211_s26 + $0x170] sm:$0xf]  ;;  %268 = vst [vmem:[%s2218_s27 + $0xb0] sm:$0xf] %v267_v44 }
  0x2e   : > { %270 = vst [vmem:[%s2218_s27 + $0xb4] sm:$0xf] %v269_v45  ;;  %272 = vst [vmem:[%s2218_s27 + $0xb8] sm:$0xf] %v271_v46  ;;  %v273_v47 = vld [vmem:[%s2211_s26 + $0x178] sm:$0xf] }
  0x2f   : > { %v275_v48 = vld [vmem:[%s2211_s26 + $0x180] sm:$0xf]  ;;  %v277_v49 = vld [vmem:[%s2211_s26 + $0x188] sm:$0xf]  ;;  %274 = vst [vmem:[%s2218_s27 + $0xbc] sm:$0xf] %v273_v47 }
  0x30   : > { %276 = vst [vmem:[%s2218_s27 + $0xc0] sm:$0xf] %v275_v48  ;;  %278 = vst [vmem:[%s2218_s27 + $0xc4] sm:$0xf] %v277_v49  ;;  %v279_v50 = vld [vmem:[%s2211_s26 + $0x190] sm:$0xf] }
  0x31   : > { %v281_v51 = vld [vmem:[%s2211_s26 + $0x198] sm:$0xf]  ;;  %v283_v52 = vld [vmem:[%s2211_s26 + $0x1a0] sm:$0xf]  ;;  %280 = vst [vmem:[%s2218_s27 + $0xc8] sm:$0xf] %v279_v50 }
  0x32   : > { %282 = vst [vmem:[%s2218_s27 + $0xcc] sm:$0xf] %v281_v51  ;;  %284 = vst [vmem:[%s2218_s27 + $0xd0] sm:$0xf] %v283_v52  ;;  %v285_v53 = vld [vmem:[%s2211_s26 + $0x1a8] sm:$0xf] }
  0x33   : > { %v287_v54 = vld [vmem:[%s2211_s26 + $0x1b0] sm:$0xf]  ;;  %v289_v55 = vld [vmem:[%s2211_s26 + $0x1b8] sm:$0xf]  ;;  %286 = vst [vmem:[%s2218_s27 + $0xd4] sm:$0xf] %v285_v53 }
  0x34   : > { %288 = vst [vmem:[%s2218_s27 + $0xd8] sm:$0xf] %v287_v54  ;;  %290 = vst [vmem:[%s2218_s27 + $0xdc] sm:$0xf] %v289_v55  ;;  %v291_v56 = vld [vmem:[%s2211_s26 + $0x1c0] sm:$0xf] }
  0x35   : > { %v293_v57 = vld [vmem:[%s2211_s26 + $0x1c8] sm:$0xf]  ;;  %v295_v58 = vld [vmem:[%s2211_s26 + $0x1d0] sm:$0xf]  ;;  %292 = vst [vmem:[%s2218_s27 + $0xe0] sm:$0xf] %v291_v56 }
  0x36   : > { %294 = vst [vmem:[%s2218_s27 + $0xe4] sm:$0xf] %v293_v57  ;;  %296 = vst [vmem:[%s2218_s27 + $0xe8] sm:$0xf] %v295_v58  ;;  %v297_v59 = vld [vmem:[%s2211_s26 + $0x1d8] sm:$0xf] }
  0x37   : > { %v299_v60 = vld [vmem:[%s2211_s26 + $0x1e0] sm:$0xf]  ;;  %v301_v61 = vld [vmem:[%s2211_s26 + $0x1e8] sm:$0xf]  ;;  %298 = vst [vmem:[%s2218_s27 + $0xec] sm:$0xf] %v297_v59 }
  0x38   : > { %300 = vst [vmem:[%s2218_s27 + $0xf0] sm:$0xf] %v299_v60  ;;  %302 = vst [vmem:[%s2218_s27 + $0xf4] sm:$0xf] %v301_v61  ;;  %v303_v62 = vld [vmem:[%s2211_s26 + $0x1f0] sm:$0xf] }
  0x39   : > { %v305_v63 = vld [vmem:[%s2211_s26 + $0x1f8] sm:$0xf]  ;;  %v307_v0 = vld [vmem:[%s2211_s26 + $0x200] sm:$0xf]  ;;  %304 = vst [vmem:[%s2218_s27 + $0xf8] sm:$0xf] %v303_v62 }
  0x3a   : > { %306 = vst [vmem:[%s2218_s27 + $0xfc] sm:$0xf] %v305_v63  ;;  %308 = vst [vmem:[%s2218_s27 + $0x100] sm:$0xf] %v307_v0  ;;  %v309_v1 = vld [vmem:[%s2211_s26 + $0x208] sm:$0xf] }
  0x3b   : > { %v311_v2 = vld [vmem:[%s2211_s26 + $0x210] sm:$0xf]  ;;  %v313_v3 = vld [vmem:[%s2211_s26 + $0x218] sm:$0xf]  ;;  %310 = vst [vmem:[%s2218_s27 + $0x104] sm:$0xf] %v309_v1 }
  0x3c   : > { %312 = vst [vmem:[%s2218_s27 + $0x108] sm:$0xf] %v311_v2  ;;  %314 = vst [vmem:[%s2218_s27 + $0x10c] sm:$0xf] %v313_v3  ;;  %v315_v4 = vld [vmem:[%s2211_s26 + $0x220] sm:$0xf] }
  0x3d   : > { %v317_v5 = vld [vmem:[%s2211_s26 + $0x228] sm:$0xf]  ;;  %v319_v6 = vld [vmem:[%s2211_s26 + $0x230] sm:$0xf]  ;;  %316 = vst [vmem:[%s2218_s27 + $0x110] sm:$0xf] %v315_v4 }
  0x3e   : > { %318 = vst [vmem:[%s2218_s27 + $0x114] sm:$0xf] %v317_v5  ;;  %320 = vst [vmem:[%s2218_s27 + $0x118] sm:$0xf] %v319_v6  ;;  %v321_v7 = vld [vmem:[%s2211_s26 + $0x238] sm:$0xf] }
  0x3f   : > { %v323_v8 = vld [vmem:[%s2211_s26 + $0x240] sm:$0xf]  ;;  %v325_v9 = vld [vmem:[%s2211_s26 + $0x248] sm:$0xf]  ;;  %322 = vst [vmem:[%s2218_s27 + $0x11c] sm:$0xf] %v321_v7 }
  0x40   : > { %324 = vst [vmem:[%s2218_s27 + $0x120] sm:$0xf] %v323_v8  ;;  %326 = vst [vmem:[%s2218_s27 + $0x124] sm:$0xf] %v325_v9  ;;  %v327_v10 = vld [vmem:[%s2211_s26 + $0x250] sm:$0xf] }
  0x41   : > { %v329_v11 = vld [vmem:[%s2211_s26 + $0x258] sm:$0xf]  ;;  %v331_v12 = vld [vmem:[%s2211_s26 + $0x260] sm:$0xf]  ;;  %328 = vst [vmem:[%s2218_s27 + $0x128] sm:$0xf] %v327_v10 }
  0x42   : > { %330 = vst [vmem:[%s2218_s27 + $0x12c] sm:$0xf] %v329_v11  ;;  %332 = vst [vmem:[%s2218_s27 + $0x130] sm:$0xf] %v331_v12  ;;  %v333_v13 = vld [vmem:[%s2211_s26 + $0x268] sm:$0xf] }
  0x43   : > { %v335_v14 = vld [vmem:[%s2211_s26 + $0x270] sm:$0xf]  ;;  %v337_v15 = vld [vmem:[%s2211_s26 + $0x278] sm:$0xf]  ;;  %334 = vst [vmem:[%s2218_s27 + $0x134] sm:$0xf] %v333_v13 }
  0x44   : > { %336 = vst [vmem:[%s2218_s27 + $0x138] sm:$0xf] %v335_v14  ;;  %338 = vst [vmem:[%s2218_s27 + $0x13c] sm:$0xf] %v337_v15  ;;  %v339_v16 = vld [vmem:[%s2211_s26 + $0x280] sm:$0xf] }
  0x45   : > { %v341_v17 = vld [vmem:[%s2211_s26 + $0x288] sm:$0xf]  ;;  %v343_v18 = vld [vmem:[%s2211_s26 + $0x290] sm:$0xf]  ;;  %340 = vst [vmem:[%s2218_s27 + $0x140] sm:$0xf] %v339_v16 }
  0x46   : > { %342 = vst [vmem:[%s2218_s27 + $0x144] sm:$0xf] %v341_v17  ;;  %344 = vst [vmem:[%s2218_s27 + $0x148] sm:$0xf] %v343_v18  ;;  %v345_v19 = vld [vmem:[%s2211_s26 + $0x298] sm:$0xf] }
  0x47   : > { %v347_v20 = vld [vmem:[%s2211_s26 + $0x2a0] sm:$0xf]  ;;  %v349_v21 = vld [vmem:[%s2211_s26 + $0x2a8] sm:$0xf]  ;;  %346 = vst [vmem:[%s2218_s27 + $0x14c] sm:$0xf] %v345_v19 }
  0x48   : > { %348 = vst [vmem:[%s2218_s27 + $0x150] sm:$0xf] %v347_v20  ;;  %350 = vst [vmem:[%s2218_s27 + $0x154] sm:$0xf] %v349_v21  ;;  %v351_v22 = vld [vmem:[%s2211_s26 + $0x2b0] sm:$0xf] }
  0x49   : > { %v353_v23 = vld [vmem:[%s2211_s26 + $0x2b8] sm:$0xf]  ;;  %v355_v24 = vld [vmem:[%s2211_s26 + $0x2c0] sm:$0xf]  ;;  %352 = vst [vmem:[%s2218_s27 + $0x158] sm:$0xf] %v351_v22 }
  0x4a   : > { %354 = vst [vmem:[%s2218_s27 + $0x15c] sm:$0xf] %v353_v23  ;;  %356 = vst [vmem:[%s2218_s27 + $0x160] sm:$0xf] %v355_v24  ;;  %v357_v25 = vld [vmem:[%s2211_s26 + $0x2c8] sm:$0xf] }
  0x4b   : > { %v359_v26 = vld [vmem:[%s2211_s26 + $0x2d0] sm:$0xf]  ;;  %v361_v27 = vld [vmem:[%s2211_s26 + $0x2d8] sm:$0xf]  ;;  %358 = vst [vmem:[%s2218_s27 + $0x164] sm:$0xf] %v357_v25 }
  0x4c   : > { %360 = vst [vmem:[%s2218_s27 + $0x168] sm:$0xf] %v359_v26  ;;  %362 = vst [vmem:[%s2218_s27 + $0x16c] sm:$0xf] %v361_v27  ;;  %v363_v28 = vld [vmem:[%s2211_s26 + $0x2e0] sm:$0xf] }
  0x4d   : > { %v365_v29 = vld [vmem:[%s2211_s26 + $0x2e8] sm:$0xf]  ;;  %v367_v30 = vld [vmem:[%s2211_s26 + $0x2f0] sm:$0xf]  ;;  %364 = vst [vmem:[%s2218_s27 + $0x170] sm:$0xf] %v363_v28 }
  0x4e   : > { %366 = vst [vmem:[%s2218_s27 + $0x174] sm:$0xf] %v365_v29  ;;  %368 = vst [vmem:[%s2218_s27 + $0x178] sm:$0xf] %v367_v30  ;;  %v369_v31 = vld [vmem:[%s2211_s26 + $0x2f8] sm:$0xf] }
  0x4f   : > { %v371_v32 = vld [vmem:[%s2211_s26 + $0x300] sm:$0xf]  ;;  %v373_v33 = vld [vmem:[%s2211_s26 + $0x308] sm:$0xf]  ;;  %370 = vst [vmem:[%s2218_s27 + $0x17c] sm:$0xf] %v369_v31 }
  0x50   : > { %372 = vst [vmem:[%s2218_s27 + $0x180] sm:$0xf] %v371_v32  ;;  %374 = vst [vmem:[%s2218_s27 + $0x184] sm:$0xf] %v373_v33  ;;  %v375_v34 = vld [vmem:[%s2211_s26 + $0x310] sm:$0xf] }
  0x51   : > { %v377_v35 = vld [vmem:[%s2211_s26 + $0x318] sm:$0xf]  ;;  %v379_v36 = vld [vmem:[%s2211_s26 + $0x320] sm:$0xf]  ;;  %376 = vst [vmem:[%s2218_s27 + $0x188] sm:$0xf] %v375_v34 }
  0x52   : > { %378 = vst [vmem:[%s2218_s27 + $0x18c] sm:$0xf] %v377_v35  ;;  %380 = vst [vmem:[%s2218_s27 + $0x190] sm:$0xf] %v379_v36  ;;  %v381_v37 = vld [vmem:[%s2211_s26 + $0x328] sm:$0xf] }
  0x53   : > { %v383_v38 = vld [vmem:[%s2211_s26 + $0x330] sm:$0xf]  ;;  %v385_v39 = vld [vmem:[%s2211_s26 + $0x338] sm:$0xf]  ;;  %382 = vst [vmem:[%s2218_s27 + $0x194] sm:$0xf] %v381_v37 }
  0x54   : > { %384 = vst [vmem:[%s2218_s27 + $0x198] sm:$0xf] %v383_v38  ;;  %386 = vst [vmem:[%s2218_s27 + $0x19c] sm:$0xf] %v385_v39  ;;  %v387_v40 = vld [vmem:[%s2211_s26 + $0x340] sm:$0xf] }
  0x55   : > { %v389_v41 = vld [vmem:[%s2211_s26 + $0x348] sm:$0xf]  ;;  %v391_v42 = vld [vmem:[%s2211_s26 + $0x350] sm:$0xf]  ;;  %388 = vst [vmem:[%s2218_s27 + $0x1a0] sm:$0xf] %v387_v40 }
  0x56   : > { %390 = vst [vmem:[%s2218_s27 + $0x1a4] sm:$0xf] %v389_v41  ;;  %392 = vst [vmem:[%s2218_s27 + $0x1a8] sm:$0xf] %v391_v42  ;;  %v393_v43 = vld [vmem:[%s2211_s26 + $0x358] sm:$0xf] }
  0x57   : > { %v395_v44 = vld [vmem:[%s2211_s26 + $0x360] sm:$0xf]  ;;  %v397_v45 = vld [vmem:[%s2211_s26 + $0x368] sm:$0xf]  ;;  %394 = vst [vmem:[%s2218_s27 + $0x1ac] sm:$0xf] %v393_v43 }
  0x58   : > { %396 = vst [vmem:[%s2218_s27 + $0x1b0] sm:$0xf] %v395_v44  ;;  %398 = vst [vmem:[%s2218_s27 + $0x1b4] sm:$0xf] %v397_v45  ;;  %v399_v46 = vld [vmem:[%s2211_s26 + $0x370] sm:$0xf] }
  0x59   : > { %v401_v47 = vld [vmem:[%s2211_s26 + $0x378] sm:$0xf]  ;;  %v403_v48 = vld [vmem:[%s2211_s26 + $0x380] sm:$0xf]  ;;  %400 = vst [vmem:[%s2218_s27 + $0x1b8] sm:$0xf] %v399_v46 }
  0x5a   : > { %402 = vst [vmem:[%s2218_s27 + $0x1bc] sm:$0xf] %v401_v47  ;;  %404 = vst [vmem:[%s2218_s27 + $0x1c0] sm:$0xf] %v403_v48  ;;  %v405_v49 = vld [vmem:[%s2211_s26 + $0x388] sm:$0xf] }
  0x5b   : > { %v407_v50 = vld [vmem:[%s2211_s26 + $0x390] sm:$0xf]  ;;  %v409_v51 = vld [vmem:[%s2211_s26 + $0x398] sm:$0xf]  ;;  %406 = vst [vmem:[%s2218_s27 + $0x1c4] sm:$0xf] %v405_v49 }
  0x5c   : > { %408 = vst [vmem:[%s2218_s27 + $0x1c8] sm:$0xf] %v407_v50  ;;  %410 = vst [vmem:[%s2218_s27 + $0x1cc] sm:$0xf] %v409_v51  ;;  %v411_v52 = vld [vmem:[%s2211_s26 + $0x3a0] sm:$0xf] }
  0x5d   : > { %v413_v53 = vld [vmem:[%s2211_s26 + $0x3a8] sm:$0xf]  ;;  %v415_v54 = vld [vmem:[%s2211_s26 + $0x3b0] sm:$0xf]  ;;  %412 = vst [vmem:[%s2218_s27 + $0x1d0] sm:$0xf] %v411_v52 }
  0x5e   : > { %414 = vst [vmem:[%s2218_s27 + $0x1d4] sm:$0xf] %v413_v53  ;;  %416 = vst [vmem:[%s2218_s27 + $0x1d8] sm:$0xf] %v415_v54  ;;  %v417_v55 = vld [vmem:[%s2211_s26 + $0x3b8] sm:$0xf] }
  0x5f   : > { %v419_v56 = vld [vmem:[%s2211_s26 + $0x3c0] sm:$0xf]  ;;  %v421_v57 = vld [vmem:[%s2211_s26 + $0x3c8] sm:$0xf]  ;;  %418 = vst [vmem:[%s2218_s27 + $0x1dc] sm:$0xf] %v417_v55 }
  0x60   : > { %420 = vst [vmem:[%s2218_s27 + $0x1e0] sm:$0xf] %v419_v56  ;;  %422 = vst [vmem:[%s2218_s27 + $0x1e4] sm:$0xf] %v421_v57  ;;  %v423_v58 = vld [vmem:[%s2211_s26 + $0x3d0] sm:$0xf] }
  0x61   : > { %v425_v59 = vld [vmem:[%s2211_s26 + $0x3d8] sm:$0xf]  ;;  %v427_v60 = vld [vmem:[%s2211_s26 + $0x3e0] sm:$0xf]  ;;  %424 = vst [vmem:[%s2218_s27 + $0x1e8] sm:$0xf] %v423_v58 }
  0x62   : > { %426 = vst [vmem:[%s2218_s27 + $0x1ec] sm:$0xf] %v425_v59  ;;  %428 = vst [vmem:[%s2218_s27 + $0x1f0] sm:$0xf] %v427_v60  ;;  %v429_v61 = vld [vmem:[%s2211_s26 + $0x3e8] sm:$0xf] }
  0x63   : > { %v431_v62 = vld [vmem:[%s2211_s26 + $0x3f0] sm:$0xf]  ;;  %v433_v63 = vld [vmem:[%s2211_s26 + $0x3f8] sm:$0xf]  ;;  %430 = vst [vmem:[%s2218_s27 + $0x1f4] sm:$0xf] %v429_v61 }
  0x64   : > { %432 = vst [vmem:[%s2218_s27 + $0x1f8] sm:$0xf] %v431_v62  ;;  %434 = vst [vmem:[%s2218_s27 + $0x1fc] sm:$0xf] %v433_v63  ;;  %v435_v0 = vld [vmem:[%s2211_s26 + $0x400] sm:$0xf] }
  0x65   : > { %v437_v1 = vld [vmem:[%s2211_s26 + $0x408] sm:$0xf]  ;;  %v439_v2 = vld [vmem:[%s2211_s26 + $0x410] sm:$0xf]  ;;  %436 = vst [vmem:[%s2218_s27 + $0x200] sm:$0xf] %v435_v0 }
  0x66   : > { %438 = vst [vmem:[%s2218_s27 + $0x204] sm:$0xf] %v437_v1  ;;  %440 = vst [vmem:[%s2218_s27 + $0x208] sm:$0xf] %v439_v2  ;;  %v441_v3 = vld [vmem:[%s2211_s26 + $0x418] sm:$0xf] }
  0x67   : > { %v443_v4 = vld [vmem:[%s2211_s26 + $0x420] sm:$0xf]  ;;  %v445_v5 = vld [vmem:[%s2211_s26 + $0x428] sm:$0xf]  ;;  %442 = vst [vmem:[%s2218_s27 + $0x20c] sm:$0xf] %v441_v3 }
  0x68   : > { %444 = vst [vmem:[%s2218_s27 + $0x210] sm:$0xf] %v443_v4  ;;  %446 = vst [vmem:[%s2218_s27 + $0x214] sm:$0xf] %v445_v5  ;;  %v447_v6 = vld [vmem:[%s2211_s26 + $0x430] sm:$0xf] }
  0x69   : > { %v449_v7 = vld [vmem:[%s2211_s26 + $0x438] sm:$0xf]  ;;  %v451_v8 = vld [vmem:[%s2211_s26 + $0x440] sm:$0xf]  ;;  %448 = vst [vmem:[%s2218_s27 + $0x218] sm:$0xf] %v447_v6 }
  0x6a   : > { %450 = vst [vmem:[%s2218_s27 + $0x21c] sm:$0xf] %v449_v7  ;;  %452 = vst [vmem:[%s2218_s27 + $0x220] sm:$0xf] %v451_v8  ;;  %v453_v9 = vld [vmem:[%s2211_s26 + $0x448] sm:$0xf] }
  0x6b   : > { %v455_v10 = vld [vmem:[%s2211_s26 + $0x450] sm:$0xf]  ;;  %v457_v11 = vld [vmem:[%s2211_s26 + $0x458] sm:$0xf]  ;;  %454 = vst [vmem:[%s2218_s27 + $0x224] sm:$0xf] %v453_v9 }
  0x6c   : > { %456 = vst [vmem:[%s2218_s27 + $0x228] sm:$0xf] %v455_v10  ;;  %458 = vst [vmem:[%s2218_s27 + $0x22c] sm:$0xf] %v457_v11  ;;  %v459_v12 = vld [vmem:[%s2211_s26 + $0x460] sm:$0xf] }
  0x6d   : > { %v461_v13 = vld [vmem:[%s2211_s26 + $0x468] sm:$0xf]  ;;  %v463_v14 = vld [vmem:[%s2211_s26 + $0x470] sm:$0xf]  ;;  %460 = vst [vmem:[%s2218_s27 + $0x230] sm:$0xf] %v459_v12 }
  0x6e   : > { %462 = vst [vmem:[%s2218_s27 + $0x234] sm:$0xf] %v461_v13  ;;  %464 = vst [vmem:[%s2218_s27 + $0x238] sm:$0xf] %v463_v14  ;;  %v465_v15 = vld [vmem:[%s2211_s26 + $0x478] sm:$0xf] }
  0x6f   : > { %466 = vst [vmem:[%s2218_s27 + $0x23c] sm:$0xf] %v465_v15 }
  0x70 PF: > { %p1778_p6 = scmp.ge.s32.totalorder %s2144_s16, 1  ;;  %p783_p7 = scmp.lt.s32.totalorder %s2144_s16, 3 }
  0x72   : > { %p784_p8 = pnand %p1778_p6, %p783_p7 }
  0x73   : > { %s790_s28 = sand.u32 (!%p784_p8), 1, %s2128_s12   ;;  %p829_p9 = scmp.lt.s32.totalorder (!%p784_p8), %s2136_s14, 1 }
  0x74   : > { %787 = sbr.rel (%p784_p8) target bundleno = 418 (0x1a2), region = 69 }
  0x75   : > { %s1982_s6 = smul.u32 (!%p784_p8), 576, %s790_s28 }
  0x77   : > { %s2520_s7 = scalar_lea.vmem (!%p784_p8), [#allocation2], %s1982_s6 }
  0x79   : > { %v2509_v16 = vld [vmem:[%s2642_s0] sm:$0xff]  ;;  %v2514_v17 = vld [vmem:[%s2642_s0 + $0x8] sm:$0xff]  ;;  %v2025_v20 = vld [vmem:[%s2520_s7 + $0x78] sm:$0xff]   ;;  %vm2147_vm0 = vmmov 0   ;;  %s2653_s14 = smov (!%p829_p9, %s2136_s14), 1 }
  0x7a   : > { %v1782_v18 = vcombine.high %v2509_v16, %v2509_v16  ;;  %v1784_v19 = vcombine.high %v2514_v17, %v2514_v17  ;;  %v2026_v21 = vld [vmem:[%s2520_s7 + $0x38] sm:$0xff]   ;;  %1864 = vmatprep.subr.bf16.mxu0 %v2025_v20  ;;  %v2029_v24 = vld [vmem:[%s2520_s7 + $0x70] sm:$0xff]   ;;  %v2033_v28 = vld [vmem:[%s2520_s7 + $0x68] sm:$0xff]   ;;  %v1781_v53 = vcombine.low %v2509_v16, %v2509_v16  ;;  %v1783_v57 = vcombine.low %v2514_v17, %v2514_v17  ;;  %s831_s22 = scalar_lea.vmem %s2644_s2, %s2653_s14  ;;  %s1779_s23 = sshll.u32 %s2653_s14, 2 }
  0x7b   : > { %v2027_v22 = vld [vmem:[%s2520_s7 + $0xf8] sm:$0xff]   ;;  %1865 = vmatpush3.bf16.msra.mxu0 %v2026_v21  ;;  %v2030_v25 = vld [vmem:[%s2520_s7 + $0x30] sm:$0xff]   ;;  %v2034_v29 = vld [vmem:[%s2520_s7 + $0x28] sm:$0xff]   ;;  %s839_s26 = scalar_lea.vmem %s2645_s3, %s1779_s23 }
  0x7c   : > { %1493 = vmatprep.mubr.bf16.mxu0 %v1782_v18  ;;  %1533 = vmatprep.mubr.bf16.mxu1 %v1784_v19  ;;  %v2028_v23 = vld [vmem:[%s2520_s7 + $0xb8] sm:$0xff]   ;;  %v2031_v26 = vld [vmem:[%s2520_s7 + $0xf0] sm:$0xff]   ;;  %v2035_v30 = vld [vmem:[%s2520_s7 + $0xe8] sm:$0xff]  }
  0x7d   : > { %1886 = vmatprep.subr.bf16.mxu1 %v2027_v22  ;;  %1866 = vmatprep.subr.bf16.mxu0 %v2029_v24  ;;  %v2032_v27 = vld [vmem:[%s2520_s7 + $0xb0] sm:$0xff]   ;;  %v2036_v31 = vld [vmem:[%s2520_s7 + $0xa8] sm:$0xff]   ;;  %v2037_v32 = vld [vmem:[%s2520_s7 + $0x60] sm:$0xff]  }
  0x7e   : > { %1887 = vmatpush3.bf16.msra.mxu1 %v2028_v23  ;;  %v2038_v33 = vld [vmem:[%s2520_s7 + $0x20] sm:$0xff]   ;;  %v2041_v36 = vld [vmem:[%s2520_s7 + $0x58] sm:$0xff]   ;;  %v2045_v40 = vld [vmem:[%s2520_s7 + $0x50] sm:$0xff]  }
  0x7f   : > { %1867 = vmatpush3.bf16.msra.mxu0 %v2030_v25  ;;  %1888 = vmatprep.subr.bf16.mxu1 %v2031_v26  ;;  %v2039_v34 = vld [vmem:[%s2520_s7 + $0xe0] sm:$0xff]   ;;  %v2042_v37 = vld [vmem:[%s2520_s7 + $0x18] sm:$0xff]   ;;  %v2046_v41 = vld [vmem:[%s2520_s7 + $0x10] sm:$0xff]  }
  0x80   : > { %1868 = vmatprep.subr.bf16.mxu0 %v2033_v28  ;;  %v2040_v35 = vld [vmem:[%s2520_s7 + $0xa0] sm:$0xff]   ;;  %v2043_v38 = vld [vmem:[%s2520_s7 + $0xd8] sm:$0xff]   ;;  %v2047_v42 = vld [vmem:[%s2520_s7 + $0xd0] sm:$0xff]  }
  0x81   : > { %v2044_v39 = vld [vmem:[%s2520_s7 + $0x98] sm:$0xff]   ;;  %v2048_v43 = vld [vmem:[%s2520_s7 + $0x90] sm:$0xff]   ;;  %v2049_v44 = vld [vmem:[%s2520_s7 + $0x48] sm:$0xff]  }
  0x82   : > { %1889 = vmatpush3.bf16.msra.mxu1 %v2032_v27  ;;  %v2050_v45 = vld [vmem:[%s2520_s7 + $0x8] sm:$0xff]   ;;  %v2552_v47 = vld [vmem:[%s2642_s0 + $0x10] sm:$0xff]  ;;  %v2053_v49 = vld [vmem:[%s2520_s7 + $0x40] sm:$0xff]   ;;  %v2146_v27 = vmov 0.0  }
  0x83   : > { %1869 = vmatpush3.bf16.msra.mxu0 %v2034_v29  ;;  %1890 = vmatprep.subr.bf16.mxu1 %v2035_v30  ;;  %v2051_v46 = vld [vmem:[%s2520_s7 + $0xc8] sm:$0xff]   ;;  %v2559_v50 = vld [vmem:[%s2642_s0 + $0x18] sm:$0xff]  ;;  %v2054_v51 = vld [vmem:[%s2520_s7] sm:$0xff]   ;;  %v1786_v55 = vcombine.high %v2552_v47, %v2552_v47  ;;  %v1785_v25 = vcombine.low %v2552_v47, %v2552_v47 }
  0x84   : > { %1870 = vmatprep.subr.bf16.mxu0 %v2037_v32  ;;  %v2052_v48 = vld [vmem:[%s2520_s7 + $0x88] sm:$0xff]   ;;  %v2055_v52 = vld [vmem:[%s2520_s7 + $0xc0] sm:$0xff]   ;;  %v2059_v56 = vld [vmem:[%s2520_s7 + $0x178] sm:$0xff]   ;;  %v1788_v59 = vcombine.high %v2559_v50, %v2559_v50  ;;  %v1787_v28 = vcombine.low %v2559_v50, %v2559_v50 }
  0x85   : > { %v2058_v54 = vld [vmem:[%s2520_s7 + $0x80] sm:$0xff]   ;;  %v2062_v58 = vld [vmem:[%s2520_s7 + $0x138] sm:$0xff]   ;;  %v2065_v62 = vld [vmem:[%s2520_s7 + $0x170] sm:$0xff]  }
  0x86   : > { %1891 = vmatpush3.bf16.msra.mxu1 %v2036_v31  ;;  %v2063_v60 = vld [vmem:[%s2520_s7 + $0x1f8] sm:$0xff]   ;;  %v2066_v63 = vld [vmem:[%s2520_s7 + $0x130] sm:$0xff]   ;;  %v2069_v2 = vld [vmem:[%s2520_s7 + $0x168] sm:$0xff]  }
  0x87   : > { %1871 = vmatpush3.bf16.msra.mxu0 %v2038_v33  ;;  %1892 = vmatprep.subr.bf16.mxu1 %v2039_v34  ;;  %v2064_v61 = vld [vmem:[%s2520_s7 + $0x1b8] sm:$0xff]   ;;  %v2067_v0 = vld [vmem:[%s2520_s7 + $0x1f0] sm:$0xff]   ;;  %v2070_v3 = vld [vmem:[%s2520_s7 + $0x128] sm:$0xff]  }
  0x88   : > { %1872 = vmatprep.subr.bf16.mxu0 %v2041_v36  ;;  %v2068_v1 = vld [vmem:[%s2520_s7 + $0x1b0] sm:$0xff]   ;;  %v2071_v4 = vld [vmem:[%s2520_s7 + $0x1e8] sm:$0xff]   ;;  %v2073_v6 = vld [vmem:[%s2520_s7 + $0x160] sm:$0xff]  }
  0x89   : > { %v2072_v5 = vld [vmem:[%s2520_s7 + $0x1a8] sm:$0xff]   ;;  %v2074_v7 = vld [vmem:[%s2520_s7 + $0x120] sm:$0xff]   ;;  %v2077_v10 = vld [vmem:[%s2520_s7 + $0x158] sm:$0xff]  }
  0x8a   : > { %1893 = vmatpush3.bf16.msra.mxu1 %v2040_v35  ;;  %v2075_v8 = vld [vmem:[%s2520_s7 + $0x1e0] sm:$0xff]   ;;  %v2078_v11 = vld [vmem:[%s2520_s7 + $0x118] sm:$0xff]   ;;  %v2081_v14 = vld [vmem:[%s2520_s7 + $0x150] sm:$0xff]  }
  0x8b   : > { %1873 = vmatpush3.bf16.msra.mxu0 %v2042_v37  ;;  %1894 = vmatprep.subr.bf16.mxu1 %v2043_v38  ;;  %v2076_v9 = vld [vmem:[%s2520_s7 + $0x1a0] sm:$0xff]   ;;  %v2079_v12 = vld [vmem:[%s2520_s7 + $0x1d8] sm:$0xff]   ;;  %v2082_v15 = vld [vmem:[%s2520_s7 + $0x110] sm:$0xff]  }
  0x8c   : > { %1874 = vmatprep.subr.bf16.mxu0 %v2045_v40  ;;  %v2080_v13 = vld [vmem:[%s2520_s7 + $0x198] sm:$0xff]   ;;  %v2083_v16 = vld [vmem:[%s2520_s7 + $0x1d0] sm:$0xff]   ;;  %v2085_v18 = vld [vmem:[%s2520_s7 + $0x148] sm:$0xff]  }
  0x8d   : > { %v2084_v17 = vld [vmem:[%s2520_s7 + $0x190] sm:$0xff]   ;;  %v2086_v19 = vld [vmem:[%s2520_s7 + $0x108] sm:$0xff]   ;;  %v2089_v22 = vld [vmem:[%s2520_s7 + $0x140] sm:$0xff]  }
  0x8e   : > { %1895 = vmatpush3.bf16.msra.mxu1 %v2044_v39  ;;  %v2087_v20 = vld [vmem:[%s2520_s7 + $0x1c8] sm:$0xff]   ;;  %v2090_v23 = vld [vmem:[%s2520_s7 + $0x100] sm:$0xff]   ;;  %v2097_v29 = vld [vmem:[%s2520_s7 + $0x238] sm:$0xff]  }
  0x8f   : > { %1875 = vmatpush3.bf16.msra.mxu0 %v2046_v41  ;;  %1896 = vmatprep.subr.bf16.mxu1 %v2047_v42  ;;  %v2088_v21 = vld [vmem:[%s2520_s7 + $0x188] sm:$0xff]   ;;  %v2091_v24 = vld [vmem:[%s2520_s7 + $0x1c0] sm:$0xff]   ;;  %v2098_v30 = vld [vmem:[%s2520_s7 + $0x230] sm:$0xff]  }
  0x90   : > { %1876 = vmatprep.subr.bf16.mxu0 %v2049_v44  ;;  %v2094_v26 = vld [vmem:[%s2520_s7 + $0x180] sm:$0xff]   ;;  %v2099_v31 = vld [vmem:[%s2520_s7 + $0x228] sm:$0xff]   ;;  %v2101_v33 = vld [vmem:[%s2520_s7 + $0x218] sm:$0xff]  }
  0x91   : > { %v2100_v32 = vld [vmem:[%s2520_s7 + $0x220] sm:$0xff]   ;;  %v2102_v34 = vld [vmem:[%s2520_s7 + $0x210] sm:$0xff]   ;;  %v2103_v35 = vld [vmem:[%s2520_s7 + $0x208] sm:$0xff]  }
  0x92   : > { %1897 = vmatpush3.bf16.msra.mxu1 %v2048_v43  ;;  %v2104_v36 = vld [vmem:[%s2520_s7 + $0x200] sm:$0xff]  }
  0x93   : > { %1877 = vmatpush3.bf16.msra.mxu0 %v2050_v45  ;;  %1898 = vmatprep.subr.bf16.mxu1 %v2051_v46  ;;  %v2105_v37 = vld [vmem:[%s2642_s0 + $0x20] ss:$0 sps:$4 sm:$0xff]  }
  0x94   : > { %1878 = vmatprep.subr.bf16.mxu0 %v2053_v49 }
  0x96   : > { %1899 = vmatpush3.bf16.msra.mxu1 %v2052_v48 }
  0x97   : > { %1879 = vmatpush3.bf16.msra.mxu0 %v2054_v51  ;;  %1900 = vmatprep.subr.bf16.mxu1 %v2055_v52 }
  0x98   : > { %1908 = vmatprep.subr.bf16.mxu0 %v2059_v56 }
  0x9a   : > { %1901 = vmatpush3.bf16.msra.mxu1 %v2058_v54  ;;  %1494 = vmatmul.mubr.bf16.vlgmr.msra.gmra.mxu0 %v1781_v53 }
  0x9b   : > { %1909 = vmatpush3.bf16.msra.mxu0 %v2062_v58  ;;  %1573 = vmatprep.mubr.bf16.mxu0 %v1786_v55  ;;  %v1780_v55 = vld [vmem:[%s831_s22] ss:$0 sm:$0xff] }
  0x9c   : > { %1930 = vmatprep.subr.bf16.mxu1 %v2063_v60  ;;  %1910 = vmatprep.subr.bf16.mxu0 %v2065_v62 }
  0x9d   : > { %1534 = vmatmul.mubr.bf16.vlgmr.msra.gmra.mxu1 %v1783_v57 }
  0x9e   : > { %1931 = vmatpush3.bf16.msra.mxu1 %v2064_v61  ;;  %1613 = vmatprep.mubr.bf16.mxu1 %v1788_v59 }
  0x9f   : > { %1911 = vmatpush3.bf16.msra.mxu0 %v2066_v63  ;;  %1932 = vmatprep.subr.bf16.mxu1 %v2067_v0 }
  0xa0   : > { %1912 = vmatprep.subr.bf16.mxu0 %v2069_v2 }
  0xa2   : > { %1933 = vmatpush3.bf16.msra.mxu1 %v2068_v1 }
  0xa3   : > { %1913 = vmatpush3.bf16.msra.mxu0 %v2070_v3  ;;  %1934 = vmatprep.subr.bf16.mxu1 %v2071_v4 }
  0xa4   : > { %1914 = vmatprep.subr.bf16.mxu0 %v2073_v6 }
  0xa6   : > { %1935 = vmatpush3.bf16.msra.mxu1 %v2072_v5 }
  0xa7   : > { %1915 = vmatpush3.bf16.msra.mxu0 %v2074_v7  ;;  %1936 = vmatprep.subr.bf16.mxu1 %v2075_v8 }
  0xa8   : > { %1916 = vmatprep.subr.bf16.mxu0 %v2077_v10 }
  0xaa   : > { %1937 = vmatpush3.bf16.msra.mxu1 %v2076_v9 }
  0xab   : > { %1917 = vmatpush3.bf16.msra.mxu0 %v2078_v11  ;;  %1938 = vmatprep.subr.bf16.mxu1 %v2079_v12 }
  0xac   : > { %1918 = vmatprep.subr.bf16.mxu0 %v2081_v14 }
  0xae   : > { %1939 = vmatpush3.bf16.msra.mxu1 %v2080_v13 }
  0xaf   : > { %1919 = vmatpush3.bf16.msra.mxu0 %v2082_v15  ;;  %1940 = vmatprep.subr.bf16.mxu1 %v2083_v16 }
  0xb0   : > { %1920 = vmatprep.subr.bf16.mxu0 %v2085_v18 }
  0xb2   : > { %1941 = vmatpush3.bf16.msra.mxu1 %v2084_v17 }
  0xb3   : > { %1921 = vmatpush3.bf16.msra.mxu0 %v2086_v19  ;;  %1942 = vmatprep.subr.bf16.mxu1 %v2087_v20 }
  0xb4   : > { %1922 = vmatprep.subr.bf16.mxu0 %v2089_v22 }
  0xb6   : > { %1943 = vmatpush3.bf16.msra.mxu1 %v2088_v21 }
  0xb7   : > { %1923 = vmatpush3.bf16.msra.mxu0 %v2090_v23  ;;  %1944 = vmatprep.subr.bf16.mxu1 %v2091_v24 }
  0xb8   : > { %1961 = vmatprep.subr.bf16.mxu0 %v2146_v27 }
  0xba   : > { %1945 = vmatpush3.bf16.msra.mxu1 %v2094_v26  ;;  %1574 = vmatmul.mubr.bf16.vlgmr.msra.gmra.mxu0 %v1785_v25 }
  0xbb   : > { %1962 = vmatpush3.bf16.msra.mxu0 %v2097_v29  ;;  %1977 = vmatprep.mubr.msk.bf16.mxu0 %vm2147_vm0, %v2146_v27 }
  0xbc   : > { %1963 = vmatprep.subr.bf16.mxu0 %v2146_v27 }
  0xbd   : > { %1614 = vmatmul.mubr.bf16.vlgmr.msra.gmra.mxu1 %v1787_v28 }
  0xbf   : > { %1964 = vmatpush3.bf16.msra.mxu0 %v2098_v30 }
  0xc0   : > { %1965 = vmatprep.subr.bf16.mxu0 %v2146_v27 }
  0xc3   : > { %1966 = vmatpush3.bf16.msra.mxu0 %v2099_v31 }
  0xc4   : > { %1967 = vmatprep.subr.bf16.mxu0 %v2146_v27 }
  0xc7   : > { %1968 = vmatpush3.bf16.msra.mxu0 %v2100_v32 }
  0xc8   : > { %1969 = vmatprep.subr.bf16.mxu0 %v2146_v27 }
  0xcb   : > { %1970 = vmatpush3.bf16.msra.mxu0 %v2101_v33 }
  0xcc   : > { %1971 = vmatprep.subr.bf16.mxu0 %v2146_v27 }
  0xcf   : > { %1972 = vmatpush3.bf16.msra.mxu0 %v2102_v34 }
  0xd0   : > { %1973 = vmatprep.subr.bf16.mxu0 %v2146_v27 }
  0xd3   : > { %1974 = vmatpush3.bf16.msra.mxu0 %v2103_v35 }
  0xd4   : > { %1975 = vmatprep.subr.bf16.mxu0 %v2146_v27 }
  0xd7   : > { %1976 = vmatpush3.bf16.msra.mxu0 %v2104_v36 }
  0xda   : > { %1978 = vmatmul.mubr.bf16.vlgmr.msra.gmra.mxu0 %v2105_v37 }
 0x15a   : > { %v1880_v38 = vpop.f32.mrf.mxu0 }
 0x15c   : > { %v1881_v39 = vpop.f32.mrf.mxu0 }
 0x15d   : > { %v1902_v40 = vpop.f32.mrf.mxu1  ;;  %v1882_v54 = vadd.f32 %v1881_v39, %v1880_v38 }
 0x15e   : > { %v1883_v41 = vpop.f32.mrf.mxu0 }
 0x15f   : > { %v1903_v42 = vpop.f32.mrf.mxu1  ;;  %v1496_v56 = vadd.f32 %v1882_v54, %v1780_v55 }
 0x160   : > { %v1884_v43 = vpop.f32.mrf.mxu0  ;;  %v1904_v57 = vadd.f32 %v1903_v42, %v1902_v40 }
 0x161   : > { %v1905_v44 = vpop.f32.mrf.mxu1 }
 0x162   : > { %v1536_v59 = vadd.f32 %v1904_v57, %v1496_v56 }
 0x163   : > { %v1906_v45 = vpop.f32.mrf.mxu1 }
 0x17a   : > { %v1924_v46 = vpop.f32.mrf.mxu0 }
 0x17c   : > { %v1925_v47 = vpop.f32.mrf.mxu0 }
 0x17d   : > { %v1946_v48 = vpop.f32.mrf.mxu1  ;;  %v1926_v58 = vadd.f32 %v1925_v47, %v1924_v46 }
 0x17e   : > { %v1927_v49 = vpop.f32.mrf.mxu0 }
 0x17f   : > { %v1947_v50 = vpop.f32.mrf.mxu1  ;;  %v1576_v60 = vadd.f32 %v1926_v58, %v1536_v59 }
 0x180   : > { %v1928_v51 = vpop.f32.mrf.mxu0  ;;  %v1948_v61 = vadd.f32 %v1947_v50, %v1946_v48 }
 0x181   : > { %v1949_v52 = vpop.f32.mrf.mxu1 }
 0x182   : > { %v1616_v62 = vadd.f32 %v1948_v61, %v1576_v60 }
 0x183   : > { %v1950_v53 = vpop.f32.mrf.mxu1 }
 0x19a   : > { %v1655_v63 = vpop.f32.mrf.mxu0 }
 0x19b   : > { %v1656_v0 = vadd.f32 %v1655_v63, %v1616_v62 }
 0x19c   : > { %v1979_v1 = vpop.f32.mrf.mxu0 }
 0x19d   : > { %v1661_v2 = vmax.f32 %v1656_v0, 0.0 }
 0x19e   : > { %v1658_v3 = vpop.f32.mrf.mxu0 }
 0x19f   : > { %v1662_v4 = vpack.c.bf16 %v1661_v2, %v1661_v2 }
 0x1a0   : > { %v1980_v5 = vpop.f32.mrf.mxu0 }
 0x1a1   : > { %1663 = vst [vmem:[%s839_s26] sm:$0xf] %v1662_v4 }
 0x1a2 PF: > { %s13_s16 = sadd.s32 1, %s2144_s16   ;;  %s2646_s12 = smov %s2132_s13 }
 0x1a3   : > { %p10_p10 = scmp.ge.s32.totalorder %s13_s16, 4   ;;  %s2647_s13 = smov %s2203_s20 }
 0x1a4   : > { %s2648_s14 = smov %s2140_s15  ;;  %s2649_s15 = smov %s2651_s17 }
 0x1a5   :  { %12 = sbr.rel (!%p10_p10) target bundleno = 3 (0x3), region = 114 }

// kernel: _lambda_.36
= control target key start
LH: loop header
LB: loop body
LE: loop exit
PB: predicated region body
PF: predicated region fallthrough
CT: control target
= control target key end

     0   :  { %s3754_s12 = smov 0   ;;  %s3756_s13 = smov 0   ;;  %s4622_s0 = inlined_call_operand.vmem [shape: bf16[8,2304], index: 0, kind: input, shape index: {}]   ;;  %s4623_s1 = inlined_call_operand.vmem [shape: bf16[2304,256], index: 1, kind: input, shape index: {}]   ;;  %s4624_s2 = inlined_call_operand.vmem [shape: f32[1,256], index: 2, kind: input, shape index: {}]   ;;  %s4625_s3 = inlined_call_operand.vmem [shape: bf16[8,256], index: 3, kind: output, shape index: {}]  }
   0x1   :  { %s3758_s14 = smov 0   ;;  %s3760_s15 = smov 0  }
   0x2   :  { %s3762_s16 = smov 0  }
   0x3 LB: > { %s22_s17 = sadd.s32 1, %s3728_s15  ;;  %p65_p1 = scmp.ne.s32.totalorder %s3720_s13, %s3716_s12  ;;  %s3732_s16 = sphi %s3762_s16, %s13_s16   ;;  %s3728_s15 = sphi %s3760_s15, %s4629_s15   ;;  %s3724_s14 = sphi %s3758_s14, %s4628_s14   ;;  %s3720_s13 = sphi %s3756_s13, %s4627_s13   ;;  %s3716_s12 = sphi %s3754_s12, %s4626_s12  }
   0x4   : > { %p23_p0 = scmp.ge.s32.totalorder %s22_s17, 2  ;;  %p66_p2 = scmp.eq.s32.totalorder %s3732_s16, 0 }
   0x5   : > { %s58_s19 = sadd.s32 1, %s3720_s13  ;;  %p3123_p5 = scmp.ge.s32.totalorder %s3732_s16, 2 }
   0x6   : > { %s4631_s17 = smov (%p23_p0, %s22_s17), 0  ;;  %p67_p3 = por %p66_p2, %p65_p1 }
   0x7   : > { %s55_s18 = ssub.s32 %s3728_s15, %s4631_s17  ;;  %153 = sbr.rel (%p3123_p5) target bundleno = 208 (0xd0), region = 20 }
   0x8   : > { %p56_p4 = scmp.eq.s32.totalorder %s55_s18, 0 }
   0xa   : > { %s3789_s20 = scalar_select %p56_p4, %s3720_s13, %s58_s19  }
   0xc   : > { %156 = sbr.rel (!%p67_p3) target bundleno = 208 (0xd0), region = 24  ;;  %s158_s21 = sand.u32 (%p67_p3), 1, %s3720_s13  }
   0xd   : > { %s3124_s22 = sshll.u32 (%p67_p3), %s3728_s15, 2  ;;  %s3490_s23 = smul.u32 (%p67_p3), 1152, %s158_s21 }
   0xe   : > { %s3797_s26 = scalar_lea.vmem (%p67_p3), %s4623_s1, %s3124_s22 }
   0xf   : > { %v179_v0 = vld [vmem:[%s3797_s26] sm:$0xf] (%p67_p3)  ;;  %v181_v1 = vld [vmem:[%s3797_s26 + $0x8] sm:$0xf] (%p67_p3)  ;;  %v183_v2 = vld [vmem:[%s3797_s26 + $0x10] sm:$0xf] (%p67_p3) }
  0x10   : > { %v185_v3 = vld [vmem:[%s3797_s26 + $0x18] sm:$0xf] (%p67_p3)  ;;  %v187_v4 = vld [vmem:[%s3797_s26 + $0x20] sm:$0xf] (%p67_p3)  ;;  %s3804_s27 = scalar_lea.vmem (%p67_p3), [#allocation2], %s3490_s23 }
  0x11   : > { %180 = vst [vmem:[%s3804_s27] sm:$0xf] %v179_v0  ;;  %182 = vst [vmem:[%s3804_s27 + $0x4] sm:$0xf] %v181_v1  ;;  %v189_v5 = vld [vmem:[%s3797_s26 + $0x28] sm:$0xf] }
  0x12   : > { %184 = vst [vmem:[%s3804_s27 + $0x8] sm:$0xf] %v183_v2  ;;  %186 = vst [vmem:[%s3804_s27 + $0xc] sm:$0xf] %v185_v3  ;;  %v191_v6 = vld [vmem:[%s3797_s26 + $0x30] sm:$0xf] }
  0x13   : > { %188 = vst [vmem:[%s3804_s27 + $0x10] sm:$0xf] %v187_v4  ;;  %v193_v7 = vld [vmem:[%s3797_s26 + $0x38] sm:$0xf]  ;;  %190 = vst [vmem:[%s3804_s27 + $0x14] sm:$0xf] %v189_v5 }
  0x14   : > { %192 = vst [vmem:[%s3804_s27 + $0x18] sm:$0xf] %v191_v6  ;;  %194 = vst [vmem:[%s3804_s27 + $0x1c] sm:$0xf] %v193_v7  ;;  %v195_v8 = vld [vmem:[%s3797_s26 + $0x40] sm:$0xf] }
  0x15   : > { %v197_v9 = vld [vmem:[%s3797_s26 + $0x48] sm:$0xf]  ;;  %v199_v10 = vld [vmem:[%s3797_s26 + $0x50] sm:$0xf]  ;;  %196 = vst [vmem:[%s3804_s27 + $0x20] sm:$0xf] %v195_v8 }
  0x16   : > { %198 = vst [vmem:[%s3804_s27 + $0x24] sm:$0xf] %v197_v9  ;;  %200 = vst [vmem:[%s3804_s27 + $0x28] sm:$0xf] %v199_v10  ;;  %v201_v11 = vld [vmem:[%s3797_s26 + $0x58] sm:$0xf] }
  0x17   : > { %v203_v12 = vld [vmem:[%s3797_s26 + $0x60] sm:$0xf]  ;;  %v205_v13 = vld [vmem:[%s3797_s26 + $0x68] sm:$0xf]  ;;  %202 = vst [vmem:[%s3804_s27 + $0x2c] sm:$0xf] %v201_v11 }
  0x18   : > { %204 = vst [vmem:[%s3804_s27 + $0x30] sm:$0xf] %v203_v12  ;;  %206 = vst [vmem:[%s3804_s27 + $0x34] sm:$0xf] %v205_v13  ;;  %v207_v14 = vld [vmem:[%s3797_s26 + $0x70] sm:$0xf] }
  0x19   : > { %v209_v15 = vld [vmem:[%s3797_s26 + $0x78] sm:$0xf]  ;;  %v211_v16 = vld [vmem:[%s3797_s26 + $0x80] sm:$0xf]  ;;  %208 = vst [vmem:[%s3804_s27 + $0x38] sm:$0xf] %v207_v14 }
  0x1a   : > { %210 = vst [vmem:[%s3804_s27 + $0x3c] sm:$0xf] %v209_v15  ;;  %212 = vst [vmem:[%s3804_s27 + $0x40] sm:$0xf] %v211_v16  ;;  %v213_v17 = vld [vmem:[%s3797_s26 + $0x88] sm:$0xf] }
  0x1b   : > { %v215_v18 = vld [vmem:[%s3797_s26 + $0x90] sm:$0xf]  ;;  %v217_v19 = vld [vmem:[%s3797_s26 + $0x98] sm:$0xf]  ;;  %214 = vst [vmem:[%s3804_s27 + $0x44] sm:$0xf] %v213_v17 }
  0x1c   : > { %216 = vst [vmem:[%s3804_s27 + $0x48] sm:$0xf] %v215_v18  ;;  %218 = vst [vmem:[%s3804_s27 + $0x4c] sm:$0xf] %v217_v19  ;;  %v219_v20 = vld [vmem:[%s3797_s26 + $0xa0] sm:$0xf] }
  0x1d   : > { %v221_v21 = vld [vmem:[%s3797_s26 + $0xa8] sm:$0xf]  ;;  %v223_v22 = vld [vmem:[%s3797_s26 + $0xb0] sm:$0xf]  ;;  %220 = vst [vmem:[%s3804_s27 + $0x50] sm:$0xf] %v219_v20 }
  0x1e   : > { %222 = vst [vmem:[%s3804_s27 + $0x54] sm:$0xf] %v221_v21  ;;  %224 = vst [vmem:[%s3804_s27 + $0x58] sm:$0xf] %v223_v22  ;;  %v225_v23 = vld [vmem:[%s3797_s26 + $0xb8] sm:$0xf] }
  0x1f   : > { %v227_v24 = vld [vmem:[%s3797_s26 + $0xc0] sm:$0xf]  ;;  %v229_v25 = vld [vmem:[%s3797_s26 + $0xc8] sm:$0xf]  ;;  %226 = vst [vmem:[%s3804_s27 + $0x5c] sm:$0xf] %v225_v23 }
  0x20   : > { %228 = vst [vmem:[%s3804_s27 + $0x60] sm:$0xf] %v227_v24  ;;  %230 = vst [vmem:[%s3804_s27 + $0x64] sm:$0xf] %v229_v25  ;;  %v231_v26 = vld [vmem:[%s3797_s26 + $0xd0] sm:$0xf] }
  0x21   : > { %v233_v27 = vld [vmem:[%s3797_s26 + $0xd8] sm:$0xf]  ;;  %v235_v28 = vld [vmem:[%s3797_s26 + $0xe0] sm:$0xf]  ;;  %232 = vst [vmem:[%s3804_s27 + $0x68] sm:$0xf] %v231_v26 }
  0x22   : > { %234 = vst [vmem:[%s3804_s27 + $0x6c] sm:$0xf] %v233_v27  ;;  %236 = vst [vmem:[%s3804_s27 + $0x70] sm:$0xf] %v235_v28  ;;  %v237_v29 = vld [vmem:[%s3797_s26 + $0xe8] sm:$0xf] }
  0x23   : > { %v239_v30 = vld [vmem:[%s3797_s26 + $0xf0] sm:$0xf]  ;;  %v241_v31 = vld [vmem:[%s3797_s26 + $0xf8] sm:$0xf]  ;;  %238 = vst [vmem:[%s3804_s27 + $0x74] sm:$0xf] %v237_v29 }
  0x24   : > { %240 = vst [vmem:[%s3804_s27 + $0x78] sm:$0xf] %v239_v30  ;;  %242 = vst [vmem:[%s3804_s27 + $0x7c] sm:$0xf] %v241_v31  ;;  %v243_v32 = vld [vmem:[%s3797_s26 + $0x100] sm:$0xf] }
  0x25   : > { %v245_v33 = vld [vmem:[%s3797_s26 + $0x108] sm:$0xf]  ;;  %v247_v34 = vld [vmem:[%s3797_s26 + $0x110] sm:$0xf]  ;;  %244 = vst [vmem:[%s3804_s27 + $0x80] sm:$0xf] %v243_v32 }
  0x26   : > { %246 = vst [vmem:[%s3804_s27 + $0x84] sm:$0xf] %v245_v33  ;;  %248 = vst [vmem:[%s3804_s27 + $0x88] sm:$0xf] %v247_v34  ;;  %v249_v35 = vld [vmem:[%s3797_s26 + $0x118] sm:$0xf] }
  0x27   : > { %v251_v36 = vld [vmem:[%s3797_s26 + $0x120] sm:$0xf]  ;;  %v253_v37 = vld [vmem:[%s3797_s26 + $0x128] sm:$0xf]  ;;  %250 = vst [vmem:[%s3804_s27 + $0x8c] sm:$0xf] %v249_v35 }
  0x28   : > { %252 = vst [vmem:[%s3804_s27 + $0x90] sm:$0xf] %v251_v36  ;;  %254 = vst [vmem:[%s3804_s27 + $0x94] sm:$0xf] %v253_v37  ;;  %v255_v38 = vld [vmem:[%s3797_s26 + $0x130] sm:$0xf] }
  0x29   : > { %v257_v39 = vld [vmem:[%s3797_s26 + $0x138] sm:$0xf]  ;;  %v259_v40 = vld [vmem:[%s3797_s26 + $0x140] sm:$0xf]  ;;  %256 = vst [vmem:[%s3804_s27 + $0x98] sm:$0xf] %v255_v38 }
  0x2a   : > { %258 = vst [vmem:[%s3804_s27 + $0x9c] sm:$0xf] %v257_v39  ;;  %260 = vst [vmem:[%s3804_s27 + $0xa0] sm:$0xf] %v259_v40  ;;  %v261_v41 = vld [vmem:[%s3797_s26 + $0x148] sm:$0xf] }
  0x2b   : > { %v263_v42 = vld [vmem:[%s3797_s26 + $0x150] sm:$0xf]  ;;  %v265_v43 = vld [vmem:[%s3797_s26 + $0x158] sm:$0xf]  ;;  %262 = vst [vmem:[%s3804_s27 + $0xa4] sm:$0xf] %v261_v41 }
  0x2c   : > { %264 = vst [vmem:[%s3804_s27 + $0xa8] sm:$0xf] %v263_v42  ;;  %266 = vst [vmem:[%s3804_s27 + $0xac] sm:$0xf] %v265_v43  ;;  %v267_v44 = vld [vmem:[%s3797_s26 + $0x160] sm:$0xf] }
  0x2d   : > { %v269_v45 = vld [vmem:[%s3797_s26 + $0x168] sm:$0xf]  ;;  %v271_v46 = vld [vmem:[%s3797_s26 + $0x170] sm:$0xf]  ;;  %268 = vst [vmem:[%s3804_s27 + $0xb0] sm:$0xf] %v267_v44 }
  0x2e   : > { %270 = vst [vmem:[%s3804_s27 + $0xb4] sm:$0xf] %v269_v45  ;;  %272 = vst [vmem:[%s3804_s27 + $0xb8] sm:$0xf] %v271_v46  ;;  %v273_v47 = vld [vmem:[%s3797_s26 + $0x178] sm:$0xf] }
  0x2f   : > { %v275_v48 = vld [vmem:[%s3797_s26 + $0x180] sm:$0xf]  ;;  %v277_v49 = vld [vmem:[%s3797_s26 + $0x188] sm:$0xf]  ;;  %274 = vst [vmem:[%s3804_s27 + $0xbc] sm:$0xf] %v273_v47 }
  0x30   : > { %276 = vst [vmem:[%s3804_s27 + $0xc0] sm:$0xf] %v275_v48  ;;  %278 = vst [vmem:[%s3804_s27 + $0xc4] sm:$0xf] %v277_v49  ;;  %v279_v50 = vld [vmem:[%s3797_s26 + $0x190] sm:$0xf] }
  0x31   : > { %v281_v51 = vld [vmem:[%s3797_s26 + $0x198] sm:$0xf]  ;;  %v283_v52 = vld [vmem:[%s3797_s26 + $0x1a0] sm:$0xf]  ;;  %280 = vst [vmem:[%s3804_s27 + $0xc8] sm:$0xf] %v279_v50 }
  0x32   : > { %282 = vst [vmem:[%s3804_s27 + $0xcc] sm:$0xf] %v281_v51  ;;  %284 = vst [vmem:[%s3804_s27 + $0xd0] sm:$0xf] %v283_v52  ;;  %v285_v53 = vld [vmem:[%s3797_s26 + $0x1a8] sm:$0xf] }
  0x33   : > { %v287_v54 = vld [vmem:[%s3797_s26 + $0x1b0] sm:$0xf]  ;;  %v289_v55 = vld [vmem:[%s3797_s26 + $0x1b8] sm:$0xf]  ;;  %286 = vst [vmem:[%s3804_s27 + $0xd4] sm:$0xf] %v285_v53 }
  0x34   : > { %288 = vst [vmem:[%s3804_s27 + $0xd8] sm:$0xf] %v287_v54  ;;  %290 = vst [vmem:[%s3804_s27 + $0xdc] sm:$0xf] %v289_v55  ;;  %v291_v56 = vld [vmem:[%s3797_s26 + $0x1c0] sm:$0xf] }
  0x35   : > { %v293_v57 = vld [vmem:[%s3797_s26 + $0x1c8] sm:$0xf]  ;;  %v295_v58 = vld [vmem:[%s3797_s26 + $0x1d0] sm:$0xf]  ;;  %292 = vst [vmem:[%s3804_s27 + $0xe0] sm:$0xf] %v291_v56 }
  0x36   : > { %294 = vst [vmem:[%s3804_s27 + $0xe4] sm:$0xf] %v293_v57  ;;  %296 = vst [vmem:[%s3804_s27 + $0xe8] sm:$0xf] %v295_v58  ;;  %v297_v59 = vld [vmem:[%s3797_s26 + $0x1d8] sm:$0xf] }
  0x37   : > { %v299_v60 = vld [vmem:[%s3797_s26 + $0x1e0] sm:$0xf]  ;;  %v301_v61 = vld [vmem:[%s3797_s26 + $0x1e8] sm:$0xf]  ;;  %298 = vst [vmem:[%s3804_s27 + $0xec] sm:$0xf] %v297_v59 }
  0x38   : > { %300 = vst [vmem:[%s3804_s27 + $0xf0] sm:$0xf] %v299_v60  ;;  %302 = vst [vmem:[%s3804_s27 + $0xf4] sm:$0xf] %v301_v61  ;;  %v303_v62 = vld [vmem:[%s3797_s26 + $0x1f0] sm:$0xf] }
  0x39   : > { %v305_v63 = vld [vmem:[%s3797_s26 + $0x1f8] sm:$0xf]  ;;  %v307_v0 = vld [vmem:[%s3797_s26 + $0x200] sm:$0xf]  ;;  %304 = vst [vmem:[%s3804_s27 + $0xf8] sm:$0xf] %v303_v62 }
  0x3a   : > { %306 = vst [vmem:[%s3804_s27 + $0xfc] sm:$0xf] %v305_v63  ;;  %308 = vst [vmem:[%s3804_s27 + $0x100] sm:$0xf] %v307_v0  ;;  %v309_v1 = vld [vmem:[%s3797_s26 + $0x208] sm:$0xf] }
  0x3b   : > { %v311_v2 = vld [vmem:[%s3797_s26 + $0x210] sm:$0xf]  ;;  %v313_v3 = vld [vmem:[%s3797_s26 + $0x218] sm:$0xf]  ;;  %310 = vst [vmem:[%s3804_s27 + $0x104] sm:$0xf] %v309_v1 }
  0x3c   : > { %312 = vst [vmem:[%s3804_s27 + $0x108] sm:$0xf] %v311_v2  ;;  %314 = vst [vmem:[%s3804_s27 + $0x10c] sm:$0xf] %v313_v3  ;;  %v315_v4 = vld [vmem:[%s3797_s26 + $0x220] sm:$0xf] }
  0x3d   : > { %v317_v5 = vld [vmem:[%s3797_s26 + $0x228] sm:$0xf]  ;;  %v319_v6 = vld [vmem:[%s3797_s26 + $0x230] sm:$0xf]  ;;  %316 = vst [vmem:[%s3804_s27 + $0x110] sm:$0xf] %v315_v4 }
  0x3e   : > { %318 = vst [vmem:[%s3804_s27 + $0x114] sm:$0xf] %v317_v5  ;;  %320 = vst [vmem:[%s3804_s27 + $0x118] sm:$0xf] %v319_v6  ;;  %v321_v7 = vld [vmem:[%s3797_s26 + $0x238] sm:$0xf] }
  0x3f   : > { %v323_v8 = vld [vmem:[%s3797_s26 + $0x240] sm:$0xf]  ;;  %v325_v9 = vld [vmem:[%s3797_s26 + $0x248] sm:$0xf]  ;;  %322 = vst [vmem:[%s3804_s27 + $0x11c] sm:$0xf] %v321_v7 }
  0x40   : > { %324 = vst [vmem:[%s3804_s27 + $0x120] sm:$0xf] %v323_v8  ;;  %326 = vst [vmem:[%s3804_s27 + $0x124] sm:$0xf] %v325_v9  ;;  %v327_v10 = vld [vmem:[%s3797_s26 + $0x250] sm:$0xf] }
  0x41   : > { %v329_v11 = vld [vmem:[%s3797_s26 + $0x258] sm:$0xf]  ;;  %v331_v12 = vld [vmem:[%s3797_s26 + $0x260] sm:$0xf]  ;;  %328 = vst [vmem:[%s3804_s27 + $0x128] sm:$0xf] %v327_v10 }
  0x42   : > { %330 = vst [vmem:[%s3804_s27 + $0x12c] sm:$0xf] %v329_v11  ;;  %332 = vst [vmem:[%s3804_s27 + $0x130] sm:$0xf] %v331_v12  ;;  %v333_v13 = vld [vmem:[%s3797_s26 + $0x268] sm:$0xf] }
  0x43   : > { %v335_v14 = vld [vmem:[%s3797_s26 + $0x270] sm:$0xf]  ;;  %v337_v15 = vld [vmem:[%s3797_s26 + $0x278] sm:$0xf]  ;;  %334 = vst [vmem:[%s3804_s27 + $0x134] sm:$0xf] %v333_v13 }
  0x44   : > { %336 = vst [vmem:[%s3804_s27 + $0x138] sm:$0xf] %v335_v14  ;;  %338 = vst [vmem:[%s3804_s27 + $0x13c] sm:$0xf] %v337_v15  ;;  %v339_v16 = vld [vmem:[%s3797_s26 + $0x280] sm:$0xf] }
  0x45   : > { %v341_v17 = vld [vmem:[%s3797_s26 + $0x288] sm:$0xf]  ;;  %v343_v18 = vld [vmem:[%s3797_s26 + $0x290] sm:$0xf]  ;;  %340 = vst [vmem:[%s3804_s27 + $0x140] sm:$0xf] %v339_v16 }
  0x46   : > { %342 = vst [vmem:[%s3804_s27 + $0x144] sm:$0xf] %v341_v17  ;;  %344 = vst [vmem:[%s3804_s27 + $0x148] sm:$0xf] %v343_v18  ;;  %v345_v19 = vld [vmem:[%s3797_s26 + $0x298] sm:$0xf] }
  0x47   : > { %v347_v20 = vld [vmem:[%s3797_s26 + $0x2a0] sm:$0xf]  ;;  %v349_v21 = vld [vmem:[%s3797_s26 + $0x2a8] sm:$0xf]  ;;  %346 = vst [vmem:[%s3804_s27 + $0x14c] sm:$0xf] %v345_v19 }
  0x48   : > { %348 = vst [vmem:[%s3804_s27 + $0x150] sm:$0xf] %v347_v20  ;;  %350 = vst [vmem:[%s3804_s27 + $0x154] sm:$0xf] %v349_v21  ;;  %v351_v22 = vld [vmem:[%s3797_s26 + $0x2b0] sm:$0xf] }
  0x49   : > { %v353_v23 = vld [vmem:[%s3797_s26 + $0x2b8] sm:$0xf]  ;;  %v355_v24 = vld [vmem:[%s3797_s26 + $0x2c0] sm:$0xf]  ;;  %352 = vst [vmem:[%s3804_s27 + $0x158] sm:$0xf] %v351_v22 }
  0x4a   : > { %354 = vst [vmem:[%s3804_s27 + $0x15c] sm:$0xf] %v353_v23  ;;  %356 = vst [vmem:[%s3804_s27 + $0x160] sm:$0xf] %v355_v24  ;;  %v357_v25 = vld [vmem:[%s3797_s26 + $0x2c8] sm:$0xf] }
  0x4b   : > { %v359_v26 = vld [vmem:[%s3797_s26 + $0x2d0] sm:$0xf]  ;;  %v361_v27 = vld [vmem:[%s3797_s26 + $0x2d8] sm:$0xf]  ;;  %358 = vst [vmem:[%s3804_s27 + $0x164] sm:$0xf] %v357_v25 }
  0x4c   : > { %360 = vst [vmem:[%s3804_s27 + $0x168] sm:$0xf] %v359_v26  ;;  %362 = vst [vmem:[%s3804_s27 + $0x16c] sm:$0xf] %v361_v27  ;;  %v363_v28 = vld [vmem:[%s3797_s26 + $0x2e0] sm:$0xf] }
  0x4d   : > { %v365_v29 = vld [vmem:[%s3797_s26 + $0x2e8] sm:$0xf]  ;;  %v367_v30 = vld [vmem:[%s3797_s26 + $0x2f0] sm:$0xf]  ;;  %364 = vst [vmem:[%s3804_s27 + $0x170] sm:$0xf] %v363_v28 }
  0x4e   : > { %366 = vst [vmem:[%s3804_s27 + $0x174] sm:$0xf] %v365_v29  ;;  %368 = vst [vmem:[%s3804_s27 + $0x178] sm:$0xf] %v367_v30  ;;  %v369_v31 = vld [vmem:[%s3797_s26 + $0x2f8] sm:$0xf] }
  0x4f   : > { %v371_v32 = vld [vmem:[%s3797_s26 + $0x300] sm:$0xf]  ;;  %v373_v33 = vld [vmem:[%s3797_s26 + $0x308] sm:$0xf]  ;;  %370 = vst [vmem:[%s3804_s27 + $0x17c] sm:$0xf] %v369_v31 }
  0x50   : > { %372 = vst [vmem:[%s3804_s27 + $0x180] sm:$0xf] %v371_v32  ;;  %374 = vst [vmem:[%s3804_s27 + $0x184] sm:$0xf] %v373_v33  ;;  %v375_v34 = vld [vmem:[%s3797_s26 + $0x310] sm:$0xf] }
  0x51   : > { %v377_v35 = vld [vmem:[%s3797_s26 + $0x318] sm:$0xf]  ;;  %v379_v36 = vld [vmem:[%s3797_s26 + $0x320] sm:$0xf]  ;;  %376 = vst [vmem:[%s3804_s27 + $0x188] sm:$0xf] %v375_v34 }
  0x52   : > { %378 = vst [vmem:[%s3804_s27 + $0x18c] sm:$0xf] %v377_v35  ;;  %380 = vst [vmem:[%s3804_s27 + $0x190] sm:$0xf] %v379_v36  ;;  %v381_v37 = vld [vmem:[%s3797_s26 + $0x328] sm:$0xf] }
  0x53   : > { %v383_v38 = vld [vmem:[%s3797_s26 + $0x330] sm:$0xf]  ;;  %v385_v39 = vld [vmem:[%s3797_s26 + $0x338] sm:$0xf]  ;;  %382 = vst [vmem:[%s3804_s27 + $0x194] sm:$0xf] %v381_v37 }
  0x54   : > { %384 = vst [vmem:[%s3804_s27 + $0x198] sm:$0xf] %v383_v38  ;;  %386 = vst [vmem:[%s3804_s27 + $0x19c] sm:$0xf] %v385_v39  ;;  %v387_v40 = vld [vmem:[%s3797_s26 + $0x340] sm:$0xf] }
  0x55   : > { %v389_v41 = vld [vmem:[%s3797_s26 + $0x348] sm:$0xf]  ;;  %v391_v42 = vld [vmem:[%s3797_s26 + $0x350] sm:$0xf]  ;;  %388 = vst [vmem:[%s3804_s27 + $0x1a0] sm:$0xf] %v387_v40 }
  0x56   : > { %390 = vst [vmem:[%s3804_s27 + $0x1a4] sm:$0xf] %v389_v41  ;;  %392 = vst [vmem:[%s3804_s27 + $0x1a8] sm:$0xf] %v391_v42  ;;  %v393_v43 = vld [vmem:[%s3797_s26 + $0x358] sm:$0xf] }
  0x57   : > { %v395_v44 = vld [vmem:[%s3797_s26 + $0x360] sm:$0xf]  ;;  %v397_v45 = vld [vmem:[%s3797_s26 + $0x368] sm:$0xf]  ;;  %394 = vst [vmem:[%s3804_s27 + $0x1ac] sm:$0xf] %v393_v43 }
  0x58   : > { %396 = vst [vmem:[%s3804_s27 + $0x1b0] sm:$0xf] %v395_v44  ;;  %398 = vst [vmem:[%s3804_s27 + $0x1b4] sm:$0xf] %v397_v45  ;;  %v399_v46 = vld [vmem:[%s3797_s26 + $0x370] sm:$0xf] }
  0x59   : > { %v401_v47 = vld [vmem:[%s3797_s26 + $0x378] sm:$0xf]  ;;  %v403_v48 = vld [vmem:[%s3797_s26 + $0x380] sm:$0xf]  ;;  %400 = vst [vmem:[%s3804_s27 + $0x1b8] sm:$0xf] %v399_v46 }
  0x5a   : > { %402 = vst [vmem:[%s3804_s27 + $0x1bc] sm:$0xf] %v401_v47  ;;  %404 = vst [vmem:[%s3804_s27 + $0x1c0] sm:$0xf] %v403_v48  ;;  %v405_v49 = vld [vmem:[%s3797_s26 + $0x388] sm:$0xf] }
  0x5b   : > { %v407_v50 = vld [vmem:[%s3797_s26 + $0x390] sm:$0xf]  ;;  %v409_v51 = vld [vmem:[%s3797_s26 + $0x398] sm:$0xf]  ;;  %406 = vst [vmem:[%s3804_s27 + $0x1c4] sm:$0xf] %v405_v49 }
  0x5c   : > { %408 = vst [vmem:[%s3804_s27 + $0x1c8] sm:$0xf] %v407_v50  ;;  %410 = vst [vmem:[%s3804_s27 + $0x1cc] sm:$0xf] %v409_v51  ;;  %v411_v52 = vld [vmem:[%s3797_s26 + $0x3a0] sm:$0xf] }
  0x5d   : > { %v413_v53 = vld [vmem:[%s3797_s26 + $0x3a8] sm:$0xf]  ;;  %v415_v54 = vld [vmem:[%s3797_s26 + $0x3b0] sm:$0xf]  ;;  %412 = vst [vmem:[%s3804_s27 + $0x1d0] sm:$0xf] %v411_v52 }
  0x5e   : > { %414 = vst [vmem:[%s3804_s27 + $0x1d4] sm:$0xf] %v413_v53  ;;  %416 = vst [vmem:[%s3804_s27 + $0x1d8] sm:$0xf] %v415_v54  ;;  %v417_v55 = vld [vmem:[%s3797_s26 + $0x3b8] sm:$0xf] }
  0x5f   : > { %v419_v56 = vld [vmem:[%s3797_s26 + $0x3c0] sm:$0xf]  ;;  %v421_v57 = vld [vmem:[%s3797_s26 + $0x3c8] sm:$0xf]  ;;  %418 = vst [vmem:[%s3804_s27 + $0x1dc] sm:$0xf] %v417_v55 }
  0x60   : > { %420 = vst [vmem:[%s3804_s27 + $0x1e0] sm:$0xf] %v419_v56  ;;  %422 = vst [vmem:[%s3804_s27 + $0x1e4] sm:$0xf] %v421_v57  ;;  %v423_v58 = vld [vmem:[%s3797_s26 + $0x3d0] sm:$0xf] }
  0x61   : > { %v425_v59 = vld [vmem:[%s3797_s26 + $0x3d8] sm:$0xf]  ;;  %v427_v60 = vld [vmem:[%s3797_s26 + $0x3e0] sm:$0xf]  ;;  %424 = vst [vmem:[%s3804_s27 + $0x1e8] sm:$0xf] %v423_v58 }
  0x62   : > { %426 = vst [vmem:[%s3804_s27 + $0x1ec] sm:$0xf] %v425_v59  ;;  %428 = vst [vmem:[%s3804_s27 + $0x1f0] sm:$0xf] %v427_v60  ;;  %v429_v61 = vld [vmem:[%s3797_s26 + $0x3e8] sm:$0xf] }
  0x63   : > { %v431_v62 = vld [vmem:[%s3797_s26 + $0x3f0] sm:$0xf]  ;;  %v433_v63 = vld [vmem:[%s3797_s26 + $0x3f8] sm:$0xf]  ;;  %430 = vst [vmem:[%s3804_s27 + $0x1f4] sm:$0xf] %v429_v61 }
  0x64   : > { %432 = vst [vmem:[%s3804_s27 + $0x1f8] sm:$0xf] %v431_v62  ;;  %434 = vst [vmem:[%s3804_s27 + $0x1fc] sm:$0xf] %v433_v63  ;;  %v435_v0 = vld [vmem:[%s3797_s26 + $0x400] sm:$0xf] }
  0x65   : > { %v437_v1 = vld [vmem:[%s3797_s26 + $0x408] sm:$0xf]  ;;  %v439_v2 = vld [vmem:[%s3797_s26 + $0x410] sm:$0xf]  ;;  %436 = vst [vmem:[%s3804_s27 + $0x200] sm:$0xf] %v435_v0 }
  0x66   : > { %438 = vst [vmem:[%s3804_s27 + $0x204] sm:$0xf] %v437_v1  ;;  %440 = vst [vmem:[%s3804_s27 + $0x208] sm:$0xf] %v439_v2  ;;  %v441_v3 = vld [vmem:[%s3797_s26 + $0x418] sm:$0xf] }
  0x67   : > { %v443_v4 = vld [vmem:[%s3797_s26 + $0x420] sm:$0xf]  ;;  %v445_v5 = vld [vmem:[%s3797_s26 + $0x428] sm:$0xf]  ;;  %442 = vst [vmem:[%s3804_s27 + $0x20c] sm:$0xf] %v441_v3 }
  0x68   : > { %444 = vst [vmem:[%s3804_s27 + $0x210] sm:$0xf] %v443_v4  ;;  %446 = vst [vmem:[%s3804_s27 + $0x214] sm:$0xf] %v445_v5  ;;  %v447_v6 = vld [vmem:[%s3797_s26 + $0x430] sm:$0xf] }
  0x69   : > { %v449_v7 = vld [vmem:[%s3797_s26 + $0x438] sm:$0xf]  ;;  %v451_v8 = vld [vmem:[%s3797_s26 + $0x440] sm:$0xf]  ;;  %448 = vst [vmem:[%s3804_s27 + $0x218] sm:$0xf] %v447_v6 }
  0x6a   : > { %450 = vst [vmem:[%s3804_s27 + $0x21c] sm:$0xf] %v449_v7  ;;  %452 = vst [vmem:[%s3804_s27 + $0x220] sm:$0xf] %v451_v8  ;;  %v453_v9 = vld [vmem:[%s3797_s26 + $0x448] sm:$0xf] }
  0x6b   : > { %v455_v10 = vld [vmem:[%s3797_s26 + $0x450] sm:$0xf]  ;;  %v457_v11 = vld [vmem:[%s3797_s26 + $0x458] sm:$0xf]  ;;  %454 = vst [vmem:[%s3804_s27 + $0x224] sm:$0xf] %v453_v9 }
  0x6c   : > { %456 = vst [vmem:[%s3804_s27 + $0x228] sm:$0xf] %v455_v10  ;;  %458 = vst [vmem:[%s3804_s27 + $0x22c] sm:$0xf] %v457_v11  ;;  %v459_v12 = vld [vmem:[%s3797_s26 + $0x460] sm:$0xf] }
  0x6d   : > { %v461_v13 = vld [vmem:[%s3797_s26 + $0x468] sm:$0xf]  ;;  %v463_v14 = vld [vmem:[%s3797_s26 + $0x470] sm:$0xf]  ;;  %460 = vst [vmem:[%s3804_s27 + $0x230] sm:$0xf] %v459_v12 }
  0x6e   : > { %462 = vst [vmem:[%s3804_s27 + $0x234] sm:$0xf] %v461_v13  ;;  %464 = vst [vmem:[%s3804_s27 + $0x238] sm:$0xf] %v463_v14  ;;  %v465_v15 = vld [vmem:[%s3797_s26 + $0x478] sm:$0xf] }
  0x6f   : > { %v467_v16 = vld [vmem:[%s3797_s26 + $0x480] sm:$0xf]  ;;  %v469_v17 = vld [vmem:[%s3797_s26 + $0x488] sm:$0xf]  ;;  %466 = vst [vmem:[%s3804_s27 + $0x23c] sm:$0xf] %v465_v15 }
  0x70   : > { %468 = vst [vmem:[%s3804_s27 + $0x240] sm:$0xf] %v467_v16  ;;  %470 = vst [vmem:[%s3804_s27 + $0x244] sm:$0xf] %v469_v17  ;;  %v471_v18 = vld [vmem:[%s3797_s26 + $0x490] sm:$0xf] }
  0x71   : > { %v473_v19 = vld [vmem:[%s3797_s26 + $0x498] sm:$0xf]  ;;  %v475_v20 = vld [vmem:[%s3797_s26 + $0x4a0] sm:$0xf]  ;;  %472 = vst [vmem:[%s3804_s27 + $0x248] sm:$0xf] %v471_v18 }
  0x72   : > { %474 = vst [vmem:[%s3804_s27 + $0x24c] sm:$0xf] %v473_v19  ;;  %476 = vst [vmem:[%s3804_s27 + $0x250] sm:$0xf] %v475_v20  ;;  %v477_v21 = vld [vmem:[%s3797_s26 + $0x4a8] sm:$0xf] }
  0x73   : > { %v479_v22 = vld [vmem:[%s3797_s26 + $0x4b0] sm:$0xf]  ;;  %v481_v23 = vld [vmem:[%s3797_s26 + $0x4b8] sm:$0xf]  ;;  %478 = vst [vmem:[%s3804_s27 + $0x254] sm:$0xf] %v477_v21 }
  0x74   : > { %480 = vst [vmem:[%s3804_s27 + $0x258] sm:$0xf] %v479_v22  ;;  %482 = vst [vmem:[%s3804_s27 + $0x25c] sm:$0xf] %v481_v23  ;;  %v483_v24 = vld [vmem:[%s3797_s26 + $0x4c0] sm:$0xf] }
  0x75   : > { %v485_v25 = vld [vmem:[%s3797_s26 + $0x4c8] sm:$0xf]  ;;  %v487_v26 = vld [vmem:[%s3797_s26 + $0x4d0] sm:$0xf]  ;;  %484 = vst [vmem:[%s3804_s27 + $0x260] sm:$0xf] %v483_v24 }
  0x76   : > { %486 = vst [vmem:[%s3804_s27 + $0x264] sm:$0xf] %v485_v25  ;;  %488 = vst [vmem:[%s3804_s27 + $0x268] sm:$0xf] %v487_v26  ;;  %v489_v27 = vld [vmem:[%s3797_s26 + $0x4d8] sm:$0xf] }
  0x77   : > { %v491_v28 = vld [vmem:[%s3797_s26 + $0x4e0] sm:$0xf]  ;;  %v493_v29 = vld [vmem:[%s3797_s26 + $0x4e8] sm:$0xf]  ;;  %490 = vst [vmem:[%s3804_s27 + $0x26c] sm:$0xf] %v489_v27 }
  0x78   : > { %492 = vst [vmem:[%s3804_s27 + $0x270] sm:$0xf] %v491_v28  ;;  %494 = vst [vmem:[%s3804_s27 + $0x274] sm:$0xf] %v493_v29  ;;  %v495_v30 = vld [vmem:[%s3797_s26 + $0x4f0] sm:$0xf] }
  0x79   : > { %v497_v31 = vld [vmem:[%s3797_s26 + $0x4f8] sm:$0xf]  ;;  %v499_v32 = vld [vmem:[%s3797_s26 + $0x500] sm:$0xf]  ;;  %496 = vst [vmem:[%s3804_s27 + $0x278] sm:$0xf] %v495_v30 }
  0x7a   : > { %498 = vst [vmem:[%s3804_s27 + $0x27c] sm:$0xf] %v497_v31  ;;  %500 = vst [vmem:[%s3804_s27 + $0x280] sm:$0xf] %v499_v32  ;;  %v501_v33 = vld [vmem:[%s3797_s26 + $0x508] sm:$0xf] }
  0x7b   : > { %v503_v34 = vld [vmem:[%s3797_s26 + $0x510] sm:$0xf]  ;;  %v505_v35 = vld [vmem:[%s3797_s26 + $0x518] sm:$0xf]  ;;  %502 = vst [vmem:[%s3804_s27 + $0x284] sm:$0xf] %v501_v33 }
  0x7c   : > { %504 = vst [vmem:[%s3804_s27 + $0x288] sm:$0xf] %v503_v34  ;;  %506 = vst [vmem:[%s3804_s27 + $0x28c] sm:$0xf] %v505_v35  ;;  %v507_v36 = vld [vmem:[%s3797_s26 + $0x520] sm:$0xf] }
  0x7d   : > { %v509_v37 = vld [vmem:[%s3797_s26 + $0x528] sm:$0xf]  ;;  %v511_v38 = vld [vmem:[%s3797_s26 + $0x530] sm:$0xf]  ;;  %508 = vst [vmem:[%s3804_s27 + $0x290] sm:$0xf] %v507_v36 }
  0x7e   : > { %510 = vst [vmem:[%s3804_s27 + $0x294] sm:$0xf] %v509_v37  ;;  %512 = vst [vmem:[%s3804_s27 + $0x298] sm:$0xf] %v511_v38  ;;  %v513_v39 = vld [vmem:[%s3797_s26 + $0x538] sm:$0xf] }
  0x7f   : > { %v515_v40 = vld [vmem:[%s3797_s26 + $0x540] sm:$0xf]  ;;  %v517_v41 = vld [vmem:[%s3797_s26 + $0x548] sm:$0xf]  ;;  %514 = vst [vmem:[%s3804_s27 + $0x29c] sm:$0xf] %v513_v39 }
  0x80   : > { %516 = vst [vmem:[%s3804_s27 + $0x2a0] sm:$0xf] %v515_v40  ;;  %518 = vst [vmem:[%s3804_s27 + $0x2a4] sm:$0xf] %v517_v41  ;;  %v519_v42 = vld [vmem:[%s3797_s26 + $0x550] sm:$0xf] }
  0x81   : > { %v521_v43 = vld [vmem:[%s3797_s26 + $0x558] sm:$0xf]  ;;  %v523_v44 = vld [vmem:[%s3797_s26 + $0x560] sm:$0xf]  ;;  %520 = vst [vmem:[%s3804_s27 + $0x2a8] sm:$0xf] %v519_v42 }
  0x82   : > { %522 = vst [vmem:[%s3804_s27 + $0x2ac] sm:$0xf] %v521_v43  ;;  %524 = vst [vmem:[%s3804_s27 + $0x2b0] sm:$0xf] %v523_v44  ;;  %v525_v45 = vld [vmem:[%s3797_s26 + $0x568] sm:$0xf] }
  0x83   : > { %v527_v46 = vld [vmem:[%s3797_s26 + $0x570] sm:$0xf]  ;;  %v529_v47 = vld [vmem:[%s3797_s26 + $0x578] sm:$0xf]  ;;  %526 = vst [vmem:[%s3804_s27 + $0x2b4] sm:$0xf] %v525_v45 }
  0x84   : > { %528 = vst [vmem:[%s3804_s27 + $0x2b8] sm:$0xf] %v527_v46  ;;  %530 = vst [vmem:[%s3804_s27 + $0x2bc] sm:$0xf] %v529_v47  ;;  %v531_v48 = vld [vmem:[%s3797_s26 + $0x580] sm:$0xf] }
  0x85   : > { %v533_v49 = vld [vmem:[%s3797_s26 + $0x588] sm:$0xf]  ;;  %v535_v50 = vld [vmem:[%s3797_s26 + $0x590] sm:$0xf]  ;;  %532 = vst [vmem:[%s3804_s27 + $0x2c0] sm:$0xf] %v531_v48 }
  0x86   : > { %534 = vst [vmem:[%s3804_s27 + $0x2c4] sm:$0xf] %v533_v49  ;;  %536 = vst [vmem:[%s3804_s27 + $0x2c8] sm:$0xf] %v535_v50  ;;  %v537_v51 = vld [vmem:[%s3797_s26 + $0x598] sm:$0xf] }
  0x87   : > { %v539_v52 = vld [vmem:[%s3797_s26 + $0x5a0] sm:$0xf]  ;;  %v541_v53 = vld [vmem:[%s3797_s26 + $0x5a8] sm:$0xf]  ;;  %538 = vst [vmem:[%s3804_s27 + $0x2cc] sm:$0xf] %v537_v51 }
  0x88   : > { %540 = vst [vmem:[%s3804_s27 + $0x2d0] sm:$0xf] %v539_v52  ;;  %542 = vst [vmem:[%s3804_s27 + $0x2d4] sm:$0xf] %v541_v53  ;;  %v543_v54 = vld [vmem:[%s3797_s26 + $0x5b0] sm:$0xf] }
  0x89   : > { %v545_v55 = vld [vmem:[%s3797_s26 + $0x5b8] sm:$0xf]  ;;  %v547_v56 = vld [vmem:[%s3797_s26 + $0x5c0] sm:$0xf]  ;;  %544 = vst [vmem:[%s3804_s27 + $0x2d8] sm:$0xf] %v543_v54 }
  0x8a   : > { %546 = vst [vmem:[%s3804_s27 + $0x2dc] sm:$0xf] %v545_v55  ;;  %548 = vst [vmem:[%s3804_s27 + $0x2e0] sm:$0xf] %v547_v56  ;;  %v549_v57 = vld [vmem:[%s3797_s26 + $0x5c8] sm:$0xf] }
  0x8b   : > { %v551_v58 = vld [vmem:[%s3797_s26 + $0x5d0] sm:$0xf]  ;;  %v553_v59 = vld [vmem:[%s3797_s26 + $0x5d8] sm:$0xf]  ;;  %550 = vst [vmem:[%s3804_s27 + $0x2e4] sm:$0xf] %v549_v57 }
  0x8c   : > { %552 = vst [vmem:[%s3804_s27 + $0x2e8] sm:$0xf] %v551_v58  ;;  %554 = vst [vmem:[%s3804_s27 + $0x2ec] sm:$0xf] %v553_v59  ;;  %v555_v60 = vld [vmem:[%s3797_s26 + $0x5e0] sm:$0xf] }
  0x8d   : > { %v557_v61 = vld [vmem:[%s3797_s26 + $0x5e8] sm:$0xf]  ;;  %v559_v62 = vld [vmem:[%s3797_s26 + $0x5f0] sm:$0xf]  ;;  %556 = vst [vmem:[%s3804_s27 + $0x2f0] sm:$0xf] %v555_v60 }
  0x8e   : > { %558 = vst [vmem:[%s3804_s27 + $0x2f4] sm:$0xf] %v557_v61  ;;  %560 = vst [vmem:[%s3804_s27 + $0x2f8] sm:$0xf] %v559_v62  ;;  %v561_v63 = vld [vmem:[%s3797_s26 + $0x5f8] sm:$0xf] }
  0x8f   : > { %v563_v0 = vld [vmem:[%s3797_s26 + $0x600] sm:$0xf]  ;;  %v565_v1 = vld [vmem:[%s3797_s26 + $0x608] sm:$0xf]  ;;  %562 = vst [vmem:[%s3804_s27 + $0x2fc] sm:$0xf] %v561_v63 }
  0x90   : > { %564 = vst [vmem:[%s3804_s27 + $0x300] sm:$0xf] %v563_v0  ;;  %566 = vst [vmem:[%s3804_s27 + $0x304] sm:$0xf] %v565_v1  ;;  %v567_v2 = vld [vmem:[%s3797_s26 + $0x610] sm:$0xf] }
  0x91   : > { %v569_v3 = vld [vmem:[%s3797_s26 + $0x618] sm:$0xf]  ;;  %v571_v4 = vld [vmem:[%s3797_s26 + $0x620] sm:$0xf]  ;;  %568 = vst [vmem:[%s3804_s27 + $0x308] sm:$0xf] %v567_v2 }
  0x92   : > { %570 = vst [vmem:[%s3804_s27 + $0x30c] sm:$0xf] %v569_v3  ;;  %572 = vst [vmem:[%s3804_s27 + $0x310] sm:$0xf] %v571_v4  ;;  %v573_v5 = vld [vmem:[%s3797_s26 + $0x628] sm:$0xf] }
  0x93   : > { %v575_v6 = vld [vmem:[%s3797_s26 + $0x630] sm:$0xf]  ;;  %v577_v7 = vld [vmem:[%s3797_s26 + $0x638] sm:$0xf]  ;;  %574 = vst [vmem:[%s3804_s27 + $0x314] sm:$0xf] %v573_v5 }
  0x94   : > { %576 = vst [vmem:[%s3804_s27 + $0x318] sm:$0xf] %v575_v6  ;;  %578 = vst [vmem:[%s3804_s27 + $0x31c] sm:$0xf] %v577_v7  ;;  %v579_v8 = vld [vmem:[%s3797_s26 + $0x640] sm:$0xf] }
  0x95   : > { %v581_v9 = vld [vmem:[%s3797_s26 + $0x648] sm:$0xf]  ;;  %v583_v10 = vld [vmem:[%s3797_s26 + $0x650] sm:$0xf]  ;;  %580 = vst [vmem:[%s3804_s27 + $0x320] sm:$0xf] %v579_v8 }
  0x96   : > { %582 = vst [vmem:[%s3804_s27 + $0x324] sm:$0xf] %v581_v9  ;;  %584 = vst [vmem:[%s3804_s27 + $0x328] sm:$0xf] %v583_v10  ;;  %v585_v11 = vld [vmem:[%s3797_s26 + $0x658] sm:$0xf] }
  0x97   : > { %v587_v12 = vld [vmem:[%s3797_s26 + $0x660] sm:$0xf]  ;;  %v589_v13 = vld [vmem:[%s3797_s26 + $0x668] sm:$0xf]  ;;  %586 = vst [vmem:[%s3804_s27 + $0x32c] sm:$0xf] %v585_v11 }
  0x98   : > { %588 = vst [vmem:[%s3804_s27 + $0x330] sm:$0xf] %v587_v12  ;;  %590 = vst [vmem:[%s3804_s27 + $0x334] sm:$0xf] %v589_v13  ;;  %v591_v14 = vld [vmem:[%s3797_s26 + $0x670] sm:$0xf] }
  0x99   : > { %v593_v15 = vld [vmem:[%s3797_s26 + $0x678] sm:$0xf]  ;;  %v595_v16 = vld [vmem:[%s3797_s26 + $0x680] sm:$0xf]  ;;  %592 = vst [vmem:[%s3804_s27 + $0x338] sm:$0xf] %v591_v14 }
  0x9a   : > { %594 = vst [vmem:[%s3804_s27 + $0x33c] sm:$0xf] %v593_v15  ;;  %596 = vst [vmem:[%s3804_s27 + $0x340] sm:$0xf] %v595_v16  ;;  %v597_v17 = vld [vmem:[%s3797_s26 + $0x688] sm:$0xf] }
  0x9b   : > { %v599_v18 = vld [vmem:[%s3797_s26 + $0x690] sm:$0xf]  ;;  %v601_v19 = vld [vmem:[%s3797_s26 + $0x698] sm:$0xf]  ;;  %598 = vst [vmem:[%s3804_s27 + $0x344] sm:$0xf] %v597_v17 }
  0x9c   : > { %600 = vst [vmem:[%s3804_s27 + $0x348] sm:$0xf] %v599_v18  ;;  %602 = vst [vmem:[%s3804_s27 + $0x34c] sm:$0xf] %v601_v19  ;;  %v603_v20 = vld [vmem:[%s3797_s26 + $0x6a0] sm:$0xf] }
  0x9d   : > { %v605_v21 = vld [vmem:[%s3797_s26 + $0x6a8] sm:$0xf]  ;;  %v607_v22 = vld [vmem:[%s3797_s26 + $0x6b0] sm:$0xf]  ;;  %604 = vst [vmem:[%s3804_s27 + $0x350] sm:$0xf] %v603_v20 }
  0x9e   : > { %606 = vst [vmem:[%s3804_s27 + $0x354] sm:$0xf] %v605_v21  ;;  %608 = vst [vmem:[%s3804_s27 + $0x358] sm:$0xf] %v607_v22  ;;  %v609_v23 = vld [vmem:[%s3797_s26 + $0x6b8] sm:$0xf] }
  0x9f   : > { %v611_v24 = vld [vmem:[%s3797_s26 + $0x6c0] sm:$0xf]  ;;  %v613_v25 = vld [vmem:[%s3797_s26 + $0x6c8] sm:$0xf]  ;;  %610 = vst [vmem:[%s3804_s27 + $0x35c] sm:$0xf] %v609_v23 }
  0xa0   : > { %612 = vst [vmem:[%s3804_s27 + $0x360] sm:$0xf] %v611_v24  ;;  %614 = vst [vmem:[%s3804_s27 + $0x364] sm:$0xf] %v613_v25  ;;  %v615_v26 = vld [vmem:[%s3797_s26 + $0x6d0] sm:$0xf] }
  0xa1   : > { %v617_v27 = vld [vmem:[%s3797_s26 + $0x6d8] sm:$0xf]  ;;  %v619_v28 = vld [vmem:[%s3797_s26 + $0x6e0] sm:$0xf]  ;;  %616 = vst [vmem:[%s3804_s27 + $0x368] sm:$0xf] %v615_v26 }
  0xa2   : > { %618 = vst [vmem:[%s3804_s27 + $0x36c] sm:$0xf] %v617_v27  ;;  %620 = vst [vmem:[%s3804_s27 + $0x370] sm:$0xf] %v619_v28  ;;  %v621_v29 = vld [vmem:[%s3797_s26 + $0x6e8] sm:$0xf] }
  0xa3   : > { %v623_v30 = vld [vmem:[%s3797_s26 + $0x6f0] sm:$0xf]  ;;  %v625_v31 = vld [vmem:[%s3797_s26 + $0x6f8] sm:$0xf]  ;;  %622 = vst [vmem:[%s3804_s27 + $0x374] sm:$0xf] %v621_v29 }
  0xa4   : > { %624 = vst [vmem:[%s3804_s27 + $0x378] sm:$0xf] %v623_v30  ;;  %626 = vst [vmem:[%s3804_s27 + $0x37c] sm:$0xf] %v625_v31  ;;  %v627_v32 = vld [vmem:[%s3797_s26 + $0x700] sm:$0xf] }
  0xa5   : > { %v629_v33 = vld [vmem:[%s3797_s26 + $0x708] sm:$0xf]  ;;  %v631_v34 = vld [vmem:[%s3797_s26 + $0x710] sm:$0xf]  ;;  %628 = vst [vmem:[%s3804_s27 + $0x380] sm:$0xf] %v627_v32 }
  0xa6   : > { %630 = vst [vmem:[%s3804_s27 + $0x384] sm:$0xf] %v629_v33  ;;  %632 = vst [vmem:[%s3804_s27 + $0x388] sm:$0xf] %v631_v34  ;;  %v633_v35 = vld [vmem:[%s3797_s26 + $0x718] sm:$0xf] }
  0xa7   : > { %v635_v36 = vld [vmem:[%s3797_s26 + $0x720] sm:$0xf]  ;;  %v637_v37 = vld [vmem:[%s3797_s26 + $0x728] sm:$0xf]  ;;  %634 = vst [vmem:[%s3804_s27 + $0x38c] sm:$0xf] %v633_v35 }
  0xa8   : > { %636 = vst [vmem:[%s3804_s27 + $0x390] sm:$0xf] %v635_v36  ;;  %638 = vst [vmem:[%s3804_s27 + $0x394] sm:$0xf] %v637_v37  ;;  %v639_v38 = vld [vmem:[%s3797_s26 + $0x730] sm:$0xf] }
  0xa9   : > { %v641_v39 = vld [vmem:[%s3797_s26 + $0x738] sm:$0xf]  ;;  %v643_v40 = vld [vmem:[%s3797_s26 + $0x740] sm:$0xf]  ;;  %640 = vst [vmem:[%s3804_s27 + $0x398] sm:$0xf] %v639_v38 }
  0xaa   : > { %642 = vst [vmem:[%s3804_s27 + $0x39c] sm:$0xf] %v641_v39  ;;  %644 = vst [vmem:[%s3804_s27 + $0x3a0] sm:$0xf] %v643_v40  ;;  %v645_v41 = vld [vmem:[%s3797_s26 + $0x748] sm:$0xf] }
  0xab   : > { %v647_v42 = vld [vmem:[%s3797_s26 + $0x750] sm:$0xf]  ;;  %v649_v43 = vld [vmem:[%s3797_s26 + $0x758] sm:$0xf]  ;;  %646 = vst [vmem:[%s3804_s27 + $0x3a4] sm:$0xf] %v645_v41 }
  0xac   : > { %648 = vst [vmem:[%s3804_s27 + $0x3a8] sm:$0xf] %v647_v42  ;;  %650 = vst [vmem:[%s3804_s27 + $0x3ac] sm:$0xf] %v649_v43  ;;  %v651_v44 = vld [vmem:[%s3797_s26 + $0x760] sm:$0xf] }
  0xad   : > { %v653_v45 = vld [vmem:[%s3797_s26 + $0x768] sm:$0xf]  ;;  %v655_v46 = vld [vmem:[%s3797_s26 + $0x770] sm:$0xf]  ;;  %652 = vst [vmem:[%s3804_s27 + $0x3b0] sm:$0xf] %v651_v44 }
  0xae   : > { %654 = vst [vmem:[%s3804_s27 + $0x3b4] sm:$0xf] %v653_v45  ;;  %656 = vst [vmem:[%s3804_s27 + $0x3b8] sm:$0xf] %v655_v46  ;;  %v657_v47 = vld [vmem:[%s3797_s26 + $0x778] sm:$0xf] }
  0xaf   : > { %v659_v48 = vld [vmem:[%s3797_s26 + $0x780] sm:$0xf]  ;;  %v661_v49 = vld [vmem:[%s3797_s26 + $0x788] sm:$0xf]  ;;  %658 = vst [vmem:[%s3804_s27 + $0x3bc] sm:$0xf] %v657_v47 }
  0xb0   : > { %660 = vst [vmem:[%s3804_s27 + $0x3c0] sm:$0xf] %v659_v48  ;;  %662 = vst [vmem:[%s3804_s27 + $0x3c4] sm:$0xf] %v661_v49  ;;  %v663_v50 = vld [vmem:[%s3797_s26 + $0x790] sm:$0xf] }
  0xb1   : > { %v665_v51 = vld [vmem:[%s3797_s26 + $0x798] sm:$0xf]  ;;  %v667_v52 = vld [vmem:[%s3797_s26 + $0x7a0] sm:$0xf]  ;;  %664 = vst [vmem:[%s3804_s27 + $0x3c8] sm:$0xf] %v663_v50 }
  0xb2   : > { %666 = vst [vmem:[%s3804_s27 + $0x3cc] sm:$0xf] %v665_v51  ;;  %668 = vst [vmem:[%s3804_s27 + $0x3d0] sm:$0xf] %v667_v52  ;;  %v669_v53 = vld [vmem:[%s3797_s26 + $0x7a8] sm:$0xf] }
  0xb3   : > { %v671_v54 = vld [vmem:[%s3797_s26 + $0x7b0] sm:$0xf]  ;;  %v673_v55 = vld [vmem:[%s3797_s26 + $0x7b8] sm:$0xf]  ;;  %670 = vst [vmem:[%s3804_s27 + $0x3d4] sm:$0xf] %v669_v53 }
  0xb4   : > { %672 = vst [vmem:[%s3804_s27 + $0x3d8] sm:$0xf] %v671_v54  ;;  %674 = vst [vmem:[%s3804_s27 + $0x3dc] sm:$0xf] %v673_v55  ;;  %v675_v56 = vld [vmem:[%s3797_s26 + $0x7c0] sm:$0xf] }
  0xb5   : > { %v677_v57 = vld [vmem:[%s3797_s26 + $0x7c8] sm:$0xf]  ;;  %v679_v58 = vld [vmem:[%s3797_s26 + $0x7d0] sm:$0xf]  ;;  %676 = vst [vmem:[%s3804_s27 + $0x3e0] sm:$0xf] %v675_v56 }
  0xb6   : > { %678 = vst [vmem:[%s3804_s27 + $0x3e4] sm:$0xf] %v677_v57  ;;  %680 = vst [vmem:[%s3804_s27 + $0x3e8] sm:$0xf] %v679_v58  ;;  %v681_v59 = vld [vmem:[%s3797_s26 + $0x7d8] sm:$0xf] }
  0xb7   : > { %v683_v60 = vld [vmem:[%s3797_s26 + $0x7e0] sm:$0xf]  ;;  %v685_v61 = vld [vmem:[%s3797_s26 + $0x7e8] sm:$0xf]  ;;  %682 = vst [vmem:[%s3804_s27 + $0x3ec] sm:$0xf] %v681_v59 }
  0xb8   : > { %684 = vst [vmem:[%s3804_s27 + $0x3f0] sm:$0xf] %v683_v60  ;;  %686 = vst [vmem:[%s3804_s27 + $0x3f4] sm:$0xf] %v685_v61  ;;  %v687_v62 = vld [vmem:[%s3797_s26 + $0x7f0] sm:$0xf] }
  0xb9   : > { %v689_v63 = vld [vmem:[%s3797_s26 + $0x7f8] sm:$0xf]  ;;  %v691_v0 = vld [vmem:[%s3797_s26 + $0x800] sm:$0xf]  ;;  %688 = vst [vmem:[%s3804_s27 + $0x3f8] sm:$0xf] %v687_v62 }
  0xba   : > { %690 = vst [vmem:[%s3804_s27 + $0x3fc] sm:$0xf] %v689_v63  ;;  %692 = vst [vmem:[%s3804_s27 + $0x400] sm:$0xf] %v691_v0  ;;  %v693_v1 = vld [vmem:[%s3797_s26 + $0x808] sm:$0xf] }
  0xbb   : > { %v695_v2 = vld [vmem:[%s3797_s26 + $0x810] sm:$0xf]  ;;  %v697_v3 = vld [vmem:[%s3797_s26 + $0x818] sm:$0xf]  ;;  %694 = vst [vmem:[%s3804_s27 + $0x404] sm:$0xf] %v693_v1 }
  0xbc   : > { %696 = vst [vmem:[%s3804_s27 + $0x408] sm:$0xf] %v695_v2  ;;  %698 = vst [vmem:[%s3804_s27 + $0x40c] sm:$0xf] %v697_v3  ;;  %v699_v4 = vld [vmem:[%s3797_s26 + $0x820] sm:$0xf] }
  0xbd   : > { %v701_v5 = vld [vmem:[%s3797_s26 + $0x828] sm:$0xf]  ;;  %v703_v6 = vld [vmem:[%s3797_s26 + $0x830] sm:$0xf]  ;;  %700 = vst [vmem:[%s3804_s27 + $0x410] sm:$0xf] %v699_v4 }
  0xbe   : > { %702 = vst [vmem:[%s3804_s27 + $0x414] sm:$0xf] %v701_v5  ;;  %704 = vst [vmem:[%s3804_s27 + $0x418] sm:$0xf] %v703_v6  ;;  %v705_v7 = vld [vmem:[%s3797_s26 + $0x838] sm:$0xf] }
  0xbf   : > { %v707_v8 = vld [vmem:[%s3797_s26 + $0x840] sm:$0xf]  ;;  %v709_v9 = vld [vmem:[%s3797_s26 + $0x848] sm:$0xf]  ;;  %706 = vst [vmem:[%s3804_s27 + $0x41c] sm:$0xf] %v705_v7 }
  0xc0   : > { %708 = vst [vmem:[%s3804_s27 + $0x420] sm:$0xf] %v707_v8  ;;  %710 = vst [vmem:[%s3804_s27 + $0x424] sm:$0xf] %v709_v9  ;;  %v711_v10 = vld [vmem:[%s3797_s26 + $0x850] sm:$0xf] }
  0xc1   : > { %v713_v11 = vld [vmem:[%s3797_s26 + $0x858] sm:$0xf]  ;;  %v715_v12 = vld [vmem:[%s3797_s26 + $0x860] sm:$0xf]  ;;  %712 = vst [vmem:[%s3804_s27 + $0x428] sm:$0xf] %v711_v10 }
  0xc2   : > { %714 = vst [vmem:[%s3804_s27 + $0x42c] sm:$0xf] %v713_v11  ;;  %716 = vst [vmem:[%s3804_s27 + $0x430] sm:$0xf] %v715_v12  ;;  %v717_v13 = vld [vmem:[%s3797_s26 + $0x868] sm:$0xf] }
  0xc3   : > { %v719_v14 = vld [vmem:[%s3797_s26 + $0x870] sm:$0xf]  ;;  %v721_v15 = vld [vmem:[%s3797_s26 + $0x878] sm:$0xf]  ;;  %718 = vst [vmem:[%s3804_s27 + $0x434] sm:$0xf] %v717_v13 }
  0xc4   : > { %720 = vst [vmem:[%s3804_s27 + $0x438] sm:$0xf] %v719_v14  ;;  %722 = vst [vmem:[%s3804_s27 + $0x43c] sm:$0xf] %v721_v15  ;;  %v723_v16 = vld [vmem:[%s3797_s26 + $0x880] sm:$0xf] }
  0xc5   : > { %v725_v17 = vld [vmem:[%s3797_s26 + $0x888] sm:$0xf]  ;;  %v727_v18 = vld [vmem:[%s3797_s26 + $0x890] sm:$0xf]  ;;  %724 = vst [vmem:[%s3804_s27 + $0x440] sm:$0xf] %v723_v16 }
  0xc6   : > { %726 = vst [vmem:[%s3804_s27 + $0x444] sm:$0xf] %v725_v17  ;;  %728 = vst [vmem:[%s3804_s27 + $0x448] sm:$0xf] %v727_v18  ;;  %v729_v19 = vld [vmem:[%s3797_s26 + $0x898] sm:$0xf] }
  0xc7   : > { %v731_v20 = vld [vmem:[%s3797_s26 + $0x8a0] sm:$0xf]  ;;  %v733_v21 = vld [vmem:[%s3797_s26 + $0x8a8] sm:$0xf]  ;;  %730 = vst [vmem:[%s3804_s27 + $0x44c] sm:$0xf] %v729_v19 }
  0xc8   : > { %732 = vst [vmem:[%s3804_s27 + $0x450] sm:$0xf] %v731_v20  ;;  %734 = vst [vmem:[%s3804_s27 + $0x454] sm:$0xf] %v733_v21  ;;  %v735_v22 = vld [vmem:[%s3797_s26 + $0x8b0] sm:$0xf] }
  0xc9   : > { %v737_v23 = vld [vmem:[%s3797_s26 + $0x8b8] sm:$0xf]  ;;  %v739_v24 = vld [vmem:[%s3797_s26 + $0x8c0] sm:$0xf]  ;;  %736 = vst [vmem:[%s3804_s27 + $0x458] sm:$0xf] %v735_v22 }
  0xca   : > { %738 = vst [vmem:[%s3804_s27 + $0x45c] sm:$0xf] %v737_v23  ;;  %740 = vst [vmem:[%s3804_s27 + $0x460] sm:$0xf] %v739_v24  ;;  %v741_v25 = vld [vmem:[%s3797_s26 + $0x8c8] sm:$0xf] }
  0xcb   : > { %v743_v26 = vld [vmem:[%s3797_s26 + $0x8d0] sm:$0xf]  ;;  %v745_v27 = vld [vmem:[%s3797_s26 + $0x8d8] sm:$0xf]  ;;  %742 = vst [vmem:[%s3804_s27 + $0x464] sm:$0xf] %v741_v25 }
  0xcc   : > { %744 = vst [vmem:[%s3804_s27 + $0x468] sm:$0xf] %v743_v26  ;;  %746 = vst [vmem:[%s3804_s27 + $0x46c] sm:$0xf] %v745_v27  ;;  %v747_v28 = vld [vmem:[%s3797_s26 + $0x8e0] sm:$0xf] }
  0xcd   : > { %v749_v29 = vld [vmem:[%s3797_s26 + $0x8e8] sm:$0xf]  ;;  %v751_v30 = vld [vmem:[%s3797_s26 + $0x8f0] sm:$0xf]  ;;  %748 = vst [vmem:[%s3804_s27 + $0x470] sm:$0xf] %v747_v28 }
  0xce   : > { %750 = vst [vmem:[%s3804_s27 + $0x474] sm:$0xf] %v749_v29  ;;  %752 = vst [vmem:[%s3804_s27 + $0x478] sm:$0xf] %v751_v30  ;;  %v753_v31 = vld [vmem:[%s3797_s26 + $0x8f8] sm:$0xf] }
  0xcf   : > { %754 = vst [vmem:[%s3804_s27 + $0x47c] sm:$0xf] %v753_v31 }
  0xd0 PF: > { %p3125_p6 = scmp.ge.s32.totalorder %s3732_s16, 1  ;;  %p1359_p7 = scmp.lt.s32.totalorder %s3732_s16, 3 }
  0xd2   : > { %p1360_p8 = pnand %p3125_p6, %p1359_p7 }
  0xd3   : > { %s1366_s28 = sand.u32 (!%p1360_p8), 1, %s3716_s12   ;;  %p1405_p9 = scmp.lt.s32.totalorder (!%p1360_p8), %s3724_s14, 1 }
  0xd4   : > { %1363 = sbr.rel (%p1360_p8) target bundleno = 582 (0x246), region = 69 }
  0xd5   : > { %s3491_s6 = smul.u32 (!%p1360_p8), 1152, %s1366_s28 }
  0xd7   : > { %s4394_s7 = scalar_lea.vmem (!%p1360_p8), [#allocation2], %s3491_s6 }
  0xd9   : > { %v4383_v32 = vld [vmem:[%s4622_s0] sm:$0xff]  ;;  %v4388_v33 = vld [vmem:[%s4622_s0 + $0x8] sm:$0xff]  ;;  %v3532_v36 = vld [vmem:[%s4394_s7 + $0x78] sm:$0xff]   ;;  %s4633_s14 = smov (!%p1405_p9, %s3724_s14), 1 }
  0xda   : > { %v3129_v34 = vcombine.high %v4383_v32, %v4383_v32  ;;  %v3131_v35 = vcombine.high %v4388_v33, %v4388_v33  ;;  %v3533_v37 = vld [vmem:[%s4394_s7 + $0x38] sm:$0xff]   ;;  %3292 = vmatprep.subr.bf16.mxu0 %v3532_v36  ;;  %v3536_v40 = vld [vmem:[%s4394_s7 + $0x70] sm:$0xff]   ;;  %v3540_v44 = vld [vmem:[%s4394_s7 + $0x68] sm:$0xff]   ;;  %v3128_v5 = vcombine.low %v4383_v32, %v4383_v32  ;;  %v3130_v9 = vcombine.low %v4388_v33, %v4388_v33  ;;  %s1407_s30 = scalar_lea.vmem %s4624_s2, %s4633_s14  ;;  %s3126_s4 = sshll.u32 %s4633_s14, 2 }
  0xdb   : > { %v3534_v38 = vld [vmem:[%s4394_s7 + $0xf8] sm:$0xff]   ;;  %3293 = vmatpush3.bf16.msra.mxu0 %v3533_v37  ;;  %v3537_v41 = vld [vmem:[%s4394_s7 + $0x30] sm:$0xff]   ;;  %v3541_v45 = vld [vmem:[%s4394_s7 + $0x28] sm:$0xff]  }
  0xdc   : > { %2680 = vmatprep.mubr.bf16.mxu0 %v3129_v34  ;;  %2720 = vmatprep.mubr.bf16.mxu1 %v3131_v35  ;;  %v3535_v39 = vld [vmem:[%s4394_s7 + $0xb8] sm:$0xff]   ;;  %v3538_v42 = vld [vmem:[%s4394_s7 + $0xf0] sm:$0xff]   ;;  %v3542_v46 = vld [vmem:[%s4394_s7 + $0xe8] sm:$0xff]  }
  0xdd   : > { %3314 = vmatprep.subr.bf16.mxu1 %v3534_v38  ;;  %3294 = vmatprep.subr.bf16.mxu0 %v3536_v40  ;;  %v3539_v43 = vld [vmem:[%s4394_s7 + $0xb0] sm:$0xff]   ;;  %v3543_v47 = vld [vmem:[%s4394_s7 + $0xa8] sm:$0xff]   ;;  %v3544_v48 = vld [vmem:[%s4394_s7 + $0x60] sm:$0xff]  }
  0xde   : > { %3315 = vmatpush3.bf16.msra.mxu1 %v3535_v39  ;;  %v3545_v49 = vld [vmem:[%s4394_s7 + $0x20] sm:$0xff]   ;;  %v3548_v52 = vld [vmem:[%s4394_s7 + $0x58] sm:$0xff]   ;;  %v3552_v56 = vld [vmem:[%s4394_s7 + $0x50] sm:$0xff]  }
  0xdf   : > { %3295 = vmatpush3.bf16.msra.mxu0 %v3537_v41  ;;  %3316 = vmatprep.subr.bf16.mxu1 %v3538_v42  ;;  %v3546_v50 = vld [vmem:[%s4394_s7 + $0xe0] sm:$0xff]   ;;  %v3549_v53 = vld [vmem:[%s4394_s7 + $0x18] sm:$0xff]   ;;  %v3553_v57 = vld [vmem:[%s4394_s7 + $0x10] sm:$0xff]  }
  0xe0   : > { %3296 = vmatprep.subr.bf16.mxu0 %v3540_v44  ;;  %v3547_v51 = vld [vmem:[%s4394_s7 + $0xa0] sm:$0xff]   ;;  %v3550_v54 = vld [vmem:[%s4394_s7 + $0xd8] sm:$0xff]   ;;  %v3554_v58 = vld [vmem:[%s4394_s7 + $0xd0] sm:$0xff]  }
  0xe1   : > { %v3551_v55 = vld [vmem:[%s4394_s7 + $0x98] sm:$0xff]   ;;  %v3555_v59 = vld [vmem:[%s4394_s7 + $0x90] sm:$0xff]   ;;  %v3556_v60 = vld [vmem:[%s4394_s7 + $0x48] sm:$0xff]  }
  0xe2   : > { %3317 = vmatpush3.bf16.msra.mxu1 %v3539_v43  ;;  %v3557_v61 = vld [vmem:[%s4394_s7 + $0x8] sm:$0xff]   ;;  %v4426_v63 = vld [vmem:[%s4622_s0 + $0x10] sm:$0xff]  ;;  %v3560_v1 = vld [vmem:[%s4394_s7 + $0x40] sm:$0xff]  }
  0xe3   : > { %3297 = vmatpush3.bf16.msra.mxu0 %v3541_v45  ;;  %3318 = vmatprep.subr.bf16.mxu1 %v3542_v46  ;;  %v3558_v62 = vld [vmem:[%s4394_s7 + $0xc8] sm:$0xff]   ;;  %v4433_v2 = vld [vmem:[%s4622_s0 + $0x18] sm:$0xff]  ;;  %v3561_v3 = vld [vmem:[%s4394_s7] sm:$0xff]   ;;  %v3133_v7 = vcombine.high %v4426_v63, %v4426_v63  ;;  %v3132_v43 = vcombine.low %v4426_v63, %v4426_v63 }
  0xe4   : > { %3298 = vmatprep.subr.bf16.mxu0 %v3544_v48  ;;  %v3559_v0 = vld [vmem:[%s4394_s7 + $0x88] sm:$0xff]   ;;  %v3562_v4 = vld [vmem:[%s4394_s7 + $0xc0] sm:$0xff]   ;;  %v3566_v8 = vld [vmem:[%s4394_s7 + $0x178] sm:$0xff]   ;;  %v3135_v11 = vcombine.high %v4433_v2, %v4433_v2 }
  0xe5   : > { %v3565_v6 = vld [vmem:[%s4394_s7 + $0x80] sm:$0xff]   ;;  %v3569_v10 = vld [vmem:[%s4394_s7 + $0x138] sm:$0xff]   ;;  %v3572_v14 = vld [vmem:[%s4394_s7 + $0x170] sm:$0xff]  }
  0xe6   : > { %3319 = vmatpush3.bf16.msra.mxu1 %v3543_v47  ;;  %v3570_v12 = vld [vmem:[%s4394_s7 + $0x1f8] sm:$0xff]   ;;  %v3573_v15 = vld [vmem:[%s4394_s7 + $0x130] sm:$0xff]   ;;  %v3576_v18 = vld [vmem:[%s4394_s7 + $0x168] sm:$0xff]   ;;  %v3134_v47 = vcombine.low %v4433_v2, %v4433_v2 }
  0xe7   : > { %3299 = vmatpush3.bf16.msra.mxu0 %v3545_v49  ;;  %3320 = vmatprep.subr.bf16.mxu1 %v3546_v50  ;;  %v3571_v13 = vld [vmem:[%s4394_s7 + $0x1b8] sm:$0xff]   ;;  %v3574_v16 = vld [vmem:[%s4394_s7 + $0x1f0] sm:$0xff]   ;;  %v3577_v19 = vld [vmem:[%s4394_s7 + $0x128] sm:$0xff]  }
  0xe8   : > { %3300 = vmatprep.subr.bf16.mxu0 %v3548_v52  ;;  %v3575_v17 = vld [vmem:[%s4394_s7 + $0x1b0] sm:$0xff]   ;;  %v3578_v20 = vld [vmem:[%s4394_s7 + $0x1e8] sm:$0xff]   ;;  %v3580_v22 = vld [vmem:[%s4394_s7 + $0x160] sm:$0xff]  }
  0xe9   : > { %v3579_v21 = vld [vmem:[%s4394_s7 + $0x1a8] sm:$0xff]   ;;  %v3581_v23 = vld [vmem:[%s4394_s7 + $0x120] sm:$0xff]   ;;  %v3584_v26 = vld [vmem:[%s4394_s7 + $0x158] sm:$0xff]  }
  0xea   : > { %3321 = vmatpush3.bf16.msra.mxu1 %v3547_v51  ;;  %v3582_v24 = vld [vmem:[%s4394_s7 + $0x1e0] sm:$0xff]   ;;  %v3585_v27 = vld [vmem:[%s4394_s7 + $0x118] sm:$0xff]   ;;  %v3588_v30 = vld [vmem:[%s4394_s7 + $0x150] sm:$0xff]  }
  0xeb   : > { %3301 = vmatpush3.bf16.msra.mxu0 %v3549_v53  ;;  %3322 = vmatprep.subr.bf16.mxu1 %v3550_v54  ;;  %v3583_v25 = vld [vmem:[%s4394_s7 + $0x1a0] sm:$0xff]   ;;  %v3586_v28 = vld [vmem:[%s4394_s7 + $0x1d8] sm:$0xff]   ;;  %v3589_v31 = vld [vmem:[%s4394_s7 + $0x110] sm:$0xff]  }
  0xec   : > { %3302 = vmatprep.subr.bf16.mxu0 %v3552_v56  ;;  %v3587_v29 = vld [vmem:[%s4394_s7 + $0x198] sm:$0xff]   ;;  %v3590_v32 = vld [vmem:[%s4394_s7 + $0x1d0] sm:$0xff]   ;;  %v3592_v34 = vld [vmem:[%s4394_s7 + $0x148] sm:$0xff]  }
  0xed   : > { %v3591_v33 = vld [vmem:[%s4394_s7 + $0x190] sm:$0xff]   ;;  %v3593_v35 = vld [vmem:[%s4394_s7 + $0x108] sm:$0xff]   ;;  %v4476_v37 = vld [vmem:[%s4622_s0 + $0x20] sm:$0xff] }
  0xee   : > { %3323 = vmatpush3.bf16.msra.mxu1 %v3551_v55  ;;  %v3594_v36 = vld [vmem:[%s4394_s7 + $0x1c8] sm:$0xff]   ;;  %v3596_v39 = vld [vmem:[%s4394_s7 + $0x140] sm:$0xff]   ;;  %v3137_v45 = vcombine.high %v4476_v37, %v4476_v37  ;;  %v3602_v46 = vld [vmem:[%s4394_s7 + $0x278] sm:$0xff]  }
  0xef   : > { %3303 = vmatpush3.bf16.msra.mxu0 %v3553_v57  ;;  %3324 = vmatprep.subr.bf16.mxu1 %v3554_v58  ;;  %v3595_v38 = vld [vmem:[%s4394_s7 + $0x188] sm:$0xff]   ;;  %v3597_v41 = vld [vmem:[%s4394_s7 + $0x100] sm:$0xff]   ;;  %v3605_v48 = vld [vmem:[%s4394_s7 + $0x238] sm:$0xff]  }
  0xf0   : > { %3304 = vmatprep.subr.bf16.mxu0 %v3556_v60  ;;  %v4483_v40 = vld [vmem:[%s4622_s0 + $0x28] sm:$0xff]  ;;  %v3598_v42 = vld [vmem:[%s4394_s7 + $0x1c0] sm:$0xff]   ;;  %v3606_v50 = vld [vmem:[%s4394_s7 + $0x2f8] sm:$0xff]  }
  0xf1   : > { %v3601_v44 = vld [vmem:[%s4394_s7 + $0x180] sm:$0xff]   ;;  %v3139_v49 = vcombine.high %v4483_v40, %v4483_v40  ;;  %v3607_v51 = vld [vmem:[%s4394_s7 + $0x2b8] sm:$0xff]   ;;  %v3608_v52 = vld [vmem:[%s4394_s7 + $0x270] sm:$0xff]  }
  0xf2   : > { %3325 = vmatpush3.bf16.msra.mxu1 %v3555_v59  ;;  %v3609_v53 = vld [vmem:[%s4394_s7 + $0x230] sm:$0xff]   ;;  %v3612_v56 = vld [vmem:[%s4394_s7 + $0x268] sm:$0xff]   ;;  %v3616_v60 = vld [vmem:[%s4394_s7 + $0x260] sm:$0xff]  }
  0xf3   : > { %3305 = vmatpush3.bf16.msra.mxu0 %v3557_v61  ;;  %3326 = vmatprep.subr.bf16.mxu1 %v3558_v62  ;;  %v3610_v54 = vld [vmem:[%s4394_s7 + $0x2f0] sm:$0xff]   ;;  %v3613_v57 = vld [vmem:[%s4394_s7 + $0x228] sm:$0xff]   ;;  %v3617_v61 = vld [vmem:[%s4394_s7 + $0x220] sm:$0xff]  }
  0xf4   : > { %3306 = vmatprep.subr.bf16.mxu0 %v3560_v1  ;;  %v3611_v55 = vld [vmem:[%s4394_s7 + $0x2b0] sm:$0xff]   ;;  %v3614_v58 = vld [vmem:[%s4394_s7 + $0x2e8] sm:$0xff]   ;;  %v3618_v62 = vld [vmem:[%s4394_s7 + $0x2e0] sm:$0xff]  }
  0xf5   : > { %v3615_v59 = vld [vmem:[%s4394_s7 + $0x2a8] sm:$0xff]   ;;  %v3619_v63 = vld [vmem:[%s4394_s7 + $0x2a0] sm:$0xff]   ;;  %v3621_v1 = vld [vmem:[%s4394_s7 + $0x218] sm:$0xff]  }
  0xf6   : > { %3327 = vmatpush3.bf16.msra.mxu1 %v3559_v0  ;;  %v3620_v0 = vld [vmem:[%s4394_s7 + $0x258] sm:$0xff]  }
  0xf7   : > { %3307 = vmatpush3.bf16.msra.mxu0 %v3561_v3  ;;  %3328 = vmatprep.subr.bf16.mxu1 %v3562_v4  ;;  %v3622_v2 = vld [vmem:[%s4394_s7 + $0x2d8] sm:$0xff]   ;;  %v3624_v4 = vld [vmem:[%s4394_s7 + $0x250] sm:$0xff]  }
  0xf8   : > { %3336 = vmatprep.subr.bf16.mxu0 %v3566_v8  ;;  %v3623_v3 = vld [vmem:[%s4394_s7 + $0x298] sm:$0xff]   ;;  %v3628_v8 = vld [vmem:[%s4394_s7 + $0x248] sm:$0xff]  }
  0xfa   : > { %3329 = vmatpush3.bf16.msra.mxu1 %v3565_v6  ;;  %2681 = vmatmul.mubr.bf16.vlgmr.msra.gmra.mxu0 %v3128_v5  ;;  %v3625_v5 = vld [vmem:[%s4394_s7 + $0x210] sm:$0xff]  }
  0xfb   : > { %3337 = vmatpush3.bf16.msra.mxu0 %v3569_v10  ;;  %2760 = vmatprep.mubr.bf16.mxu0 %v3133_v7  ;;  %v3626_v6 = vld [vmem:[%s4394_s7 + $0x2d0] sm:$0xff]   ;;  %v3630_v10 = vld [vmem:[%s4394_s7 + $0x2c8] sm:$0xff]  }
  0xfc   : > { %3358 = vmatprep.subr.bf16.mxu1 %v3570_v12  ;;  %3338 = vmatprep.subr.bf16.mxu0 %v3572_v14  ;;  %v3627_v7 = vld [vmem:[%s4394_s7 + $0x290] sm:$0xff]   ;;  %v3631_v12 = vld [vmem:[%s4394_s7 + $0x288] sm:$0xff]   ;;  %v3633_v14 = vld [vmem:[%s4394_s7 + $0x200] sm:$0xff]  }
  0xfd   : > { %2721 = vmatmul.mubr.bf16.vlgmr.msra.gmra.mxu1 %v3130_v9  ;;  %v3629_v9 = vld [vmem:[%s4394_s7 + $0x208] sm:$0xff]  }
  0xfe   : > { %3359 = vmatpush3.bf16.msra.mxu1 %v3571_v13  ;;  %2800 = vmatprep.mubr.bf16.mxu1 %v3135_v11  ;;  %v4526_v11 = vld [vmem:[%s4622_s0 + $0x30] sm:$0xff]  ;;  %v3632_v13 = vld [vmem:[%s4394_s7 + $0x240] sm:$0xff]  }
  0xff   : > { %3339 = vmatpush3.bf16.msra.mxu0 %v3573_v15  ;;  %3360 = vmatprep.subr.bf16.mxu1 %v3574_v16  ;;  %v3634_v15 = vld [vmem:[%s4394_s7 + $0x2c0] sm:$0xff]   ;;  %v3136_v16 = vcombine.low %v4476_v37, %v4476_v37  ;;  %v3657_v37 = vld [vmem:[%s4394_s7 + $0x318] sm:$0xff]  }
 0x100   : > { %3340 = vmatprep.subr.bf16.mxu0 %v3576_v18  ;;  %v3141_v18 = vcombine.high %v4526_v11, %v4526_v11 }
 0x102   : > { %3361 = vmatpush3.bf16.msra.mxu1 %v3575_v17  ;;  %v3637_v17 = vld [vmem:[%s4394_s7 + $0x280] sm:$0xff]  }
 0x103   : > { %3341 = vmatpush3.bf16.msra.mxu0 %v3577_v19  ;;  %3362 = vmatprep.subr.bf16.mxu1 %v3578_v20  ;;  %v3638_v19 = vld [vmem:[%s4394_s7 + $0x378] sm:$0xff]   ;;  %v3138_v20 = vcombine.low %v4483_v40, %v4483_v40  ;;  %v3660_v40 = vld [vmem:[%s4394_s7 + $0x350] sm:$0xff]  }
 0x104   : > { %3342 = vmatprep.subr.bf16.mxu0 %v3580_v22  ;;  %v3642_v22 = vld [vmem:[%s4394_s7 + $0x3f8] sm:$0xff]  }
 0x106   : > { %3363 = vmatpush3.bf16.msra.mxu1 %v3579_v21  ;;  %v3641_v21 = vld [vmem:[%s4394_s7 + $0x338] sm:$0xff]  }
 0x107   : > { %3343 = vmatpush3.bf16.msra.mxu0 %v3581_v23  ;;  %3364 = vmatprep.subr.bf16.mxu1 %v3582_v24  ;;  %v3643_v23 = vld [vmem:[%s4394_s7 + $0x3b8] sm:$0xff]   ;;  %v3644_v24 = vld [vmem:[%s4394_s7 + $0x370] sm:$0xff]  }
 0x108   : > { %3344 = vmatprep.subr.bf16.mxu0 %v3584_v26  ;;  %v3646_v26 = vld [vmem:[%s4394_s7 + $0x3f0] sm:$0xff]  }
 0x10a   : > { %3365 = vmatpush3.bf16.msra.mxu1 %v3583_v25  ;;  %v3645_v25 = vld [vmem:[%s4394_s7 + $0x330] sm:$0xff]  }
 0x10b   : > { %3345 = vmatpush3.bf16.msra.mxu0 %v3585_v27  ;;  %3366 = vmatprep.subr.bf16.mxu1 %v3586_v28  ;;  %v3647_v27 = vld [vmem:[%s4394_s7 + $0x3b0] sm:$0xff]   ;;  %v3648_v28 = vld [vmem:[%s4394_s7 + $0x368] sm:$0xff]  }
 0x10c   : > { %3346 = vmatprep.subr.bf16.mxu0 %v3588_v30  ;;  %v3650_v30 = vld [vmem:[%s4394_s7 + $0x3e8] sm:$0xff]  }
 0x10e   : > { %3367 = vmatpush3.bf16.msra.mxu1 %v3587_v29  ;;  %v3649_v29 = vld [vmem:[%s4394_s7 + $0x328] sm:$0xff]  }
 0x10f   : > { %3347 = vmatpush3.bf16.msra.mxu0 %v3589_v31  ;;  %3368 = vmatprep.subr.bf16.mxu1 %v3590_v32  ;;  %v3651_v31 = vld [vmem:[%s4394_s7 + $0x3a8] sm:$0xff]   ;;  %v3652_v32 = vld [vmem:[%s4394_s7 + $0x360] sm:$0xff]  }
 0x110   : > { %3348 = vmatprep.subr.bf16.mxu0 %v3592_v34  ;;  %v3654_v34 = vld [vmem:[%s4394_s7 + $0x3e0] sm:$0xff]  }
 0x112   : > { %3369 = vmatpush3.bf16.msra.mxu1 %v3591_v33  ;;  %v3653_v33 = vld [vmem:[%s4394_s7 + $0x320] sm:$0xff]  }
 0x113   : > { %3349 = vmatpush3.bf16.msra.mxu0 %v3593_v35  ;;  %3370 = vmatprep.subr.bf16.mxu1 %v3594_v36  ;;  %v3655_v35 = vld [vmem:[%s4394_s7 + $0x3a0] sm:$0xff]   ;;  %v3656_v36 = vld [vmem:[%s4394_s7 + $0x358] sm:$0xff]  }
 0x114   : > { %3350 = vmatprep.subr.bf16.mxu0 %v3596_v39  ;;  %v3659_v39 = vld [vmem:[%s4394_s7 + $0x398] sm:$0xff]  }
 0x116   : > { %3371 = vmatpush3.bf16.msra.mxu1 %v3595_v38  ;;  %v3658_v38 = vld [vmem:[%s4394_s7 + $0x3d8] sm:$0xff]  }
 0x117   : > { %3351 = vmatpush3.bf16.msra.mxu0 %v3597_v41  ;;  %3372 = vmatprep.subr.bf16.mxu1 %v3598_v42  ;;  %v3661_v41 = vld [vmem:[%s4394_s7 + $0x310] sm:$0xff]  }
 0x118   : > { %3380 = vmatprep.subr.bf16.mxu0 %v3602_v46  ;;  %v3662_v42 = vld [vmem:[%s4394_s7 + $0x3d0] sm:$0xff]   ;;  %v3666_v46 = vld [vmem:[%s4394_s7 + $0x3c8] sm:$0xff]  }
 0x11a   : > { %3373 = vmatpush3.bf16.msra.mxu1 %v3601_v44  ;;  %2761 = vmatmul.mubr.bf16.vlgmr.msra.gmra.mxu0 %v3132_v43  ;;  %v3663_v43 = vld [vmem:[%s4394_s7 + $0x390] sm:$0xff]   ;;  %v3664_v44 = vld [vmem:[%s4394_s7 + $0x348] sm:$0xff]  }
 0x11b   : > { %3381 = vmatpush3.bf16.msra.mxu0 %v3605_v48  ;;  %2840 = vmatprep.mubr.bf16.mxu0 %v3137_v45  ;;  %v3665_v45 = vld [vmem:[%s4394_s7 + $0x308] sm:$0xff]   ;;  %v3668_v48 = vld [vmem:[%s4394_s7 + $0x340] sm:$0xff]  }
 0x11c   : > { %3402 = vmatprep.subr.bf16.mxu1 %v3606_v50  ;;  %3382 = vmatprep.subr.bf16.mxu0 %v3608_v52  ;;  %v3670_v50 = vld [vmem:[%s4394_s7 + $0x3c0] sm:$0xff]  }
 0x11d   : > { %2801 = vmatmul.mubr.bf16.vlgmr.msra.gmra.mxu1 %v3134_v47  ;;  %v3667_v47 = vld [vmem:[%s4394_s7 + $0x388] sm:$0xff]   ;;  %v3673_v52 = vld [vmem:[%s4394_s7 + $0x380] sm:$0xff]  }
 0x11e   : > { %3403 = vmatpush3.bf16.msra.mxu1 %v3607_v51  ;;  %2880 = vmatprep.mubr.bf16.mxu1 %v3139_v49  ;;  %v3669_v49 = vld [vmem:[%s4394_s7 + $0x300] sm:$0xff]   ;;  %v3140_v51 = vcombine.low %v4526_v11, %v4526_v11 }
 0x11f   : > { %3383 = vmatpush3.bf16.msra.mxu0 %v3609_v53  ;;  %3404 = vmatprep.subr.bf16.mxu1 %v3610_v54  ;;  %v3674_v53 = vld [vmem:[%s4394_s7 + $0x478] sm:$0xff]  }
 0x120   : > { %3384 = vmatprep.subr.bf16.mxu0 %v3612_v56  ;;  %v1424_v54 = vld [vmem:[%s4622_s0 + $0x38] sm:$0xff] }
 0x121   : > { %v3143_v56 = vcombine.high %v1424_v54, %v1424_v54 }
 0x122   : > { %3405 = vmatpush3.bf16.msra.mxu1 %v3611_v55  ;;  %v3142_v55 = vcombine.low %v1424_v54, %v1424_v54 }
 0x123   : > { %3385 = vmatpush3.bf16.msra.mxu0 %v3613_v57  ;;  %3406 = vmatprep.subr.bf16.mxu1 %v3614_v58  ;;  %v3677_v57 = vld [vmem:[%s4394_s7 + $0x438] sm:$0xff]   ;;  %v3678_v58 = vld [vmem:[%s4394_s7 + $0x470] sm:$0xff]  }
 0x124   : > { %3386 = vmatprep.subr.bf16.mxu0 %v3616_v60  ;;  %v3680_v60 = vld [vmem:[%s4394_s7 + $0x468] sm:$0xff]  }
 0x126   : > { %3407 = vmatpush3.bf16.msra.mxu1 %v3615_v59  ;;  %v3679_v59 = vld [vmem:[%s4394_s7 + $0x430] sm:$0xff]  }
 0x127   : > { %3387 = vmatpush3.bf16.msra.mxu0 %v3617_v61  ;;  %3408 = vmatprep.subr.bf16.mxu1 %v3618_v62  ;;  %v3681_v61 = vld [vmem:[%s4394_s7 + $0x428] sm:$0xff]   ;;  %v3682_v62 = vld [vmem:[%s4394_s7 + $0x460] sm:$0xff]  }
 0x128   : > { %3388 = vmatprep.subr.bf16.mxu0 %v3620_v0  ;;  %v3684_v0 = vld [vmem:[%s4394_s7 + $0x458] sm:$0xff]  }
 0x12a   : > { %3409 = vmatpush3.bf16.msra.mxu1 %v3619_v63  ;;  %v3683_v63 = vld [vmem:[%s4394_s7 + $0x420] sm:$0xff]  }
 0x12b   : > { %3389 = vmatpush3.bf16.msra.mxu0 %v3621_v1  ;;  %3410 = vmatprep.subr.bf16.mxu1 %v3622_v2  ;;  %v3685_v1 = vld [vmem:[%s4394_s7 + $0x418] sm:$0xff]   ;;  %v1425_v2 = vld [vmem:[%s4622_s0 + $0x40] sm:$0xff] }
 0x12c   : > { %3390 = vmatprep.subr.bf16.mxu0 %v3624_v4  ;;  %v3145_v4 = vcombine.high %v1425_v2, %v1425_v2 }
 0x12e   : > { %3411 = vmatpush3.bf16.msra.mxu1 %v3623_v3  ;;  %v3686_v3 = vld [vmem:[%s4394_s7 + $0x450] sm:$0xff]  }
 0x12f   : > { %3391 = vmatpush3.bf16.msra.mxu0 %v3625_v5  ;;  %3412 = vmatprep.subr.bf16.mxu1 %v3626_v6  ;;  %v3687_v5 = vld [vmem:[%s4394_s7 + $0x410] sm:$0xff]   ;;  %v3688_v6 = vld [vmem:[%s4394_s7 + $0x448] sm:$0xff]  }
 0x130   : > { %3392 = vmatprep.subr.bf16.mxu0 %v3628_v8  ;;  %v3690_v8 = vld [vmem:[%s4394_s7 + $0x440] sm:$0xff]  }
 0x132   : > { %3413 = vmatpush3.bf16.msra.mxu1 %v3627_v7  ;;  %v3689_v7 = vld [vmem:[%s4394_s7 + $0x408] sm:$0xff]  }
 0x133   : > { %3393 = vmatpush3.bf16.msra.mxu0 %v3629_v9  ;;  %3414 = vmatprep.subr.bf16.mxu1 %v3630_v10  ;;  %v3691_v9 = vld [vmem:[%s4394_s7 + $0x400] sm:$0xff]   ;;  %v3144_v10 = vcombine.low %v1425_v2, %v1425_v2  ;;  %s1415_s7 = scalar_lea.vmem %s4625_s3, %s3126_s4 }
 0x134   : > { %3394 = vmatprep.subr.bf16.mxu0 %v3632_v13 }
 0x136   : > { %3415 = vmatpush3.bf16.msra.mxu1 %v3631_v12  ;;  %v3127_v12 = vld [vmem:[%s1407_s30] ss:$0 sm:$0xff] }
 0x137   : > { %3395 = vmatpush3.bf16.msra.mxu0 %v3633_v14  ;;  %3416 = vmatprep.subr.bf16.mxu1 %v3634_v15 }
 0x138   : > { %3424 = vmatprep.subr.bf16.mxu0 %v3638_v19 }
 0x13a   : > { %3417 = vmatpush3.bf16.msra.mxu1 %v3637_v17  ;;  %2841 = vmatmul.mubr.bf16.vlgmr.msra.gmra.mxu0 %v3136_v16 }
 0x13b   : > { %3425 = vmatpush3.bf16.msra.mxu0 %v3641_v21  ;;  %2920 = vmatprep.mubr.bf16.mxu0 %v3141_v18 }
 0x13c   : > { %3446 = vmatprep.subr.bf16.mxu1 %v3642_v22  ;;  %3426 = vmatprep.subr.bf16.mxu0 %v3644_v24 }
 0x13d   : > { %2881 = vmatmul.mubr.bf16.vlgmr.msra.gmra.mxu1 %v3138_v20 }
 0x13e   : > { %3447 = vmatpush3.bf16.msra.mxu1 %v3643_v23  ;;  %2960 = vmatprep.mubr.bf16.mxu1 %v3143_v56 }
 0x13f   : > { %3427 = vmatpush3.bf16.msra.mxu0 %v3645_v25  ;;  %3448 = vmatprep.subr.bf16.mxu1 %v3646_v26 }
 0x140   : > { %3428 = vmatprep.subr.bf16.mxu0 %v3648_v28 }
 0x142   : > { %3449 = vmatpush3.bf16.msra.mxu1 %v3647_v27 }
 0x143   : > { %3429 = vmatpush3.bf16.msra.mxu0 %v3649_v29  ;;  %3450 = vmatprep.subr.bf16.mxu1 %v3650_v30 }
 0x144   : > { %3430 = vmatprep.subr.bf16.mxu0 %v3652_v32 }
 0x146   : > { %3451 = vmatpush3.bf16.msra.mxu1 %v3651_v31 }
 0x147   : > { %3431 = vmatpush3.bf16.msra.mxu0 %v3653_v33  ;;  %3452 = vmatprep.subr.bf16.mxu1 %v3654_v34 }
 0x148   : > { %3432 = vmatprep.subr.bf16.mxu0 %v3656_v36 }
 0x14a   : > { %3453 = vmatpush3.bf16.msra.mxu1 %v3655_v35 }
 0x14b   : > { %3433 = vmatpush3.bf16.msra.mxu0 %v3657_v37  ;;  %3454 = vmatprep.subr.bf16.mxu1 %v3658_v38 }
 0x14c   : > { %3434 = vmatprep.subr.bf16.mxu0 %v3660_v40 }
 0x14e   : > { %3455 = vmatpush3.bf16.msra.mxu1 %v3659_v39 }
 0x14f   : > { %3435 = vmatpush3.bf16.msra.mxu0 %v3661_v41  ;;  %3456 = vmatprep.subr.bf16.mxu1 %v3662_v42 }
 0x150   : > { %3436 = vmatprep.subr.bf16.mxu0 %v3664_v44 }
 0x152   : > { %3457 = vmatpush3.bf16.msra.mxu1 %v3663_v43 }
 0x153   : > { %3437 = vmatpush3.bf16.msra.mxu0 %v3665_v45  ;;  %3458 = vmatprep.subr.bf16.mxu1 %v3666_v46 }
 0x154   : > { %3438 = vmatprep.subr.bf16.mxu0 %v3668_v48 }
 0x156   : > { %3459 = vmatpush3.bf16.msra.mxu1 %v3667_v47 }
 0x157   : > { %3439 = vmatpush3.bf16.msra.mxu0 %v3669_v49  ;;  %3460 = vmatprep.subr.bf16.mxu1 %v3670_v50 }
 0x158   : > { %3468 = vmatprep.subr.bf16.mxu0 %v3674_v53 }
 0x15a   : > { %3461 = vmatpush3.bf16.msra.mxu1 %v3673_v52  ;;  %2921 = vmatmul.mubr.bf16.vlgmr.msra.gmra.mxu0 %v3140_v51 }
 0x15b   : > { %3469 = vmatpush3.bf16.msra.mxu0 %v3677_v57  ;;  %3000 = vmatprep.mubr.bf16.mxu0 %v3145_v4 }
 0x15c   : > { %3470 = vmatprep.subr.bf16.mxu0 %v3678_v58 }
 0x15d   : > { %2961 = vmatmul.mubr.bf16.vlgmr.msra.gmra.mxu1 %v3142_v55 }
 0x15f   : > { %3471 = vmatpush3.bf16.msra.mxu0 %v3679_v59 }
 0x160   : > { %3472 = vmatprep.subr.bf16.mxu0 %v3680_v60 }
 0x163   : > { %3473 = vmatpush3.bf16.msra.mxu0 %v3681_v61 }
 0x164   : > { %3474 = vmatprep.subr.bf16.mxu0 %v3682_v62 }
 0x167   : > { %3475 = vmatpush3.bf16.msra.mxu0 %v3683_v63 }
 0x168   : > { %3476 = vmatprep.subr.bf16.mxu0 %v3684_v0 }
 0x16b   : > { %3477 = vmatpush3.bf16.msra.mxu0 %v3685_v1 }
 0x16c   : > { %3478 = vmatprep.subr.bf16.mxu0 %v3686_v3 }
 0x16f   : > { %3479 = vmatpush3.bf16.msra.mxu0 %v3687_v5 }
 0x170   : > { %3480 = vmatprep.subr.bf16.mxu0 %v3688_v6 }
 0x173   : > { %3481 = vmatpush3.bf16.msra.mxu0 %v3689_v7 }
 0x174   : > { %3482 = vmatprep.subr.bf16.mxu0 %v3690_v8 }
 0x177   : > { %3483 = vmatpush3.bf16.msra.mxu0 %v3691_v9 }
 0x17a   : > { %3001 = vmatmul.mubr.bf16.vlgmr.msra.gmra.mxu0 %v3144_v10 }
 0x1ba   : > { %v3308_v11 = vpop.f32.mrf.mxu0 }
 0x1bc   : > { %v3309_v13 = vpop.f32.mrf.mxu0 }
 0x1bd   : > { %v3330_v14 = vpop.f32.mrf.mxu1  ;;  %v3310_v15 = vadd.f32 %v3309_v13, %v3308_v11 }
 0x1be   : > { %v3311_v16 = vpop.f32.mrf.mxu0 }
 0x1bf   : > { %v3331_v17 = vpop.f32.mrf.mxu1  ;;  %v2683_v18 = vadd.f32 %v3310_v15, %v3127_v12 }
 0x1c0   : > { %v3332_v19 = vadd.f32 %v3331_v17, %v3330_v14  ;;  %v3312_v20 = vpop.f32.mrf.mxu0 }
 0x1c1   : > { %v3333_v21 = vpop.f32.mrf.mxu1 }
 0x1c2   : > { %v2723_v22 = vadd.f32 %v3332_v19, %v2683_v18 }
 0x1c3   : > { %v3334_v23 = vpop.f32.mrf.mxu1 }
 0x1da   : > { %v3352_v24 = vpop.f32.mrf.mxu0 }
 0x1dc   : > { %v3353_v25 = vpop.f32.mrf.mxu0 }
 0x1dd   : > { %v3374_v26 = vpop.f32.mrf.mxu1  ;;  %v3354_v27 = vadd.f32 %v3353_v25, %v3352_v24 }
 0x1de   : > { %v3355_v28 = vpop.f32.mrf.mxu0 }
 0x1df   : > { %v3375_v29 = vpop.f32.mrf.mxu1  ;;  %v2763_v30 = vadd.f32 %v3354_v27, %v2723_v22 }
 0x1e0   : > { %v3376_v31 = vadd.f32 %v3375_v29, %v3374_v26  ;;  %v3356_v32 = vpop.f32.mrf.mxu0 }
 0x1e1   : > { %v3377_v33 = vpop.f32.mrf.mxu1 }
 0x1e2   : > { %v2803_v34 = vadd.f32 %v3376_v31, %v2763_v30 }
 0x1e3   : > { %v3378_v35 = vpop.f32.mrf.mxu1 }
 0x1fa   : > { %v3396_v36 = vpop.f32.mrf.mxu0 }
 0x1fc   : > { %v3397_v37 = vpop.f32.mrf.mxu0 }
 0x1fd   : > { %v3418_v38 = vpop.f32.mrf.mxu1  ;;  %v3398_v52 = vadd.f32 %v3397_v37, %v3396_v36 }
 0x1fe   : > { %v3399_v39 = vpop.f32.mrf.mxu0 }
 0x1ff   : > { %v3419_v40 = vpop.f32.mrf.mxu1  ;;  %v2843_v53 = vadd.f32 %v3398_v52, %v2803_v34 }
 0x200   : > { %v3400_v41 = vpop.f32.mrf.mxu0  ;;  %v3420_v54 = vadd.f32 %v3419_v40, %v3418_v38 }
 0x201   : > { %v3421_v42 = vpop.f32.mrf.mxu1 }
 0x202   : > { %v2883_v56 = vadd.f32 %v3420_v54, %v2843_v53 }
 0x203   : > { %v3422_v43 = vpop.f32.mrf.mxu1 }
 0x21a   : > { %v3440_v44 = vpop.f32.mrf.mxu0 }
 0x21c   : > { %v3441_v45 = vpop.f32.mrf.mxu0 }
 0x21d   : > { %v3462_v46 = vpop.f32.mrf.mxu1  ;;  %v3442_v55 = vadd.f32 %v3441_v45, %v3440_v44 }
 0x21e   : > { %v3443_v47 = vpop.f32.mrf.mxu0 }
 0x21f   : > { %v3463_v48 = vpop.f32.mrf.mxu1  ;;  %v2923_v57 = vadd.f32 %v3442_v55, %v2883_v56 }
 0x220   : > { %v3444_v49 = vpop.f32.mrf.mxu0  ;;  %v3464_v58 = vadd.f32 %v3463_v48, %v3462_v46 }
 0x221   : > { %v3465_v50 = vpop.f32.mrf.mxu1 }
 0x222   : > { %v2963_v61 = vadd.f32 %v3464_v58, %v2923_v57 }
 0x223   : > { %v3466_v51 = vpop.f32.mrf.mxu1 }
 0x23a   : > { %v3484_v59 = vpop.f32.mrf.mxu0 }
 0x23c   : > { %v3485_v60 = vpop.f32.mrf.mxu0 }
 0x23d   : > { %v3486_v62 = vadd.f32 %v3485_v60, %v3484_v59 }
 0x23e   : > { %v3487_v63 = vpop.f32.mrf.mxu0 }
 0x23f   : > { %v3003_v0 = vadd.f32 %v3486_v62, %v2963_v61 }
 0x240   : > { %v3488_v1 = vpop.f32.mrf.mxu0 }
 0x241   : > { %v3008_v2 = vmax.f32 %v3003_v0, 0.0 }
 0x243   : > { %v3009_v3 = vpack.c.bf16 %v3008_v2, %v3008_v2 }
 0x245   : > { %3010 = vst [vmem:[%s1415_s7] sm:$0xf] %v3009_v3 }
 0x246 PF: > { %s13_s16 = sadd.s32 1, %s3732_s16   ;;  %s4626_s12 = smov %s3720_s13 }
 0x247   : > { %p10_p10 = scmp.ge.s32.totalorder %s13_s16, 4   ;;  %s4627_s13 = smov %s3789_s20 }
 0x248   : > { %s4628_s14 = smov %s3728_s15  ;;  %s4629_s15 = smov %s4631_s17 }
 0x249   :  { %12 = sbr.rel (!%p10_p10) target bundleno = 3 (0x3), region = 114 }

// kernel: _lambda_.35
= control target key start
LH: loop header
LB: loop body
LE: loop exit
PB: predicated region body
PF: predicated region fallthrough
CT: control target
= control target key end

     0   :  { %s3839_s15 = smov 0   ;;  %s3841_s16 = smov 0   ;;  %s4710_s0 = inlined_call_operand.vmem [shape: bf16[8,2304], index: 0, kind: input, shape index: {}]   ;;  %s4711_s1 = inlined_call_operand.vmem [shape: bf16[2304,256], index: 1, kind: input, shape index: {}]   ;;  %s4712_s2 = inlined_call_operand.vmem [shape: f32[1,256], index: 2, kind: input, shape index: {}]   ;;  %s4713_s3 = inlined_call_operand.vmem [shape: bf16[8,256], index: 3, kind: input, shape index: {}]   ;;  %s4714_s4 = inlined_call_operand.vmem [shape: bf16[8,256], index: 4, kind: output, shape index: {}]  }
   0x1   :  { %s3843_s17 = smov 0   ;;  %s3845_s18 = smov 0  }
   0x2   :  { %s3847_s19 = smov 0  }
   0x3 LB: > { %s23_s20 = sadd.s32 1, %s3808_s18  ;;  %p66_p1 = scmp.ne.s32.totalorder %s3800_s16, %s3796_s15  ;;  %s3812_s19 = sphi %s3847_s19, %s14_s19   ;;  %s3808_s18 = sphi %s3845_s18, %s4718_s18   ;;  %s3804_s17 = sphi %s3843_s17, %s4717_s17   ;;  %s3800_s16 = sphi %s3841_s16, %s4716_s16   ;;  %s3796_s15 = sphi %s3839_s15, %s4715_s15  }
   0x4   : > { %p24_p0 = scmp.ge.s32.totalorder %s23_s20, 2  ;;  %p67_p2 = scmp.eq.s32.totalorder %s3812_s19, 0 }
   0x5   : > { %s59_s22 = sadd.s32 1, %s3800_s16  ;;  %p3202_p5 = scmp.ge.s32.totalorder %s3812_s19, 2 }
   0x6   : > { %s4720_s20 = smov (%p24_p0, %s23_s20), 0  ;;  %p68_p3 = por %p67_p2, %p66_p1 }
   0x7   : > { %s56_s21 = ssub.s32 %s3808_s18, %s4720_s20  ;;  %182 = sbr.rel (%p3202_p5) target bundleno = 208 (0xd0), region = 20 }
   0x8   : > { %p57_p4 = scmp.eq.s32.totalorder %s56_s21, 0 }
   0xa   : > { %s3874_s23 = scalar_select %p57_p4, %s3800_s16, %s59_s22  }
   0xc   : > { %185 = sbr.rel (!%p68_p3) target bundleno = 208 (0xd0), region = 24  ;;  %s187_s24 = sand.u32 (%p68_p3), 1, %s3800_s16  }
   0xd   : > { %s3203_s25 = sshll.u32 (%p68_p3), %s3808_s18, 2  ;;  %s3570_s26 = smul.u32 (%p68_p3), 1152, %s187_s24 }
   0xe   : > { %s3882_s29 = scalar_lea.vmem (%p68_p3), %s4711_s1, %s3203_s25 }
   0xf   : > { %v208_v0 = vld [vmem:[%s3882_s29] sm:$0xf] (%p68_p3)  ;;  %v210_v1 = vld [vmem:[%s3882_s29 + $0x8] sm:$0xf] (%p68_p3)  ;;  %v212_v2 = vld [vmem:[%s3882_s29 + $0x10] sm:$0xf] (%p68_p3) }
  0x10   : > { %v214_v3 = vld [vmem:[%s3882_s29 + $0x18] sm:$0xf] (%p68_p3)  ;;  %v216_v4 = vld [vmem:[%s3882_s29 + $0x20] sm:$0xf] (%p68_p3)  ;;  %s3889_s30 = scalar_lea.vmem (%p68_p3), [#allocation2], %s3570_s26 }
  0x11   : > { %209 = vst [vmem:[%s3889_s30] sm:$0xf] %v208_v0  ;;  %211 = vst [vmem:[%s3889_s30 + $0x4] sm:$0xf] %v210_v1  ;;  %v218_v5 = vld [vmem:[%s3882_s29 + $0x28] sm:$0xf] }
  0x12   : > { %213 = vst [vmem:[%s3889_s30 + $0x8] sm:$0xf] %v212_v2  ;;  %215 = vst [vmem:[%s3889_s30 + $0xc] sm:$0xf] %v214_v3  ;;  %v220_v6 = vld [vmem:[%s3882_s29 + $0x30] sm:$0xf] }
  0x13   : > { %217 = vst [vmem:[%s3889_s30 + $0x10] sm:$0xf] %v216_v4  ;;  %v222_v7 = vld [vmem:[%s3882_s29 + $0x38] sm:$0xf]  ;;  %219 = vst [vmem:[%s3889_s30 + $0x14] sm:$0xf] %v218_v5 }
  0x14   : > { %221 = vst [vmem:[%s3889_s30 + $0x18] sm:$0xf] %v220_v6  ;;  %223 = vst [vmem:[%s3889_s30 + $0x1c] sm:$0xf] %v222_v7  ;;  %v224_v8 = vld [vmem:[%s3882_s29 + $0x40] sm:$0xf] }
  0x15   : > { %v226_v9 = vld [vmem:[%s3882_s29 + $0x48] sm:$0xf]  ;;  %v228_v10 = vld [vmem:[%s3882_s29 + $0x50] sm:$0xf]  ;;  %225 = vst [vmem:[%s3889_s30 + $0x20] sm:$0xf] %v224_v8 }
  0x16   : > { %227 = vst [vmem:[%s3889_s30 + $0x24] sm:$0xf] %v226_v9  ;;  %229 = vst [vmem:[%s3889_s30 + $0x28] sm:$0xf] %v228_v10  ;;  %v230_v11 = vld [vmem:[%s3882_s29 + $0x58] sm:$0xf] }
  0x17   : > { %v232_v12 = vld [vmem:[%s3882_s29 + $0x60] sm:$0xf]  ;;  %v234_v13 = vld [vmem:[%s3882_s29 + $0x68] sm:$0xf]  ;;  %231 = vst [vmem:[%s3889_s30 + $0x2c] sm:$0xf] %v230_v11 }
  0x18   : > { %233 = vst [vmem:[%s3889_s30 + $0x30] sm:$0xf] %v232_v12  ;;  %235 = vst [vmem:[%s3889_s30 + $0x34] sm:$0xf] %v234_v13  ;;  %v236_v14 = vld [vmem:[%s3882_s29 + $0x70] sm:$0xf] }
  0x19   : > { %v238_v15 = vld [vmem:[%s3882_s29 + $0x78] sm:$0xf]  ;;  %v240_v16 = vld [vmem:[%s3882_s29 + $0x80] sm:$0xf]  ;;  %237 = vst [vmem:[%s3889_s30 + $0x38] sm:$0xf] %v236_v14 }
  0x1a   : > { %239 = vst [vmem:[%s3889_s30 + $0x3c] sm:$0xf] %v238_v15  ;;  %241 = vst [vmem:[%s3889_s30 + $0x40] sm:$0xf] %v240_v16  ;;  %v242_v17 = vld [vmem:[%s3882_s29 + $0x88] sm:$0xf] }
  0x1b   : > { %v244_v18 = vld [vmem:[%s3882_s29 + $0x90] sm:$0xf]  ;;  %v246_v19 = vld [vmem:[%s3882_s29 + $0x98] sm:$0xf]  ;;  %243 = vst [vmem:[%s3889_s30 + $0x44] sm:$0xf] %v242_v17 }
  0x1c   : > { %245 = vst [vmem:[%s3889_s30 + $0x48] sm:$0xf] %v244_v18  ;;  %247 = vst [vmem:[%s3889_s30 + $0x4c] sm:$0xf] %v246_v19  ;;  %v248_v20 = vld [vmem:[%s3882_s29 + $0xa0] sm:$0xf] }
  0x1d   : > { %v250_v21 = vld [vmem:[%s3882_s29 + $0xa8] sm:$0xf]  ;;  %v252_v22 = vld [vmem:[%s3882_s29 + $0xb0] sm:$0xf]  ;;  %249 = vst [vmem:[%s3889_s30 + $0x50] sm:$0xf] %v248_v20 }
  0x1e   : > { %251 = vst [vmem:[%s3889_s30 + $0x54] sm:$0xf] %v250_v21  ;;  %253 = vst [vmem:[%s3889_s30 + $0x58] sm:$0xf] %v252_v22  ;;  %v254_v23 = vld [vmem:[%s3882_s29 + $0xb8] sm:$0xf] }
  0x1f   : > { %v256_v24 = vld [vmem:[%s3882_s29 + $0xc0] sm:$0xf]  ;;  %v258_v25 = vld [vmem:[%s3882_s29 + $0xc8] sm:$0xf]  ;;  %255 = vst [vmem:[%s3889_s30 + $0x5c] sm:$0xf] %v254_v23 }
  0x20   : > { %257 = vst [vmem:[%s3889_s30 + $0x60] sm:$0xf] %v256_v24  ;;  %259 = vst [vmem:[%s3889_s30 + $0x64] sm:$0xf] %v258_v25  ;;  %v260_v26 = vld [vmem:[%s3882_s29 + $0xd0] sm:$0xf] }
  0x21   : > { %v262_v27 = vld [vmem:[%s3882_s29 + $0xd8] sm:$0xf]  ;;  %v264_v28 = vld [vmem:[%s3882_s29 + $0xe0] sm:$0xf]  ;;  %261 = vst [vmem:[%s3889_s30 + $0x68] sm:$0xf] %v260_v26 }
  0x22   : > { %263 = vst [vmem:[%s3889_s30 + $0x6c] sm:$0xf] %v262_v27  ;;  %265 = vst [vmem:[%s3889_s30 + $0x70] sm:$0xf] %v264_v28  ;;  %v266_v29 = vld [vmem:[%s3882_s29 + $0xe8] sm:$0xf] }
  0x23   : > { %v268_v30 = vld [vmem:[%s3882_s29 + $0xf0] sm:$0xf]  ;;  %v270_v31 = vld [vmem:[%s3882_s29 + $0xf8] sm:$0xf]  ;;  %267 = vst [vmem:[%s3889_s30 + $0x74] sm:$0xf] %v266_v29 }
  0x24   : > { %269 = vst [vmem:[%s3889_s30 + $0x78] sm:$0xf] %v268_v30  ;;  %271 = vst [vmem:[%s3889_s30 + $0x7c] sm:$0xf] %v270_v31  ;;  %v272_v32 = vld [vmem:[%s3882_s29 + $0x100] sm:$0xf] }
  0x25   : > { %v274_v33 = vld [vmem:[%s3882_s29 + $0x108] sm:$0xf]  ;;  %v276_v34 = vld [vmem:[%s3882_s29 + $0x110] sm:$0xf]  ;;  %273 = vst [vmem:[%s3889_s30 + $0x80] sm:$0xf] %v272_v32 }
  0x26   : > { %275 = vst [vmem:[%s3889_s30 + $0x84] sm:$0xf] %v274_v33  ;;  %277 = vst [vmem:[%s3889_s30 + $0x88] sm:$0xf] %v276_v34  ;;  %v278_v35 = vld [vmem:[%s3882_s29 + $0x118] sm:$0xf] }
  0x27   : > { %v280_v36 = vld [vmem:[%s3882_s29 + $0x120] sm:$0xf]  ;;  %v282_v37 = vld [vmem:[%s3882_s29 + $0x128] sm:$0xf]  ;;  %279 = vst [vmem:[%s3889_s30 + $0x8c] sm:$0xf] %v278_v35 }
  0x28   : > { %281 = vst [vmem:[%s3889_s30 + $0x90] sm:$0xf] %v280_v36  ;;  %283 = vst [vmem:[%s3889_s30 + $0x94] sm:$0xf] %v282_v37  ;;  %v284_v38 = vld [vmem:[%s3882_s29 + $0x130] sm:$0xf] }
  0x29   : > { %v286_v39 = vld [vmem:[%s3882_s29 + $0x138] sm:$0xf]  ;;  %v288_v40 = vld [vmem:[%s3882_s29 + $0x140] sm:$0xf]  ;;  %285 = vst [vmem:[%s3889_s30 + $0x98] sm:$0xf] %v284_v38 }
  0x2a   : > { %287 = vst [vmem:[%s3889_s30 + $0x9c] sm:$0xf] %v286_v39  ;;  %289 = vst [vmem:[%s3889_s30 + $0xa0] sm:$0xf] %v288_v40  ;;  %v290_v41 = vld [vmem:[%s3882_s29 + $0x148] sm:$0xf] }
  0x2b   : > { %v292_v42 = vld [vmem:[%s3882_s29 + $0x150] sm:$0xf]  ;;  %v294_v43 = vld [vmem:[%s3882_s29 + $0x158] sm:$0xf]  ;;  %291 = vst [vmem:[%s3889_s30 + $0xa4] sm:$0xf] %v290_v41 }
  0x2c   : > { %293 = vst [vmem:[%s3889_s30 + $0xa8] sm:$0xf] %v292_v42  ;;  %295 = vst [vmem:[%s3889_s30 + $0xac] sm:$0xf] %v294_v43  ;;  %v296_v44 = vld [vmem:[%s3882_s29 + $0x160] sm:$0xf] }
  0x2d   : > { %v298_v45 = vld [vmem:[%s3882_s29 + $0x168] sm:$0xf]  ;;  %v300_v46 = vld [vmem:[%s3882_s29 + $0x170] sm:$0xf]  ;;  %297 = vst [vmem:[%s3889_s30 + $0xb0] sm:$0xf] %v296_v44 }
  0x2e   : > { %299 = vst [vmem:[%s3889_s30 + $0xb4] sm:$0xf] %v298_v45  ;;  %301 = vst [vmem:[%s3889_s30 + $0xb8] sm:$0xf] %v300_v46  ;;  %v302_v47 = vld [vmem:[%s3882_s29 + $0x178] sm:$0xf] }
  0x2f   : > { %v304_v48 = vld [vmem:[%s3882_s29 + $0x180] sm:$0xf]  ;;  %v306_v49 = vld [vmem:[%s3882_s29 + $0x188] sm:$0xf]  ;;  %303 = vst [vmem:[%s3889_s30 + $0xbc] sm:$0xf] %v302_v47 }
  0x30   : > { %305 = vst [vmem:[%s3889_s30 + $0xc0] sm:$0xf] %v304_v48  ;;  %307 = vst [vmem:[%s3889_s30 + $0xc4] sm:$0xf] %v306_v49  ;;  %v308_v50 = vld [vmem:[%s3882_s29 + $0x190] sm:$0xf] }
  0x31   : > { %v310_v51 = vld [vmem:[%s3882_s29 + $0x198] sm:$0xf]  ;;  %v312_v52 = vld [vmem:[%s3882_s29 + $0x1a0] sm:$0xf]  ;;  %309 = vst [vmem:[%s3889_s30 + $0xc8] sm:$0xf] %v308_v50 }
  0x32   : > { %311 = vst [vmem:[%s3889_s30 + $0xcc] sm:$0xf] %v310_v51  ;;  %313 = vst [vmem:[%s3889_s30 + $0xd0] sm:$0xf] %v312_v52  ;;  %v314_v53 = vld [vmem:[%s3882_s29 + $0x1a8] sm:$0xf] }
  0x33   : > { %v316_v54 = vld [vmem:[%s3882_s29 + $0x1b0] sm:$0xf]  ;;  %v318_v55 = vld [vmem:[%s3882_s29 + $0x1b8] sm:$0xf]  ;;  %315 = vst [vmem:[%s3889_s30 + $0xd4] sm:$0xf] %v314_v53 }
  0x34   : > { %317 = vst [vmem:[%s3889_s30 + $0xd8] sm:$0xf] %v316_v54  ;;  %319 = vst [vmem:[%s3889_s30 + $0xdc] sm:$0xf] %v318_v55  ;;  %v320_v56 = vld [vmem:[%s3882_s29 + $0x1c0] sm:$0xf] }
  0x35   : > { %v322_v57 = vld [vmem:[%s3882_s29 + $0x1c8] sm:$0xf]  ;;  %v324_v58 = vld [vmem:[%s3882_s29 + $0x1d0] sm:$0xf]  ;;  %321 = vst [vmem:[%s3889_s30 + $0xe0] sm:$0xf] %v320_v56 }
  0x36   : > { %323 = vst [vmem:[%s3889_s30 + $0xe4] sm:$0xf] %v322_v57  ;;  %325 = vst [vmem:[%s3889_s30 + $0xe8] sm:$0xf] %v324_v58  ;;  %v326_v59 = vld [vmem:[%s3882_s29 + $0x1d8] sm:$0xf] }
  0x37   : > { %v328_v60 = vld [vmem:[%s3882_s29 + $0x1e0] sm:$0xf]  ;;  %v330_v61 = vld [vmem:[%s3882_s29 + $0x1e8] sm:$0xf]  ;;  %327 = vst [vmem:[%s3889_s30 + $0xec] sm:$0xf] %v326_v59 }
  0x38   : > { %329 = vst [vmem:[%s3889_s30 + $0xf0] sm:$0xf] %v328_v60  ;;  %331 = vst [vmem:[%s3889_s30 + $0xf4] sm:$0xf] %v330_v61  ;;  %v332_v62 = vld [vmem:[%s3882_s29 + $0x1f0] sm:$0xf] }
  0x39   : > { %v334_v63 = vld [vmem:[%s3882_s29 + $0x1f8] sm:$0xf]  ;;  %v336_v0 = vld [vmem:[%s3882_s29 + $0x200] sm:$0xf]  ;;  %333 = vst [vmem:[%s3889_s30 + $0xf8] sm:$0xf] %v332_v62 }
  0x3a   : > { %335 = vst [vmem:[%s3889_s30 + $0xfc] sm:$0xf] %v334_v63  ;;  %337 = vst [vmem:[%s3889_s30 + $0x100] sm:$0xf] %v336_v0  ;;  %v338_v1 = vld [vmem:[%s3882_s29 + $0x208] sm:$0xf] }
  0x3b   : > { %v340_v2 = vld [vmem:[%s3882_s29 + $0x210] sm:$0xf]  ;;  %v342_v3 = vld [vmem:[%s3882_s29 + $0x218] sm:$0xf]  ;;  %339 = vst [vmem:[%s3889_s30 + $0x104] sm:$0xf] %v338_v1 }
  0x3c   : > { %341 = vst [vmem:[%s3889_s30 + $0x108] sm:$0xf] %v340_v2  ;;  %343 = vst [vmem:[%s3889_s30 + $0x10c] sm:$0xf] %v342_v3  ;;  %v344_v4 = vld [vmem:[%s3882_s29 + $0x220] sm:$0xf] }
  0x3d   : > { %v346_v5 = vld [vmem:[%s3882_s29 + $0x228] sm:$0xf]  ;;  %v348_v6 = vld [vmem:[%s3882_s29 + $0x230] sm:$0xf]  ;;  %345 = vst [vmem:[%s3889_s30 + $0x110] sm:$0xf] %v344_v4 }
  0x3e   : > { %347 = vst [vmem:[%s3889_s30 + $0x114] sm:$0xf] %v346_v5  ;;  %349 = vst [vmem:[%s3889_s30 + $0x118] sm:$0xf] %v348_v6  ;;  %v350_v7 = vld [vmem:[%s3882_s29 + $0x238] sm:$0xf] }
  0x3f   : > { %v352_v8 = vld [vmem:[%s3882_s29 + $0x240] sm:$0xf]  ;;  %v354_v9 = vld [vmem:[%s3882_s29 + $0x248] sm:$0xf]  ;;  %351 = vst [vmem:[%s3889_s30 + $0x11c] sm:$0xf] %v350_v7 }
  0x40   : > { %353 = vst [vmem:[%s3889_s30 + $0x120] sm:$0xf] %v352_v8  ;;  %355 = vst [vmem:[%s3889_s30 + $0x124] sm:$0xf] %v354_v9  ;;  %v356_v10 = vld [vmem:[%s3882_s29 + $0x250] sm:$0xf] }
  0x41   : > { %v358_v11 = vld [vmem:[%s3882_s29 + $0x258] sm:$0xf]  ;;  %v360_v12 = vld [vmem:[%s3882_s29 + $0x260] sm:$0xf]  ;;  %357 = vst [vmem:[%s3889_s30 + $0x128] sm:$0xf] %v356_v10 }
  0x42   : > { %359 = vst [vmem:[%s3889_s30 + $0x12c] sm:$0xf] %v358_v11  ;;  %361 = vst [vmem:[%s3889_s30 + $0x130] sm:$0xf] %v360_v12  ;;  %v362_v13 = vld [vmem:[%s3882_s29 + $0x268] sm:$0xf] }
  0x43   : > { %v364_v14 = vld [vmem:[%s3882_s29 + $0x270] sm:$0xf]  ;;  %v366_v15 = vld [vmem:[%s3882_s29 + $0x278] sm:$0xf]  ;;  %363 = vst [vmem:[%s3889_s30 + $0x134] sm:$0xf] %v362_v13 }
  0x44   : > { %365 = vst [vmem:[%s3889_s30 + $0x138] sm:$0xf] %v364_v14  ;;  %367 = vst [vmem:[%s3889_s30 + $0x13c] sm:$0xf] %v366_v15  ;;  %v368_v16 = vld [vmem:[%s3882_s29 + $0x280] sm:$0xf] }
  0x45   : > { %v370_v17 = vld [vmem:[%s3882_s29 + $0x288] sm:$0xf]  ;;  %v372_v18 = vld [vmem:[%s3882_s29 + $0x290] sm:$0xf]  ;;  %369 = vst [vmem:[%s3889_s30 + $0x140] sm:$0xf] %v368_v16 }
  0x46   : > { %371 = vst [vmem:[%s3889_s30 + $0x144] sm:$0xf] %v370_v17  ;;  %373 = vst [vmem:[%s3889_s30 + $0x148] sm:$0xf] %v372_v18  ;;  %v374_v19 = vld [vmem:[%s3882_s29 + $0x298] sm:$0xf] }
  0x47   : > { %v376_v20 = vld [vmem:[%s3882_s29 + $0x2a0] sm:$0xf]  ;;  %v378_v21 = vld [vmem:[%s3882_s29 + $0x2a8] sm:$0xf]  ;;  %375 = vst [vmem:[%s3889_s30 + $0x14c] sm:$0xf] %v374_v19 }
  0x48   : > { %377 = vst [vmem:[%s3889_s30 + $0x150] sm:$0xf] %v376_v20  ;;  %379 = vst [vmem:[%s3889_s30 + $0x154] sm:$0xf] %v378_v21  ;;  %v380_v22 = vld [vmem:[%s3882_s29 + $0x2b0] sm:$0xf] }
  0x49   : > { %v382_v23 = vld [vmem:[%s3882_s29 + $0x2b8] sm:$0xf]  ;;  %v384_v24 = vld [vmem:[%s3882_s29 + $0x2c0] sm:$0xf]  ;;  %381 = vst [vmem:[%s3889_s30 + $0x158] sm:$0xf] %v380_v22 }
  0x4a   : > { %383 = vst [vmem:[%s3889_s30 + $0x15c] sm:$0xf] %v382_v23  ;;  %385 = vst [vmem:[%s3889_s30 + $0x160] sm:$0xf] %v384_v24  ;;  %v386_v25 = vld [vmem:[%s3882_s29 + $0x2c8] sm:$0xf] }
  0x4b   : > { %v388_v26 = vld [vmem:[%s3882_s29 + $0x2d0] sm:$0xf]  ;;  %v390_v27 = vld [vmem:[%s3882_s29 + $0x2d8] sm:$0xf]  ;;  %387 = vst [vmem:[%s3889_s30 + $0x164] sm:$0xf] %v386_v25 }
  0x4c   : > { %389 = vst [vmem:[%s3889_s30 + $0x168] sm:$0xf] %v388_v26  ;;  %391 = vst [vmem:[%s3889_s30 + $0x16c] sm:$0xf] %v390_v27  ;;  %v392_v28 = vld [vmem:[%s3882_s29 + $0x2e0] sm:$0xf] }
  0x4d   : > { %v394_v29 = vld [vmem:[%s3882_s29 + $0x2e8] sm:$0xf]  ;;  %v396_v30 = vld [vmem:[%s3882_s29 + $0x2f0] sm:$0xf]  ;;  %393 = vst [vmem:[%s3889_s30 + $0x170] sm:$0xf] %v392_v28 }
  0x4e   : > { %395 = vst [vmem:[%s3889_s30 + $0x174] sm:$0xf] %v394_v29  ;;  %397 = vst [vmem:[%s3889_s30 + $0x178] sm:$0xf] %v396_v30  ;;  %v398_v31 = vld [vmem:[%s3882_s29 + $0x2f8] sm:$0xf] }
  0x4f   : > { %v400_v32 = vld [vmem:[%s3882_s29 + $0x300] sm:$0xf]  ;;  %v402_v33 = vld [vmem:[%s3882_s29 + $0x308] sm:$0xf]  ;;  %399 = vst [vmem:[%s3889_s30 + $0x17c] sm:$0xf] %v398_v31 }
  0x50   : > { %401 = vst [vmem:[%s3889_s30 + $0x180] sm:$0xf] %v400_v32  ;;  %403 = vst [vmem:[%s3889_s30 + $0x184] sm:$0xf] %v402_v33  ;;  %v404_v34 = vld [vmem:[%s3882_s29 + $0x310] sm:$0xf] }
  0x51   : > { %v406_v35 = vld [vmem:[%s3882_s29 + $0x318] sm:$0xf]  ;;  %v408_v36 = vld [vmem:[%s3882_s29 + $0x320] sm:$0xf]  ;;  %405 = vst [vmem:[%s3889_s30 + $0x188] sm:$0xf] %v404_v34 }
  0x52   : > { %407 = vst [vmem:[%s3889_s30 + $0x18c] sm:$0xf] %v406_v35  ;;  %409 = vst [vmem:[%s3889_s30 + $0x190] sm:$0xf] %v408_v36  ;;  %v410_v37 = vld [vmem:[%s3882_s29 + $0x328] sm:$0xf] }
  0x53   : > { %v412_v38 = vld [vmem:[%s3882_s29 + $0x330] sm:$0xf]  ;;  %v414_v39 = vld [vmem:[%s3882_s29 + $0x338] sm:$0xf]  ;;  %411 = vst [vmem:[%s3889_s30 + $0x194] sm:$0xf] %v410_v37 }
  0x54   : > { %413 = vst [vmem:[%s3889_s30 + $0x198] sm:$0xf] %v412_v38  ;;  %415 = vst [vmem:[%s3889_s30 + $0x19c] sm:$0xf] %v414_v39  ;;  %v416_v40 = vld [vmem:[%s3882_s29 + $0x340] sm:$0xf] }
  0x55   : > { %v418_v41 = vld [vmem:[%s3882_s29 + $0x348] sm:$0xf]  ;;  %v420_v42 = vld [vmem:[%s3882_s29 + $0x350] sm:$0xf]  ;;  %417 = vst [vmem:[%s3889_s30 + $0x1a0] sm:$0xf] %v416_v40 }
  0x56   : > { %419 = vst [vmem:[%s3889_s30 + $0x1a4] sm:$0xf] %v418_v41  ;;  %421 = vst [vmem:[%s3889_s30 + $0x1a8] sm:$0xf] %v420_v42  ;;  %v422_v43 = vld [vmem:[%s3882_s29 + $0x358] sm:$0xf] }
  0x57   : > { %v424_v44 = vld [vmem:[%s3882_s29 + $0x360] sm:$0xf]  ;;  %v426_v45 = vld [vmem:[%s3882_s29 + $0x368] sm:$0xf]  ;;  %423 = vst [vmem:[%s3889_s30 + $0x1ac] sm:$0xf] %v422_v43 }
  0x58   : > { %425 = vst [vmem:[%s3889_s30 + $0x1b0] sm:$0xf] %v424_v44  ;;  %427 = vst [vmem:[%s3889_s30 + $0x1b4] sm:$0xf] %v426_v45  ;;  %v428_v46 = vld [vmem:[%s3882_s29 + $0x370] sm:$0xf] }
  0x59   : > { %v430_v47 = vld [vmem:[%s3882_s29 + $0x378] sm:$0xf]  ;;  %v432_v48 = vld [vmem:[%s3882_s29 + $0x380] sm:$0xf]  ;;  %429 = vst [vmem:[%s3889_s30 + $0x1b8] sm:$0xf] %v428_v46 }
  0x5a   : > { %431 = vst [vmem:[%s3889_s30 + $0x1bc] sm:$0xf] %v430_v47  ;;  %433 = vst [vmem:[%s3889_s30 + $0x1c0] sm:$0xf] %v432_v48  ;;  %v434_v49 = vld [vmem:[%s3882_s29 + $0x388] sm:$0xf] }
  0x5b   : > { %v436_v50 = vld [vmem:[%s3882_s29 + $0x390] sm:$0xf]  ;;  %v438_v51 = vld [vmem:[%s3882_s29 + $0x398] sm:$0xf]  ;;  %435 = vst [vmem:[%s3889_s30 + $0x1c4] sm:$0xf] %v434_v49 }
  0x5c   : > { %437 = vst [vmem:[%s3889_s30 + $0x1c8] sm:$0xf] %v436_v50  ;;  %439 = vst [vmem:[%s3889_s30 + $0x1cc] sm:$0xf] %v438_v51  ;;  %v440_v52 = vld [vmem:[%s3882_s29 + $0x3a0] sm:$0xf] }
  0x5d   : > { %v442_v53 = vld [vmem:[%s3882_s29 + $0x3a8] sm:$0xf]  ;;  %v444_v54 = vld [vmem:[%s3882_s29 + $0x3b0] sm:$0xf]  ;;  %441 = vst [vmem:[%s3889_s30 + $0x1d0] sm:$0xf] %v440_v52 }
  0x5e   : > { %443 = vst [vmem:[%s3889_s30 + $0x1d4] sm:$0xf] %v442_v53  ;;  %445 = vst [vmem:[%s3889_s30 + $0x1d8] sm:$0xf] %v444_v54  ;;  %v446_v55 = vld [vmem:[%s3882_s29 + $0x3b8] sm:$0xf] }
  0x5f   : > { %v448_v56 = vld [vmem:[%s3882_s29 + $0x3c0] sm:$0xf]  ;;  %v450_v57 = vld [vmem:[%s3882_s29 + $0x3c8] sm:$0xf]  ;;  %447 = vst [vmem:[%s3889_s30 + $0x1dc] sm:$0xf] %v446_v55 }
  0x60   : > { %449 = vst [vmem:[%s3889_s30 + $0x1e0] sm:$0xf] %v448_v56  ;;  %451 = vst [vmem:[%s3889_s30 + $0x1e4] sm:$0xf] %v450_v57  ;;  %v452_v58 = vld [vmem:[%s3882_s29 + $0x3d0] sm:$0xf] }
  0x61   : > { %v454_v59 = vld [vmem:[%s3882_s29 + $0x3d8] sm:$0xf]  ;;  %v456_v60 = vld [vmem:[%s3882_s29 + $0x3e0] sm:$0xf]  ;;  %453 = vst [vmem:[%s3889_s30 + $0x1e8] sm:$0xf] %v452_v58 }
  0x62   : > { %455 = vst [vmem:[%s3889_s30 + $0x1ec] sm:$0xf] %v454_v59  ;;  %457 = vst [vmem:[%s3889_s30 + $0x1f0] sm:$0xf] %v456_v60  ;;  %v458_v61 = vld [vmem:[%s3882_s29 + $0x3e8] sm:$0xf] }
  0x63   : > { %v460_v62 = vld [vmem:[%s3882_s29 + $0x3f0] sm:$0xf]  ;;  %v462_v63 = vld [vmem:[%s3882_s29 + $0x3f8] sm:$0xf]  ;;  %459 = vst [vmem:[%s3889_s30 + $0x1f4] sm:$0xf] %v458_v61 }
  0x64   : > { %461 = vst [vmem:[%s3889_s30 + $0x1f8] sm:$0xf] %v460_v62  ;;  %463 = vst [vmem:[%s3889_s30 + $0x1fc] sm:$0xf] %v462_v63  ;;  %v464_v0 = vld [vmem:[%s3882_s29 + $0x400] sm:$0xf] }
  0x65   : > { %v466_v1 = vld [vmem:[%s3882_s29 + $0x408] sm:$0xf]  ;;  %v468_v2 = vld [vmem:[%s3882_s29 + $0x410] sm:$0xf]  ;;  %465 = vst [vmem:[%s3889_s30 + $0x200] sm:$0xf] %v464_v0 }
  0x66   : > { %467 = vst [vmem:[%s3889_s30 + $0x204] sm:$0xf] %v466_v1  ;;  %469 = vst [vmem:[%s3889_s30 + $0x208] sm:$0xf] %v468_v2  ;;  %v470_v3 = vld [vmem:[%s3882_s29 + $0x418] sm:$0xf] }
  0x67   : > { %v472_v4 = vld [vmem:[%s3882_s29 + $0x420] sm:$0xf]  ;;  %v474_v5 = vld [vmem:[%s3882_s29 + $0x428] sm:$0xf]  ;;  %471 = vst [vmem:[%s3889_s30 + $0x20c] sm:$0xf] %v470_v3 }
  0x68   : > { %473 = vst [vmem:[%s3889_s30 + $0x210] sm:$0xf] %v472_v4  ;;  %475 = vst [vmem:[%s3889_s30 + $0x214] sm:$0xf] %v474_v5  ;;  %v476_v6 = vld [vmem:[%s3882_s29 + $0x430] sm:$0xf] }
  0x69   : > { %v478_v7 = vld [vmem:[%s3882_s29 + $0x438] sm:$0xf]  ;;  %v480_v8 = vld [vmem:[%s3882_s29 + $0x440] sm:$0xf]  ;;  %477 = vst [vmem:[%s3889_s30 + $0x218] sm:$0xf] %v476_v6 }
  0x6a   : > { %479 = vst [vmem:[%s3889_s30 + $0x21c] sm:$0xf] %v478_v7  ;;  %481 = vst [vmem:[%s3889_s30 + $0x220] sm:$0xf] %v480_v8  ;;  %v482_v9 = vld [vmem:[%s3882_s29 + $0x448] sm:$0xf] }
  0x6b   : > { %v484_v10 = vld [vmem:[%s3882_s29 + $0x450] sm:$0xf]  ;;  %v486_v11 = vld [vmem:[%s3882_s29 + $0x458] sm:$0xf]  ;;  %483 = vst [vmem:[%s3889_s30 + $0x224] sm:$0xf] %v482_v9 }
  0x6c   : > { %485 = vst [vmem:[%s3889_s30 + $0x228] sm:$0xf] %v484_v10  ;;  %487 = vst [vmem:[%s3889_s30 + $0x22c] sm:$0xf] %v486_v11  ;;  %v488_v12 = vld [vmem:[%s3882_s29 + $0x460] sm:$0xf] }
  0x6d   : > { %v490_v13 = vld [vmem:[%s3882_s29 + $0x468] sm:$0xf]  ;;  %v492_v14 = vld [vmem:[%s3882_s29 + $0x470] sm:$0xf]  ;;  %489 = vst [vmem:[%s3889_s30 + $0x230] sm:$0xf] %v488_v12 }
  0x6e   : > { %491 = vst [vmem:[%s3889_s30 + $0x234] sm:$0xf] %v490_v13  ;;  %493 = vst [vmem:[%s3889_s30 + $0x238] sm:$0xf] %v492_v14  ;;  %v494_v15 = vld [vmem:[%s3882_s29 + $0x478] sm:$0xf] }
  0x6f   : > { %v496_v16 = vld [vmem:[%s3882_s29 + $0x480] sm:$0xf]  ;;  %v498_v17 = vld [vmem:[%s3882_s29 + $0x488] sm:$0xf]  ;;  %495 = vst [vmem:[%s3889_s30 + $0x23c] sm:$0xf] %v494_v15 }
  0x70   : > { %497 = vst [vmem:[%s3889_s30 + $0x240] sm:$0xf] %v496_v16  ;;  %499 = vst [vmem:[%s3889_s30 + $0x244] sm:$0xf] %v498_v17  ;;  %v500_v18 = vld [vmem:[%s3882_s29 + $0x490] sm:$0xf] }
  0x71   : > { %v502_v19 = vld [vmem:[%s3882_s29 + $0x498] sm:$0xf]  ;;  %v504_v20 = vld [vmem:[%s3882_s29 + $0x4a0] sm:$0xf]  ;;  %501 = vst [vmem:[%s3889_s30 + $0x248] sm:$0xf] %v500_v18 }
  0x72   : > { %503 = vst [vmem:[%s3889_s30 + $0x24c] sm:$0xf] %v502_v19  ;;  %505 = vst [vmem:[%s3889_s30 + $0x250] sm:$0xf] %v504_v20  ;;  %v506_v21 = vld [vmem:[%s3882_s29 + $0x4a8] sm:$0xf] }
  0x73   : > { %v508_v22 = vld [vmem:[%s3882_s29 + $0x4b0] sm:$0xf]  ;;  %v510_v23 = vld [vmem:[%s3882_s29 + $0x4b8] sm:$0xf]  ;;  %507 = vst [vmem:[%s3889_s30 + $0x254] sm:$0xf] %v506_v21 }
  0x74   : > { %509 = vst [vmem:[%s3889_s30 + $0x258] sm:$0xf] %v508_v22  ;;  %511 = vst [vmem:[%s3889_s30 + $0x25c] sm:$0xf] %v510_v23  ;;  %v512_v24 = vld [vmem:[%s3882_s29 + $0x4c0] sm:$0xf] }
  0x75   : > { %v514_v25 = vld [vmem:[%s3882_s29 + $0x4c8] sm:$0xf]  ;;  %v516_v26 = vld [vmem:[%s3882_s29 + $0x4d0] sm:$0xf]  ;;  %513 = vst [vmem:[%s3889_s30 + $0x260] sm:$0xf] %v512_v24 }
  0x76   : > { %515 = vst [vmem:[%s3889_s30 + $0x264] sm:$0xf] %v514_v25  ;;  %517 = vst [vmem:[%s3889_s30 + $0x268] sm:$0xf] %v516_v26  ;;  %v518_v27 = vld [vmem:[%s3882_s29 + $0x4d8] sm:$0xf] }
  0x77   : > { %v520_v28 = vld [vmem:[%s3882_s29 + $0x4e0] sm:$0xf]  ;;  %v522_v29 = vld [vmem:[%s3882_s29 + $0x4e8] sm:$0xf]  ;;  %519 = vst [vmem:[%s3889_s30 + $0x26c] sm:$0xf] %v518_v27 }
  0x78   : > { %521 = vst [vmem:[%s3889_s30 + $0x270] sm:$0xf] %v520_v28  ;;  %523 = vst [vmem:[%s3889_s30 + $0x274] sm:$0xf] %v522_v29  ;;  %v524_v30 = vld [vmem:[%s3882_s29 + $0x4f0] sm:$0xf] }
  0x79   : > { %v526_v31 = vld [vmem:[%s3882_s29 + $0x4f8] sm:$0xf]  ;;  %v528_v32 = vld [vmem:[%s3882_s29 + $0x500] sm:$0xf]  ;;  %525 = vst [vmem:[%s3889_s30 + $0x278] sm:$0xf] %v524_v30 }
  0x7a   : > { %527 = vst [vmem:[%s3889_s30 + $0x27c] sm:$0xf] %v526_v31  ;;  %529 = vst [vmem:[%s3889_s30 + $0x280] sm:$0xf] %v528_v32  ;;  %v530_v33 = vld [vmem:[%s3882_s29 + $0x508] sm:$0xf] }
  0x7b   : > { %v532_v34 = vld [vmem:[%s3882_s29 + $0x510] sm:$0xf]  ;;  %v534_v35 = vld [vmem:[%s3882_s29 + $0x518] sm:$0xf]  ;;  %531 = vst [vmem:[%s3889_s30 + $0x284] sm:$0xf] %v530_v33 }
  0x7c   : > { %533 = vst [vmem:[%s3889_s30 + $0x288] sm:$0xf] %v532_v34  ;;  %535 = vst [vmem:[%s3889_s30 + $0x28c] sm:$0xf] %v534_v35  ;;  %v536_v36 = vld [vmem:[%s3882_s29 + $0x520] sm:$0xf] }
  0x7d   : > { %v538_v37 = vld [vmem:[%s3882_s29 + $0x528] sm:$0xf]  ;;  %v540_v38 = vld [vmem:[%s3882_s29 + $0x530] sm:$0xf]  ;;  %537 = vst [vmem:[%s3889_s30 + $0x290] sm:$0xf] %v536_v36 }
  0x7e   : > { %539 = vst [vmem:[%s3889_s30 + $0x294] sm:$0xf] %v538_v37  ;;  %541 = vst [vmem:[%s3889_s30 + $0x298] sm:$0xf] %v540_v38  ;;  %v542_v39 = vld [vmem:[%s3882_s29 + $0x538] sm:$0xf] }
  0x7f   : > { %v544_v40 = vld [vmem:[%s3882_s29 + $0x540] sm:$0xf]  ;;  %v546_v41 = vld [vmem:[%s3882_s29 + $0x548] sm:$0xf]  ;;  %543 = vst [vmem:[%s3889_s30 + $0x29c] sm:$0xf] %v542_v39 }
  0x80   : > { %545 = vst [vmem:[%s3889_s30 + $0x2a0] sm:$0xf] %v544_v40  ;;  %547 = vst [vmem:[%s3889_s30 + $0x2a4] sm:$0xf] %v546_v41  ;;  %v548_v42 = vld [vmem:[%s3882_s29 + $0x550] sm:$0xf] }
  0x81   : > { %v550_v43 = vld [vmem:[%s3882_s29 + $0x558] sm:$0xf]  ;;  %v552_v44 = vld [vmem:[%s3882_s29 + $0x560] sm:$0xf]  ;;  %549 = vst [vmem:[%s3889_s30 + $0x2a8] sm:$0xf] %v548_v42 }
  0x82   : > { %551 = vst [vmem:[%s3889_s30 + $0x2ac] sm:$0xf] %v550_v43  ;;  %553 = vst [vmem:[%s3889_s30 + $0x2b0] sm:$0xf] %v552_v44  ;;  %v554_v45 = vld [vmem:[%s3882_s29 + $0x568] sm:$0xf] }
  0x83   : > { %v556_v46 = vld [vmem:[%s3882_s29 + $0x570] sm:$0xf]  ;;  %v558_v47 = vld [vmem:[%s3882_s29 + $0x578] sm:$0xf]  ;;  %555 = vst [vmem:[%s3889_s30 + $0x2b4] sm:$0xf] %v554_v45 }
  0x84   : > { %557 = vst [vmem:[%s3889_s30 + $0x2b8] sm:$0xf] %v556_v46  ;;  %559 = vst [vmem:[%s3889_s30 + $0x2bc] sm:$0xf] %v558_v47  ;;  %v560_v48 = vld [vmem:[%s3882_s29 + $0x580] sm:$0xf] }
  0x85   : > { %v562_v49 = vld [vmem:[%s3882_s29 + $0x588] sm:$0xf]  ;;  %v564_v50 = vld [vmem:[%s3882_s29 + $0x590] sm:$0xf]  ;;  %561 = vst [vmem:[%s3889_s30 + $0x2c0] sm:$0xf] %v560_v48 }
  0x86   : > { %563 = vst [vmem:[%s3889_s30 + $0x2c4] sm:$0xf] %v562_v49  ;;  %565 = vst [vmem:[%s3889_s30 + $0x2c8] sm:$0xf] %v564_v50  ;;  %v566_v51 = vld [vmem:[%s3882_s29 + $0x598] sm:$0xf] }
  0x87   : > { %v568_v52 = vld [vmem:[%s3882_s29 + $0x5a0] sm:$0xf]  ;;  %v570_v53 = vld [vmem:[%s3882_s29 + $0x5a8] sm:$0xf]  ;;  %567 = vst [vmem:[%s3889_s30 + $0x2cc] sm:$0xf] %v566_v51 }
  0x88   : > { %569 = vst [vmem:[%s3889_s30 + $0x2d0] sm:$0xf] %v568_v52  ;;  %571 = vst [vmem:[%s3889_s30 + $0x2d4] sm:$0xf] %v570_v53  ;;  %v572_v54 = vld [vmem:[%s3882_s29 + $0x5b0] sm:$0xf] }
  0x89   : > { %v574_v55 = vld [vmem:[%s3882_s29 + $0x5b8] sm:$0xf]  ;;  %v576_v56 = vld [vmem:[%s3882_s29 + $0x5c0] sm:$0xf]  ;;  %573 = vst [vmem:[%s3889_s30 + $0x2d8] sm:$0xf] %v572_v54 }
  0x8a   : > { %575 = vst [vmem:[%s3889_s30 + $0x2dc] sm:$0xf] %v574_v55  ;;  %577 = vst [vmem:[%s3889_s30 + $0x2e0] sm:$0xf] %v576_v56  ;;  %v578_v57 = vld [vmem:[%s3882_s29 + $0x5c8] sm:$0xf] }
  0x8b   : > { %v580_v58 = vld [vmem:[%s3882_s29 + $0x5d0] sm:$0xf]  ;;  %v582_v59 = vld [vmem:[%s3882_s29 + $0x5d8] sm:$0xf]  ;;  %579 = vst [vmem:[%s3889_s30 + $0x2e4] sm:$0xf] %v578_v57 }
  0x8c   : > { %581 = vst [vmem:[%s3889_s30 + $0x2e8] sm:$0xf] %v580_v58  ;;  %583 = vst [vmem:[%s3889_s30 + $0x2ec] sm:$0xf] %v582_v59  ;;  %v584_v60 = vld [vmem:[%s3882_s29 + $0x5e0] sm:$0xf] }
  0x8d   : > { %v586_v61 = vld [vmem:[%s3882_s29 + $0x5e8] sm:$0xf]  ;;  %v588_v62 = vld [vmem:[%s3882_s29 + $0x5f0] sm:$0xf]  ;;  %585 = vst [vmem:[%s3889_s30 + $0x2f0] sm:$0xf] %v584_v60 }
  0x8e   : > { %587 = vst [vmem:[%s3889_s30 + $0x2f4] sm:$0xf] %v586_v61  ;;  %589 = vst [vmem:[%s3889_s30 + $0x2f8] sm:$0xf] %v588_v62  ;;  %v590_v63 = vld [vmem:[%s3882_s29 + $0x5f8] sm:$0xf] }
  0x8f   : > { %v592_v0 = vld [vmem:[%s3882_s29 + $0x600] sm:$0xf]  ;;  %v594_v1 = vld [vmem:[%s3882_s29 + $0x608] sm:$0xf]  ;;  %591 = vst [vmem:[%s3889_s30 + $0x2fc] sm:$0xf] %v590_v63 }
  0x90   : > { %593 = vst [vmem:[%s3889_s30 + $0x300] sm:$0xf] %v592_v0  ;;  %595 = vst [vmem:[%s3889_s30 + $0x304] sm:$0xf] %v594_v1  ;;  %v596_v2 = vld [vmem:[%s3882_s29 + $0x610] sm:$0xf] }
  0x91   : > { %v598_v3 = vld [vmem:[%s3882_s29 + $0x618] sm:$0xf]  ;;  %v600_v4 = vld [vmem:[%s3882_s29 + $0x620] sm:$0xf]  ;;  %597 = vst [vmem:[%s3889_s30 + $0x308] sm:$0xf] %v596_v2 }
  0x92   : > { %599 = vst [vmem:[%s3889_s30 + $0x30c] sm:$0xf] %v598_v3  ;;  %601 = vst [vmem:[%s3889_s30 + $0x310] sm:$0xf] %v600_v4  ;;  %v602_v5 = vld [vmem:[%s3882_s29 + $0x628] sm:$0xf] }
  0x93   : > { %v604_v6 = vld [vmem:[%s3882_s29 + $0x630] sm:$0xf]  ;;  %v606_v7 = vld [vmem:[%s3882_s29 + $0x638] sm:$0xf]  ;;  %603 = vst [vmem:[%s3889_s30 + $0x314] sm:$0xf] %v602_v5 }
  0x94   : > { %605 = vst [vmem:[%s3889_s30 + $0x318] sm:$0xf] %v604_v6  ;;  %607 = vst [vmem:[%s3889_s30 + $0x31c] sm:$0xf] %v606_v7  ;;  %v608_v8 = vld [vmem:[%s3882_s29 + $0x640] sm:$0xf] }
  0x95   : > { %v610_v9 = vld [vmem:[%s3882_s29 + $0x648] sm:$0xf]  ;;  %v612_v10 = vld [vmem:[%s3882_s29 + $0x650] sm:$0xf]  ;;  %609 = vst [vmem:[%s3889_s30 + $0x320] sm:$0xf] %v608_v8 }
  0x96   : > { %611 = vst [vmem:[%s3889_s30 + $0x324] sm:$0xf] %v610_v9  ;;  %613 = vst [vmem:[%s3889_s30 + $0x328] sm:$0xf] %v612_v10  ;;  %v614_v11 = vld [vmem:[%s3882_s29 + $0x658] sm:$0xf] }
  0x97   : > { %v616_v12 = vld [vmem:[%s3882_s29 + $0x660] sm:$0xf]  ;;  %v618_v13 = vld [vmem:[%s3882_s29 + $0x668] sm:$0xf]  ;;  %615 = vst [vmem:[%s3889_s30 + $0x32c] sm:$0xf] %v614_v11 }
  0x98   : > { %617 = vst [vmem:[%s3889_s30 + $0x330] sm:$0xf] %v616_v12  ;;  %619 = vst [vmem:[%s3889_s30 + $0x334] sm:$0xf] %v618_v13  ;;  %v620_v14 = vld [vmem:[%s3882_s29 + $0x670] sm:$0xf] }
  0x99   : > { %v622_v15 = vld [vmem:[%s3882_s29 + $0x678] sm:$0xf]  ;;  %v624_v16 = vld [vmem:[%s3882_s29 + $0x680] sm:$0xf]  ;;  %621 = vst [vmem:[%s3889_s30 + $0x338] sm:$0xf] %v620_v14 }
  0x9a   : > { %623 = vst [vmem:[%s3889_s30 + $0x33c] sm:$0xf] %v622_v15  ;;  %625 = vst [vmem:[%s3889_s30 + $0x340] sm:$0xf] %v624_v16  ;;  %v626_v17 = vld [vmem:[%s3882_s29 + $0x688] sm:$0xf] }
  0x9b   : > { %v628_v18 = vld [vmem:[%s3882_s29 + $0x690] sm:$0xf]  ;;  %v630_v19 = vld [vmem:[%s3882_s29 + $0x698] sm:$0xf]  ;;  %627 = vst [vmem:[%s3889_s30 + $0x344] sm:$0xf] %v626_v17 }
  0x9c   : > { %629 = vst [vmem:[%s3889_s30 + $0x348] sm:$0xf] %v628_v18  ;;  %631 = vst [vmem:[%s3889_s30 + $0x34c] sm:$0xf] %v630_v19  ;;  %v632_v20 = vld [vmem:[%s3882_s29 + $0x6a0] sm:$0xf] }
  0x9d   : > { %v634_v21 = vld [vmem:[%s3882_s29 + $0x6a8] sm:$0xf]  ;;  %v636_v22 = vld [vmem:[%s3882_s29 + $0x6b0] sm:$0xf]  ;;  %633 = vst [vmem:[%s3889_s30 + $0x350] sm:$0xf] %v632_v20 }
  0x9e   : > { %635 = vst [vmem:[%s3889_s30 + $0x354] sm:$0xf] %v634_v21  ;;  %637 = vst [vmem:[%s3889_s30 + $0x358] sm:$0xf] %v636_v22  ;;  %v638_v23 = vld [vmem:[%s3882_s29 + $0x6b8] sm:$0xf] }
  0x9f   : > { %v640_v24 = vld [vmem:[%s3882_s29 + $0x6c0] sm:$0xf]  ;;  %v642_v25 = vld [vmem:[%s3882_s29 + $0x6c8] sm:$0xf]  ;;  %639 = vst [vmem:[%s3889_s30 + $0x35c] sm:$0xf] %v638_v23 }
  0xa0   : > { %641 = vst [vmem:[%s3889_s30 + $0x360] sm:$0xf] %v640_v24  ;;  %643 = vst [vmem:[%s3889_s30 + $0x364] sm:$0xf] %v642_v25  ;;  %v644_v26 = vld [vmem:[%s3882_s29 + $0x6d0] sm:$0xf] }
  0xa1   : > { %v646_v27 = vld [vmem:[%s3882_s29 + $0x6d8] sm:$0xf]  ;;  %v648_v28 = vld [vmem:[%s3882_s29 + $0x6e0] sm:$0xf]  ;;  %645 = vst [vmem:[%s3889_s30 + $0x368] sm:$0xf] %v644_v26 }
  0xa2   : > { %647 = vst [vmem:[%s3889_s30 + $0x36c] sm:$0xf] %v646_v27  ;;  %649 = vst [vmem:[%s3889_s30 + $0x370] sm:$0xf] %v648_v28  ;;  %v650_v29 = vld [vmem:[%s3882_s29 + $0x6e8] sm:$0xf] }
  0xa3   : > { %v652_v30 = vld [vmem:[%s3882_s29 + $0x6f0] sm:$0xf]  ;;  %v654_v31 = vld [vmem:[%s3882_s29 + $0x6f8] sm:$0xf]  ;;  %651 = vst [vmem:[%s3889_s30 + $0x374] sm:$0xf] %v650_v29 }
  0xa4   : > { %653 = vst [vmem:[%s3889_s30 + $0x378] sm:$0xf] %v652_v30  ;;  %655 = vst [vmem:[%s3889_s30 + $0x37c] sm:$0xf] %v654_v31  ;;  %v656_v32 = vld [vmem:[%s3882_s29 + $0x700] sm:$0xf] }
  0xa5   : > { %v658_v33 = vld [vmem:[%s3882_s29 + $0x708] sm:$0xf]  ;;  %v660_v34 = vld [vmem:[%s3882_s29 + $0x710] sm:$0xf]  ;;  %657 = vst [vmem:[%s3889_s30 + $0x380] sm:$0xf] %v656_v32 }
  0xa6   : > { %659 = vst [vmem:[%s3889_s30 + $0x384] sm:$0xf] %v658_v33  ;;  %661 = vst [vmem:[%s3889_s30 + $0x388] sm:$0xf] %v660_v34  ;;  %v662_v35 = vld [vmem:[%s3882_s29 + $0x718] sm:$0xf] }
  0xa7   : > { %v664_v36 = vld [vmem:[%s3882_s29 + $0x720] sm:$0xf]  ;;  %v666_v37 = vld [vmem:[%s3882_s29 + $0x728] sm:$0xf]  ;;  %663 = vst [vmem:[%s3889_s30 + $0x38c] sm:$0xf] %v662_v35 }
  0xa8   : > { %665 = vst [vmem:[%s3889_s30 + $0x390] sm:$0xf] %v664_v36  ;;  %667 = vst [vmem:[%s3889_s30 + $0x394] sm:$0xf] %v666_v37  ;;  %v668_v38 = vld [vmem:[%s3882_s29 + $0x730] sm:$0xf] }
  0xa9   : > { %v670_v39 = vld [vmem:[%s3882_s29 + $0x738] sm:$0xf]  ;;  %v672_v40 = vld [vmem:[%s3882_s29 + $0x740] sm:$0xf]  ;;  %669 = vst [vmem:[%s3889_s30 + $0x398] sm:$0xf] %v668_v38 }
  0xaa   : > { %671 = vst [vmem:[%s3889_s30 + $0x39c] sm:$0xf] %v670_v39  ;;  %673 = vst [vmem:[%s3889_s30 + $0x3a0] sm:$0xf] %v672_v40  ;;  %v674_v41 = vld [vmem:[%s3882_s29 + $0x748] sm:$0xf] }
  0xab   : > { %v676_v42 = vld [vmem:[%s3882_s29 + $0x750] sm:$0xf]  ;;  %v678_v43 = vld [vmem:[%s3882_s29 + $0x758] sm:$0xf]  ;;  %675 = vst [vmem:[%s3889_s30 + $0x3a4] sm:$0xf] %v674_v41 }
  0xac   : > { %677 = vst [vmem:[%s3889_s30 + $0x3a8] sm:$0xf] %v676_v42  ;;  %679 = vst [vmem:[%s3889_s30 + $0x3ac] sm:$0xf] %v678_v43  ;;  %v680_v44 = vld [vmem:[%s3882_s29 + $0x760] sm:$0xf] }
  0xad   : > { %v682_v45 = vld [vmem:[%s3882_s29 + $0x768] sm:$0xf]  ;;  %v684_v46 = vld [vmem:[%s3882_s29 + $0x770] sm:$0xf]  ;;  %681 = vst [vmem:[%s3889_s30 + $0x3b0] sm:$0xf] %v680_v44 }
  0xae   : > { %683 = vst [vmem:[%s3889_s30 + $0x3b4] sm:$0xf] %v682_v45  ;;  %685 = vst [vmem:[%s3889_s30 + $0x3b8] sm:$0xf] %v684_v46  ;;  %v686_v47 = vld [vmem:[%s3882_s29 + $0x778] sm:$0xf] }
  0xaf   : > { %v688_v48 = vld [vmem:[%s3882_s29 + $0x780] sm:$0xf]  ;;  %v690_v49 = vld [vmem:[%s3882_s29 + $0x788] sm:$0xf]  ;;  %687 = vst [vmem:[%s3889_s30 + $0x3bc] sm:$0xf] %v686_v47 }
  0xb0   : > { %689 = vst [vmem:[%s3889_s30 + $0x3c0] sm:$0xf] %v688_v48  ;;  %691 = vst [vmem:[%s3889_s30 + $0x3c4] sm:$0xf] %v690_v49  ;;  %v692_v50 = vld [vmem:[%s3882_s29 + $0x790] sm:$0xf] }
  0xb1   : > { %v694_v51 = vld [vmem:[%s3882_s29 + $0x798] sm:$0xf]  ;;  %v696_v52 = vld [vmem:[%s3882_s29 + $0x7a0] sm:$0xf]  ;;  %693 = vst [vmem:[%s3889_s30 + $0x3c8] sm:$0xf] %v692_v50 }
  0xb2   : > { %695 = vst [vmem:[%s3889_s30 + $0x3cc] sm:$0xf] %v694_v51  ;;  %697 = vst [vmem:[%s3889_s30 + $0x3d0] sm:$0xf] %v696_v52  ;;  %v698_v53 = vld [vmem:[%s3882_s29 + $0x7a8] sm:$0xf] }
  0xb3   : > { %v700_v54 = vld [vmem:[%s3882_s29 + $0x7b0] sm:$0xf]  ;;  %v702_v55 = vld [vmem:[%s3882_s29 + $0x7b8] sm:$0xf]  ;;  %699 = vst [vmem:[%s3889_s30 + $0x3d4] sm:$0xf] %v698_v53 }
  0xb4   : > { %701 = vst [vmem:[%s3889_s30 + $0x3d8] sm:$0xf] %v700_v54  ;;  %703 = vst [vmem:[%s3889_s30 + $0x3dc] sm:$0xf] %v702_v55  ;;  %v704_v56 = vld [vmem:[%s3882_s29 + $0x7c0] sm:$0xf] }
  0xb5   : > { %v706_v57 = vld [vmem:[%s3882_s29 + $0x7c8] sm:$0xf]  ;;  %v708_v58 = vld [vmem:[%s3882_s29 + $0x7d0] sm:$0xf]  ;;  %705 = vst [vmem:[%s3889_s30 + $0x3e0] sm:$0xf] %v704_v56 }
  0xb6   : > { %707 = vst [vmem:[%s3889_s30 + $0x3e4] sm:$0xf] %v706_v57  ;;  %709 = vst [vmem:[%s3889_s30 + $0x3e8] sm:$0xf] %v708_v58  ;;  %v710_v59 = vld [vmem:[%s3882_s29 + $0x7d8] sm:$0xf] }
  0xb7   : > { %v712_v60 = vld [vmem:[%s3882_s29 + $0x7e0] sm:$0xf]  ;;  %v714_v61 = vld [vmem:[%s3882_s29 + $0x7e8] sm:$0xf]  ;;  %711 = vst [vmem:[%s3889_s30 + $0x3ec] sm:$0xf] %v710_v59 }
  0xb8   : > { %713 = vst [vmem:[%s3889_s30 + $0x3f0] sm:$0xf] %v712_v60  ;;  %715 = vst [vmem:[%s3889_s30 + $0x3f4] sm:$0xf] %v714_v61  ;;  %v716_v62 = vld [vmem:[%s3882_s29 + $0x7f0] sm:$0xf] }
  0xb9   : > { %v718_v63 = vld [vmem:[%s3882_s29 + $0x7f8] sm:$0xf]  ;;  %v720_v0 = vld [vmem:[%s3882_s29 + $0x800] sm:$0xf]  ;;  %717 = vst [vmem:[%s3889_s30 + $0x3f8] sm:$0xf] %v716_v62 }
  0xba   : > { %719 = vst [vmem:[%s3889_s30 + $0x3fc] sm:$0xf] %v718_v63  ;;  %721 = vst [vmem:[%s3889_s30 + $0x400] sm:$0xf] %v720_v0  ;;  %v722_v1 = vld [vmem:[%s3882_s29 + $0x808] sm:$0xf] }
  0xbb   : > { %v724_v2 = vld [vmem:[%s3882_s29 + $0x810] sm:$0xf]  ;;  %v726_v3 = vld [vmem:[%s3882_s29 + $0x818] sm:$0xf]  ;;  %723 = vst [vmem:[%s3889_s30 + $0x404] sm:$0xf] %v722_v1 }
  0xbc   : > { %725 = vst [vmem:[%s3889_s30 + $0x408] sm:$0xf] %v724_v2  ;;  %727 = vst [vmem:[%s3889_s30 + $0x40c] sm:$0xf] %v726_v3  ;;  %v728_v4 = vld [vmem:[%s3882_s29 + $0x820] sm:$0xf] }
  0xbd   : > { %v730_v5 = vld [vmem:[%s3882_s29 + $0x828] sm:$0xf]  ;;  %v732_v6 = vld [vmem:[%s3882_s29 + $0x830] sm:$0xf]  ;;  %729 = vst [vmem:[%s3889_s30 + $0x410] sm:$0xf] %v728_v4 }
  0xbe   : > { %731 = vst [vmem:[%s3889_s30 + $0x414] sm:$0xf] %v730_v5  ;;  %733 = vst [vmem:[%s3889_s30 + $0x418] sm:$0xf] %v732_v6  ;;  %v734_v7 = vld [vmem:[%s3882_s29 + $0x838] sm:$0xf] }
  0xbf   : > { %v736_v8 = vld [vmem:[%s3882_s29 + $0x840] sm:$0xf]  ;;  %v738_v9 = vld [vmem:[%s3882_s29 + $0x848] sm:$0xf]  ;;  %735 = vst [vmem:[%s3889_s30 + $0x41c] sm:$0xf] %v734_v7 }
  0xc0   : > { %737 = vst [vmem:[%s3889_s30 + $0x420] sm:$0xf] %v736_v8  ;;  %739 = vst [vmem:[%s3889_s30 + $0x424] sm:$0xf] %v738_v9  ;;  %v740_v10 = vld [vmem:[%s3882_s29 + $0x850] sm:$0xf] }
  0xc1   : > { %v742_v11 = vld [vmem:[%s3882_s29 + $0x858] sm:$0xf]  ;;  %v744_v12 = vld [vmem:[%s3882_s29 + $0x860] sm:$0xf]  ;;  %741 = vst [vmem:[%s3889_s30 + $0x428] sm:$0xf] %v740_v10 }
  0xc2   : > { %743 = vst [vmem:[%s3889_s30 + $0x42c] sm:$0xf] %v742_v11  ;;  %745 = vst [vmem:[%s3889_s30 + $0x430] sm:$0xf] %v744_v12  ;;  %v746_v13 = vld [vmem:[%s3882_s29 + $0x868] sm:$0xf] }
  0xc3   : > { %v748_v14 = vld [vmem:[%s3882_s29 + $0x870] sm:$0xf]  ;;  %v750_v15 = vld [vmem:[%s3882_s29 + $0x878] sm:$0xf]  ;;  %747 = vst [vmem:[%s3889_s30 + $0x434] sm:$0xf] %v746_v13 }
  0xc4   : > { %749 = vst [vmem:[%s3889_s30 + $0x438] sm:$0xf] %v748_v14  ;;  %751 = vst [vmem:[%s3889_s30 + $0x43c] sm:$0xf] %v750_v15  ;;  %v752_v16 = vld [vmem:[%s3882_s29 + $0x880] sm:$0xf] }
  0xc5   : > { %v754_v17 = vld [vmem:[%s3882_s29 + $0x888] sm:$0xf]  ;;  %v756_v18 = vld [vmem:[%s3882_s29 + $0x890] sm:$0xf]  ;;  %753 = vst [vmem:[%s3889_s30 + $0x440] sm:$0xf] %v752_v16 }
  0xc6   : > { %755 = vst [vmem:[%s3889_s30 + $0x444] sm:$0xf] %v754_v17  ;;  %757 = vst [vmem:[%s3889_s30 + $0x448] sm:$0xf] %v756_v18  ;;  %v758_v19 = vld [vmem:[%s3882_s29 + $0x898] sm:$0xf] }
  0xc7   : > { %v760_v20 = vld [vmem:[%s3882_s29 + $0x8a0] sm:$0xf]  ;;  %v762_v21 = vld [vmem:[%s3882_s29 + $0x8a8] sm:$0xf]  ;;  %759 = vst [vmem:[%s3889_s30 + $0x44c] sm:$0xf] %v758_v19 }
  0xc8   : > { %761 = vst [vmem:[%s3889_s30 + $0x450] sm:$0xf] %v760_v20  ;;  %763 = vst [vmem:[%s3889_s30 + $0x454] sm:$0xf] %v762_v21  ;;  %v764_v22 = vld [vmem:[%s3882_s29 + $0x8b0] sm:$0xf] }
  0xc9   : > { %v766_v23 = vld [vmem:[%s3882_s29 + $0x8b8] sm:$0xf]  ;;  %v768_v24 = vld [vmem:[%s3882_s29 + $0x8c0] sm:$0xf]  ;;  %765 = vst [vmem:[%s3889_s30 + $0x458] sm:$0xf] %v764_v22 }
  0xca   : > { %767 = vst [vmem:[%s3889_s30 + $0x45c] sm:$0xf] %v766_v23  ;;  %769 = vst [vmem:[%s3889_s30 + $0x460] sm:$0xf] %v768_v24  ;;  %v770_v25 = vld [vmem:[%s3882_s29 + $0x8c8] sm:$0xf] }
  0xcb   : > { %v772_v26 = vld [vmem:[%s3882_s29 + $0x8d0] sm:$0xf]  ;;  %v774_v27 = vld [vmem:[%s3882_s29 + $0x8d8] sm:$0xf]  ;;  %771 = vst [vmem:[%s3889_s30 + $0x464] sm:$0xf] %v770_v25 }
  0xcc   : > { %773 = vst [vmem:[%s3889_s30 + $0x468] sm:$0xf] %v772_v26  ;;  %775 = vst [vmem:[%s3889_s30 + $0x46c] sm:$0xf] %v774_v27  ;;  %v776_v28 = vld [vmem:[%s3882_s29 + $0x8e0] sm:$0xf] }
  0xcd   : > { %v778_v29 = vld [vmem:[%s3882_s29 + $0x8e8] sm:$0xf]  ;;  %v780_v30 = vld [vmem:[%s3882_s29 + $0x8f0] sm:$0xf]  ;;  %777 = vst [vmem:[%s3889_s30 + $0x470] sm:$0xf] %v776_v28 }
  0xce   : > { %779 = vst [vmem:[%s3889_s30 + $0x474] sm:$0xf] %v778_v29  ;;  %781 = vst [vmem:[%s3889_s30 + $0x478] sm:$0xf] %v780_v30  ;;  %v782_v31 = vld [vmem:[%s3882_s29 + $0x8f8] sm:$0xf] }
  0xcf   : > { %783 = vst [vmem:[%s3889_s30 + $0x47c] sm:$0xf] %v782_v31 }
  0xd0 PF: > { %p3204_p6 = scmp.ge.s32.totalorder %s3812_s19, 1  ;;  %p1399_p7 = scmp.lt.s32.totalorder %s3812_s19, 3 }
  0xd2   : > { %p1400_p8 = pnand %p3204_p6, %p1399_p7 }
  0xd3   : > { %s1406_s5 = sand.u32 (!%p1400_p8), 1, %s3796_s15   ;;  %p1455_p9 = scmp.lt.s32.totalorder (!%p1400_p8), %s3804_s17, 1 }
  0xd4   : > { %1403 = sbr.rel (%p1400_p8) target bundleno = 584 (0x248), region = 73 }
  0xd5   : > { %s3571_s10 = smul.u32 (!%p1400_p8), 1152, %s1406_s5 }
  0xd7   : > { %s4479_s11 = scalar_lea.vmem (!%p1400_p8), [#allocation2], %s3571_s10 }
  0xd9   : > { %v4468_v32 = vld [vmem:[%s4710_s0] sm:$0xff]  ;;  %v4473_v33 = vld [vmem:[%s4710_s0 + $0x8] sm:$0xff]  ;;  %v3612_v36 = vld [vmem:[%s4479_s11 + $0x78] sm:$0xff]   ;;  %s4722_s17 = smov (!%p1455_p9, %s3804_s17), 1 }
  0xda   : > { %v3209_v34 = vcombine.high %v4468_v32, %v4468_v32  ;;  %v3211_v35 = vcombine.high %v4473_v33, %v4473_v33  ;;  %v3613_v37 = vld [vmem:[%s4479_s11 + $0x38] sm:$0xff]   ;;  %3372 = vmatprep.subr.bf16.mxu0 %v3612_v36  ;;  %v3616_v40 = vld [vmem:[%s4479_s11 + $0x70] sm:$0xff]   ;;  %v3620_v44 = vld [vmem:[%s4479_s11 + $0x68] sm:$0xff]   ;;  %v3208_v5 = vcombine.low %v4468_v32, %v4468_v32  ;;  %v3210_v9 = vcombine.low %v4473_v33, %v4473_v33  ;;  %s1457_s8 = scalar_lea.vmem %s4712_s2, %s4722_s17  ;;  %s3205_s9 = sshll.u32 %s4722_s17, 2 }
  0xdb   : > { %v3614_v38 = vld [vmem:[%s4479_s11 + $0xf8] sm:$0xff]   ;;  %3373 = vmatpush3.bf16.msra.mxu0 %v3613_v37  ;;  %v3617_v41 = vld [vmem:[%s4479_s11 + $0x30] sm:$0xff]   ;;  %v3621_v45 = vld [vmem:[%s4479_s11 + $0x28] sm:$0xff]   ;;  %s1465_s12 = scalar_lea.vmem %s4713_s3, %s3205_s9  ;;  %s1473_s14 = scalar_lea.vmem %s4714_s4, %s3205_s9 }
  0xdc   : > { %2738 = vmatprep.mubr.bf16.mxu0 %v3209_v34  ;;  %2778 = vmatprep.mubr.bf16.mxu1 %v3211_v35  ;;  %v3615_v39 = vld [vmem:[%s4479_s11 + $0xb8] sm:$0xff]   ;;  %v3618_v42 = vld [vmem:[%s4479_s11 + $0xf0] sm:$0xff]   ;;  %v3622_v46 = vld [vmem:[%s4479_s11 + $0xe8] sm:$0xff]  }
  0xdd   : > { %3394 = vmatprep.subr.bf16.mxu1 %v3614_v38  ;;  %3374 = vmatprep.subr.bf16.mxu0 %v3616_v40  ;;  %v3619_v43 = vld [vmem:[%s4479_s11 + $0xb0] sm:$0xff]   ;;  %v3623_v47 = vld [vmem:[%s4479_s11 + $0xa8] sm:$0xff]   ;;  %v3624_v48 = vld [vmem:[%s4479_s11 + $0x60] sm:$0xff]  }
  0xde   : > { %3395 = vmatpush3.bf16.msra.mxu1 %v3615_v39  ;;  %v3625_v49 = vld [vmem:[%s4479_s11 + $0x20] sm:$0xff]   ;;  %v3628_v52 = vld [vmem:[%s4479_s11 + $0x58] sm:$0xff]   ;;  %v3632_v56 = vld [vmem:[%s4479_s11 + $0x50] sm:$0xff]  }
  0xdf   : > { %3375 = vmatpush3.bf16.msra.mxu0 %v3617_v41  ;;  %3396 = vmatprep.subr.bf16.mxu1 %v3618_v42  ;;  %v3626_v50 = vld [vmem:[%s4479_s11 + $0xe0] sm:$0xff]   ;;  %v3629_v53 = vld [vmem:[%s4479_s11 + $0x18] sm:$0xff]   ;;  %v3633_v57 = vld [vmem:[%s4479_s11 + $0x10] sm:$0xff]  }
  0xe0   : > { %3376 = vmatprep.subr.bf16.mxu0 %v3620_v44  ;;  %v3627_v51 = vld [vmem:[%s4479_s11 + $0xa0] sm:$0xff]   ;;  %v3630_v54 = vld [vmem:[%s4479_s11 + $0xd8] sm:$0xff]   ;;  %v3634_v58 = vld [vmem:[%s4479_s11 + $0xd0] sm:$0xff]  }
  0xe1   : > { %v3631_v55 = vld [vmem:[%s4479_s11 + $0x98] sm:$0xff]   ;;  %v3635_v59 = vld [vmem:[%s4479_s11 + $0x90] sm:$0xff]   ;;  %v3636_v60 = vld [vmem:[%s4479_s11 + $0x48] sm:$0xff]  }
  0xe2   : > { %3397 = vmatpush3.bf16.msra.mxu1 %v3619_v43  ;;  %v3637_v61 = vld [vmem:[%s4479_s11 + $0x8] sm:$0xff]   ;;  %v4511_v63 = vld [vmem:[%s4710_s0 + $0x10] sm:$0xff]  ;;  %v3640_v1 = vld [vmem:[%s4479_s11 + $0x40] sm:$0xff]  }
  0xe3   : > { %3377 = vmatpush3.bf16.msra.mxu0 %v3621_v45  ;;  %3398 = vmatprep.subr.bf16.mxu1 %v3622_v46  ;;  %v3638_v62 = vld [vmem:[%s4479_s11 + $0xc8] sm:$0xff]   ;;  %v4518_v2 = vld [vmem:[%s4710_s0 + $0x18] sm:$0xff]  ;;  %v3641_v3 = vld [vmem:[%s4479_s11] sm:$0xff]   ;;  %v3213_v7 = vcombine.high %v4511_v63, %v4511_v63  ;;  %v3212_v43 = vcombine.low %v4511_v63, %v4511_v63 }
  0xe4   : > { %3378 = vmatprep.subr.bf16.mxu0 %v3624_v48  ;;  %v3639_v0 = vld [vmem:[%s4479_s11 + $0x88] sm:$0xff]   ;;  %v3642_v4 = vld [vmem:[%s4479_s11 + $0xc0] sm:$0xff]   ;;  %v3646_v8 = vld [vmem:[%s4479_s11 + $0x178] sm:$0xff]   ;;  %v3215_v11 = vcombine.high %v4518_v2, %v4518_v2 }
  0xe5   : > { %v3645_v6 = vld [vmem:[%s4479_s11 + $0x80] sm:$0xff]   ;;  %v3649_v10 = vld [vmem:[%s4479_s11 + $0x138] sm:$0xff]   ;;  %v3652_v14 = vld [vmem:[%s4479_s11 + $0x170] sm:$0xff]  }
  0xe6   : > { %3399 = vmatpush3.bf16.msra.mxu1 %v3623_v47  ;;  %v3650_v12 = vld [vmem:[%s4479_s11 + $0x1f8] sm:$0xff]   ;;  %v3653_v15 = vld [vmem:[%s4479_s11 + $0x130] sm:$0xff]   ;;  %v3656_v18 = vld [vmem:[%s4479_s11 + $0x168] sm:$0xff]   ;;  %v3214_v47 = vcombine.low %v4518_v2, %v4518_v2 }
  0xe7   : > { %3379 = vmatpush3.bf16.msra.mxu0 %v3625_v49  ;;  %3400 = vmatprep.subr.bf16.mxu1 %v3626_v50  ;;  %v3651_v13 = vld [vmem:[%s4479_s11 + $0x1b8] sm:$0xff]   ;;  %v3654_v16 = vld [vmem:[%s4479_s11 + $0x1f0] sm:$0xff]   ;;  %v3657_v19 = vld [vmem:[%s4479_s11 + $0x128] sm:$0xff]  }
  0xe8   : > { %3380 = vmatprep.subr.bf16.mxu0 %v3628_v52  ;;  %v3655_v17 = vld [vmem:[%s4479_s11 + $0x1b0] sm:$0xff]   ;;  %v3658_v20 = vld [vmem:[%s4479_s11 + $0x1e8] sm:$0xff]   ;;  %v3660_v22 = vld [vmem:[%s4479_s11 + $0x160] sm:$0xff]  }
  0xe9   : > { %v3659_v21 = vld [vmem:[%s4479_s11 + $0x1a8] sm:$0xff]   ;;  %v3661_v23 = vld [vmem:[%s4479_s11 + $0x120] sm:$0xff]   ;;  %v3664_v26 = vld [vmem:[%s4479_s11 + $0x158] sm:$0xff]  }
  0xea   : > { %3401 = vmatpush3.bf16.msra.mxu1 %v3627_v51  ;;  %v3662_v24 = vld [vmem:[%s4479_s11 + $0x1e0] sm:$0xff]   ;;  %v3665_v27 = vld [vmem:[%s4479_s11 + $0x118] sm:$0xff]   ;;  %v3668_v30 = vld [vmem:[%s4479_s11 + $0x150] sm:$0xff]  }
  0xeb   : > { %3381 = vmatpush3.bf16.msra.mxu0 %v3629_v53  ;;  %3402 = vmatprep.subr.bf16.mxu1 %v3630_v54  ;;  %v3663_v25 = vld [vmem:[%s4479_s11 + $0x1a0] sm:$0xff]   ;;  %v3666_v28 = vld [vmem:[%s4479_s11 + $0x1d8] sm:$0xff]   ;;  %v3669_v31 = vld [vmem:[%s4479_s11 + $0x110] sm:$0xff]  }
  0xec   : > { %3382 = vmatprep.subr.bf16.mxu0 %v3632_v56  ;;  %v3667_v29 = vld [vmem:[%s4479_s11 + $0x198] sm:$0xff]   ;;  %v3670_v32 = vld [vmem:[%s4479_s11 + $0x1d0] sm:$0xff]   ;;  %v3672_v34 = vld [vmem:[%s4479_s11 + $0x148] sm:$0xff]  }
  0xed   : > { %v3671_v33 = vld [vmem:[%s4479_s11 + $0x190] sm:$0xff]   ;;  %v3673_v35 = vld [vmem:[%s4479_s11 + $0x108] sm:$0xff]   ;;  %v4561_v37 = vld [vmem:[%s4710_s0 + $0x20] sm:$0xff] }
  0xee   : > { %3403 = vmatpush3.bf16.msra.mxu1 %v3631_v55  ;;  %v3674_v36 = vld [vmem:[%s4479_s11 + $0x1c8] sm:$0xff]   ;;  %v3676_v39 = vld [vmem:[%s4479_s11 + $0x140] sm:$0xff]   ;;  %v3217_v45 = vcombine.high %v4561_v37, %v4561_v37  ;;  %v3682_v46 = vld [vmem:[%s4479_s11 + $0x278] sm:$0xff]  }
  0xef   : > { %3383 = vmatpush3.bf16.msra.mxu0 %v3633_v57  ;;  %3404 = vmatprep.subr.bf16.mxu1 %v3634_v58  ;;  %v3675_v38 = vld [vmem:[%s4479_s11 + $0x188] sm:$0xff]   ;;  %v3677_v41 = vld [vmem:[%s4479_s11 + $0x100] sm:$0xff]   ;;  %v3685_v48 = vld [vmem:[%s4479_s11 + $0x238] sm:$0xff]  }
  0xf0   : > { %3384 = vmatprep.subr.bf16.mxu0 %v3636_v60  ;;  %v4568_v40 = vld [vmem:[%s4710_s0 + $0x28] sm:$0xff]  ;;  %v3678_v42 = vld [vmem:[%s4479_s11 + $0x1c0] sm:$0xff]   ;;  %v3686_v50 = vld [vmem:[%s4479_s11 + $0x2f8] sm:$0xff]  }
  0xf1   : > { %v3681_v44 = vld [vmem:[%s4479_s11 + $0x180] sm:$0xff]   ;;  %v3219_v49 = vcombine.high %v4568_v40, %v4568_v40  ;;  %v3687_v51 = vld [vmem:[%s4479_s11 + $0x2b8] sm:$0xff]   ;;  %v3688_v52 = vld [vmem:[%s4479_s11 + $0x270] sm:$0xff]  }
  0xf2   : > { %3405 = vmatpush3.bf16.msra.mxu1 %v3635_v59  ;;  %v3689_v53 = vld [vmem:[%s4479_s11 + $0x230] sm:$0xff]   ;;  %v3692_v56 = vld [vmem:[%s4479_s11 + $0x268] sm:$0xff]   ;;  %v3696_v60 = vld [vmem:[%s4479_s11 + $0x260] sm:$0xff]  }
  0xf3   : > { %3385 = vmatpush3.bf16.msra.mxu0 %v3637_v61  ;;  %3406 = vmatprep.subr.bf16.mxu1 %v3638_v62  ;;  %v3690_v54 = vld [vmem:[%s4479_s11 + $0x2f0] sm:$0xff]   ;;  %v3693_v57 = vld [vmem:[%s4479_s11 + $0x228] sm:$0xff]   ;;  %v3697_v61 = vld [vmem:[%s4479_s11 + $0x220] sm:$0xff]  }
  0xf4   : > { %3386 = vmatprep.subr.bf16.mxu0 %v3640_v1  ;;  %v3691_v55 = vld [vmem:[%s4479_s11 + $0x2b0] sm:$0xff]   ;;  %v3694_v58 = vld [vmem:[%s4479_s11 + $0x2e8] sm:$0xff]   ;;  %v3698_v62 = vld [vmem:[%s4479_s11 + $0x2e0] sm:$0xff]  }
  0xf5   : > { %v3695_v59 = vld [vmem:[%s4479_s11 + $0x2a8] sm:$0xff]   ;;  %v3699_v63 = vld [vmem:[%s4479_s11 + $0x2a0] sm:$0xff]   ;;  %v3701_v1 = vld [vmem:[%s4479_s11 + $0x218] sm:$0xff]  }
  0xf6   : > { %3407 = vmatpush3.bf16.msra.mxu1 %v3639_v0  ;;  %v3700_v0 = vld [vmem:[%s4479_s11 + $0x258] sm:$0xff]  }
  0xf7   : > { %3387 = vmatpush3.bf16.msra.mxu0 %v3641_v3  ;;  %3408 = vmatprep.subr.bf16.mxu1 %v3642_v4  ;;  %v3702_v2 = vld [vmem:[%s4479_s11 + $0x2d8] sm:$0xff]   ;;  %v3704_v4 = vld [vmem:[%s4479_s11 + $0x250] sm:$0xff]  }
  0xf8   : > { %3416 = vmatprep.subr.bf16.mxu0 %v3646_v8  ;;  %v3703_v3 = vld [vmem:[%s4479_s11 + $0x298] sm:$0xff]   ;;  %v3708_v8 = vld [vmem:[%s4479_s11 + $0x248] sm:$0xff]  }
  0xfa   : > { %3409 = vmatpush3.bf16.msra.mxu1 %v3645_v6  ;;  %2739 = vmatmul.mubr.bf16.vlgmr.msra.gmra.mxu0 %v3208_v5  ;;  %v3705_v5 = vld [vmem:[%s4479_s11 + $0x210] sm:$0xff]  }
  0xfb   : > { %3417 = vmatpush3.bf16.msra.mxu0 %v3649_v10  ;;  %2818 = vmatprep.mubr.bf16.mxu0 %v3213_v7  ;;  %v3706_v6 = vld [vmem:[%s4479_s11 + $0x2d0] sm:$0xff]   ;;  %v3710_v10 = vld [vmem:[%s4479_s11 + $0x2c8] sm:$0xff]  }
  0xfc   : > { %3438 = vmatprep.subr.bf16.mxu1 %v3650_v12  ;;  %3418 = vmatprep.subr.bf16.mxu0 %v3652_v14  ;;  %v3707_v7 = vld [vmem:[%s4479_s11 + $0x290] sm:$0xff]   ;;  %v3711_v12 = vld [vmem:[%s4479_s11 + $0x288] sm:$0xff]   ;;  %v3713_v14 = vld [vmem:[%s4479_s11 + $0x200] sm:$0xff]  }
  0xfd   : > { %2779 = vmatmul.mubr.bf16.vlgmr.msra.gmra.mxu1 %v3210_v9  ;;  %v3709_v9 = vld [vmem:[%s4479_s11 + $0x208] sm:$0xff]  }
  0xfe   : > { %3439 = vmatpush3.bf16.msra.mxu1 %v3651_v13  ;;  %2858 = vmatprep.mubr.bf16.mxu1 %v3215_v11  ;;  %v4611_v11 = vld [vmem:[%s4710_s0 + $0x30] sm:$0xff]  ;;  %v3712_v13 = vld [vmem:[%s4479_s11 + $0x240] sm:$0xff]  }
  0xff   : > { %3419 = vmatpush3.bf16.msra.mxu0 %v3653_v15  ;;  %3440 = vmatprep.subr.bf16.mxu1 %v3654_v16  ;;  %v3714_v15 = vld [vmem:[%s4479_s11 + $0x2c0] sm:$0xff]   ;;  %v3216_v16 = vcombine.low %v4561_v37, %v4561_v37  ;;  %v3737_v37 = vld [vmem:[%s4479_s11 + $0x318] sm:$0xff]  }
 0x100   : > { %3420 = vmatprep.subr.bf16.mxu0 %v3656_v18  ;;  %v3221_v18 = vcombine.high %v4611_v11, %v4611_v11 }
 0x102   : > { %3441 = vmatpush3.bf16.msra.mxu1 %v3655_v17  ;;  %v3717_v17 = vld [vmem:[%s4479_s11 + $0x280] sm:$0xff]  }
 0x103   : > { %3421 = vmatpush3.bf16.msra.mxu0 %v3657_v19  ;;  %3442 = vmatprep.subr.bf16.mxu1 %v3658_v20  ;;  %v3718_v19 = vld [vmem:[%s4479_s11 + $0x378] sm:$0xff]   ;;  %v3218_v20 = vcombine.low %v4568_v40, %v4568_v40  ;;  %v3740_v40 = vld [vmem:[%s4479_s11 + $0x350] sm:$0xff]  }
 0x104   : > { %3422 = vmatprep.subr.bf16.mxu0 %v3660_v22  ;;  %v3722_v22 = vld [vmem:[%s4479_s11 + $0x3f8] sm:$0xff]  }
 0x106   : > { %3443 = vmatpush3.bf16.msra.mxu1 %v3659_v21  ;;  %v3721_v21 = vld [vmem:[%s4479_s11 + $0x338] sm:$0xff]  }
 0x107   : > { %3423 = vmatpush3.bf16.msra.mxu0 %v3661_v23  ;;  %3444 = vmatprep.subr.bf16.mxu1 %v3662_v24  ;;  %v3723_v23 = vld [vmem:[%s4479_s11 + $0x3b8] sm:$0xff]   ;;  %v3724_v24 = vld [vmem:[%s4479_s11 + $0x370] sm:$0xff]  }
 0x108   : > { %3424 = vmatprep.subr.bf16.mxu0 %v3664_v26  ;;  %v3726_v26 = vld [vmem:[%s4479_s11 + $0x3f0] sm:$0xff]  }
 0x10a   : > { %3445 = vmatpush3.bf16.msra.mxu1 %v3663_v25  ;;  %v3725_v25 = vld [vmem:[%s4479_s11 + $0x330] sm:$0xff]  }
 0x10b   : > { %3425 = vmatpush3.bf16.msra.mxu0 %v3665_v27  ;;  %3446 = vmatprep.subr.bf16.mxu1 %v3666_v28  ;;  %v3727_v27 = vld [vmem:[%s4479_s11 + $0x3b0] sm:$0xff]   ;;  %v3728_v28 = vld [vmem:[%s4479_s11 + $0x368] sm:$0xff]  }
 0x10c   : > { %3426 = vmatprep.subr.bf16.mxu0 %v3668_v30  ;;  %v3730_v30 = vld [vmem:[%s4479_s11 + $0x3e8] sm:$0xff]  }
 0x10e   : > { %3447 = vmatpush3.bf16.msra.mxu1 %v3667_v29  ;;  %v3729_v29 = vld [vmem:[%s4479_s11 + $0x328] sm:$0xff]  }
 0x10f   : > { %3427 = vmatpush3.bf16.msra.mxu0 %v3669_v31  ;;  %3448 = vmatprep.subr.bf16.mxu1 %v3670_v32  ;;  %v3731_v31 = vld [vmem:[%s4479_s11 + $0x3a8] sm:$0xff]   ;;  %v3732_v32 = vld [vmem:[%s4479_s11 + $0x360] sm:$0xff]  }
 0x110   : > { %3428 = vmatprep.subr.bf16.mxu0 %v3672_v34  ;;  %v3734_v34 = vld [vmem:[%s4479_s11 + $0x3e0] sm:$0xff]  }
 0x112   : > { %3449 = vmatpush3.bf16.msra.mxu1 %v3671_v33  ;;  %v3733_v33 = vld [vmem:[%s4479_s11 + $0x320] sm:$0xff]  }
 0x113   : > { %3429 = vmatpush3.bf16.msra.mxu0 %v3673_v35  ;;  %3450 = vmatprep.subr.bf16.mxu1 %v3674_v36  ;;  %v3735_v35 = vld [vmem:[%s4479_s11 + $0x3a0] sm:$0xff]   ;;  %v3736_v36 = vld [vmem:[%s4479_s11 + $0x358] sm:$0xff]  }
 0x114   : > { %3430 = vmatprep.subr.bf16.mxu0 %v3676_v39  ;;  %v3739_v39 = vld [vmem:[%s4479_s11 + $0x398] sm:$0xff]  }
 0x116   : > { %3451 = vmatpush3.bf16.msra.mxu1 %v3675_v38  ;;  %v3738_v38 = vld [vmem:[%s4479_s11 + $0x3d8] sm:$0xff]  }
 0x117   : > { %3431 = vmatpush3.bf16.msra.mxu0 %v3677_v41  ;;  %3452 = vmatprep.subr.bf16.mxu1 %v3678_v42  ;;  %v3741_v41 = vld [vmem:[%s4479_s11 + $0x310] sm:$0xff]  }
 0x118   : > { %3460 = vmatprep.subr.bf16.mxu0 %v3682_v46  ;;  %v3742_v42 = vld [vmem:[%s4479_s11 + $0x3d0] sm:$0xff]   ;;  %v3746_v46 = vld [vmem:[%s4479_s11 + $0x3c8] sm:$0xff]  }
 0x11a   : > { %3453 = vmatpush3.bf16.msra.mxu1 %v3681_v44  ;;  %2819 = vmatmul.mubr.bf16.vlgmr.msra.gmra.mxu0 %v3212_v43  ;;  %v3743_v43 = vld [vmem:[%s4479_s11 + $0x390] sm:$0xff]   ;;  %v3744_v44 = vld [vmem:[%s4479_s11 + $0x348] sm:$0xff]  }
 0x11b   : > { %3461 = vmatpush3.bf16.msra.mxu0 %v3685_v48  ;;  %2898 = vmatprep.mubr.bf16.mxu0 %v3217_v45  ;;  %v3745_v45 = vld [vmem:[%s4479_s11 + $0x308] sm:$0xff]   ;;  %v3748_v48 = vld [vmem:[%s4479_s11 + $0x340] sm:$0xff]  }
 0x11c   : > { %3482 = vmatprep.subr.bf16.mxu1 %v3686_v50  ;;  %3462 = vmatprep.subr.bf16.mxu0 %v3688_v52  ;;  %v3750_v50 = vld [vmem:[%s4479_s11 + $0x3c0] sm:$0xff]  }
 0x11d   : > { %2859 = vmatmul.mubr.bf16.vlgmr.msra.gmra.mxu1 %v3214_v47  ;;  %v3747_v47 = vld [vmem:[%s4479_s11 + $0x388] sm:$0xff]   ;;  %v3753_v52 = vld [vmem:[%s4479_s11 + $0x380] sm:$0xff]  }
 0x11e   : > { %3483 = vmatpush3.bf16.msra.mxu1 %v3687_v51  ;;  %2938 = vmatprep.mubr.bf16.mxu1 %v3219_v49  ;;  %v3749_v49 = vld [vmem:[%s4479_s11 + $0x300] sm:$0xff]   ;;  %v3220_v51 = vcombine.low %v4611_v11, %v4611_v11 }
 0x11f   : > { %3463 = vmatpush3.bf16.msra.mxu0 %v3689_v53  ;;  %3484 = vmatprep.subr.bf16.mxu1 %v3690_v54  ;;  %v3754_v53 = vld [vmem:[%s4479_s11 + $0x478] sm:$0xff]  }
 0x120   : > { %3464 = vmatprep.subr.bf16.mxu0 %v3692_v56  ;;  %v1482_v54 = vld [vmem:[%s4710_s0 + $0x38] sm:$0xff] }
 0x121   : > { %v3223_v56 = vcombine.high %v1482_v54, %v1482_v54 }
 0x122   : > { %3485 = vmatpush3.bf16.msra.mxu1 %v3691_v55  ;;  %v3222_v55 = vcombine.low %v1482_v54, %v1482_v54 }
 0x123   : > { %3465 = vmatpush3.bf16.msra.mxu0 %v3693_v57  ;;  %3486 = vmatprep.subr.bf16.mxu1 %v3694_v58  ;;  %v3757_v57 = vld [vmem:[%s4479_s11 + $0x438] sm:$0xff]   ;;  %v3758_v58 = vld [vmem:[%s4479_s11 + $0x470] sm:$0xff]  }
 0x124   : > { %3466 = vmatprep.subr.bf16.mxu0 %v3696_v60  ;;  %v3760_v60 = vld [vmem:[%s4479_s11 + $0x468] sm:$0xff]  }
 0x126   : > { %3487 = vmatpush3.bf16.msra.mxu1 %v3695_v59  ;;  %v3759_v59 = vld [vmem:[%s4479_s11 + $0x430] sm:$0xff]  }
 0x127   : > { %3467 = vmatpush3.bf16.msra.mxu0 %v3697_v61  ;;  %3488 = vmatprep.subr.bf16.mxu1 %v3698_v62  ;;  %v3761_v61 = vld [vmem:[%s4479_s11 + $0x428] sm:$0xff]   ;;  %v3762_v62 = vld [vmem:[%s4479_s11 + $0x460] sm:$0xff]  }
 0x128   : > { %3468 = vmatprep.subr.bf16.mxu0 %v3700_v0  ;;  %v3764_v0 = vld [vmem:[%s4479_s11 + $0x458] sm:$0xff]  }
 0x12a   : > { %3489 = vmatpush3.bf16.msra.mxu1 %v3699_v63  ;;  %v3763_v63 = vld [vmem:[%s4479_s11 + $0x420] sm:$0xff]  }
 0x12b   : > { %3469 = vmatpush3.bf16.msra.mxu0 %v3701_v1  ;;  %3490 = vmatprep.subr.bf16.mxu1 %v3702_v2  ;;  %v3765_v1 = vld [vmem:[%s4479_s11 + $0x418] sm:$0xff]   ;;  %v1483_v2 = vld [vmem:[%s4710_s0 + $0x40] sm:$0xff] }
 0x12c   : > { %3470 = vmatprep.subr.bf16.mxu0 %v3704_v4  ;;  %v3225_v4 = vcombine.high %v1483_v2, %v1483_v2 }
 0x12e   : > { %3491 = vmatpush3.bf16.msra.mxu1 %v3703_v3  ;;  %v3766_v3 = vld [vmem:[%s4479_s11 + $0x450] sm:$0xff]  }
 0x12f   : > { %3471 = vmatpush3.bf16.msra.mxu0 %v3705_v5  ;;  %3492 = vmatprep.subr.bf16.mxu1 %v3706_v6  ;;  %v3767_v5 = vld [vmem:[%s4479_s11 + $0x410] sm:$0xff]   ;;  %v3768_v6 = vld [vmem:[%s4479_s11 + $0x448] sm:$0xff]  }
 0x130   : > { %3472 = vmatprep.subr.bf16.mxu0 %v3708_v8  ;;  %v3770_v8 = vld [vmem:[%s4479_s11 + $0x440] sm:$0xff]  }
 0x132   : > { %3493 = vmatpush3.bf16.msra.mxu1 %v3707_v7  ;;  %v3769_v7 = vld [vmem:[%s4479_s11 + $0x408] sm:$0xff]  }
 0x133   : > { %3473 = vmatpush3.bf16.msra.mxu0 %v3709_v9  ;;  %3494 = vmatprep.subr.bf16.mxu1 %v3710_v10  ;;  %v3771_v9 = vld [vmem:[%s4479_s11 + $0x400] sm:$0xff]   ;;  %v3224_v10 = vcombine.low %v1483_v2, %v1483_v2 }
 0x134   : > { %3474 = vmatprep.subr.bf16.mxu0 %v3712_v13 }
 0x136   : > { %3495 = vmatpush3.bf16.msra.mxu1 %v3711_v12  ;;  %v3207_v12 = vld [vmem:[%s1457_s8] ss:$0 sm:$0xff] }
 0x137   : > { %3475 = vmatpush3.bf16.msra.mxu0 %v3713_v14  ;;  %3496 = vmatprep.subr.bf16.mxu1 %v3714_v15 }
 0x138   : > { %3504 = vmatprep.subr.bf16.mxu0 %v3718_v19 }
 0x13a   : > { %3497 = vmatpush3.bf16.msra.mxu1 %v3717_v17  ;;  %2899 = vmatmul.mubr.bf16.vlgmr.msra.gmra.mxu0 %v3216_v16 }
 0x13b   : > { %3505 = vmatpush3.bf16.msra.mxu0 %v3721_v21  ;;  %2978 = vmatprep.mubr.bf16.mxu0 %v3221_v18 }
 0x13c   : > { %3526 = vmatprep.subr.bf16.mxu1 %v3722_v22  ;;  %3506 = vmatprep.subr.bf16.mxu0 %v3724_v24 }
 0x13d   : > { %2939 = vmatmul.mubr.bf16.vlgmr.msra.gmra.mxu1 %v3218_v20 }
 0x13e   : > { %3527 = vmatpush3.bf16.msra.mxu1 %v3723_v23  ;;  %3018 = vmatprep.mubr.bf16.mxu1 %v3223_v56 }
 0x13f   : > { %3507 = vmatpush3.bf16.msra.mxu0 %v3725_v25  ;;  %3528 = vmatprep.subr.bf16.mxu1 %v3726_v26 }
 0x140   : > { %3508 = vmatprep.subr.bf16.mxu0 %v3728_v28 }
 0x142   : > { %3529 = vmatpush3.bf16.msra.mxu1 %v3727_v27 }
 0x143   : > { %3509 = vmatpush3.bf16.msra.mxu0 %v3729_v29  ;;  %3530 = vmatprep.subr.bf16.mxu1 %v3730_v30 }
 0x144   : > { %3510 = vmatprep.subr.bf16.mxu0 %v3732_v32 }
 0x146   : > { %3531 = vmatpush3.bf16.msra.mxu1 %v3731_v31 }
 0x147   : > { %3511 = vmatpush3.bf16.msra.mxu0 %v3733_v33  ;;  %3532 = vmatprep.subr.bf16.mxu1 %v3734_v34 }
 0x148   : > { %3512 = vmatprep.subr.bf16.mxu0 %v3736_v36 }
 0x14a   : > { %3533 = vmatpush3.bf16.msra.mxu1 %v3735_v35 }
 0x14b   : > { %3513 = vmatpush3.bf16.msra.mxu0 %v3737_v37  ;;  %3534 = vmatprep.subr.bf16.mxu1 %v3738_v38 }
 0x14c   : > { %3514 = vmatprep.subr.bf16.mxu0 %v3740_v40 }
 0x14e   : > { %3535 = vmatpush3.bf16.msra.mxu1 %v3739_v39 }
 0x14f   : > { %3515 = vmatpush3.bf16.msra.mxu0 %v3741_v41  ;;  %3536 = vmatprep.subr.bf16.mxu1 %v3742_v42 }
 0x150   : > { %3516 = vmatprep.subr.bf16.mxu0 %v3744_v44 }
 0x152   : > { %3537 = vmatpush3.bf16.msra.mxu1 %v3743_v43 }
 0x153   : > { %3517 = vmatpush3.bf16.msra.mxu0 %v3745_v45  ;;  %3538 = vmatprep.subr.bf16.mxu1 %v3746_v46 }
 0x154   : > { %3518 = vmatprep.subr.bf16.mxu0 %v3748_v48 }
 0x156   : > { %3539 = vmatpush3.bf16.msra.mxu1 %v3747_v47 }
 0x157   : > { %3519 = vmatpush3.bf16.msra.mxu0 %v3749_v49  ;;  %3540 = vmatprep.subr.bf16.mxu1 %v3750_v50 }
 0x158   : > { %3548 = vmatprep.subr.bf16.mxu0 %v3754_v53 }
 0x15a   : > { %3541 = vmatpush3.bf16.msra.mxu1 %v3753_v52  ;;  %2979 = vmatmul.mubr.bf16.vlgmr.msra.gmra.mxu0 %v3220_v51 }
 0x15b   : > { %3549 = vmatpush3.bf16.msra.mxu0 %v3757_v57  ;;  %3058 = vmatprep.mubr.bf16.mxu0 %v3225_v4 }
 0x15c   : > { %3550 = vmatprep.subr.bf16.mxu0 %v3758_v58 }
 0x15d   : > { %3019 = vmatmul.mubr.bf16.vlgmr.msra.gmra.mxu1 %v3222_v55 }
 0x15f   : > { %3551 = vmatpush3.bf16.msra.mxu0 %v3759_v59 }
 0x160   : > { %3552 = vmatprep.subr.bf16.mxu0 %v3760_v60  ;;  %v3066_v60 = vld [vmem:[%s1465_s12] sm:$0xf] }
 0x163   : > { %3553 = vmatpush3.bf16.msra.mxu0 %v3761_v61 }
 0x164   : > { %3554 = vmatprep.subr.bf16.mxu0 %v3762_v62 }
 0x167   : > { %3555 = vmatpush3.bf16.msra.mxu0 %v3763_v63 }
 0x168   : > { %3556 = vmatprep.subr.bf16.mxu0 %v3764_v0  ;;  %v3067_v0 = vunpack.c.l.bf16 %v3066_v60 }
 0x16b   : > { %3557 = vmatpush3.bf16.msra.mxu0 %v3765_v1 }
 0x16c   : > { %3558 = vmatprep.subr.bf16.mxu0 %v3766_v3 }
 0x16f   : > { %3559 = vmatpush3.bf16.msra.mxu0 %v3767_v5 }
 0x170   : > { %3560 = vmatprep.subr.bf16.mxu0 %v3768_v6 }
 0x173   : > { %3561 = vmatpush3.bf16.msra.mxu0 %v3769_v7 }
 0x174   : > { %3562 = vmatprep.subr.bf16.mxu0 %v3770_v8 }
 0x177   : > { %3563 = vmatpush3.bf16.msra.mxu0 %v3771_v9 }
 0x17a   : > { %3059 = vmatmul.mubr.bf16.vlgmr.msra.gmra.mxu0 %v3224_v10 }
 0x1ba   : > { %v3388_v11 = vpop.f32.mrf.mxu0 }
 0x1bc   : > { %v3389_v13 = vpop.f32.mrf.mxu0 }
 0x1bd   : > { %v3410_v14 = vpop.f32.mrf.mxu1  ;;  %v3390_v15 = vadd.f32 %v3389_v13, %v3388_v11 }
 0x1be   : > { %v3391_v16 = vpop.f32.mrf.mxu0 }
 0x1bf   : > { %v3411_v17 = vpop.f32.mrf.mxu1  ;;  %v2741_v18 = vadd.f32 %v3390_v15, %v3207_v12 }
 0x1c0   : > { %v3412_v19 = vadd.f32 %v3411_v17, %v3410_v14  ;;  %v3392_v20 = vpop.f32.mrf.mxu0 }
 0x1c1   : > { %v3413_v21 = vpop.f32.mrf.mxu1 }
 0x1c2   : > { %v2781_v22 = vadd.f32 %v3412_v19, %v2741_v18 }
 0x1c3   : > { %v3414_v23 = vpop.f32.mrf.mxu1 }
 0x1da   : > { %v3432_v24 = vpop.f32.mrf.mxu0 }
 0x1dc   : > { %v3433_v25 = vpop.f32.mrf.mxu0 }
 0x1dd   : > { %v3454_v26 = vpop.f32.mrf.mxu1  ;;  %v3434_v27 = vadd.f32 %v3433_v25, %v3432_v24 }
 0x1de   : > { %v3435_v28 = vpop.f32.mrf.mxu0 }
 0x1df   : > { %v3455_v29 = vpop.f32.mrf.mxu1  ;;  %v2821_v30 = vadd.f32 %v3434_v27, %v2781_v22 }
 0x1e0   : > { %v3456_v31 = vadd.f32 %v3455_v29, %v3454_v26  ;;  %v3436_v32 = vpop.f32.mrf.mxu0 }
 0x1e1   : > { %v3457_v33 = vpop.f32.mrf.mxu1 }
 0x1e2   : > { %v2861_v34 = vadd.f32 %v3456_v31, %v2821_v30 }
 0x1e3   : > { %v3458_v35 = vpop.f32.mrf.mxu1 }
 0x1fa   : > { %v3476_v36 = vpop.f32.mrf.mxu0 }
 0x1fc   : > { %v3477_v37 = vpop.f32.mrf.mxu0 }
 0x1fd   : > { %v3498_v38 = vpop.f32.mrf.mxu1  ;;  %v3478_v52 = vadd.f32 %v3477_v37, %v3476_v36 }
 0x1fe   : > { %v3479_v39 = vpop.f32.mrf.mxu0 }
 0x1ff   : > { %v3499_v40 = vpop.f32.mrf.mxu1  ;;  %v2901_v53 = vadd.f32 %v3478_v52, %v2861_v34 }
 0x200   : > { %v3480_v41 = vpop.f32.mrf.mxu0  ;;  %v3500_v54 = vadd.f32 %v3499_v40, %v3498_v38 }
 0x201   : > { %v3501_v42 = vpop.f32.mrf.mxu1 }
 0x202   : > { %v2941_v56 = vadd.f32 %v3500_v54, %v2901_v53 }
 0x203   : > { %v3502_v43 = vpop.f32.mrf.mxu1 }
 0x21a   : > { %v3520_v44 = vpop.f32.mrf.mxu0 }
 0x21c   : > { %v3521_v45 = vpop.f32.mrf.mxu0 }
 0x21d   : > { %v3542_v46 = vpop.f32.mrf.mxu1  ;;  %v3522_v55 = vadd.f32 %v3521_v45, %v3520_v44 }
 0x21e   : > { %v3523_v47 = vpop.f32.mrf.mxu0 }
 0x21f   : > { %v3543_v48 = vpop.f32.mrf.mxu1  ;;  %v2981_v57 = vadd.f32 %v3522_v55, %v2941_v56 }
 0x220   : > { %v3524_v49 = vpop.f32.mrf.mxu0  ;;  %v3544_v58 = vadd.f32 %v3543_v48, %v3542_v46 }
 0x221   : > { %v3545_v50 = vpop.f32.mrf.mxu1 }
 0x222   : > { %v3021_v62 = vadd.f32 %v3544_v58, %v2981_v57 }
 0x223   : > { %v3546_v51 = vpop.f32.mrf.mxu1 }
 0x23a   : > { %v3564_v59 = vpop.f32.mrf.mxu0 }
 0x23c   : > { %v3565_v61 = vpop.f32.mrf.mxu0 }
 0x23d   : > { %v3566_v63 = vadd.f32 %v3565_v61, %v3564_v59 }
 0x23e   : > { %v3567_v1 = vpop.f32.mrf.mxu0 }
 0x23f   : > { %v3061_v2 = vadd.f32 %v3566_v63, %v3021_v62 }
 0x240   : > { %v3568_v3 = vpop.f32.mrf.mxu0 }
 0x241   : > { %v3068_v4 = vadd.f32 %v3067_v0, %v3061_v2 }
 0x243   : > { %v3069_v5 = vmax.f32 %v3068_v4, 0.0 }
 0x245   : > { %v3070_v6 = vpack.c.bf16 %v3069_v5, %v3069_v5 }
 0x247   : > { %3071 = vst [vmem:[%s1473_s14] sm:$0xf] %v3070_v6 }
 0x248 PF: > { %s14_s19 = sadd.s32 1, %s3812_s19   ;;  %s4715_s15 = smov %s3800_s16 }
 0x249   : > { %p11_p10 = scmp.ge.s32.totalorder %s14_s19, 4   ;;  %s4716_s16 = smov %s3874_s23 }
 0x24a   : > { %s4717_s17 = smov %s3808_s18  ;;  %s4718_s18 = smov %s4720_s20 }
 0x24b   :  { %13 = sbr.rel (!%p11_p10) target bundleno = 3 (0x3), region = 121 }

// kernel: _lambda_.38
= control target key start
LH: loop header
LB: loop body
LE: loop exit
PB: predicated region body
PF: predicated region fallthrough
CT: control target
= control target key end

     0   :  { %s3754_s12 = smov 0   ;;  %s3756_s13 = smov 0   ;;  %s4622_s0 = inlined_call_operand.vmem [shape: bf16[8,2304], index: 0, kind: input, shape index: {}]   ;;  %s4623_s1 = inlined_call_operand.vmem [shape: bf16[2304,512], index: 1, kind: input, shape index: {}]   ;;  %s4624_s2 = inlined_call_operand.vmem [shape: f32[1,512], index: 2, kind: input, shape index: {}]   ;;  %s4625_s3 = inlined_call_operand.vmem [shape: bf16[8,512], index: 3, kind: output, shape index: {}]  }
   0x1   :  { %s3758_s14 = smov 0   ;;  %s3760_s15 = smov 0  }
   0x2   :  { %s3762_s16 = smov 0  }
   0x3 LB: > { %s22_s17 = sadd.s32 1, %s3728_s15  ;;  %p65_p1 = scmp.ne.s32.totalorder %s3720_s13, %s3716_s12  ;;  %s3732_s16 = sphi %s3762_s16, %s13_s16   ;;  %s3728_s15 = sphi %s3760_s15, %s4629_s15   ;;  %s3724_s14 = sphi %s3758_s14, %s4628_s14   ;;  %s3720_s13 = sphi %s3756_s13, %s4627_s13   ;;  %s3716_s12 = sphi %s3754_s12, %s4626_s12  }
   0x4   : > { %p23_p0 = scmp.ge.s32.totalorder %s22_s17, 4  ;;  %p66_p2 = scmp.eq.s32.totalorder %s3732_s16, 0 }
   0x5   : > { %s58_s19 = sadd.s32 1, %s3720_s13  ;;  %p3123_p5 = scmp.ge.s32.totalorder %s3732_s16, 4 }
   0x6   : > { %s4631_s17 = smov (%p23_p0, %s22_s17), 0  ;;  %p67_p3 = por %p66_p2, %p65_p1 }
   0x7   : > { %s55_s18 = ssub.s32 %s3728_s15, %s4631_s17  ;;  %153 = sbr.rel (%p3123_p5) target bundleno = 208 (0xd0), region = 20 }
   0x8   : > { %p56_p4 = scmp.eq.s32.totalorder %s55_s18, 0 }
   0xa   : > { %s3789_s20 = scalar_select %p56_p4, %s3720_s13, %s58_s19  }
   0xc   : > { %156 = sbr.rel (!%p67_p3) target bundleno = 208 (0xd0), region = 24  ;;  %s158_s21 = sand.u32 (%p67_p3), 1, %s3720_s13  }
   0xd   : > { %s3124_s22 = sshll.u32 (%p67_p3), %s3728_s15, 2  ;;  %s3490_s23 = smul.u32 (%p67_p3), 1152, %s158_s21 }
   0xe   : > { %s3797_s26 = scalar_lea.vmem (%p67_p3), %s4623_s1, %s3124_s22 }
   0xf   : > { %v179_v0 = vld [vmem:[%s3797_s26] sm:$0xf] (%p67_p3)  ;;  %v181_v1 = vld [vmem:[%s3797_s26 + $0x10] sm:$0xf] (%p67_p3)  ;;  %s3804_s27 = scalar_lea.vmem (%p67_p3), [#allocation2], %s3490_s23 }
  0x10   : > { %v183_v2 = vld [vmem:[%s3797_s26 + $0x20] sm:$0xf] (%p67_p3)  ;;  %v185_v3 = vld [vmem:[%s3797_s26 + $0x30] sm:$0xf] (%p67_p3)  ;;  %180 = vst [vmem:[%s3804_s27] sm:$0xf] (%p67_p3), %v179_v0 }
  0x11   : > { %v187_v4 = vld [vmem:[%s3797_s26 + $0x40] sm:$0xf]  ;;  %182 = vst [vmem:[%s3804_s27 + $0x4] sm:$0xf] %v181_v1  ;;  %184 = vst [vmem:[%s3804_s27 + $0x8] sm:$0xf] %v183_v2 }
  0x12   : > { %186 = vst [vmem:[%s3804_s27 + $0xc] sm:$0xf] %v185_v3  ;;  %188 = vst [vmem:[%s3804_s27 + $0x10] sm:$0xf] %v187_v4  ;;  %v189_v5 = vld [vmem:[%s3797_s26 + $0x50] sm:$0xf] }
  0x13   : > { %v191_v6 = vld [vmem:[%s3797_s26 + $0x60] sm:$0xf]  ;;  %v193_v7 = vld [vmem:[%s3797_s26 + $0x70] sm:$0xf]  ;;  %190 = vst [vmem:[%s3804_s27 + $0x14] sm:$0xf] %v189_v5 }
  0x14   : > { %192 = vst [vmem:[%s3804_s27 + $0x18] sm:$0xf] %v191_v6  ;;  %194 = vst [vmem:[%s3804_s27 + $0x1c] sm:$0xf] %v193_v7  ;;  %v195_v8 = vld [vmem:[%s3797_s26 + $0x80] sm:$0xf] }
  0x15   : > { %v197_v9 = vld [vmem:[%s3797_s26 + $0x90] sm:$0xf]  ;;  %v199_v10 = vld [vmem:[%s3797_s26 + $0xa0] sm:$0xf]  ;;  %196 = vst [vmem:[%s3804_s27 + $0x20] sm:$0xf] %v195_v8 }
  0x16   : > { %198 = vst [vmem:[%s3804_s27 + $0x24] sm:$0xf] %v197_v9  ;;  %200 = vst [vmem:[%s3804_s27 + $0x28] sm:$0xf] %v199_v10  ;;  %v201_v11 = vld [vmem:[%s3797_s26 + $0xb0] sm:$0xf] }
  0x17   : > { %v203_v12 = vld [vmem:[%s3797_s26 + $0xc0] sm:$0xf]  ;;  %v205_v13 = vld [vmem:[%s3797_s26 + $0xd0] sm:$0xf]  ;;  %202 = vst [vmem:[%s3804_s27 + $0x2c] sm:$0xf] %v201_v11 }
  0x18   : > { %204 = vst [vmem:[%s3804_s27 + $0x30] sm:$0xf] %v203_v12  ;;  %206 = vst [vmem:[%s3804_s27 + $0x34] sm:$0xf] %v205_v13  ;;  %v207_v14 = vld [vmem:[%s3797_s26 + $0xe0] sm:$0xf] }
  0x19   : > { %v209_v15 = vld [vmem:[%s3797_s26 + $0xf0] sm:$0xf]  ;;  %v211_v16 = vld [vmem:[%s3797_s26 + $0x100] sm:$0xf]  ;;  %208 = vst [vmem:[%s3804_s27 + $0x38] sm:$0xf] %v207_v14 }
  0x1a   : > { %210 = vst [vmem:[%s3804_s27 + $0x3c] sm:$0xf] %v209_v15  ;;  %212 = vst [vmem:[%s3804_s27 + $0x40] sm:$0xf] %v211_v16  ;;  %v213_v17 = vld [vmem:[%s3797_s26 + $0x110] sm:$0xf] }
  0x1b   : > { %v215_v18 = vld [vmem:[%s3797_s26 + $0x120] sm:$0xf]  ;;  %v217_v19 = vld [vmem:[%s3797_s26 + $0x130] sm:$0xf]  ;;  %214 = vst [vmem:[%s3804_s27 + $0x44] sm:$0xf] %v213_v17 }
  0x1c   : > { %216 = vst [vmem:[%s3804_s27 + $0x48] sm:$0xf] %v215_v18  ;;  %218 = vst [vmem:[%s3804_s27 + $0x4c] sm:$0xf] %v217_v19  ;;  %v219_v20 = vld [vmem:[%s3797_s26 + $0x140] sm:$0xf] }
  0x1d   : > { %v221_v21 = vld [vmem:[%s3797_s26 + $0x150] sm:$0xf]  ;;  %v223_v22 = vld [vmem:[%s3797_s26 + $0x160] sm:$0xf]  ;;  %220 = vst [vmem:[%s3804_s27 + $0x50] sm:$0xf] %v219_v20 }
  0x1e   : > { %222 = vst [vmem:[%s3804_s27 + $0x54] sm:$0xf] %v221_v21  ;;  %224 = vst [vmem:[%s3804_s27 + $0x58] sm:$0xf] %v223_v22  ;;  %v225_v23 = vld [vmem:[%s3797_s26 + $0x170] sm:$0xf] }
  0x1f   : > { %v227_v24 = vld [vmem:[%s3797_s26 + $0x180] sm:$0xf]  ;;  %v229_v25 = vld [vmem:[%s3797_s26 + $0x190] sm:$0xf]  ;;  %226 = vst [vmem:[%s3804_s27 + $0x5c] sm:$0xf] %v225_v23 }
  0x20   : > { %228 = vst [vmem:[%s3804_s27 + $0x60] sm:$0xf] %v227_v24  ;;  %230 = vst [vmem:[%s3804_s27 + $0x64] sm:$0xf] %v229_v25  ;;  %v231_v26 = vld [vmem:[%s3797_s26 + $0x1a0] sm:$0xf] }
  0x21   : > { %v233_v27 = vld [vmem:[%s3797_s26 + $0x1b0] sm:$0xf]  ;;  %v235_v28 = vld [vmem:[%s3797_s26 + $0x1c0] sm:$0xf]  ;;  %232 = vst [vmem:[%s3804_s27 + $0x68] sm:$0xf] %v231_v26 }
  0x22   : > { %234 = vst [vmem:[%s3804_s27 + $0x6c] sm:$0xf] %v233_v27  ;;  %236 = vst [vmem:[%s3804_s27 + $0x70] sm:$0xf] %v235_v28  ;;  %v237_v29 = vld [vmem:[%s3797_s26 + $0x1d0] sm:$0xf] }
  0x23   : > { %v239_v30 = vld [vmem:[%s3797_s26 + $0x1e0] sm:$0xf]  ;;  %v241_v31 = vld [vmem:[%s3797_s26 + $0x1f0] sm:$0xf]  ;;  %238 = vst [vmem:[%s3804_s27 + $0x74] sm:$0xf] %v237_v29 }
  0x24   : > { %240 = vst [vmem:[%s3804_s27 + $0x78] sm:$0xf] %v239_v30  ;;  %242 = vst [vmem:[%s3804_s27 + $0x7c] sm:$0xf] %v241_v31  ;;  %v243_v32 = vld [vmem:[%s3797_s26 + $0x200] sm:$0xf] }
  0x25   : > { %v245_v33 = vld [vmem:[%s3797_s26 + $0x210] sm:$0xf]  ;;  %v247_v34 = vld [vmem:[%s3797_s26 + $0x220] sm:$0xf]  ;;  %244 = vst [vmem:[%s3804_s27 + $0x80] sm:$0xf] %v243_v32 }
  0x26   : > { %246 = vst [vmem:[%s3804_s27 + $0x84] sm:$0xf] %v245_v33  ;;  %248 = vst [vmem:[%s3804_s27 + $0x88] sm:$0xf] %v247_v34  ;;  %v249_v35 = vld [vmem:[%s3797_s26 + $0x230] sm:$0xf] }
  0x27   : > { %v251_v36 = vld [vmem:[%s3797_s26 + $0x240] sm:$0xf]  ;;  %v253_v37 = vld [vmem:[%s3797_s26 + $0x250] sm:$0xf]  ;;  %250 = vst [vmem:[%s3804_s27 + $0x8c] sm:$0xf] %v249_v35 }
  0x28   : > { %252 = vst [vmem:[%s3804_s27 + $0x90] sm:$0xf] %v251_v36  ;;  %254 = vst [vmem:[%s3804_s27 + $0x94] sm:$0xf] %v253_v37  ;;  %v255_v38 = vld [vmem:[%s3797_s26 + $0x260] sm:$0xf] }
  0x29   : > { %v257_v39 = vld [vmem:[%s3797_s26 + $0x270] sm:$0xf]  ;;  %v259_v40 = vld [vmem:[%s3797_s26 + $0x280] sm:$0xf]  ;;  %256 = vst [vmem:[%s3804_s27 + $0x98] sm:$0xf] %v255_v38 }
  0x2a   : > { %258 = vst [vmem:[%s3804_s27 + $0x9c] sm:$0xf] %v257_v39  ;;  %260 = vst [vmem:[%s3804_s27 + $0xa0] sm:$0xf] %v259_v40  ;;  %v261_v41 = vld [vmem:[%s3797_s26 + $0x290] sm:$0xf] }
  0x2b   : > { %v263_v42 = vld [vmem:[%s3797_s26 + $0x2a0] sm:$0xf]  ;;  %v265_v43 = vld [vmem:[%s3797_s26 + $0x2b0] sm:$0xf]  ;;  %262 = vst [vmem:[%s3804_s27 + $0xa4] sm:$0xf] %v261_v41 }
  0x2c   : > { %264 = vst [vmem:[%s3804_s27 + $0xa8] sm:$0xf] %v263_v42  ;;  %266 = vst [vmem:[%s3804_s27 + $0xac] sm:$0xf] %v265_v43  ;;  %v267_v44 = vld [vmem:[%s3797_s26 + $0x2c0] sm:$0xf] }
  0x2d   : > { %v269_v45 = vld [vmem:[%s3797_s26 + $0x2d0] sm:$0xf]  ;;  %v271_v46 = vld [vmem:[%s3797_s26 + $0x2e0] sm:$0xf]  ;;  %268 = vst [vmem:[%s3804_s27 + $0xb0] sm:$0xf] %v267_v44 }
  0x2e   : > { %270 = vst [vmem:[%s3804_s27 + $0xb4] sm:$0xf] %v269_v45  ;;  %272 = vst [vmem:[%s3804_s27 + $0xb8] sm:$0xf] %v271_v46  ;;  %v273_v47 = vld [vmem:[%s3797_s26 + $0x2f0] sm:$0xf] }
  0x2f   : > { %v275_v48 = vld [vmem:[%s3797_s26 + $0x300] sm:$0xf]  ;;  %v277_v49 = vld [vmem:[%s3797_s26 + $0x310] sm:$0xf]  ;;  %274 = vst [vmem:[%s3804_s27 + $0xbc] sm:$0xf] %v273_v47 }
  0x30   : > { %276 = vst [vmem:[%s3804_s27 + $0xc0] sm:$0xf] %v275_v48  ;;  %278 = vst [vmem:[%s3804_s27 + $0xc4] sm:$0xf] %v277_v49  ;;  %v279_v50 = vld [vmem:[%s3797_s26 + $0x320] sm:$0xf] }
  0x31   : > { %v281_v51 = vld [vmem:[%s3797_s26 + $0x330] sm:$0xf]  ;;  %v283_v52 = vld [vmem:[%s3797_s26 + $0x340] sm:$0xf]  ;;  %280 = vst [vmem:[%s3804_s27 + $0xc8] sm:$0xf] %v279_v50 }
  0x32   : > { %282 = vst [vmem:[%s3804_s27 + $0xcc] sm:$0xf] %v281_v51  ;;  %284 = vst [vmem:[%s3804_s27 + $0xd0] sm:$0xf] %v283_v52  ;;  %v285_v53 = vld [vmem:[%s3797_s26 + $0x350] sm:$0xf] }
  0x33   : > { %v287_v54 = vld [vmem:[%s3797_s26 + $0x360] sm:$0xf]  ;;  %v289_v55 = vld [vmem:[%s3797_s26 + $0x370] sm:$0xf]  ;;  %286 = vst [vmem:[%s3804_s27 + $0xd4] sm:$0xf] %v285_v53 }
  0x34   : > { %288 = vst [vmem:[%s3804_s27 + $0xd8] sm:$0xf] %v287_v54  ;;  %290 = vst [vmem:[%s3804_s27 + $0xdc] sm:$0xf] %v289_v55  ;;  %v291_v56 = vld [vmem:[%s3797_s26 + $0x380] sm:$0xf] }
  0x35   : > { %v293_v57 = vld [vmem:[%s3797_s26 + $0x390] sm:$0xf]  ;;  %v295_v58 = vld [vmem:[%s3797_s26 + $0x3a0] sm:$0xf]  ;;  %292 = vst [vmem:[%s3804_s27 + $0xe0] sm:$0xf] %v291_v56 }
  0x36   : > { %294 = vst [vmem:[%s3804_s27 + $0xe4] sm:$0xf] %v293_v57  ;;  %296 = vst [vmem:[%s3804_s27 + $0xe8] sm:$0xf] %v295_v58  ;;  %v297_v59 = vld [vmem:[%s3797_s26 + $0x3b0] sm:$0xf] }
  0x37   : > { %v299_v60 = vld [vmem:[%s3797_s26 + $0x3c0] sm:$0xf]  ;;  %v301_v61 = vld [vmem:[%s3797_s26 + $0x3d0] sm:$0xf]  ;;  %298 = vst [vmem:[%s3804_s27 + $0xec] sm:$0xf] %v297_v59 }
  0x38   : > { %300 = vst [vmem:[%s3804_s27 + $0xf0] sm:$0xf] %v299_v60  ;;  %302 = vst [vmem:[%s3804_s27 + $0xf4] sm:$0xf] %v301_v61  ;;  %v303_v62 = vld [vmem:[%s3797_s26 + $0x3e0] sm:$0xf] }
  0x39   : > { %v305_v63 = vld [vmem:[%s3797_s26 + $0x3f0] sm:$0xf]  ;;  %v307_v0 = vld [vmem:[%s3797_s26 + $0x400] sm:$0xf]  ;;  %304 = vst [vmem:[%s3804_s27 + $0xf8] sm:$0xf] %v303_v62 }
  0x3a   : > { %306 = vst [vmem:[%s3804_s27 + $0xfc] sm:$0xf] %v305_v63  ;;  %308 = vst [vmem:[%s3804_s27 + $0x100] sm:$0xf] %v307_v0  ;;  %v309_v1 = vld [vmem:[%s3797_s26 + $0x410] sm:$0xf] }
  0x3b   : > { %v311_v2 = vld [vmem:[%s3797_s26 + $0x420] sm:$0xf]  ;;  %v313_v3 = vld [vmem:[%s3797_s26 + $0x430] sm:$0xf]  ;;  %310 = vst [vmem:[%s3804_s27 + $0x104] sm:$0xf] %v309_v1 }
  0x3c   : > { %312 = vst [vmem:[%s3804_s27 + $0x108] sm:$0xf] %v311_v2  ;;  %314 = vst [vmem:[%s3804_s27 + $0x10c] sm:$0xf] %v313_v3  ;;  %v315_v4 = vld [vmem:[%s3797_s26 + $0x440] sm:$0xf] }
  0x3d   : > { %v317_v5 = vld [vmem:[%s3797_s26 + $0x450] sm:$0xf]  ;;  %v319_v6 = vld [vmem:[%s3797_s26 + $0x460] sm:$0xf]  ;;  %316 = vst [vmem:[%s3804_s27 + $0x110] sm:$0xf] %v315_v4 }
  0x3e   : > { %318 = vst [vmem:[%s3804_s27 + $0x114] sm:$0xf] %v317_v5  ;;  %320 = vst [vmem:[%s3804_s27 + $0x118] sm:$0xf] %v319_v6  ;;  %v321_v7 = vld [vmem:[%s3797_s26 + $0x470] sm:$0xf] }
  0x3f   : > { %v323_v8 = vld [vmem:[%s3797_s26 + $0x480] sm:$0xf]  ;;  %v325_v9 = vld [vmem:[%s3797_s26 + $0x490] sm:$0xf]  ;;  %322 = vst [vmem:[%s3804_s27 + $0x11c] sm:$0xf] %v321_v7 }
  0x40   : > { %324 = vst [vmem:[%s3804_s27 + $0x120] sm:$0xf] %v323_v8  ;;  %326 = vst [vmem:[%s3804_s27 + $0x124] sm:$0xf] %v325_v9  ;;  %v327_v10 = vld [vmem:[%s3797_s26 + $0x4a0] sm:$0xf] }
  0x41   : > { %v329_v11 = vld [vmem:[%s3797_s26 + $0x4b0] sm:$0xf]  ;;  %v331_v12 = vld [vmem:[%s3797_s26 + $0x4c0] sm:$0xf]  ;;  %328 = vst [vmem:[%s3804_s27 + $0x128] sm:$0xf] %v327_v10 }
  0x42   : > { %330 = vst [vmem:[%s3804_s27 + $0x12c] sm:$0xf] %v329_v11  ;;  %332 = vst [vmem:[%s3804_s27 + $0x130] sm:$0xf] %v331_v12  ;;  %v333_v13 = vld [vmem:[%s3797_s26 + $0x4d0] sm:$0xf] }
  0x43   : > { %v335_v14 = vld [vmem:[%s3797_s26 + $0x4e0] sm:$0xf]  ;;  %v337_v15 = vld [vmem:[%s3797_s26 + $0x4f0] sm:$0xf]  ;;  %334 = vst [vmem:[%s3804_s27 + $0x134] sm:$0xf] %v333_v13 }
  0x44   : > { %336 = vst [vmem:[%s3804_s27 + $0x138] sm:$0xf] %v335_v14  ;;  %338 = vst [vmem:[%s3804_s27 + $0x13c] sm:$0xf] %v337_v15  ;;  %v339_v16 = vld [vmem:[%s3797_s26 + $0x500] sm:$0xf] }
  0x45   : > { %v341_v17 = vld [vmem:[%s3797_s26 + $0x510] sm:$0xf]  ;;  %v343_v18 = vld [vmem:[%s3797_s26 + $0x520] sm:$0xf]  ;;  %340 = vst [vmem:[%s3804_s27 + $0x140] sm:$0xf] %v339_v16 }
  0x46   : > { %342 = vst [vmem:[%s3804_s27 + $0x144] sm:$0xf] %v341_v17  ;;  %344 = vst [vmem:[%s3804_s27 + $0x148] sm:$0xf] %v343_v18  ;;  %v345_v19 = vld [vmem:[%s3797_s26 + $0x530] sm:$0xf] }
  0x47   : > { %v347_v20 = vld [vmem:[%s3797_s26 + $0x540] sm:$0xf]  ;;  %v349_v21 = vld [vmem:[%s3797_s26 + $0x550] sm:$0xf]  ;;  %346 = vst [vmem:[%s3804_s27 + $0x14c] sm:$0xf] %v345_v19 }
  0x48   : > { %348 = vst [vmem:[%s3804_s27 + $0x150] sm:$0xf] %v347_v20  ;;  %350 = vst [vmem:[%s3804_s27 + $0x154] sm:$0xf] %v349_v21  ;;  %v351_v22 = vld [vmem:[%s3797_s26 + $0x560] sm:$0xf] }
  0x49   : > { %v353_v23 = vld [vmem:[%s3797_s26 + $0x570] sm:$0xf]  ;;  %v355_v24 = vld [vmem:[%s3797_s26 + $0x580] sm:$0xf]  ;;  %352 = vst [vmem:[%s3804_s27 + $0x158] sm:$0xf] %v351_v22 }
  0x4a   : > { %354 = vst [vmem:[%s3804_s27 + $0x15c] sm:$0xf] %v353_v23  ;;  %356 = vst [vmem:[%s3804_s27 + $0x160] sm:$0xf] %v355_v24  ;;  %v357_v25 = vld [vmem:[%s3797_s26 + $0x590] sm:$0xf] }
  0x4b   : > { %v359_v26 = vld [vmem:[%s3797_s26 + $0x5a0] sm:$0xf]  ;;  %v361_v27 = vld [vmem:[%s3797_s26 + $0x5b0] sm:$0xf]  ;;  %358 = vst [vmem:[%s3804_s27 + $0x164] sm:$0xf] %v357_v25 }
  0x4c   : > { %360 = vst [vmem:[%s3804_s27 + $0x168] sm:$0xf] %v359_v26  ;;  %362 = vst [vmem:[%s3804_s27 + $0x16c] sm:$0xf] %v361_v27  ;;  %v363_v28 = vld [vmem:[%s3797_s26 + $0x5c0] sm:$0xf] }
  0x4d   : > { %v365_v29 = vld [vmem:[%s3797_s26 + $0x5d0] sm:$0xf]  ;;  %v367_v30 = vld [vmem:[%s3797_s26 + $0x5e0] sm:$0xf]  ;;  %364 = vst [vmem:[%s3804_s27 + $0x170] sm:$0xf] %v363_v28 }
  0x4e   : > { %366 = vst [vmem:[%s3804_s27 + $0x174] sm:$0xf] %v365_v29  ;;  %368 = vst [vmem:[%s3804_s27 + $0x178] sm:$0xf] %v367_v30  ;;  %v369_v31 = vld [vmem:[%s3797_s26 + $0x5f0] sm:$0xf] }
  0x4f   : > { %v371_v32 = vld [vmem:[%s3797_s26 + $0x600] sm:$0xf]  ;;  %v373_v33 = vld [vmem:[%s3797_s26 + $0x610] sm:$0xf]  ;;  %370 = vst [vmem:[%s3804_s27 + $0x17c] sm:$0xf] %v369_v31 }
  0x50   : > { %372 = vst [vmem:[%s3804_s27 + $0x180] sm:$0xf] %v371_v32  ;;  %374 = vst [vmem:[%s3804_s27 + $0x184] sm:$0xf] %v373_v33  ;;  %v375_v34 = vld [vmem:[%s3797_s26 + $0x620] sm:$0xf] }
  0x51   : > { %v377_v35 = vld [vmem:[%s3797_s26 + $0x630] sm:$0xf]  ;;  %v379_v36 = vld [vmem:[%s3797_s26 + $0x640] sm:$0xf]  ;;  %376 = vst [vmem:[%s3804_s27 + $0x188] sm:$0xf] %v375_v34 }
  0x52   : > { %378 = vst [vmem:[%s3804_s27 + $0x18c] sm:$0xf] %v377_v35  ;;  %380 = vst [vmem:[%s3804_s27 + $0x190] sm:$0xf] %v379_v36  ;;  %v381_v37 = vld [vmem:[%s3797_s26 + $0x650] sm:$0xf] }
  0x53   : > { %v383_v38 = vld [vmem:[%s3797_s26 + $0x660] sm:$0xf]  ;;  %v385_v39 = vld [vmem:[%s3797_s26 + $0x670] sm:$0xf]  ;;  %382 = vst [vmem:[%s3804_s27 + $0x194] sm:$0xf] %v381_v37 }
  0x54   : > { %384 = vst [vmem:[%s3804_s27 + $0x198] sm:$0xf] %v383_v38  ;;  %386 = vst [vmem:[%s3804_s27 + $0x19c] sm:$0xf] %v385_v39  ;;  %v387_v40 = vld [vmem:[%s3797_s26 + $0x680] sm:$0xf] }
  0x55   : > { %v389_v41 = vld [vmem:[%s3797_s26 + $0x690] sm:$0xf]  ;;  %v391_v42 = vld [vmem:[%s3797_s26 + $0x6a0] sm:$0xf]  ;;  %388 = vst [vmem:[%s3804_s27 + $0x1a0] sm:$0xf] %v387_v40 }
  0x56   : > { %390 = vst [vmem:[%s3804_s27 + $0x1a4] sm:$0xf] %v389_v41  ;;  %392 = vst [vmem:[%s3804_s27 + $0x1a8] sm:$0xf] %v391_v42  ;;  %v393_v43 = vld [vmem:[%s3797_s26 + $0x6b0] sm:$0xf] }
  0x57   : > { %v395_v44 = vld [vmem:[%s3797_s26 + $0x6c0] sm:$0xf]  ;;  %v397_v45 = vld [vmem:[%s3797_s26 + $0x6d0] sm:$0xf]  ;;  %394 = vst [vmem:[%s3804_s27 + $0x1ac] sm:$0xf] %v393_v43 }
  0x58   : > { %396 = vst [vmem:[%s3804_s27 + $0x1b0] sm:$0xf] %v395_v44  ;;  %398 = vst [vmem:[%s3804_s27 + $0x1b4] sm:$0xf] %v397_v45  ;;  %v399_v46 = vld [vmem:[%s3797_s26 + $0x6e0] sm:$0xf] }
  0x59   : > { %v401_v47 = vld [vmem:[%s3797_s26 + $0x6f0] sm:$0xf]  ;;  %v403_v48 = vld [vmem:[%s3797_s26 + $0x700] sm:$0xf]  ;;  %400 = vst [vmem:[%s3804_s27 + $0x1b8] sm:$0xf] %v399_v46 }
  0x5a   : > { %402 = vst [vmem:[%s3804_s27 + $0x1bc] sm:$0xf] %v401_v47  ;;  %404 = vst [vmem:[%s3804_s27 + $0x1c0] sm:$0xf] %v403_v48  ;;  %v405_v49 = vld [vmem:[%s3797_s26 + $0x710] sm:$0xf] }
  0x5b   : > { %v407_v50 = vld [vmem:[%s3797_s26 + $0x720] sm:$0xf]  ;;  %v409_v51 = vld [vmem:[%s3797_s26 + $0x730] sm:$0xf]  ;;  %406 = vst [vmem:[%s3804_s27 + $0x1c4] sm:$0xf] %v405_v49 }
  0x5c   : > { %408 = vst [vmem:[%s3804_s27 + $0x1c8] sm:$0xf] %v407_v50  ;;  %410 = vst [vmem:[%s3804_s27 + $0x1cc] sm:$0xf] %v409_v51  ;;  %v411_v52 = vld [vmem:[%s3797_s26 + $0x740] sm:$0xf] }
  0x5d   : > { %v413_v53 = vld [vmem:[%s3797_s26 + $0x750] sm:$0xf]  ;;  %v415_v54 = vld [vmem:[%s3797_s26 + $0x760] sm:$0xf]  ;;  %412 = vst [vmem:[%s3804_s27 + $0x1d0] sm:$0xf] %v411_v52 }
  0x5e   : > { %414 = vst [vmem:[%s3804_s27 + $0x1d4] sm:$0xf] %v413_v53  ;;  %416 = vst [vmem:[%s3804_s27 + $0x1d8] sm:$0xf] %v415_v54  ;;  %v417_v55 = vld [vmem:[%s3797_s26 + $0x770] sm:$0xf] }
  0x5f   : > { %v419_v56 = vld [vmem:[%s3797_s26 + $0x780] sm:$0xf]  ;;  %v421_v57 = vld [vmem:[%s3797_s26 + $0x790] sm:$0xf]  ;;  %418 = vst [vmem:[%s3804_s27 + $0x1dc] sm:$0xf] %v417_v55 }
  0x60   : > { %420 = vst [vmem:[%s3804_s27 + $0x1e0] sm:$0xf] %v419_v56  ;;  %422 = vst [vmem:[%s3804_s27 + $0x1e4] sm:$0xf] %v421_v57  ;;  %v423_v58 = vld [vmem:[%s3797_s26 + $0x7a0] sm:$0xf] }
  0x61   : > { %v425_v59 = vld [vmem:[%s3797_s26 + $0x7b0] sm:$0xf]  ;;  %v427_v60 = vld [vmem:[%s3797_s26 + $0x7c0] sm:$0xf]  ;;  %424 = vst [vmem:[%s3804_s27 + $0x1e8] sm:$0xf] %v423_v58 }
  0x62   : > { %426 = vst [vmem:[%s3804_s27 + $0x1ec] sm:$0xf] %v425_v59  ;;  %428 = vst [vmem:[%s3804_s27 + $0x1f0] sm:$0xf] %v427_v60  ;;  %v429_v61 = vld [vmem:[%s3797_s26 + $0x7d0] sm:$0xf] }
  0x63   : > { %v431_v62 = vld [vmem:[%s3797_s26 + $0x7e0] sm:$0xf]  ;;  %v433_v63 = vld [vmem:[%s3797_s26 + $0x7f0] sm:$0xf]  ;;  %430 = vst [vmem:[%s3804_s27 + $0x1f4] sm:$0xf] %v429_v61 }
  0x64   : > { %432 = vst [vmem:[%s3804_s27 + $0x1f8] sm:$0xf] %v431_v62  ;;  %434 = vst [vmem:[%s3804_s27 + $0x1fc] sm:$0xf] %v433_v63  ;;  %v435_v0 = vld [vmem:[%s3797_s26 + $0x800] sm:$0xf] }
  0x65   : > { %v437_v1 = vld [vmem:[%s3797_s26 + $0x810] sm:$0xf]  ;;  %v439_v2 = vld [vmem:[%s3797_s26 + $0x820] sm:$0xf]  ;;  %436 = vst [vmem:[%s3804_s27 + $0x200] sm:$0xf] %v435_v0 }
  0x66   : > { %438 = vst [vmem:[%s3804_s27 + $0x204] sm:$0xf] %v437_v1  ;;  %440 = vst [vmem:[%s3804_s27 + $0x208] sm:$0xf] %v439_v2  ;;  %v441_v3 = vld [vmem:[%s3797_s26 + $0x830] sm:$0xf] }
  0x67   : > { %v443_v4 = vld [vmem:[%s3797_s26 + $0x840] sm:$0xf]  ;;  %v445_v5 = vld [vmem:[%s3797_s26 + $0x850] sm:$0xf]  ;;  %442 = vst [vmem:[%s3804_s27 + $0x20c] sm:$0xf] %v441_v3 }
  0x68   : > { %444 = vst [vmem:[%s3804_s27 + $0x210] sm:$0xf] %v443_v4  ;;  %446 = vst [vmem:[%s3804_s27 + $0x214] sm:$0xf] %v445_v5  ;;  %v447_v6 = vld [vmem:[%s3797_s26 + $0x860] sm:$0xf] }
  0x69   : > { %v449_v7 = vld [vmem:[%s3797_s26 + $0x870] sm:$0xf]  ;;  %v451_v8 = vld [vmem:[%s3797_s26 + $0x880] sm:$0xf]  ;;  %448 = vst [vmem:[%s3804_s27 + $0x218] sm:$0xf] %v447_v6 }
  0x6a   : > { %450 = vst [vmem:[%s3804_s27 + $0x21c] sm:$0xf] %v449_v7  ;;  %452 = vst [vmem:[%s3804_s27 + $0x220] sm:$0xf] %v451_v8  ;;  %v453_v9 = vld [vmem:[%s3797_s26 + $0x890] sm:$0xf] }
  0x6b   : > { %v455_v10 = vld [vmem:[%s3797_s26 + $0x8a0] sm:$0xf]  ;;  %v457_v11 = vld [vmem:[%s3797_s26 + $0x8b0] sm:$0xf]  ;;  %454 = vst [vmem:[%s3804_s27 + $0x224] sm:$0xf] %v453_v9 }
  0x6c   : > { %456 = vst [vmem:[%s3804_s27 + $0x228] sm:$0xf] %v455_v10  ;;  %458 = vst [vmem:[%s3804_s27 + $0x22c] sm:$0xf] %v457_v11  ;;  %v459_v12 = vld [vmem:[%s3797_s26 + $0x8c0] sm:$0xf] }
  0x6d   : > { %v461_v13 = vld [vmem:[%s3797_s26 + $0x8d0] sm:$0xf]  ;;  %v463_v14 = vld [vmem:[%s3797_s26 + $0x8e0] sm:$0xf]  ;;  %460 = vst [vmem:[%s3804_s27 + $0x230] sm:$0xf] %v459_v12 }
  0x6e   : > { %462 = vst [vmem:[%s3804_s27 + $0x234] sm:$0xf] %v461_v13  ;;  %464 = vst [vmem:[%s3804_s27 + $0x238] sm:$0xf] %v463_v14  ;;  %v465_v15 = vld [vmem:[%s3797_s26 + $0x8f0] sm:$0xf] }
  0x6f   : > { %v467_v16 = vld [vmem:[%s3797_s26 + $0x900] sm:$0xf]  ;;  %v469_v17 = vld [vmem:[%s3797_s26 + $0x910] sm:$0xf]  ;;  %466 = vst [vmem:[%s3804_s27 + $0x23c] sm:$0xf] %v465_v15 }
  0x70   : > { %468 = vst [vmem:[%s3804_s27 + $0x240] sm:$0xf] %v467_v16  ;;  %470 = vst [vmem:[%s3804_s27 + $0x244] sm:$0xf] %v469_v17  ;;  %v471_v18 = vld [vmem:[%s3797_s26 + $0x920] sm:$0xf] }
  0x71   : > { %v473_v19 = vld [vmem:[%s3797_s26 + $0x930] sm:$0xf]  ;;  %v475_v20 = vld [vmem:[%s3797_s26 + $0x940] sm:$0xf]  ;;  %472 = vst [vmem:[%s3804_s27 + $0x248] sm:$0xf] %v471_v18 }
  0x72   : > { %474 = vst [vmem:[%s3804_s27 + $0x24c] sm:$0xf] %v473_v19  ;;  %476 = vst [vmem:[%s3804_s27 + $0x250] sm:$0xf] %v475_v20  ;;  %v477_v21 = vld [vmem:[%s3797_s26 + $0x950] sm:$0xf] }
  0x73   : > { %v479_v22 = vld [vmem:[%s3797_s26 + $0x960] sm:$0xf]  ;;  %v481_v23 = vld [vmem:[%s3797_s26 + $0x970] sm:$0xf]  ;;  %478 = vst [vmem:[%s3804_s27 + $0x254] sm:$0xf] %v477_v21 }
  0x74   : > { %480 = vst [vmem:[%s3804_s27 + $0x258] sm:$0xf] %v479_v22  ;;  %482 = vst [vmem:[%s3804_s27 + $0x25c] sm:$0xf] %v481_v23  ;;  %v483_v24 = vld [vmem:[%s3797_s26 + $0x980] sm:$0xf] }
  0x75   : > { %v485_v25 = vld [vmem:[%s3797_s26 + $0x990] sm:$0xf]  ;;  %v487_v26 = vld [vmem:[%s3797_s26 + $0x9a0] sm:$0xf]  ;;  %484 = vst [vmem:[%s3804_s27 + $0x260] sm:$0xf] %v483_v24 }
  0x76   : > { %486 = vst [vmem:[%s3804_s27 + $0x264] sm:$0xf] %v485_v25  ;;  %488 = vst [vmem:[%s3804_s27 + $0x268] sm:$0xf] %v487_v26  ;;  %v489_v27 = vld [vmem:[%s3797_s26 + $0x9b0] sm:$0xf] }
  0x77   : > { %v491_v28 = vld [vmem:[%s3797_s26 + $0x9c0] sm:$0xf]  ;;  %v493_v29 = vld [vmem:[%s3797_s26 + $0x9d0] sm:$0xf]  ;;  %490 = vst [vmem:[%s3804_s27 + $0x26c] sm:$0xf] %v489_v27 }
  0x78   : > { %492 = vst [vmem:[%s3804_s27 + $0x270] sm:$0xf] %v491_v28  ;;  %494 = vst [vmem:[%s3804_s27 + $0x274] sm:$0xf] %v493_v29  ;;  %v495_v30 = vld [vmem:[%s3797_s26 + $0x9e0] sm:$0xf] }
  0x79   : > { %v497_v31 = vld [vmem:[%s3797_s26 + $0x9f0] sm:$0xf]  ;;  %v499_v32 = vld [vmem:[%s3797_s26 + $0xa00] sm:$0xf]  ;;  %496 = vst [vmem:[%s3804_s27 + $0x278] sm:$0xf] %v495_v30 }
  0x7a   : > { %498 = vst [vmem:[%s3804_s27 + $0x27c] sm:$0xf] %v497_v31  ;;  %500 = vst [vmem:[%s3804_s27 + $0x280] sm:$0xf] %v499_v32  ;;  %v501_v33 = vld [vmem:[%s3797_s26 + $0xa10] sm:$0xf] }
  0x7b   : > { %v503_v34 = vld [vmem:[%s3797_s26 + $0xa20] sm:$0xf]  ;;  %v505_v35 = vld [vmem:[%s3797_s26 + $0xa30] sm:$0xf]  ;;  %502 = vst [vmem:[%s3804_s27 + $0x284] sm:$0xf] %v501_v33 }
  0x7c   : > { %504 = vst [vmem:[%s3804_s27 + $0x288] sm:$0xf] %v503_v34  ;;  %506 = vst [vmem:[%s3804_s27 + $0x28c] sm:$0xf] %v505_v35  ;;  %v507_v36 = vld [vmem:[%s3797_s26 + $0xa40] sm:$0xf] }
  0x7d   : > { %v509_v37 = vld [vmem:[%s3797_s26 + $0xa50] sm:$0xf]  ;;  %v511_v38 = vld [vmem:[%s3797_s26 + $0xa60] sm:$0xf]  ;;  %508 = vst [vmem:[%s3804_s27 + $0x290] sm:$0xf] %v507_v36 }
  0x7e   : > { %510 = vst [vmem:[%s3804_s27 + $0x294] sm:$0xf] %v509_v37  ;;  %512 = vst [vmem:[%s3804_s27 + $0x298] sm:$0xf] %v511_v38  ;;  %v513_v39 = vld [vmem:[%s3797_s26 + $0xa70] sm:$0xf] }
  0x7f   : > { %v515_v40 = vld [vmem:[%s3797_s26 + $0xa80] sm:$0xf]  ;;  %v517_v41 = vld [vmem:[%s3797_s26 + $0xa90] sm:$0xf]  ;;  %514 = vst [vmem:[%s3804_s27 + $0x29c] sm:$0xf] %v513_v39 }
  0x80   : > { %516 = vst [vmem:[%s3804_s27 + $0x2a0] sm:$0xf] %v515_v40  ;;  %518 = vst [vmem:[%s3804_s27 + $0x2a4] sm:$0xf] %v517_v41  ;;  %v519_v42 = vld [vmem:[%s3797_s26 + $0xaa0] sm:$0xf] }
  0x81   : > { %v521_v43 = vld [vmem:[%s3797_s26 + $0xab0] sm:$0xf]  ;;  %v523_v44 = vld [vmem:[%s3797_s26 + $0xac0] sm:$0xf]  ;;  %520 = vst [vmem:[%s3804_s27 + $0x2a8] sm:$0xf] %v519_v42 }
  0x82   : > { %522 = vst [vmem:[%s3804_s27 + $0x2ac] sm:$0xf] %v521_v43  ;;  %524 = vst [vmem:[%s3804_s27 + $0x2b0] sm:$0xf] %v523_v44  ;;  %v525_v45 = vld [vmem:[%s3797_s26 + $0xad0] sm:$0xf] }
  0x83   : > { %v527_v46 = vld [vmem:[%s3797_s26 + $0xae0] sm:$0xf]  ;;  %v529_v47 = vld [vmem:[%s3797_s26 + $0xaf0] sm:$0xf]  ;;  %526 = vst [vmem:[%s3804_s27 + $0x2b4] sm:$0xf] %v525_v45 }
  0x84   : > { %528 = vst [vmem:[%s3804_s27 + $0x2b8] sm:$0xf] %v527_v46  ;;  %530 = vst [vmem:[%s3804_s27 + $0x2bc] sm:$0xf] %v529_v47  ;;  %v531_v48 = vld [vmem:[%s3797_s26 + $0xb00] sm:$0xf] }
  0x85   : > { %v533_v49 = vld [vmem:[%s3797_s26 + $0xb10] sm:$0xf]  ;;  %v535_v50 = vld [vmem:[%s3797_s26 + $0xb20] sm:$0xf]  ;;  %532 = vst [vmem:[%s3804_s27 + $0x2c0] sm:$0xf] %v531_v48 }
  0x86   : > { %534 = vst [vmem:[%s3804_s27 + $0x2c4] sm:$0xf] %v533_v49  ;;  %536 = vst [vmem:[%s3804_s27 + $0x2c8] sm:$0xf] %v535_v50  ;;  %v537_v51 = vld [vmem:[%s3797_s26 + $0xb30] sm:$0xf] }
  0x87   : > { %v539_v52 = vld [vmem:[%s3797_s26 + $0xb40] sm:$0xf]  ;;  %v541_v53 = vld [vmem:[%s3797_s26 + $0xb50] sm:$0xf]  ;;  %538 = vst [vmem:[%s3804_s27 + $0x2cc] sm:$0xf] %v537_v51 }
  0x88   : > { %540 = vst [vmem:[%s3804_s27 + $0x2d0] sm:$0xf] %v539_v52  ;;  %542 = vst [vmem:[%s3804_s27 + $0x2d4] sm:$0xf] %v541_v53  ;;  %v543_v54 = vld [vmem:[%s3797_s26 + $0xb60] sm:$0xf] }
  0x89   : > { %v545_v55 = vld [vmem:[%s3797_s26 + $0xb70] sm:$0xf]  ;;  %v547_v56 = vld [vmem:[%s3797_s26 + $0xb80] sm:$0xf]  ;;  %544 = vst [vmem:[%s3804_s27 + $0x2d8] sm:$0xf] %v543_v54 }
  0x8a   : > { %546 = vst [vmem:[%s3804_s27 + $0x2dc] sm:$0xf] %v545_v55  ;;  %548 = vst [vmem:[%s3804_s27 + $0x2e0] sm:$0xf] %v547_v56  ;;  %v549_v57 = vld [vmem:[%s3797_s26 + $0xb90] sm:$0xf] }
  0x8b   : > { %v551_v58 = vld [vmem:[%s3797_s26 + $0xba0] sm:$0xf]  ;;  %v553_v59 = vld [vmem:[%s3797_s26 + $0xbb0] sm:$0xf]  ;;  %550 = vst [vmem:[%s3804_s27 + $0x2e4] sm:$0xf] %v549_v57 }
  0x8c   : > { %552 = vst [vmem:[%s3804_s27 + $0x2e8] sm:$0xf] %v551_v58  ;;  %554 = vst [vmem:[%s3804_s27 + $0x2ec] sm:$0xf] %v553_v59  ;;  %v555_v60 = vld [vmem:[%s3797_s26 + $0xbc0] sm:$0xf] }
  0x8d   : > { %v557_v61 = vld [vmem:[%s3797_s26 + $0xbd0] sm:$0xf]  ;;  %v559_v62 = vld [vmem:[%s3797_s26 + $0xbe0] sm:$0xf]  ;;  %556 = vst [vmem:[%s3804_s27 + $0x2f0] sm:$0xf] %v555_v60 }
  0x8e   : > { %558 = vst [vmem:[%s3804_s27 + $0x2f4] sm:$0xf] %v557_v61  ;;  %560 = vst [vmem:[%s3804_s27 + $0x2f8] sm:$0xf] %v559_v62  ;;  %v561_v63 = vld [vmem:[%s3797_s26 + $0xbf0] sm:$0xf] }
  0x8f   : > { %v563_v0 = vld [vmem:[%s3797_s26 + $0xc00] sm:$0xf]  ;;  %v565_v1 = vld [vmem:[%s3797_s26 + $0xc10] sm:$0xf]  ;;  %562 = vst [vmem:[%s3804_s27 + $0x2fc] sm:$0xf] %v561_v63 }
  0x90   : > { %564 = vst [vmem:[%s3804_s27 + $0x300] sm:$0xf] %v563_v0  ;;  %566 = vst [vmem:[%s3804_s27 + $0x304] sm:$0xf] %v565_v1  ;;  %v567_v2 = vld [vmem:[%s3797_s26 + $0xc20] sm:$0xf] }
  0x91   : > { %v569_v3 = vld [vmem:[%s3797_s26 + $0xc30] sm:$0xf]  ;;  %v571_v4 = vld [vmem:[%s3797_s26 + $0xc40] sm:$0xf]  ;;  %568 = vst [vmem:[%s3804_s27 + $0x308] sm:$0xf] %v567_v2 }
  0x92   : > { %570 = vst [vmem:[%s3804_s27 + $0x30c] sm:$0xf] %v569_v3  ;;  %572 = vst [vmem:[%s3804_s27 + $0x310] sm:$0xf] %v571_v4  ;;  %v573_v5 = vld [vmem:[%s3797_s26 + $0xc50] sm:$0xf] }
  0x93   : > { %v575_v6 = vld [vmem:[%s3797_s26 + $0xc60] sm:$0xf]  ;;  %v577_v7 = vld [vmem:[%s3797_s26 + $0xc70] sm:$0xf]  ;;  %574 = vst [vmem:[%s3804_s27 + $0x314] sm:$0xf] %v573_v5 }
  0x94   : > { %576 = vst [vmem:[%s3804_s27 + $0x318] sm:$0xf] %v575_v6  ;;  %578 = vst [vmem:[%s3804_s27 + $0x31c] sm:$0xf] %v577_v7  ;;  %v579_v8 = vld [vmem:[%s3797_s26 + $0xc80] sm:$0xf] }
  0x95   : > { %v581_v9 = vld [vmem:[%s3797_s26 + $0xc90] sm:$0xf]  ;;  %v583_v10 = vld [vmem:[%s3797_s26 + $0xca0] sm:$0xf]  ;;  %580 = vst [vmem:[%s3804_s27 + $0x320] sm:$0xf] %v579_v8 }
  0x96   : > { %582 = vst [vmem:[%s3804_s27 + $0x324] sm:$0xf] %v581_v9  ;;  %584 = vst [vmem:[%s3804_s27 + $0x328] sm:$0xf] %v583_v10  ;;  %v585_v11 = vld [vmem:[%s3797_s26 + $0xcb0] sm:$0xf] }
  0x97   : > { %v587_v12 = vld [vmem:[%s3797_s26 + $0xcc0] sm:$0xf]  ;;  %v589_v13 = vld [vmem:[%s3797_s26 + $0xcd0] sm:$0xf]  ;;  %586 = vst [vmem:[%s3804_s27 + $0x32c] sm:$0xf] %v585_v11 }
  0x98   : > { %588 = vst [vmem:[%s3804_s27 + $0x330] sm:$0xf] %v587_v12  ;;  %590 = vst [vmem:[%s3804_s27 + $0x334] sm:$0xf] %v589_v13  ;;  %v591_v14 = vld [vmem:[%s3797_s26 + $0xce0] sm:$0xf] }
  0x99   : > { %v593_v15 = vld [vmem:[%s3797_s26 + $0xcf0] sm:$0xf]  ;;  %v595_v16 = vld [vmem:[%s3797_s26 + $0xd00] sm:$0xf]  ;;  %592 = vst [vmem:[%s3804_s27 + $0x338] sm:$0xf] %v591_v14 }
  0x9a   : > { %594 = vst [vmem:[%s3804_s27 + $0x33c] sm:$0xf] %v593_v15  ;;  %596 = vst [vmem:[%s3804_s27 + $0x340] sm:$0xf] %v595_v16  ;;  %v597_v17 = vld [vmem:[%s3797_s26 + $0xd10] sm:$0xf] }
  0x9b   : > { %v599_v18 = vld [vmem:[%s3797_s26 + $0xd20] sm:$0xf]  ;;  %v601_v19 = vld [vmem:[%s3797_s26 + $0xd30] sm:$0xf]  ;;  %598 = vst [vmem:[%s3804_s27 + $0x344] sm:$0xf] %v597_v17 }
  0x9c   : > { %600 = vst [vmem:[%s3804_s27 + $0x348] sm:$0xf] %v599_v18  ;;  %602 = vst [vmem:[%s3804_s27 + $0x34c] sm:$0xf] %v601_v19  ;;  %v603_v20 = vld [vmem:[%s3797_s26 + $0xd40] sm:$0xf] }
  0x9d   : > { %v605_v21 = vld [vmem:[%s3797_s26 + $0xd50] sm:$0xf]  ;;  %v607_v22 = vld [vmem:[%s3797_s26 + $0xd60] sm:$0xf]  ;;  %604 = vst [vmem:[%s3804_s27 + $0x350] sm:$0xf] %v603_v20 }
  0x9e   : > { %606 = vst [vmem:[%s3804_s27 + $0x354] sm:$0xf] %v605_v21  ;;  %608 = vst [vmem:[%s3804_s27 + $0x358] sm:$0xf] %v607_v22  ;;  %v609_v23 = vld [vmem:[%s3797_s26 + $0xd70] sm:$0xf] }
  0x9f   : > { %v611_v24 = vld [vmem:[%s3797_s26 + $0xd80] sm:$0xf]  ;;  %v613_v25 = vld [vmem:[%s3797_s26 + $0xd90] sm:$0xf]  ;;  %610 = vst [vmem:[%s3804_s27 + $0x35c] sm:$0xf] %v609_v23 }
  0xa0   : > { %612 = vst [vmem:[%s3804_s27 + $0x360] sm:$0xf] %v611_v24  ;;  %614 = vst [vmem:[%s3804_s27 + $0x364] sm:$0xf] %v613_v25  ;;  %v615_v26 = vld [vmem:[%s3797_s26 + $0xda0] sm:$0xf] }
  0xa1   : > { %v617_v27 = vld [vmem:[%s3797_s26 + $0xdb0] sm:$0xf]  ;;  %v619_v28 = vld [vmem:[%s3797_s26 + $0xdc0] sm:$0xf]  ;;  %616 = vst [vmem:[%s3804_s27 + $0x368] sm:$0xf] %v615_v26 }
  0xa2   : > { %618 = vst [vmem:[%s3804_s27 + $0x36c] sm:$0xf] %v617_v27  ;;  %620 = vst [vmem:[%s3804_s27 + $0x370] sm:$0xf] %v619_v28  ;;  %v621_v29 = vld [vmem:[%s3797_s26 + $0xdd0] sm:$0xf] }
  0xa3   : > { %v623_v30 = vld [vmem:[%s3797_s26 + $0xde0] sm:$0xf]  ;;  %v625_v31 = vld [vmem:[%s3797_s26 + $0xdf0] sm:$0xf]  ;;  %622 = vst [vmem:[%s3804_s27 + $0x374] sm:$0xf] %v621_v29 }
  0xa4   : > { %624 = vst [vmem:[%s3804_s27 + $0x378] sm:$0xf] %v623_v30  ;;  %626 = vst [vmem:[%s3804_s27 + $0x37c] sm:$0xf] %v625_v31  ;;  %v627_v32 = vld [vmem:[%s3797_s26 + $0xe00] sm:$0xf] }
  0xa5   : > { %v629_v33 = vld [vmem:[%s3797_s26 + $0xe10] sm:$0xf]  ;;  %v631_v34 = vld [vmem:[%s3797_s26 + $0xe20] sm:$0xf]  ;;  %628 = vst [vmem:[%s3804_s27 + $0x380] sm:$0xf] %v627_v32 }
  0xa6   : > { %630 = vst [vmem:[%s3804_s27 + $0x384] sm:$0xf] %v629_v33  ;;  %632 = vst [vmem:[%s3804_s27 + $0x388] sm:$0xf] %v631_v34  ;;  %v633_v35 = vld [vmem:[%s3797_s26 + $0xe30] sm:$0xf] }
  0xa7   : > { %v635_v36 = vld [vmem:[%s3797_s26 + $0xe40] sm:$0xf]  ;;  %v637_v37 = vld [vmem:[%s3797_s26 + $0xe50] sm:$0xf]  ;;  %634 = vst [vmem:[%s3804_s27 + $0x38c] sm:$0xf] %v633_v35 }
  0xa8   : > { %636 = vst [vmem:[%s3804_s27 + $0x390] sm:$0xf] %v635_v36  ;;  %638 = vst [vmem:[%s3804_s27 + $0x394] sm:$0xf] %v637_v37  ;;  %v639_v38 = vld [vmem:[%s3797_s26 + $0xe60] sm:$0xf] }
  0xa9   : > { %v641_v39 = vld [vmem:[%s3797_s26 + $0xe70] sm:$0xf]  ;;  %v643_v40 = vld [vmem:[%s3797_s26 + $0xe80] sm:$0xf]  ;;  %640 = vst [vmem:[%s3804_s27 + $0x398] sm:$0xf] %v639_v38 }
  0xaa   : > { %642 = vst [vmem:[%s3804_s27 + $0x39c] sm:$0xf] %v641_v39  ;;  %644 = vst [vmem:[%s3804_s27 + $0x3a0] sm:$0xf] %v643_v40  ;;  %v645_v41 = vld [vmem:[%s3797_s26 + $0xe90] sm:$0xf] }
  0xab   : > { %v647_v42 = vld [vmem:[%s3797_s26 + $0xea0] sm:$0xf]  ;;  %v649_v43 = vld [vmem:[%s3797_s26 + $0xeb0] sm:$0xf]  ;;  %646 = vst [vmem:[%s3804_s27 + $0x3a4] sm:$0xf] %v645_v41 }
  0xac   : > { %648 = vst [vmem:[%s3804_s27 + $0x3a8] sm:$0xf] %v647_v42  ;;  %650 = vst [vmem:[%s3804_s27 + $0x3ac] sm:$0xf] %v649_v43  ;;  %v651_v44 = vld [vmem:[%s3797_s26 + $0xec0] sm:$0xf] }
  0xad   : > { %v653_v45 = vld [vmem:[%s3797_s26 + $0xed0] sm:$0xf]  ;;  %v655_v46 = vld [vmem:[%s3797_s26 + $0xee0] sm:$0xf]  ;;  %652 = vst [vmem:[%s3804_s27 + $0x3b0] sm:$0xf] %v651_v44 }
  0xae   : > { %654 = vst [vmem:[%s3804_s27 + $0x3b4] sm:$0xf] %v653_v45  ;;  %656 = vst [vmem:[%s3804_s27 + $0x3b8] sm:$0xf] %v655_v46  ;;  %v657_v47 = vld [vmem:[%s3797_s26 + $0xef0] sm:$0xf] }
  0xaf   : > { %v659_v48 = vld [vmem:[%s3797_s26 + $0xf00] sm:$0xf]  ;;  %v661_v49 = vld [vmem:[%s3797_s26 + $0xf10] sm:$0xf]  ;;  %658 = vst [vmem:[%s3804_s27 + $0x3bc] sm:$0xf] %v657_v47 }
  0xb0   : > { %660 = vst [vmem:[%s3804_s27 + $0x3c0] sm:$0xf] %v659_v48  ;;  %662 = vst [vmem:[%s3804_s27 + $0x3c4] sm:$0xf] %v661_v49  ;;  %v663_v50 = vld [vmem:[%s3797_s26 + $0xf20] sm:$0xf] }
  0xb1   : > { %v665_v51 = vld [vmem:[%s3797_s26 + $0xf30] sm:$0xf]  ;;  %v667_v52 = vld [vmem:[%s3797_s26 + $0xf40] sm:$0xf]  ;;  %664 = vst [vmem:[%s3804_s27 + $0x3c8] sm:$0xf] %v663_v50 }
  0xb2   : > { %666 = vst [vmem:[%s3804_s27 + $0x3cc] sm:$0xf] %v665_v51  ;;  %668 = vst [vmem:[%s3804_s27 + $0x3d0] sm:$0xf] %v667_v52  ;;  %v669_v53 = vld [vmem:[%s3797_s26 + $0xf50] sm:$0xf] }
  0xb3   : > { %v671_v54 = vld [vmem:[%s3797_s26 + $0xf60] sm:$0xf]  ;;  %v673_v55 = vld [vmem:[%s3797_s26 + $0xf70] sm:$0xf]  ;;  %670 = vst [vmem:[%s3804_s27 + $0x3d4] sm:$0xf] %v669_v53 }
  0xb4   : > { %672 = vst [vmem:[%s3804_s27 + $0x3d8] sm:$0xf] %v671_v54  ;;  %674 = vst [vmem:[%s3804_s27 + $0x3dc] sm:$0xf] %v673_v55  ;;  %v675_v56 = vld [vmem:[%s3797_s26 + $0xf80] sm:$0xf] }
  0xb5   : > { %v677_v57 = vld [vmem:[%s3797_s26 + $0xf90] sm:$0xf]  ;;  %v679_v58 = vld [vmem:[%s3797_s26 + $0xfa0] sm:$0xf]  ;;  %676 = vst [vmem:[%s3804_s27 + $0x3e0] sm:$0xf] %v675_v56 }
  0xb6   : > { %678 = vst [vmem:[%s3804_s27 + $0x3e4] sm:$0xf] %v677_v57  ;;  %680 = vst [vmem:[%s3804_s27 + $0x3e8] sm:$0xf] %v679_v58  ;;  %v681_v59 = vld [vmem:[%s3797_s26 + $0xfb0] sm:$0xf] }
  0xb7   : > { %v683_v60 = vld [vmem:[%s3797_s26 + $0xfc0] sm:$0xf]  ;;  %v685_v61 = vld [vmem:[%s3797_s26 + $0xfd0] sm:$0xf]  ;;  %682 = vst [vmem:[%s3804_s27 + $0x3ec] sm:$0xf] %v681_v59 }
  0xb8   : > { %684 = vst [vmem:[%s3804_s27 + $0x3f0] sm:$0xf] %v683_v60  ;;  %686 = vst [vmem:[%s3804_s27 + $0x3f4] sm:$0xf] %v685_v61  ;;  %v687_v62 = vld [vmem:[%s3797_s26 + $0xfe0] sm:$0xf] }
  0xb9   : > { %v689_v63 = vld [vmem:[%s3797_s26 + $0xff0] sm:$0xf]  ;;  %v691_v0 = vld [vmem:[%s3797_s26 + $0x1000] sm:$0xf]  ;;  %688 = vst [vmem:[%s3804_s27 + $0x3f8] sm:$0xf] %v687_v62 }
  0xba   : > { %690 = vst [vmem:[%s3804_s27 + $0x3fc] sm:$0xf] %v689_v63  ;;  %692 = vst [vmem:[%s3804_s27 + $0x400] sm:$0xf] %v691_v0  ;;  %v693_v1 = vld [vmem:[%s3797_s26 + $0x1010] sm:$0xf] }
  0xbb   : > { %v695_v2 = vld [vmem:[%s3797_s26 + $0x1020] sm:$0xf]  ;;  %v697_v3 = vld [vmem:[%s3797_s26 + $0x1030] sm:$0xf]  ;;  %694 = vst [vmem:[%s3804_s27 + $0x404] sm:$0xf] %v693_v1 }
  0xbc   : > { %696 = vst [vmem:[%s3804_s27 + $0x408] sm:$0xf] %v695_v2  ;;  %698 = vst [vmem:[%s3804_s27 + $0x40c] sm:$0xf] %v697_v3  ;;  %v699_v4 = vld [vmem:[%s3797_s26 + $0x1040] sm:$0xf] }
  0xbd   : > { %v701_v5 = vld [vmem:[%s3797_s26 + $0x1050] sm:$0xf]  ;;  %v703_v6 = vld [vmem:[%s3797_s26 + $0x1060] sm:$0xf]  ;;  %700 = vst [vmem:[%s3804_s27 + $0x410] sm:$0xf] %v699_v4 }
  0xbe   : > { %702 = vst [vmem:[%s3804_s27 + $0x414] sm:$0xf] %v701_v5  ;;  %704 = vst [vmem:[%s3804_s27 + $0x418] sm:$0xf] %v703_v6  ;;  %v705_v7 = vld [vmem:[%s3797_s26 + $0x1070] sm:$0xf] }
  0xbf   : > { %v707_v8 = vld [vmem:[%s3797_s26 + $0x1080] sm:$0xf]  ;;  %v709_v9 = vld [vmem:[%s3797_s26 + $0x1090] sm:$0xf]  ;;  %706 = vst [vmem:[%s3804_s27 + $0x41c] sm:$0xf] %v705_v7 }
  0xc0   : > { %708 = vst [vmem:[%s3804_s27 + $0x420] sm:$0xf] %v707_v8  ;;  %710 = vst [vmem:[%s3804_s27 + $0x424] sm:$0xf] %v709_v9  ;;  %v711_v10 = vld [vmem:[%s3797_s26 + $0x10a0] sm:$0xf] }
  0xc1   : > { %v713_v11 = vld [vmem:[%s3797_s26 + $0x10b0] sm:$0xf]  ;;  %v715_v12 = vld [vmem:[%s3797_s26 + $0x10c0] sm:$0xf]  ;;  %712 = vst [vmem:[%s3804_s27 + $0x428] sm:$0xf] %v711_v10 }
  0xc2   : > { %714 = vst [vmem:[%s3804_s27 + $0x42c] sm:$0xf] %v713_v11  ;;  %716 = vst [vmem:[%s3804_s27 + $0x430] sm:$0xf] %v715_v12  ;;  %v717_v13 = vld [vmem:[%s3797_s26 + $0x10d0] sm:$0xf] }
  0xc3   : > { %v719_v14 = vld [vmem:[%s3797_s26 + $0x10e0] sm:$0xf]  ;;  %v721_v15 = vld [vmem:[%s3797_s26 + $0x10f0] sm:$0xf]  ;;  %718 = vst [vmem:[%s3804_s27 + $0x434] sm:$0xf] %v717_v13 }
  0xc4   : > { %720 = vst [vmem:[%s3804_s27 + $0x438] sm:$0xf] %v719_v14  ;;  %722 = vst [vmem:[%s3804_s27 + $0x43c] sm:$0xf] %v721_v15  ;;  %v723_v16 = vld [vmem:[%s3797_s26 + $0x1100] sm:$0xf] }
  0xc5   : > { %v725_v17 = vld [vmem:[%s3797_s26 + $0x1110] sm:$0xf]  ;;  %v727_v18 = vld [vmem:[%s3797_s26 + $0x1120] sm:$0xf]  ;;  %724 = vst [vmem:[%s3804_s27 + $0x440] sm:$0xf] %v723_v16 }
  0xc6   : > { %726 = vst [vmem:[%s3804_s27 + $0x444] sm:$0xf] %v725_v17  ;;  %728 = vst [vmem:[%s3804_s27 + $0x448] sm:$0xf] %v727_v18  ;;  %v729_v19 = vld [vmem:[%s3797_s26 + $0x1130] sm:$0xf] }
  0xc7   : > { %v731_v20 = vld [vmem:[%s3797_s26 + $0x1140] sm:$0xf]  ;;  %v733_v21 = vld [vmem:[%s3797_s26 + $0x1150] sm:$0xf]  ;;  %730 = vst [vmem:[%s3804_s27 + $0x44c] sm:$0xf] %v729_v19 }
  0xc8   : > { %732 = vst [vmem:[%s3804_s27 + $0x450] sm:$0xf] %v731_v20  ;;  %734 = vst [vmem:[%s3804_s27 + $0x454] sm:$0xf] %v733_v21  ;;  %v735_v22 = vld [vmem:[%s3797_s26 + $0x1160] sm:$0xf] }
  0xc9   : > { %v737_v23 = vld [vmem:[%s3797_s26 + $0x1170] sm:$0xf]  ;;  %v739_v24 = vld [vmem:[%s3797_s26 + $0x1180] sm:$0xf]  ;;  %736 = vst [vmem:[%s3804_s27 + $0x458] sm:$0xf] %v735_v22 }
  0xca   : > { %738 = vst [vmem:[%s3804_s27 + $0x45c] sm:$0xf] %v737_v23  ;;  %740 = vst [vmem:[%s3804_s27 + $0x460] sm:$0xf] %v739_v24  ;;  %v741_v25 = vld [vmem:[%s3797_s26 + $0x1190] sm:$0xf] }
  0xcb   : > { %v743_v26 = vld [vmem:[%s3797_s26 + $0x11a0] sm:$0xf]  ;;  %v745_v27 = vld [vmem:[%s3797_s26 + $0x11b0] sm:$0xf]  ;;  %742 = vst [vmem:[%s3804_s27 + $0x464] sm:$0xf] %v741_v25 }
  0xcc   : > { %744 = vst [vmem:[%s3804_s27 + $0x468] sm:$0xf] %v743_v26  ;;  %746 = vst [vmem:[%s3804_s27 + $0x46c] sm:$0xf] %v745_v27  ;;  %v747_v28 = vld [vmem:[%s3797_s26 + $0x11c0] sm:$0xf] }
  0xcd   : > { %v749_v29 = vld [vmem:[%s3797_s26 + $0x11d0] sm:$0xf]  ;;  %v751_v30 = vld [vmem:[%s3797_s26 + $0x11e0] sm:$0xf]  ;;  %748 = vst [vmem:[%s3804_s27 + $0x470] sm:$0xf] %v747_v28 }
  0xce   : > { %750 = vst [vmem:[%s3804_s27 + $0x474] sm:$0xf] %v749_v29  ;;  %752 = vst [vmem:[%s3804_s27 + $0x478] sm:$0xf] %v751_v30  ;;  %v753_v31 = vld [vmem:[%s3797_s26 + $0x11f0] sm:$0xf] }
  0xcf   : > { %754 = vst [vmem:[%s3804_s27 + $0x47c] sm:$0xf] %v753_v31 }
  0xd0 PF: > { %p3125_p6 = scmp.ge.s32.totalorder %s3732_s16, 1  ;;  %p1359_p7 = scmp.lt.s32.totalorder %s3732_s16, 5 }
  0xd2   : > { %p1360_p8 = pnand %p3125_p6, %p1359_p7 }
  0xd3   : > { %s1366_s28 = sand.u32 (!%p1360_p8), 1, %s3716_s12   ;;  %p1405_p9 = scmp.lt.s32.totalorder (!%p1360_p8), %s3724_s14, 3 }
  0xd4   : > { %1363 = sbr.rel (%p1360_p8) target bundleno = 582 (0x246), region = 69 }
  0xd5   : > { %s3491_s6 = smul.u32 (!%p1360_p8), 1152, %s1366_s28 }
  0xd7   : > { %s4394_s7 = scalar_lea.vmem (!%p1360_p8), [#allocation2], %s3491_s6 }
  0xd9   : > { %v4383_v32 = vld [vmem:[%s4622_s0] sm:$0xff]  ;;  %v4388_v33 = vld [vmem:[%s4622_s0 + $0x8] sm:$0xff]  ;;  %v3532_v36 = vld [vmem:[%s4394_s7 + $0x78] sm:$0xff]   ;;  %s4633_s14 = smov (!%p1405_p9, %s3724_s14), 3 }
  0xda   : > { %v3129_v34 = vcombine.high %v4383_v32, %v4383_v32  ;;  %v3131_v35 = vcombine.high %v4388_v33, %v4388_v33  ;;  %v3533_v37 = vld [vmem:[%s4394_s7 + $0x38] sm:$0xff]   ;;  %3292 = vmatprep.subr.bf16.mxu0 %v3532_v36  ;;  %v3536_v40 = vld [vmem:[%s4394_s7 + $0x70] sm:$0xff]   ;;  %v3540_v44 = vld [vmem:[%s4394_s7 + $0x68] sm:$0xff]   ;;  %v3128_v5 = vcombine.low %v4383_v32, %v4383_v32  ;;  %v3130_v9 = vcombine.low %v4388_v33, %v4388_v33  ;;  %s1407_s30 = scalar_lea.vmem %s4624_s2, %s4633_s14  ;;  %s3126_s4 = sshll.u32 %s4633_s14, 2 }
  0xdb   : > { %v3534_v38 = vld [vmem:[%s4394_s7 + $0xf8] sm:$0xff]   ;;  %3293 = vmatpush3.bf16.msra.mxu0 %v3533_v37  ;;  %v3537_v41 = vld [vmem:[%s4394_s7 + $0x30] sm:$0xff]   ;;  %v3541_v45 = vld [vmem:[%s4394_s7 + $0x28] sm:$0xff]  }
  0xdc   : > { %2680 = vmatprep.mubr.bf16.mxu0 %v3129_v34  ;;  %2720 = vmatprep.mubr.bf16.mxu1 %v3131_v35  ;;  %v3535_v39 = vld [vmem:[%s4394_s7 + $0xb8] sm:$0xff]   ;;  %v3538_v42 = vld [vmem:[%s4394_s7 + $0xf0] sm:$0xff]   ;;  %v3542_v46 = vld [vmem:[%s4394_s7 + $0xe8] sm:$0xff]  }
  0xdd   : > { %3314 = vmatprep.subr.bf16.mxu1 %v3534_v38  ;;  %3294 = vmatprep.subr.bf16.mxu0 %v3536_v40  ;;  %v3539_v43 = vld [vmem:[%s4394_s7 + $0xb0] sm:$0xff]   ;;  %v3543_v47 = vld [vmem:[%s4394_s7 + $0xa8] sm:$0xff]   ;;  %v3544_v48 = vld [vmem:[%s4394_s7 + $0x60] sm:$0xff]  }
  0xde   : > { %3315 = vmatpush3.bf16.msra.mxu1 %v3535_v39  ;;  %v3545_v49 = vld [vmem:[%s4394_s7 + $0x20] sm:$0xff]   ;;  %v3548_v52 = vld [vmem:[%s4394_s7 + $0x58] sm:$0xff]   ;;  %v3552_v56 = vld [vmem:[%s4394_s7 + $0x50] sm:$0xff]  }
  0xdf   : > { %3295 = vmatpush3.bf16.msra.mxu0 %v3537_v41  ;;  %3316 = vmatprep.subr.bf16.mxu1 %v3538_v42  ;;  %v3546_v50 = vld [vmem:[%s4394_s7 + $0xe0] sm:$0xff]   ;;  %v3549_v53 = vld [vmem:[%s4394_s7 + $0x18] sm:$0xff]   ;;  %v3553_v57 = vld [vmem:[%s4394_s7 + $0x10] sm:$0xff]  }
  0xe0   : > { %3296 = vmatprep.subr.bf16.mxu0 %v3540_v44  ;;  %v3547_v51 = vld [vmem:[%s4394_s7 + $0xa0] sm:$0xff]   ;;  %v3550_v54 = vld [vmem:[%s4394_s7 + $0xd8] sm:$0xff]   ;;  %v3554_v58 = vld [vmem:[%s4394_s7 + $0xd0] sm:$0xff]  }
  0xe1   : > { %v3551_v55 = vld [vmem:[%s4394_s7 + $0x98] sm:$0xff]   ;;  %v3555_v59 = vld [vmem:[%s4394_s7 + $0x90] sm:$0xff]   ;;  %v3556_v60 = vld [vmem:[%s4394_s7 + $0x48] sm:$0xff]  }
  0xe2   : > { %3317 = vmatpush3.bf16.msra.mxu1 %v3539_v43  ;;  %v3557_v61 = vld [vmem:[%s4394_s7 + $0x8] sm:$0xff]   ;;  %v4426_v63 = vld [vmem:[%s4622_s0 + $0x10] sm:$0xff]  ;;  %v3560_v1 = vld [vmem:[%s4394_s7 + $0x40] sm:$0xff]  }
  0xe3   : > { %3297 = vmatpush3.bf16.msra.mxu0 %v3541_v45  ;;  %3318 = vmatprep.subr.bf16.mxu1 %v3542_v46  ;;  %v3558_v62 = vld [vmem:[%s4394_s7 + $0xc8] sm:$0xff]   ;;  %v4433_v2 = vld [vmem:[%s4622_s0 + $0x18] sm:$0xff]  ;;  %v3561_v3 = vld [vmem:[%s4394_s7] sm:$0xff]   ;;  %v3133_v7 = vcombine.high %v4426_v63, %v4426_v63  ;;  %v3132_v43 = vcombine.low %v4426_v63, %v4426_v63 }
  0xe4   : > { %3298 = vmatprep.subr.bf16.mxu0 %v3544_v48  ;;  %v3559_v0 = vld [vmem:[%s4394_s7 + $0x88] sm:$0xff]   ;;  %v3562_v4 = vld [vmem:[%s4394_s7 + $0xc0] sm:$0xff]   ;;  %v3566_v8 = vld [vmem:[%s4394_s7 + $0x178] sm:$0xff]   ;;  %v3135_v11 = vcombine.high %v4433_v2, %v4433_v2 }
  0xe5   : > { %v3565_v6 = vld [vmem:[%s4394_s7 + $0x80] sm:$0xff]   ;;  %v3569_v10 = vld [vmem:[%s4394_s7 + $0x138] sm:$0xff]   ;;  %v3572_v14 = vld [vmem:[%s4394_s7 + $0x170] sm:$0xff]  }
  0xe6   : > { %3319 = vmatpush3.bf16.msra.mxu1 %v3543_v47  ;;  %v3570_v12 = vld [vmem:[%s4394_s7 + $0x1f8] sm:$0xff]   ;;  %v3573_v15 = vld [vmem:[%s4394_s7 + $0x130] sm:$0xff]   ;;  %v3576_v18 = vld [vmem:[%s4394_s7 + $0x168] sm:$0xff]   ;;  %v3134_v47 = vcombine.low %v4433_v2, %v4433_v2 }
  0xe7   : > { %3299 = vmatpush3.bf16.msra.mxu0 %v3545_v49  ;;  %3320 = vmatprep.subr.bf16.mxu1 %v3546_v50  ;;  %v3571_v13 = vld [vmem:[%s4394_s7 + $0x1b8] sm:$0xff]   ;;  %v3574_v16 = vld [vmem:[%s4394_s7 + $0x1f0] sm:$0xff]   ;;  %v3577_v19 = vld [vmem:[%s4394_s7 + $0x128] sm:$0xff]  }
  0xe8   : > { %3300 = vmatprep.subr.bf16.mxu0 %v3548_v52  ;;  %v3575_v17 = vld [vmem:[%s4394_s7 + $0x1b0] sm:$0xff]   ;;  %v3578_v20 = vld [vmem:[%s4394_s7 + $0x1e8] sm:$0xff]   ;;  %v3580_v22 = vld [vmem:[%s4394_s7 + $0x160] sm:$0xff]  }
  0xe9   : > { %v3579_v21 = vld [vmem:[%s4394_s7 + $0x1a8] sm:$0xff]   ;;  %v3581_v23 = vld [vmem:[%s4394_s7 + $0x120] sm:$0xff]   ;;  %v3584_v26 = vld [vmem:[%s4394_s7 + $0x158] sm:$0xff]  }
  0xea   : > { %3321 = vmatpush3.bf16.msra.mxu1 %v3547_v51  ;;  %v3582_v24 = vld [vmem:[%s4394_s7 + $0x1e0] sm:$0xff]   ;;  %v3585_v27 = vld [vmem:[%s4394_s7 + $0x118] sm:$0xff]   ;;  %v3588_v30 = vld [vmem:[%s4394_s7 + $0x150] sm:$0xff]  }
  0xeb   : > { %3301 = vmatpush3.bf16.msra.mxu0 %v3549_v53  ;;  %3322 = vmatprep.subr.bf16.mxu1 %v3550_v54  ;;  %v3583_v25 = vld [vmem:[%s4394_s7 + $0x1a0] sm:$0xff]   ;;  %v3586_v28 = vld [vmem:[%s4394_s7 + $0x1d8] sm:$0xff]   ;;  %v3589_v31 = vld [vmem:[%s4394_s7 + $0x110] sm:$0xff]  }
  0xec   : > { %3302 = vmatprep.subr.bf16.mxu0 %v3552_v56  ;;  %v3587_v29 = vld [vmem:[%s4394_s7 + $0x198] sm:$0xff]   ;;  %v3590_v32 = vld [vmem:[%s4394_s7 + $0x1d0] sm:$0xff]   ;;  %v3592_v34 = vld [vmem:[%s4394_s7 + $0x148] sm:$0xff]  }
  0xed   : > { %v3591_v33 = vld [vmem:[%s4394_s7 + $0x190] sm:$0xff]   ;;  %v3593_v35 = vld [vmem:[%s4394_s7 + $0x108] sm:$0xff]   ;;  %v4476_v37 = vld [vmem:[%s4622_s0 + $0x20] sm:$0xff] }
  0xee   : > { %3323 = vmatpush3.bf16.msra.mxu1 %v3551_v55  ;;  %v3594_v36 = vld [vmem:[%s4394_s7 + $0x1c8] sm:$0xff]   ;;  %v3596_v39 = vld [vmem:[%s4394_s7 + $0x140] sm:$0xff]   ;;  %v3137_v45 = vcombine.high %v4476_v37, %v4476_v37  ;;  %v3602_v46 = vld [vmem:[%s4394_s7 + $0x278] sm:$0xff]  }
  0xef   : > { %3303 = vmatpush3.bf16.msra.mxu0 %v3553_v57  ;;  %3324 = vmatprep.subr.bf16.mxu1 %v3554_v58  ;;  %v3595_v38 = vld [vmem:[%s4394_s7 + $0x188] sm:$0xff]   ;;  %v3597_v41 = vld [vmem:[%s4394_s7 + $0x100] sm:$0xff]   ;;  %v3605_v48 = vld [vmem:[%s4394_s7 + $0x238] sm:$0xff]  }
  0xf0   : > { %3304 = vmatprep.subr.bf16.mxu0 %v3556_v60  ;;  %v4483_v40 = vld [vmem:[%s4622_s0 + $0x28] sm:$0xff]  ;;  %v3598_v42 = vld [vmem:[%s4394_s7 + $0x1c0] sm:$0xff]   ;;  %v3606_v50 = vld [vmem:[%s4394_s7 + $0x2f8] sm:$0xff]  }
  0xf1   : > { %v3601_v44 = vld [vmem:[%s4394_s7 + $0x180] sm:$0xff]   ;;  %v3139_v49 = vcombine.high %v4483_v40, %v4483_v40  ;;  %v3607_v51 = vld [vmem:[%s4394_s7 + $0x2b8] sm:$0xff]   ;;  %v3608_v52 = vld [vmem:[%s4394_s7 + $0x270] sm:$0xff]  }
  0xf2   : > { %3325 = vmatpush3.bf16.msra.mxu1 %v3555_v59  ;;  %v3609_v53 = vld [vmem:[%s4394_s7 + $0x230] sm:$0xff]   ;;  %v3612_v56 = vld [vmem:[%s4394_s7 + $0x268] sm:$0xff]   ;;  %v3616_v60 = vld [vmem:[%s4394_s7 + $0x260] sm:$0xff]  }
  0xf3   : > { %3305 = vmatpush3.bf16.msra.mxu0 %v3557_v61  ;;  %3326 = vmatprep.subr.bf16.mxu1 %v3558_v62  ;;  %v3610_v54 = vld [vmem:[%s4394_s7 + $0x2f0] sm:$0xff]   ;;  %v3613_v57 = vld [vmem:[%s4394_s7 + $0x228] sm:$0xff]   ;;  %v3617_v61 = vld [vmem:[%s4394_s7 + $0x220] sm:$0xff]  }
  0xf4   : > { %3306 = vmatprep.subr.bf16.mxu0 %v3560_v1  ;;  %v3611_v55 = vld [vmem:[%s4394_s7 + $0x2b0] sm:$0xff]   ;;  %v3614_v58 = vld [vmem:[%s4394_s7 + $0x2e8] sm:$0xff]   ;;  %v3618_v62 = vld [vmem:[%s4394_s7 + $0x2e0] sm:$0xff]  }
  0xf5   : > { %v3615_v59 = vld [vmem:[%s4394_s7 + $0x2a8] sm:$0xff]   ;;  %v3619_v63 = vld [vmem:[%s4394_s7 + $0x2a0] sm:$0xff]   ;;  %v3621_v1 = vld [vmem:[%s4394_s7 + $0x218] sm:$0xff]  }
  0xf6   : > { %3327 = vmatpush3.bf16.msra.mxu1 %v3559_v0  ;;  %v3620_v0 = vld [vmem:[%s4394_s7 + $0x258] sm:$0xff]  }
  0xf7   : > { %3307 = vmatpush3.bf16.msra.mxu0 %v3561_v3  ;;  %3328 = vmatprep.subr.bf16.mxu1 %v3562_v4  ;;  %v3622_v2 = vld [vmem:[%s4394_s7 + $0x2d8] sm:$0xff]   ;;  %v3624_v4 = vld [vmem:[%s4394_s7 + $0x250] sm:$0xff]  }
  0xf8   : > { %3336 = vmatprep.subr.bf16.mxu0 %v3566_v8  ;;  %v3623_v3 = vld [vmem:[%s4394_s7 + $0x298] sm:$0xff]   ;;  %v3628_v8 = vld [vmem:[%s4394_s7 + $0x248] sm:$0xff]  }
  0xfa   : > { %3329 = vmatpush3.bf16.msra.mxu1 %v3565_v6  ;;  %2681 = vmatmul.mubr.bf16.vlgmr.msra.gmra.mxu0 %v3128_v5  ;;  %v3625_v5 = vld [vmem:[%s4394_s7 + $0x210] sm:$0xff]  }
  0xfb   : > { %3337 = vmatpush3.bf16.msra.mxu0 %v3569_v10  ;;  %2760 = vmatprep.mubr.bf16.mxu0 %v3133_v7  ;;  %v3626_v6 = vld [vmem:[%s4394_s7 + $0x2d0] sm:$0xff]   ;;  %v3630_v10 = vld [vmem:[%s4394_s7 + $0x2c8] sm:$0xff]  }
  0xfc   : > { %3358 = vmatprep.subr.bf16.mxu1 %v3570_v12  ;;  %3338 = vmatprep.subr.bf16.mxu0 %v3572_v14  ;;  %v3627_v7 = vld [vmem:[%s4394_s7 + $0x290] sm:$0xff]   ;;  %v3631_v12 = vld [vmem:[%s4394_s7 + $0x288] sm:$0xff]   ;;  %v3633_v14 = vld [vmem:[%s4394_s7 + $0x200] sm:$0xff]  }
  0xfd   : > { %2721 = vmatmul.mubr.bf16.vlgmr.msra.gmra.mxu1 %v3130_v9  ;;  %v3629_v9 = vld [vmem:[%s4394_s7 + $0x208] sm:$0xff]  }
  0xfe   : > { %3359 = vmatpush3.bf16.msra.mxu1 %v3571_v13  ;;  %2800 = vmatprep.mubr.bf16.mxu1 %v3135_v11  ;;  %v4526_v11 = vld [vmem:[%s4622_s0 + $0x30] sm:$0xff]  ;;  %v3632_v13 = vld [vmem:[%s4394_s7 + $0x240] sm:$0xff]  }
  0xff   : > { %3339 = vmatpush3.bf16.msra.mxu0 %v3573_v15  ;;  %3360 = vmatprep.subr.bf16.mxu1 %v3574_v16  ;;  %v3634_v15 = vld [vmem:[%s4394_s7 + $0x2c0] sm:$0xff]   ;;  %v3136_v16 = vcombine.low %v4476_v37, %v4476_v37  ;;  %v3657_v37 = vld [vmem:[%s4394_s7 + $0x318] sm:$0xff]  }
 0x100   : > { %3340 = vmatprep.subr.bf16.mxu0 %v3576_v18  ;;  %v3141_v18 = vcombine.high %v4526_v11, %v4526_v11 }
 0x102   : > { %3361 = vmatpush3.bf16.msra.mxu1 %v3575_v17  ;;  %v3637_v17 = vld [vmem:[%s4394_s7 + $0x280] sm:$0xff]  }
 0x103   : > { %3341 = vmatpush3.bf16.msra.mxu0 %v3577_v19  ;;  %3362 = vmatprep.subr.bf16.mxu1 %v3578_v20  ;;  %v3638_v19 = vld [vmem:[%s4394_s7 + $0x378] sm:$0xff]   ;;  %v3138_v20 = vcombine.low %v4483_v40, %v4483_v40  ;;  %v3660_v40 = vld [vmem:[%s4394_s7 + $0x350] sm:$0xff]  }
 0x104   : > { %3342 = vmatprep.subr.bf16.mxu0 %v3580_v22  ;;  %v3642_v22 = vld [vmem:[%s4394_s7 + $0x3f8] sm:$0xff]  }
 0x106   : > { %3363 = vmatpush3.bf16.msra.mxu1 %v3579_v21  ;;  %v3641_v21 = vld [vmem:[%s4394_s7 + $0x338] sm:$0xff]  }
 0x107   : > { %3343 = vmatpush3.bf16.msra.mxu0 %v3581_v23  ;;  %3364 = vmatprep.subr.bf16.mxu1 %v3582_v24  ;;  %v3643_v23 = vld [vmem:[%s4394_s7 + $0x3b8] sm:$0xff]   ;;  %v3644_v24 = vld [vmem:[%s4394_s7 + $0x370] sm:$0xff]  }
 0x108   : > { %3344 = vmatprep.subr.bf16.mxu0 %v3584_v26  ;;  %v3646_v26 = vld [vmem:[%s4394_s7 + $0x3f0] sm:$0xff]  }
 0x10a   : > { %3365 = vmatpush3.bf16.msra.mxu1 %v3583_v25  ;;  %v3645_v25 = vld [vmem:[%s4394_s7 + $0x330] sm:$0xff]  }
 0x10b   : > { %3345 = vmatpush3.bf16.msra.mxu0 %v3585_v27  ;;  %3366 = vmatprep.subr.bf16.mxu1 %v3586_v28  ;;  %v3647_v27 = vld [vmem:[%s4394_s7 + $0x3b0] sm:$0xff]   ;;  %v3648_v28 = vld [vmem:[%s4394_s7 + $0x368] sm:$0xff]  }
 0x10c   : > { %3346 = vmatprep.subr.bf16.mxu0 %v3588_v30  ;;  %v3650_v30 = vld [vmem:[%s4394_s7 + $0x3e8] sm:$0xff]  }
 0x10e   : > { %3367 = vmatpush3.bf16.msra.mxu1 %v3587_v29  ;;  %v3649_v29 = vld [vmem:[%s4394_s7 + $0x328] sm:$0xff]  }
 0x10f   : > { %3347 = vmatpush3.bf16.msra.mxu0 %v3589_v31  ;;  %3368 = vmatprep.subr.bf16.mxu1 %v3590_v32  ;;  %v3651_v31 = vld [vmem:[%s4394_s7 + $0x3a8] sm:$0xff]   ;;  %v3652_v32 = vld [vmem:[%s4394_s7 + $0x360] sm:$0xff]  }
 0x110   : > { %3348 = vmatprep.subr.bf16.mxu0 %v3592_v34  ;;  %v3654_v34 = vld [vmem:[%s4394_s7 + $0x3e0] sm:$0xff]  }
 0x112   : > { %3369 = vmatpush3.bf16.msra.mxu1 %v3591_v33  ;;  %v3653_v33 = vld [vmem:[%s4394_s7 + $0x320] sm:$0xff]  }
 0x113   : > { %3349 = vmatpush3.bf16.msra.mxu0 %v3593_v35  ;;  %3370 = vmatprep.subr.bf16.mxu1 %v3594_v36  ;;  %v3655_v35 = vld [vmem:[%s4394_s7 + $0x3a0] sm:$0xff]   ;;  %v3656_v36 = vld [vmem:[%s4394_s7 + $0x358] sm:$0xff]  }
 0x114   : > { %3350 = vmatprep.subr.bf16.mxu0 %v3596_v39  ;;  %v3659_v39 = vld [vmem:[%s4394_s7 + $0x398] sm:$0xff]  }
 0x116   : > { %3371 = vmatpush3.bf16.msra.mxu1 %v3595_v38  ;;  %v3658_v38 = vld [vmem:[%s4394_s7 + $0x3d8] sm:$0xff]  }
 0x117   : > { %3351 = vmatpush3.bf16.msra.mxu0 %v3597_v41  ;;  %3372 = vmatprep.subr.bf16.mxu1 %v3598_v42  ;;  %v3661_v41 = vld [vmem:[%s4394_s7 + $0x310] sm:$0xff]  }
 0x118   : > { %3380 = vmatprep.subr.bf16.mxu0 %v3602_v46  ;;  %v3662_v42 = vld [vmem:[%s4394_s7 + $0x3d0] sm:$0xff]   ;;  %v3666_v46 = vld [vmem:[%s4394_s7 + $0x3c8] sm:$0xff]  }
 0x11a   : > { %3373 = vmatpush3.bf16.msra.mxu1 %v3601_v44  ;;  %2761 = vmatmul.mubr.bf16.vlgmr.msra.gmra.mxu0 %v3132_v43  ;;  %v3663_v43 = vld [vmem:[%s4394_s7 + $0x390] sm:$0xff]   ;;  %v3664_v44 = vld [vmem:[%s4394_s7 + $0x348] sm:$0xff]  }
 0x11b   : > { %3381 = vmatpush3.bf16.msra.mxu0 %v3605_v48  ;;  %2840 = vmatprep.mubr.bf16.mxu0 %v3137_v45  ;;  %v3665_v45 = vld [vmem:[%s4394_s7 + $0x308] sm:$0xff]   ;;  %v3668_v48 = vld [vmem:[%s4394_s7 + $0x340] sm:$0xff]  }
 0x11c   : > { %3402 = vmatprep.subr.bf16.mxu1 %v3606_v50  ;;  %3382 = vmatprep.subr.bf16.mxu0 %v3608_v52  ;;  %v3670_v50 = vld [vmem:[%s4394_s7 + $0x3c0] sm:$0xff]  }
 0x11d   : > { %2801 = vmatmul.mubr.bf16.vlgmr.msra.gmra.mxu1 %v3134_v47  ;;  %v3667_v47 = vld [vmem:[%s4394_s7 + $0x388] sm:$0xff]   ;;  %v3673_v52 = vld [vmem:[%s4394_s7 + $0x380] sm:$0xff]  }
 0x11e   : > { %3403 = vmatpush3.bf16.msra.mxu1 %v3607_v51  ;;  %2880 = vmatprep.mubr.bf16.mxu1 %v3139_v49  ;;  %v3669_v49 = vld [vmem:[%s4394_s7 + $0x300] sm:$0xff]   ;;  %v3140_v51 = vcombine.low %v4526_v11, %v4526_v11 }
 0x11f   : > { %3383 = vmatpush3.bf16.msra.mxu0 %v3609_v53  ;;  %3404 = vmatprep.subr.bf16.mxu1 %v3610_v54  ;;  %v3674_v53 = vld [vmem:[%s4394_s7 + $0x478] sm:$0xff]  }
 0x120   : > { %3384 = vmatprep.subr.bf16.mxu0 %v3612_v56  ;;  %v1424_v54 = vld [vmem:[%s4622_s0 + $0x38] sm:$0xff] }
 0x121   : > { %v3143_v56 = vcombine.high %v1424_v54, %v1424_v54 }
 0x122   : > { %3405 = vmatpush3.bf16.msra.mxu1 %v3611_v55  ;;  %v3142_v55 = vcombine.low %v1424_v54, %v1424_v54 }
 0x123   : > { %3385 = vmatpush3.bf16.msra.mxu0 %v3613_v57  ;;  %3406 = vmatprep.subr.bf16.mxu1 %v3614_v58  ;;  %v3677_v57 = vld [vmem:[%s4394_s7 + $0x438] sm:$0xff]   ;;  %v3678_v58 = vld [vmem:[%s4394_s7 + $0x470] sm:$0xff]  }
 0x124   : > { %3386 = vmatprep.subr.bf16.mxu0 %v3616_v60  ;;  %v3680_v60 = vld [vmem:[%s4394_s7 + $0x468] sm:$0xff]  }
 0x126   : > { %3407 = vmatpush3.bf16.msra.mxu1 %v3615_v59  ;;  %v3679_v59 = vld [vmem:[%s4394_s7 + $0x430] sm:$0xff]  }
 0x127   : > { %3387 = vmatpush3.bf16.msra.mxu0 %v3617_v61  ;;  %3408 = vmatprep.subr.bf16.mxu1 %v3618_v62  ;;  %v3681_v61 = vld [vmem:[%s4394_s7 + $0x428] sm:$0xff]   ;;  %v3682_v62 = vld [vmem:[%s4394_s7 + $0x460] sm:$0xff]  }
 0x128   : > { %3388 = vmatprep.subr.bf16.mxu0 %v3620_v0  ;;  %v3684_v0 = vld [vmem:[%s4394_s7 + $0x458] sm:$0xff]  }
 0x12a   : > { %3409 = vmatpush3.bf16.msra.mxu1 %v3619_v63  ;;  %v3683_v63 = vld [vmem:[%s4394_s7 + $0x420] sm:$0xff]  }
 0x12b   : > { %3389 = vmatpush3.bf16.msra.mxu0 %v3621_v1  ;;  %3410 = vmatprep.subr.bf16.mxu1 %v3622_v2  ;;  %v3685_v1 = vld [vmem:[%s4394_s7 + $0x418] sm:$0xff]   ;;  %v1425_v2 = vld [vmem:[%s4622_s0 + $0x40] sm:$0xff] }
 0x12c   : > { %3390 = vmatprep.subr.bf16.mxu0 %v3624_v4  ;;  %v3145_v4 = vcombine.high %v1425_v2, %v1425_v2 }
 0x12e   : > { %3411 = vmatpush3.bf16.msra.mxu1 %v3623_v3  ;;  %v3686_v3 = vld [vmem:[%s4394_s7 + $0x450] sm:$0xff]  }
 0x12f   : > { %3391 = vmatpush3.bf16.msra.mxu0 %v3625_v5  ;;  %3412 = vmatprep.subr.bf16.mxu1 %v3626_v6  ;;  %v3687_v5 = vld [vmem:[%s4394_s7 + $0x410] sm:$0xff]   ;;  %v3688_v6 = vld [vmem:[%s4394_s7 + $0x448] sm:$0xff]  }
 0x130   : > { %3392 = vmatprep.subr.bf16.mxu0 %v3628_v8  ;;  %v3690_v8 = vld [vmem:[%s4394_s7 + $0x440] sm:$0xff]  }
 0x132   : > { %3413 = vmatpush3.bf16.msra.mxu1 %v3627_v7  ;;  %v3689_v7 = vld [vmem:[%s4394_s7 + $0x408] sm:$0xff]  }
 0x133   : > { %3393 = vmatpush3.bf16.msra.mxu0 %v3629_v9  ;;  %3414 = vmatprep.subr.bf16.mxu1 %v3630_v10  ;;  %v3691_v9 = vld [vmem:[%s4394_s7 + $0x400] sm:$0xff]   ;;  %v3144_v10 = vcombine.low %v1425_v2, %v1425_v2  ;;  %s1415_s7 = scalar_lea.vmem %s4625_s3, %s3126_s4 }
 0x134   : > { %3394 = vmatprep.subr.bf16.mxu0 %v3632_v13 }
 0x136   : > { %3415 = vmatpush3.bf16.msra.mxu1 %v3631_v12  ;;  %v3127_v12 = vld [vmem:[%s1407_s30] ss:$0 sm:$0xff] }
 0x137   : > { %3395 = vmatpush3.bf16.msra.mxu0 %v3633_v14  ;;  %3416 = vmatprep.subr.bf16.mxu1 %v3634_v15 }
 0x138   : > { %3424 = vmatprep.subr.bf16.mxu0 %v3638_v19 }
 0x13a   : > { %3417 = vmatpush3.bf16.msra.mxu1 %v3637_v17  ;;  %2841 = vmatmul.mubr.bf16.vlgmr.msra.gmra.mxu0 %v3136_v16 }
 0x13b   : > { %3425 = vmatpush3.bf16.msra.mxu0 %v3641_v21  ;;  %2920 = vmatprep.mubr.bf16.mxu0 %v3141_v18 }
 0x13c   : > { %3446 = vmatprep.subr.bf16.mxu1 %v3642_v22  ;;  %3426 = vmatprep.subr.bf16.mxu0 %v3644_v24 }
 0x13d   : > { %2881 = vmatmul.mubr.bf16.vlgmr.msra.gmra.mxu1 %v3138_v20 }
 0x13e   : > { %3447 = vmatpush3.bf16.msra.mxu1 %v3643_v23  ;;  %2960 = vmatprep.mubr.bf16.mxu1 %v3143_v56 }
 0x13f   : > { %3427 = vmatpush3.bf16.msra.mxu0 %v3645_v25  ;;  %3448 = vmatprep.subr.bf16.mxu1 %v3646_v26 }
 0x140   : > { %3428 = vmatprep.subr.bf16.mxu0 %v3648_v28 }
 0x142   : > { %3449 = vmatpush3.bf16.msra.mxu1 %v3647_v27 }
 0x143   : > { %3429 = vmatpush3.bf16.msra.mxu0 %v3649_v29  ;;  %3450 = vmatprep.subr.bf16.mxu1 %v3650_v30 }
 0x144   : > { %3430 = vmatprep.subr.bf16.mxu0 %v3652_v32 }
 0x146   : > { %3451 = vmatpush3.bf16.msra.mxu1 %v3651_v31 }
 0x147   : > { %3431 = vmatpush3.bf16.msra.mxu0 %v3653_v33  ;;  %3452 = vmatprep.subr.bf16.mxu1 %v3654_v34 }
 0x148   : > { %3432 = vmatprep.subr.bf16.mxu0 %v3656_v36 }
 0x14a   : > { %3453 = vmatpush3.bf16.msra.mxu1 %v3655_v35 }
 0x14b   : > { %3433 = vmatpush3.bf16.msra.mxu0 %v3657_v37  ;;  %3454 = vmatprep.subr.bf16.mxu1 %v3658_v38 }
 0x14c   : > { %3434 = vmatprep.subr.bf16.mxu0 %v3660_v40 }
 0x14e   : > { %3455 = vmatpush3.bf16.msra.mxu1 %v3659_v39 }
 0x14f   : > { %3435 = vmatpush3.bf16.msra.mxu0 %v3661_v41  ;;  %3456 = vmatprep.subr.bf16.mxu1 %v3662_v42 }
 0x150   : > { %3436 = vmatprep.subr.bf16.mxu0 %v3664_v44 }
 0x152   : > { %3457 = vmatpush3.bf16.msra.mxu1 %v3663_v43 }
 0x153   : > { %3437 = vmatpush3.bf16.msra.mxu0 %v3665_v45  ;;  %3458 = vmatprep.subr.bf16.mxu1 %v3666_v46 }
 0x154   : > { %3438 = vmatprep.subr.bf16.mxu0 %v3668_v48 }
 0x156   : > { %3459 = vmatpush3.bf16.msra.mxu1 %v3667_v47 }
 0x157   : > { %3439 = vmatpush3.bf16.msra.mxu0 %v3669_v49  ;;  %3460 = vmatprep.subr.bf16.mxu1 %v3670_v50 }
 0x158   : > { %3468 = vmatprep.subr.bf16.mxu0 %v3674_v53 }
 0x15a   : > { %3461 = vmatpush3.bf16.msra.mxu1 %v3673_v52  ;;  %2921 = vmatmul.mubr.bf16.vlgmr.msra.gmra.mxu0 %v3140_v51 }
 0x15b   : > { %3469 = vmatpush3.bf16.msra.mxu0 %v3677_v57  ;;  %3000 = vmatprep.mubr.bf16.mxu0 %v3145_v4 }
 0x15c   : > { %3470 = vmatprep.subr.bf16.mxu0 %v3678_v58 }
 0x15d   : > { %2961 = vmatmul.mubr.bf16.vlgmr.msra.gmra.mxu1 %v3142_v55 }
 0x15f   : > { %3471 = vmatpush3.bf16.msra.mxu0 %v3679_v59 }
 0x160   : > { %3472 = vmatprep.subr.bf16.mxu0 %v3680_v60 }
 0x163   : > { %3473 = vmatpush3.bf16.msra.mxu0 %v3681_v61 }
 0x164   : > { %3474 = vmatprep.subr.bf16.mxu0 %v3682_v62 }
 0x167   : > { %3475 = vmatpush3.bf16.msra.mxu0 %v3683_v63 }
 0x168   : > { %3476 = vmatprep.subr.bf16.mxu0 %v3684_v0 }
 0x16b   : > { %3477 = vmatpush3.bf16.msra.mxu0 %v3685_v1 }
 0x16c   : > { %3478 = vmatprep.subr.bf16.mxu0 %v3686_v3 }
 0x16f   : > { %3479 = vmatpush3.bf16.msra.mxu0 %v3687_v5 }
 0x170   : > { %3480 = vmatprep.subr.bf16.mxu0 %v3688_v6 }
 0x173   : > { %3481 = vmatpush3.bf16.msra.mxu0 %v3689_v7 }
 0x174   : > { %3482 = vmatprep.subr.bf16.mxu0 %v3690_v8 }
 0x177   : > { %3483 = vmatpush3.bf16.msra.mxu0 %v3691_v9 }
 0x17a   : > { %3001 = vmatmul.mubr.bf16.vlgmr.msra.gmra.mxu0 %v3144_v10 }
 0x1ba   : > { %v3308_v11 = vpop.f32.mrf.mxu0 }
 0x1bc   : > { %v3309_v13 = vpop.f32.mrf.mxu0 }
 0x1bd   : > { %v3330_v14 = vpop.f32.mrf.mxu1  ;;  %v3310_v15 = vadd.f32 %v3309_v13, %v3308_v11 }
 0x1be   : > { %v3311_v16 = vpop.f32.mrf.mxu0 }
 0x1bf   : > { %v3331_v17 = vpop.f32.mrf.mxu1  ;;  %v2683_v18 = vadd.f32 %v3310_v15, %v3127_v12 }
 0x1c0   : > { %v3332_v19 = vadd.f32 %v3331_v17, %v3330_v14  ;;  %v3312_v20 = vpop.f32.mrf.mxu0 }
 0x1c1   : > { %v3333_v21 = vpop.f32.mrf.mxu1 }
 0x1c2   : > { %v2723_v22 = vadd.f32 %v3332_v19, %v2683_v18 }
 0x1c3   : > { %v3334_v23 = vpop.f32.mrf.mxu1 }
 0x1da   : > { %v3352_v24 = vpop.f32.mrf.mxu0 }
 0x1dc   : > { %v3353_v25 = vpop.f32.mrf.mxu0 }
 0x1dd   : > { %v3374_v26 = vpop.f32.mrf.mxu1  ;;  %v3354_v27 = vadd.f32 %v3353_v25, %v3352_v24 }
 0x1de   : > { %v3355_v28 = vpop.f32.mrf.mxu0 }
 0x1df   : > { %v3375_v29 = vpop.f32.mrf.mxu1  ;;  %v2763_v30 = vadd.f32 %v3354_v27, %v2723_v22 }
 0x1e0   : > { %v3376_v31 = vadd.f32 %v3375_v29, %v3374_v26  ;;  %v3356_v32 = vpop.f32.mrf.mxu0 }
 0x1e1   : > { %v3377_v33 = vpop.f32.mrf.mxu1 }
 0x1e2   : > { %v2803_v34 = vadd.f32 %v3376_v31, %v2763_v30 }
 0x1e3   : > { %v3378_v35 = vpop.f32.mrf.mxu1 }
 0x1fa   : > { %v3396_v36 = vpop.f32.mrf.mxu0 }
 0x1fc   : > { %v3397_v37 = vpop.f32.mrf.mxu0 }
 0x1fd   : > { %v3418_v38 = vpop.f32.mrf.mxu1  ;;  %v3398_v52 = vadd.f32 %v3397_v37, %v3396_v36 }
 0x1fe   : > { %v3399_v39 = vpop.f32.mrf.mxu0 }
 0x1ff   : > { %v3419_v40 = vpop.f32.mrf.mxu1  ;;  %v2843_v53 = vadd.f32 %v3398_v52, %v2803_v34 }
 0x200   : > { %v3400_v41 = vpop.f32.mrf.mxu0  ;;  %v3420_v54 = vadd.f32 %v3419_v40, %v3418_v38 }
 0x201   : > { %v3421_v42 = vpop.f32.mrf.mxu1 }
 0x202   : > { %v2883_v56 = vadd.f32 %v3420_v54, %v2843_v53 }
 0x203   : > { %v3422_v43 = vpop.f32.mrf.mxu1 }
 0x21a   : > { %v3440_v44 = vpop.f32.mrf.mxu0 }
 0x21c   : > { %v3441_v45 = vpop.f32.mrf.mxu0 }
 0x21d   : > { %v3462_v46 = vpop.f32.mrf.mxu1  ;;  %v3442_v55 = vadd.f32 %v3441_v45, %v3440_v44 }
 0x21e   : > { %v3443_v47 = vpop.f32.mrf.mxu0 }
 0x21f   : > { %v3463_v48 = vpop.f32.mrf.mxu1  ;;  %v2923_v57 = vadd.f32 %v3442_v55, %v2883_v56 }
 0x220   : > { %v3444_v49 = vpop.f32.mrf.mxu0  ;;  %v3464_v58 = vadd.f32 %v3463_v48, %v3462_v46 }
 0x221   : > { %v3465_v50 = vpop.f32.mrf.mxu1 }
 0x222   : > { %v2963_v61 = vadd.f32 %v3464_v58, %v2923_v57 }
 0x223   : > { %v3466_v51 = vpop.f32.mrf.mxu1 }
 0x23a   : > { %v3484_v59 = vpop.f32.mrf.mxu0 }
 0x23c   : > { %v3485_v60 = vpop.f32.mrf.mxu0 }
 0x23d   : > { %v3486_v62 = vadd.f32 %v3485_v60, %v3484_v59 }
 0x23e   : > { %v3487_v63 = vpop.f32.mrf.mxu0 }
 0x23f   : > { %v3003_v0 = vadd.f32 %v3486_v62, %v2963_v61 }
 0x240   : > { %v3488_v1 = vpop.f32.mrf.mxu0 }
 0x241   : > { %v3008_v2 = vmax.f32 %v3003_v0, 0.0 }
 0x243   : > { %v3009_v3 = vpack.c.bf16 %v3008_v2, %v3008_v2 }
 0x245   : > { %3010 = vst [vmem:[%s1415_s7] sm:$0xf] %v3009_v3 }
 0x246 PF: > { %s13_s16 = sadd.s32 1, %s3732_s16   ;;  %s4626_s12 = smov %s3720_s13 }
 0x247   : > { %p10_p10 = scmp.ge.s32.totalorder %s13_s16, 6   ;;  %s4627_s13 = smov %s3789_s20 }
 0x248   : > { %s4628_s14 = smov %s3728_s15  ;;  %s4629_s15 = smov %s4631_s17 }
 0x249   :  { %12 = sbr.rel (!%p10_p10) target bundleno = 3 (0x3), region = 114 }

// kernel: _lambda_.39
= control target key start
LH: loop header
LB: loop body
LE: loop exit
PB: predicated region body
PF: predicated region fallthrough
CT: control target
= control target key end

     0   :  { %s857_s12 = smov 0   ;;  %s859_s13 = smov 0   ;;  %s1015_s0 = inlined_call_operand.vmem [shape: bf16[8,256], index: 0, kind: input, shape index: {}]   ;;  %s1016_s1 = inlined_call_operand.vmem [shape: bf16[256,512], index: 1, kind: input, shape index: {}]   ;;  %s1017_s2 = inlined_call_operand.vmem [shape: f32[1,512], index: 2, kind: input, shape index: {}]   ;;  %s1018_s3 = inlined_call_operand.vmem [shape: bf16[8,512], index: 3, kind: output, shape index: {}]  }
   0x1   :  { %s861_s14 = smov 0   ;;  %s863_s15 = smov 0  }
   0x2   :  { %s865_s16 = smov 0  }
   0x3 LB: > { %s22_s17 = sadd.s32 1, %s831_s15  ;;  %p65_p1 = scmp.ne.s32.totalorder %s823_s13, %s819_s12  ;;  %s835_s16 = sphi %s865_s16, %s13_s16   ;;  %s831_s15 = sphi %s863_s15, %s1022_s15   ;;  %s827_s14 = sphi %s861_s14, %s1021_s14   ;;  %s823_s13 = sphi %s859_s13, %s1020_s13   ;;  %s819_s12 = sphi %s857_s12, %s1019_s12  }
   0x4   : > { %p23_p0 = scmp.ge.s32.totalorder %s22_s17, 4  ;;  %p66_p2 = scmp.eq.s32.totalorder %s835_s16, 0 }
   0x5   : > { %s58_s19 = sadd.s32 1, %s823_s13  ;;  %p690_p5 = scmp.ge.s32.totalorder %s835_s16, 4 }
   0x6   : > { %s1024_s17 = smov (%p23_p0, %s22_s17), 0  ;;  %p67_p3 = por %p66_p2, %p65_p1 }
   0x7   : > { %s55_s18 = ssub.s32 %s831_s15, %s1024_s17  ;;  %153 = sbr.rel (%p690_p5) target bundleno = 37 (0x25), region = 20 }
   0x8   : > { %p56_p4 = scmp.eq.s32.totalorder %s55_s18, 0 }
   0xa   : > { %s892_s20 = scalar_select %p56_p4, %s823_s13, %s58_s19  }
   0xc   : > { %156 = sbr.rel (!%p67_p3) target bundleno = 37 (0x25), region = 24  ;;  %s158_s21 = sand.u32 (%p67_p3), 1, %s823_s13  }
   0xd   : > { %s692_s22 = sshll.u32 (%p67_p3), %s831_s15, 2  ;;  %s691_s23 = sshll.u32 (%p67_p3), %s158_s21, 7 }
   0xe   : > { %s900_s26 = scalar_lea.vmem (%p67_p3), %s1016_s1, %s692_s22  ;;  %s904_s27 = scalar_lea.vmem (%p67_p3), [#allocation2], %s691_s23 }
   0xf   : > { %v179_v0 = vld [vmem:[%s900_s26] sm:$0xf] (%p67_p3)  ;;  %v181_v1 = vld [vmem:[%s900_s26 + $0x10] sm:$0xf] (%p67_p3) }
  0x10   : > { %180 = vst [vmem:[%s904_s27] sm:$0xf] (%p67_p3), %v179_v0  ;;  %182 = vst [vmem:[%s904_s27 + $0x4] sm:$0xf] (%p67_p3), %v181_v1  ;;  %v183_v2 = vld [vmem:[%s900_s26 + $0x20] sm:$0xf] (%p67_p3) }
  0x11   : > { %v185_v3 = vld [vmem:[%s900_s26 + $0x30] sm:$0xf]  ;;  %v187_v4 = vld [vmem:[%s900_s26 + $0x40] sm:$0xf]  ;;  %184 = vst [vmem:[%s904_s27 + $0x8] sm:$0xf] %v183_v2 }
  0x12   : > { %186 = vst [vmem:[%s904_s27 + $0xc] sm:$0xf] %v185_v3  ;;  %188 = vst [vmem:[%s904_s27 + $0x10] sm:$0xf] %v187_v4  ;;  %v189_v5 = vld [vmem:[%s900_s26 + $0x50] sm:$0xf] }
  0x13   : > { %v191_v6 = vld [vmem:[%s900_s26 + $0x60] sm:$0xf]  ;;  %v193_v7 = vld [vmem:[%s900_s26 + $0x70] sm:$0xf]  ;;  %190 = vst [vmem:[%s904_s27 + $0x14] sm:$0xf] %v189_v5 }
  0x14   : > { %192 = vst [vmem:[%s904_s27 + $0x18] sm:$0xf] %v191_v6  ;;  %194 = vst [vmem:[%s904_s27 + $0x1c] sm:$0xf] %v193_v7  ;;  %v195_v8 = vld [vmem:[%s900_s26 + $0x80] sm:$0xf] }
  0x15   : > { %v197_v9 = vld [vmem:[%s900_s26 + $0x90] sm:$0xf]  ;;  %v199_v10 = vld [vmem:[%s900_s26 + $0xa0] sm:$0xf]  ;;  %196 = vst [vmem:[%s904_s27 + $0x20] sm:$0xf] %v195_v8 }
  0x16   : > { %198 = vst [vmem:[%s904_s27 + $0x24] sm:$0xf] %v197_v9  ;;  %200 = vst [vmem:[%s904_s27 + $0x28] sm:$0xf] %v199_v10  ;;  %v201_v11 = vld [vmem:[%s900_s26 + $0xb0] sm:$0xf] }
  0x17   : > { %v203_v12 = vld [vmem:[%s900_s26 + $0xc0] sm:$0xf]  ;;  %v205_v13 = vld [vmem:[%s900_s26 + $0xd0] sm:$0xf]  ;;  %202 = vst [vmem:[%s904_s27 + $0x2c] sm:$0xf] %v201_v11 }
  0x18   : > { %204 = vst [vmem:[%s904_s27 + $0x30] sm:$0xf] %v203_v12  ;;  %206 = vst [vmem:[%s904_s27 + $0x34] sm:$0xf] %v205_v13  ;;  %v207_v14 = vld [vmem:[%s900_s26 + $0xe0] sm:$0xf] }
  0x19   : > { %v209_v15 = vld [vmem:[%s900_s26 + $0xf0] sm:$0xf]  ;;  %v211_v16 = vld [vmem:[%s900_s26 + $0x100] sm:$0xf]  ;;  %208 = vst [vmem:[%s904_s27 + $0x38] sm:$0xf] %v207_v14 }
  0x1a   : > { %210 = vst [vmem:[%s904_s27 + $0x3c] sm:$0xf] %v209_v15  ;;  %212 = vst [vmem:[%s904_s27 + $0x40] sm:$0xf] %v211_v16  ;;  %v213_v17 = vld [vmem:[%s900_s26 + $0x110] sm:$0xf] }
  0x1b   : > { %v215_v18 = vld [vmem:[%s900_s26 + $0x120] sm:$0xf]  ;;  %v217_v19 = vld [vmem:[%s900_s26 + $0x130] sm:$0xf]  ;;  %214 = vst [vmem:[%s904_s27 + $0x44] sm:$0xf] %v213_v17 }
  0x1c   : > { %216 = vst [vmem:[%s904_s27 + $0x48] sm:$0xf] %v215_v18  ;;  %218 = vst [vmem:[%s904_s27 + $0x4c] sm:$0xf] %v217_v19  ;;  %v219_v20 = vld [vmem:[%s900_s26 + $0x140] sm:$0xf] }
  0x1d   : > { %v221_v21 = vld [vmem:[%s900_s26 + $0x150] sm:$0xf]  ;;  %v223_v22 = vld [vmem:[%s900_s26 + $0x160] sm:$0xf]  ;;  %220 = vst [vmem:[%s904_s27 + $0x50] sm:$0xf] %v219_v20 }
  0x1e   : > { %222 = vst [vmem:[%s904_s27 + $0x54] sm:$0xf] %v221_v21  ;;  %224 = vst [vmem:[%s904_s27 + $0x58] sm:$0xf] %v223_v22  ;;  %v225_v23 = vld [vmem:[%s900_s26 + $0x170] sm:$0xf] }
  0x1f   : > { %v227_v24 = vld [vmem:[%s900_s26 + $0x180] sm:$0xf]  ;;  %v229_v25 = vld [vmem:[%s900_s26 + $0x190] sm:$0xf]  ;;  %226 = vst [vmem:[%s904_s27 + $0x5c] sm:$0xf] %v225_v23 }
  0x20   : > { %228 = vst [vmem:[%s904_s27 + $0x60] sm:$0xf] %v227_v24  ;;  %230 = vst [vmem:[%s904_s27 + $0x64] sm:$0xf] %v229_v25  ;;  %v231_v26 = vld [vmem:[%s900_s26 + $0x1a0] sm:$0xf] }
  0x21   : > { %v233_v27 = vld [vmem:[%s900_s26 + $0x1b0] sm:$0xf]  ;;  %v235_v28 = vld [vmem:[%s900_s26 + $0x1c0] sm:$0xf]  ;;  %232 = vst [vmem:[%s904_s27 + $0x68] sm:$0xf] %v231_v26 }
  0x22   : > { %234 = vst [vmem:[%s904_s27 + $0x6c] sm:$0xf] %v233_v27  ;;  %236 = vst [vmem:[%s904_s27 + $0x70] sm:$0xf] %v235_v28  ;;  %v237_v29 = vld [vmem:[%s900_s26 + $0x1d0] sm:$0xf] }
  0x23   : > { %v239_v30 = vld [vmem:[%s900_s26 + $0x1e0] sm:$0xf]  ;;  %v241_v31 = vld [vmem:[%s900_s26 + $0x1f0] sm:$0xf]  ;;  %238 = vst [vmem:[%s904_s27 + $0x74] sm:$0xf] %v237_v29 }
  0x24   : > { %240 = vst [vmem:[%s904_s27 + $0x78] sm:$0xf] %v239_v30  ;;  %242 = vst [vmem:[%s904_s27 + $0x7c] sm:$0xf] %v241_v31 }
  0x25 PF: > { %p693_p6 = scmp.ge.s32.totalorder %s835_s16, 1  ;;  %p335_p7 = scmp.lt.s32.totalorder %s835_s16, 5 }
  0x27   : > { %p336_p8 = pnand %p693_p6, %p335_p7 }
  0x28   : > { %s342_s28 = sand.u32 (!%p336_p8), 1, %s819_s12   ;;  %p381_p9 = scmp.lt.s32.totalorder (!%p336_p8), %s827_s14, 3 }
  0x29   : > { %339 = sbr.rel (%p336_p8) target bundleno = 281 (0x119), region = 69  ;;  %s694_s4 = sshll.u32 (!%p336_p8), %s342_s28, 7 }
  0x2a   : > { %s974_s5 = scalar_lea.vmem (!%p336_p8), [#allocation2], %s694_s4 }
  0x2e   : > { %v393_v32 = vld [vmem:[%s1015_s0] sm:$0xff]  ;;  %v779_v34 = vld [vmem:[%s974_s5 + $0x78] sm:$0xff]   ;;  %v781_v36 = vld [vmem:[%s974_s5 + $0x70] sm:$0xff]   ;;  %s1026_s14 = smov (!%p381_p9, %s827_s14), 3 }
  0x2f   : > { %v698_v33 = vcombine.high %v393_v32, %v393_v32  ;;  %v780_v35 = vld [vmem:[%s974_s5 + $0x38] sm:$0xff]   ;;  %717 = vmatprep.subr.bf16.mxu0 %v779_v34  ;;  %v782_v37 = vld [vmem:[%s974_s5 + $0x30] sm:$0xff]   ;;  %v783_v38 = vld [vmem:[%s974_s5 + $0x68] sm:$0xff]   ;;  %v697_v50 = vcombine.low %v393_v32, %v393_v32  ;;  %s383_s8 = scalar_lea.vmem %s1017_s2, %s1026_s14  ;;  %s695_s9 = sshll.u32 %s1026_s14, 2 }
  0x30   : > { %718 = vmatpush3.bf16.msra.mxu0 %v780_v35  ;;  %v784_v39 = vld [vmem:[%s974_s5 + $0x28] sm:$0xff]   ;;  %v785_v40 = vld [vmem:[%s974_s5 + $0x60] sm:$0xff]   ;;  %v787_v42 = vld [vmem:[%s974_s5 + $0x58] sm:$0xff]   ;;  %s391_s12 = scalar_lea.vmem %s1018_s3, %s695_s9 }
  0x31   : > { %568 = vmatprep.mubr.bf16.mxu0 %v698_v33  ;;  %719 = vmatprep.subr.bf16.mxu0 %v781_v36  ;;  %v786_v41 = vld [vmem:[%s974_s5 + $0x20] sm:$0xff]   ;;  %v788_v43 = vld [vmem:[%s974_s5 + $0x18] sm:$0xff]   ;;  %v789_v44 = vld [vmem:[%s974_s5 + $0x50] sm:$0xff]  }
  0x32   : > { %v790_v45 = vld [vmem:[%s974_s5 + $0x10] sm:$0xff]   ;;  %v791_v46 = vld [vmem:[%s974_s5 + $0x48] sm:$0xff]   ;;  %v793_v48 = vld [vmem:[%s974_s5 + $0x40] sm:$0xff]  }
  0x33   : > { %v792_v47 = vld [vmem:[%s974_s5 + $0x8] sm:$0xff]   ;;  %v794_v49 = vld [vmem:[%s974_s5] sm:$0xff]  }
  0x34   : > { %720 = vmatpush3.bf16.msra.mxu0 %v782_v37  ;;  %v696_v52 = vld [vmem:[%s383_s8] ss:$0 sm:$0xff] }
  0x35   : > { %721 = vmatprep.subr.bf16.mxu0 %v783_v38 }
  0x38   : > { %722 = vmatpush3.bf16.msra.mxu0 %v784_v39 }
  0x39   : > { %723 = vmatprep.subr.bf16.mxu0 %v785_v40 }
  0x3c   : > { %724 = vmatpush3.bf16.msra.mxu0 %v786_v41 }
  0x3d   : > { %725 = vmatprep.subr.bf16.mxu0 %v787_v42 }
  0x40   : > { %726 = vmatpush3.bf16.msra.mxu0 %v788_v43 }
  0x41   : > { %727 = vmatprep.subr.bf16.mxu0 %v789_v44 }
  0x44   : > { %728 = vmatpush3.bf16.msra.mxu0 %v790_v45 }
  0x45   : > { %729 = vmatprep.subr.bf16.mxu0 %v791_v46 }
  0x48   : > { %730 = vmatpush3.bf16.msra.mxu0 %v792_v47 }
  0x49   : > { %731 = vmatprep.subr.bf16.mxu0 %v793_v48 }
  0x4c   : > { %732 = vmatpush3.bf16.msra.mxu0 %v794_v49 }
  0x4f   : > { %569 = vmatmul.mubr.bf16.vlgmr.msra.gmra.mxu0 %v697_v50 }
 0x10f   : > { %v733_v51 = vpop.f32.mrf.mxu0 }
 0x111   : > { %v734_v53 = vpop.f32.mrf.mxu0 }
 0x112   : > { %v735_v54 = vadd.f32 %v734_v53, %v733_v51 }
 0x113   : > { %v736_v55 = vpop.f32.mrf.mxu0 }
 0x114   : > { %v571_v56 = vadd.f32 %v735_v54, %v696_v52 }
 0x115   : > { %v737_v57 = vpop.f32.mrf.mxu0 }
 0x116   : > { %v576_v58 = vpack.c.bf16 %v571_v56, %v571_v56 }
 0x118   : > { %577 = vst [vmem:[%s391_s12] sm:$0xf] %v576_v58 }
 0x119 PF: > { %s13_s16 = sadd.s32 1, %s835_s16   ;;  %s1019_s12 = smov %s823_s13 }
 0x11a   : > { %p10_p10 = scmp.ge.s32.totalorder %s13_s16, 6   ;;  %s1020_s13 = smov %s892_s20 }
 0x11b   : > { %s1021_s14 = smov %s831_s15  ;;  %s1022_s15 = smov %s1024_s17 }
 0x11c   :  { %12 = sbr.rel (!%p10_p10) target bundleno = 3 (0x3), region = 114 }

// kernel: _lambda_.40
= control target key start
LH: loop header
LB: loop body
LE: loop exit
PB: predicated region body
PF: predicated region fallthrough
CT: control target
= control target key end

     0   :  { %s1398_s15 = smov 0   ;;  %s1400_s16 = smov 0   ;;  %s1684_s0 = inlined_call_operand.vmem [shape: bf16[8,4608], index: 0, kind: input, shape index: {}]   ;;  %s1685_s1 = inlined_call_operand.vmem [shape: bf16[4608,512], index: 1, kind: input, shape index: {}]   ;;  %s1686_s2 = inlined_call_operand.vmem [shape: f32[1,512], index: 2, kind: input, shape index: {}]   ;;  %s1687_s3 = inlined_call_operand.vmem [shape: bf16[8,512], index: 3, kind: input, shape index: {}]   ;;  %s1688_s4 = inlined_call_operand.vmem [shape: bf16[8,512], index: 4, kind: output, shape index: {}]  }
   0x1   :  { %s1402_s17 = smov 0   ;;  %s1404_s18 = smov 0  }
   0x2   :  { %s1406_s19 = smov 0   ;;  %s1408_s20 = smov 0  }
   0x3   :  { %s1410_s21 = smov 0  }
   0x4 LB: > { %s26_s22 = sadd.s32 1, %s1362_s19  ;;  %s29_s23 = sadd.s32 1, %s1366_s20  ;;  %s1370_s21 = sphi %s1410_s21, %s14_s21   ;;  %s1366_s20 = sphi %s1408_s20, %s1694_s20   ;;  %s1362_s19 = sphi %s1406_s19, %s1693_s19   ;;  %s1358_s18 = sphi %s1404_s18, %s1692_s18   ;;  %s1354_s17 = sphi %s1402_s17, %s1691_s17   ;;  %s1350_s16 = sphi %s1400_s16, %s1690_s16   ;;  %s1346_s15 = sphi %s1398_s15, %s1689_s15  }
   0x5   : > { %p27_p0 = scmp.ge.s32.totalorder %s26_s22, 9  ;;  %p77_p1 = scmp.ne.s32.totalorder %s1350_s16, %s1346_s15 }
   0x6   : > { %p78_p2 = scmp.eq.s32.totalorder %s1370_s21, 0  ;;  %s70_s27 = sadd.s32 1, %s1350_s16 }
   0x7   : > { %s1696_s22 = smov (%p27_p0, %s26_s22), 0  ;;  %s1698_s23 = smov (!%p27_p0, %s29_s23), %s1366_s20 }
   0x8   : > { %p79_p3 = por %p78_p2, %p77_p1  ;;  %p31_p4 = scmp.ge.s32.totalorder %s1698_s23, 4 }
   0x9   : > { %s65_s24 = ssub.s32 %s1362_s19, %s1696_s22  ;;  %p1126_p6 = scmp.ge.s32.totalorder %s1370_s21, 36 }
   0xa   : > { %s1700_s23 = smov (%p31_p4, %s1698_s23), 0 }
   0xb   : > { %s66_s25 = ssub.s32 %s1366_s20, %s1700_s23  ;;  %185 = sbr.rel (%p1126_p6) target bundleno = 65 (0x41), region = 16 }
   0xc   : > { %s67_s26 = sor.u32 %s66_s25, %s65_s24 }
   0xd   : > { %p68_p5 = scmp.eq.s32.totalorder %s67_s26, 0 }
   0xf   : > { %s1449_s28 = scalar_select %p68_p5, %s1350_s16, %s70_s27  }
  0x10   : > { %201 = sbr.rel (!%p79_p3) target bundleno = 65 (0x41), region = 24  ;;  %s203_s29 = sand.u32 (%p79_p3), 1, %s1350_s16  }
  0x11   : > { %s1178_s30 = sshll.u32 (%p79_p3), %s1362_s19, 8  ;;  %s1127_s5 = sshll.u32 (%p79_p3), %s203_s29, 8 }
  0x12   : > { %s208_s6 = sadd.s32 (%p79_p3), %s1366_s20, %s1178_s30  ;;  %s1463_s11 = scalar_lea.vmem (%p79_p3), [#allocation3], %s1127_s5 }
  0x13   : > { %s1130_s7 = sshll.u32 (%p79_p3), %s208_s6, 2 }
  0x14   : > { %s1458_s10 = scalar_lea.vmem (%p79_p3), %s1685_s1, %s1130_s7 }
  0x15   : > { %v227_v0 = vld [vmem:[%s1458_s10] sm:$0xf]  ;;  %v229_v1 = vld [vmem:[%s1458_s10 + $0x10] sm:$0xf] }
  0x16   : > { %v231_v2 = vld [vmem:[%s1458_s10 + $0x20] sm:$0xf]  ;;  %228 = vst [vmem:[%s1463_s11] sm:$0xf] %v227_v0  ;;  %230 = vst [vmem:[%s1463_s11 + $0x4] sm:$0xf] %v229_v1 }
  0x17   : > { %232 = vst [vmem:[%s1463_s11 + $0x8] sm:$0xf] %v231_v2  ;;  %v233_v3 = vld [vmem:[%s1458_s10 + $0x30] sm:$0xf]  ;;  %v235_v4 = vld [vmem:[%s1458_s10 + $0x40] sm:$0xf] }
  0x18   : > { %v237_v5 = vld [vmem:[%s1458_s10 + $0x50] sm:$0xf]  ;;  %234 = vst [vmem:[%s1463_s11 + $0xc] sm:$0xf] %v233_v3  ;;  %236 = vst [vmem:[%s1463_s11 + $0x10] sm:$0xf] %v235_v4 }
  0x19   : > { %238 = vst [vmem:[%s1463_s11 + $0x14] sm:$0xf] %v237_v5  ;;  %v239_v6 = vld [vmem:[%s1458_s10 + $0x60] sm:$0xf]  ;;  %v241_v7 = vld [vmem:[%s1458_s10 + $0x70] sm:$0xf] }
  0x1a   : > { %v243_v8 = vld [vmem:[%s1458_s10 + $0x80] sm:$0xf]  ;;  %240 = vst [vmem:[%s1463_s11 + $0x18] sm:$0xf] %v239_v6  ;;  %242 = vst [vmem:[%s1463_s11 + $0x1c] sm:$0xf] %v241_v7 }
  0x1b   : > { %244 = vst [vmem:[%s1463_s11 + $0x20] sm:$0xf] %v243_v8  ;;  %v245_v9 = vld [vmem:[%s1458_s10 + $0x90] sm:$0xf]  ;;  %v247_v10 = vld [vmem:[%s1458_s10 + $0xa0] sm:$0xf] }
  0x1c   : > { %v249_v11 = vld [vmem:[%s1458_s10 + $0xb0] sm:$0xf]  ;;  %246 = vst [vmem:[%s1463_s11 + $0x24] sm:$0xf] %v245_v9  ;;  %248 = vst [vmem:[%s1463_s11 + $0x28] sm:$0xf] %v247_v10 }
  0x1d   : > { %250 = vst [vmem:[%s1463_s11 + $0x2c] sm:$0xf] %v249_v11  ;;  %v251_v12 = vld [vmem:[%s1458_s10 + $0xc0] sm:$0xf]  ;;  %v253_v13 = vld [vmem:[%s1458_s10 + $0xd0] sm:$0xf] }
  0x1e   : > { %v255_v14 = vld [vmem:[%s1458_s10 + $0xe0] sm:$0xf]  ;;  %252 = vst [vmem:[%s1463_s11 + $0x30] sm:$0xf] %v251_v12  ;;  %254 = vst [vmem:[%s1463_s11 + $0x34] sm:$0xf] %v253_v13 }
  0x1f   : > { %256 = vst [vmem:[%s1463_s11 + $0x38] sm:$0xf] %v255_v14  ;;  %v257_v15 = vld [vmem:[%s1458_s10 + $0xf0] sm:$0xf]  ;;  %v259_v16 = vld [vmem:[%s1458_s10 + $0x100] sm:$0xf] }
  0x20   : > { %v261_v17 = vld [vmem:[%s1458_s10 + $0x110] sm:$0xf]  ;;  %258 = vst [vmem:[%s1463_s11 + $0x3c] sm:$0xf] %v257_v15  ;;  %260 = vst [vmem:[%s1463_s11 + $0x40] sm:$0xf] %v259_v16 }
  0x21   : > { %262 = vst [vmem:[%s1463_s11 + $0x44] sm:$0xf] %v261_v17  ;;  %v263_v18 = vld [vmem:[%s1458_s10 + $0x120] sm:$0xf]  ;;  %v265_v19 = vld [vmem:[%s1458_s10 + $0x130] sm:$0xf] }
  0x22   : > { %v267_v20 = vld [vmem:[%s1458_s10 + $0x140] sm:$0xf]  ;;  %264 = vst [vmem:[%s1463_s11 + $0x48] sm:$0xf] %v263_v18  ;;  %266 = vst [vmem:[%s1463_s11 + $0x4c] sm:$0xf] %v265_v19 }
  0x23   : > { %268 = vst [vmem:[%s1463_s11 + $0x50] sm:$0xf] %v267_v20  ;;  %v269_v21 = vld [vmem:[%s1458_s10 + $0x150] sm:$0xf]  ;;  %v271_v22 = vld [vmem:[%s1458_s10 + $0x160] sm:$0xf] }
  0x24   : > { %v273_v23 = vld [vmem:[%s1458_s10 + $0x170] sm:$0xf]  ;;  %270 = vst [vmem:[%s1463_s11 + $0x54] sm:$0xf] %v269_v21  ;;  %272 = vst [vmem:[%s1463_s11 + $0x58] sm:$0xf] %v271_v22 }
  0x25   : > { %274 = vst [vmem:[%s1463_s11 + $0x5c] sm:$0xf] %v273_v23  ;;  %v275_v24 = vld [vmem:[%s1458_s10 + $0x180] sm:$0xf]  ;;  %v277_v25 = vld [vmem:[%s1458_s10 + $0x190] sm:$0xf] }
  0x26   : > { %v279_v26 = vld [vmem:[%s1458_s10 + $0x1a0] sm:$0xf]  ;;  %276 = vst [vmem:[%s1463_s11 + $0x60] sm:$0xf] %v275_v24  ;;  %278 = vst [vmem:[%s1463_s11 + $0x64] sm:$0xf] %v277_v25 }
  0x27   : > { %280 = vst [vmem:[%s1463_s11 + $0x68] sm:$0xf] %v279_v26  ;;  %v281_v27 = vld [vmem:[%s1458_s10 + $0x1b0] sm:$0xf]  ;;  %v283_v28 = vld [vmem:[%s1458_s10 + $0x1c0] sm:$0xf] }
  0x28   : > { %v285_v29 = vld [vmem:[%s1458_s10 + $0x1d0] sm:$0xf]  ;;  %282 = vst [vmem:[%s1463_s11 + $0x6c] sm:$0xf] %v281_v27  ;;  %284 = vst [vmem:[%s1463_s11 + $0x70] sm:$0xf] %v283_v28 }
  0x29   : > { %286 = vst [vmem:[%s1463_s11 + $0x74] sm:$0xf] %v285_v29  ;;  %v287_v30 = vld [vmem:[%s1458_s10 + $0x1e0] sm:$0xf]  ;;  %v289_v31 = vld [vmem:[%s1458_s10 + $0x1f0] sm:$0xf] }
  0x2a   : > { %v291_v32 = vld [vmem:[%s1458_s10 + $0x200] sm:$0xf]  ;;  %288 = vst [vmem:[%s1463_s11 + $0x78] sm:$0xf] %v287_v30  ;;  %290 = vst [vmem:[%s1463_s11 + $0x7c] sm:$0xf] %v289_v31 }
  0x2b   : > { %292 = vst [vmem:[%s1463_s11 + $0x80] sm:$0xf] %v291_v32  ;;  %v293_v33 = vld [vmem:[%s1458_s10 + $0x210] sm:$0xf]  ;;  %v295_v34 = vld [vmem:[%s1458_s10 + $0x220] sm:$0xf] }
  0x2c   : > { %v297_v35 = vld [vmem:[%s1458_s10 + $0x230] sm:$0xf]  ;;  %294 = vst [vmem:[%s1463_s11 + $0x84] sm:$0xf] %v293_v33  ;;  %296 = vst [vmem:[%s1463_s11 + $0x88] sm:$0xf] %v295_v34 }
  0x2d   : > { %298 = vst [vmem:[%s1463_s11 + $0x8c] sm:$0xf] %v297_v35  ;;  %v299_v36 = vld [vmem:[%s1458_s10 + $0x240] sm:$0xf]  ;;  %v301_v37 = vld [vmem:[%s1458_s10 + $0x250] sm:$0xf] }
  0x2e   : > { %v303_v38 = vld [vmem:[%s1458_s10 + $0x260] sm:$0xf]  ;;  %300 = vst [vmem:[%s1463_s11 + $0x90] sm:$0xf] %v299_v36  ;;  %302 = vst [vmem:[%s1463_s11 + $0x94] sm:$0xf] %v301_v37 }
  0x2f   : > { %304 = vst [vmem:[%s1463_s11 + $0x98] sm:$0xf] %v303_v38  ;;  %v305_v39 = vld [vmem:[%s1458_s10 + $0x270] sm:$0xf]  ;;  %v307_v40 = vld [vmem:[%s1458_s10 + $0x280] sm:$0xf] }
  0x30   : > { %v309_v41 = vld [vmem:[%s1458_s10 + $0x290] sm:$0xf]  ;;  %306 = vst [vmem:[%s1463_s11 + $0x9c] sm:$0xf] %v305_v39  ;;  %308 = vst [vmem:[%s1463_s11 + $0xa0] sm:$0xf] %v307_v40 }
  0x31   : > { %310 = vst [vmem:[%s1463_s11 + $0xa4] sm:$0xf] %v309_v41  ;;  %v311_v42 = vld [vmem:[%s1458_s10 + $0x2a0] sm:$0xf]  ;;  %v313_v43 = vld [vmem:[%s1458_s10 + $0x2b0] sm:$0xf] }
  0x32   : > { %v315_v44 = vld [vmem:[%s1458_s10 + $0x2c0] sm:$0xf]  ;;  %312 = vst [vmem:[%s1463_s11 + $0xa8] sm:$0xf] %v311_v42  ;;  %314 = vst [vmem:[%s1463_s11 + $0xac] sm:$0xf] %v313_v43 }
  0x33   : > { %316 = vst [vmem:[%s1463_s11 + $0xb0] sm:$0xf] %v315_v44  ;;  %v317_v45 = vld [vmem:[%s1458_s10 + $0x2d0] sm:$0xf]  ;;  %v319_v46 = vld [vmem:[%s1458_s10 + $0x2e0] sm:$0xf] }
  0x34   : > { %v321_v47 = vld [vmem:[%s1458_s10 + $0x2f0] sm:$0xf]  ;;  %318 = vst [vmem:[%s1463_s11 + $0xb4] sm:$0xf] %v317_v45  ;;  %320 = vst [vmem:[%s1463_s11 + $0xb8] sm:$0xf] %v319_v46 }
  0x35   : > { %322 = vst [vmem:[%s1463_s11 + $0xbc] sm:$0xf] %v321_v47  ;;  %v323_v48 = vld [vmem:[%s1458_s10 + $0x300] sm:$0xf]  ;;  %v325_v49 = vld [vmem:[%s1458_s10 + $0x310] sm:$0xf] }
  0x36   : > { %v327_v50 = vld [vmem:[%s1458_s10 + $0x320] sm:$0xf]  ;;  %324 = vst [vmem:[%s1463_s11 + $0xc0] sm:$0xf] %v323_v48  ;;  %326 = vst [vmem:[%s1463_s11 + $0xc4] sm:$0xf] %v325_v49 }
  0x37   : > { %328 = vst [vmem:[%s1463_s11 + $0xc8] sm:$0xf] %v327_v50  ;;  %v329_v51 = vld [vmem:[%s1458_s10 + $0x330] sm:$0xf]  ;;  %v331_v52 = vld [vmem:[%s1458_s10 + $0x340] sm:$0xf] }
  0x38   : > { %v333_v53 = vld [vmem:[%s1458_s10 + $0x350] sm:$0xf]  ;;  %330 = vst [vmem:[%s1463_s11 + $0xcc] sm:$0xf] %v329_v51  ;;  %332 = vst [vmem:[%s1463_s11 + $0xd0] sm:$0xf] %v331_v52 }
  0x39   : > { %334 = vst [vmem:[%s1463_s11 + $0xd4] sm:$0xf] %v333_v53  ;;  %v335_v54 = vld [vmem:[%s1458_s10 + $0x360] sm:$0xf]  ;;  %v337_v55 = vld [vmem:[%s1458_s10 + $0x370] sm:$0xf] }
  0x3a   : > { %v339_v56 = vld [vmem:[%s1458_s10 + $0x380] sm:$0xf]  ;;  %336 = vst [vmem:[%s1463_s11 + $0xd8] sm:$0xf] %v335_v54  ;;  %338 = vst [vmem:[%s1463_s11 + $0xdc] sm:$0xf] %v337_v55 }
  0x3b   : > { %340 = vst [vmem:[%s1463_s11 + $0xe0] sm:$0xf] %v339_v56  ;;  %v341_v57 = vld [vmem:[%s1458_s10 + $0x390] sm:$0xf]  ;;  %v343_v58 = vld [vmem:[%s1458_s10 + $0x3a0] sm:$0xf] }
  0x3c   : > { %v345_v59 = vld [vmem:[%s1458_s10 + $0x3b0] sm:$0xf]  ;;  %342 = vst [vmem:[%s1463_s11 + $0xe4] sm:$0xf] %v341_v57  ;;  %344 = vst [vmem:[%s1463_s11 + $0xe8] sm:$0xf] %v343_v58 }
  0x3d   : > { %346 = vst [vmem:[%s1463_s11 + $0xec] sm:$0xf] %v345_v59  ;;  %v347_v60 = vld [vmem:[%s1458_s10 + $0x3c0] sm:$0xf]  ;;  %v349_v61 = vld [vmem:[%s1458_s10 + $0x3d0] sm:$0xf] }
  0x3e   : > { %v351_v62 = vld [vmem:[%s1458_s10 + $0x3e0] sm:$0xf]  ;;  %348 = vst [vmem:[%s1463_s11 + $0xf0] sm:$0xf] %v347_v60  ;;  %350 = vst [vmem:[%s1463_s11 + $0xf4] sm:$0xf] %v349_v61 }
  0x3f   : > { %352 = vst [vmem:[%s1463_s11 + $0xf8] sm:$0xf] %v351_v62  ;;  %v353_v63 = vld [vmem:[%s1458_s10 + $0x3f0] sm:$0xf] }
  0x40   : > { %354 = vst [vmem:[%s1463_s11 + $0xfc] sm:$0xf] %v353_v63 }
  0x41 PF: > { %p1131_p7 = scmp.ge.s32.totalorder %s1370_s21, 1  ;;  %p522_p8 = scmp.lt.s32.totalorder %s1370_s21, 37 }
  0x43   : > { %p523_p9 = pnand %p1131_p7, %p522_p8 }
  0x44   : > { %s529_s12 = sand.u32 (!%p523_p9), 1, %s1346_s15   ;;  %s1133_s13 = sshll.u32 (!%p523_p9), %s1354_s17, 2 }
  0x45   : > { %526 = sbr.rel (%p523_p9) target bundleno = 338 (0x152), region = 73  ;;  %s1132_s14 = sshll.u32 (!%p523_p9), %s529_s12, 8 }
  0x46   : > { %p580_p10 = scmp.lt.s32.totalorder (!%p523_p9), %s1133_s13, 35  ;;  %p588_p11 = scmp.lt.s32.totalorder (!%p523_p9), %s1358_s18, 3 }
  0x47   : > { %s1618_s12 = scalar_lea.vmem (!%p523_p9), [#allocation3], %s1132_s14  ;;  %p1137_p12 = scmp.ne.s32.totalorder (!%p523_p9), %s1354_s17, 0 }
  0x4a   : > { %s1702_s13 = smov (!%p580_p10, %s1133_s13), 35  ;;  %s1704_s18 = smov (!%p588_p11, %s1358_s18), 3 }
  0x4b   : > { %s1134_s24 = sshll.u32 %s1702_s13, 2  ;;  %s590_s5 = scalar_lea.vmem %s1686_s2, %s1704_s18 }
  0x4c   : > { %s1601_s27 = scalar_lea.vmem %s1684_s0, %s1134_s24  ;;  %s1135_s15 = sshll.u32 %s1704_s18, 2 }
  0x4d   : > { %s1611_s8 = scalar_lea.vmem %s1687_s3, %s1135_s15  ;;  %s1616_s11 = scalar_lea.vmem %s1688_s4, %s1135_s15 }
  0x4e   : > { %611 = sbr.rel (%p1137_p12) target bundleno = 85 (0x55), region = 81 }
  0x53   : > { %v1372_v0 = vmov 0.0  }
  0x54   : > { %612 = vst [vmem:[#allocation2] sm:$0xff] %v1372_v0 }
  0x55 PF: > { %v1280_v1 = vld [vmem:[%s1618_s12 + $0x78] sm:$0xff]   ;;  %v1284_v5 = vld [vmem:[%s1618_s12 + $0x70] sm:$0xff]   ;;  %v1288_v9 = vld [vmem:[%s1618_s12 + $0x68] sm:$0xff]   ;;  %p1174_p13 = scmp.ne.s32.totalorder %s1354_s17, 8 }
  0x56   : > { %v1281_v2 = vld [vmem:[%s1618_s12 + $0xf8] sm:$0xff]   ;;  %1179 = vmatprep.subr.bf16.mxu0 %v1280_v1  ;;  %v1285_v6 = vld [vmem:[%s1618_s12 + $0xf0] sm:$0xff]   ;;  %v1289_v10 = vld [vmem:[%s1618_s12 + $0xe8] sm:$0xff]  }
  0x57   : > { %v1282_v3 = vld [vmem:[%s1618_s12 + $0x38] sm:$0xff]   ;;  %1201 = vmatprep.subr.bf16.mxu1 %v1281_v2  ;;  %v1286_v7 = vld [vmem:[%s1618_s12 + $0x30] sm:$0xff]   ;;  %v1290_v11 = vld [vmem:[%s1618_s12 + $0x28] sm:$0xff]  }
  0x58   : > { %v1283_v4 = vld [vmem:[%s1618_s12 + $0xb8] sm:$0xff]   ;;  %1180 = vmatpush3.bf16.msra.mxu0 %v1282_v3  ;;  %v1287_v8 = vld [vmem:[%s1618_s12 + $0xb0] sm:$0xff]   ;;  %v1291_v12 = vld [vmem:[%s1618_s12 + $0xa8] sm:$0xff]  }
  0x59   : > { %1202 = vmatpush3.bf16.msra.mxu1 %v1283_v4  ;;  %1181 = vmatprep.subr.bf16.mxu0 %v1284_v5  ;;  %v1292_v13 = vld [vmem:[%s1618_s12 + $0x60] sm:$0xff]   ;;  %v1296_v17 = vld [vmem:[%s1618_s12 + $0x58] sm:$0xff]   ;;  %v1300_v21 = vld [vmem:[%s1618_s12 + $0x50] sm:$0xff]  }
  0x5a   : > { %1203 = vmatprep.subr.bf16.mxu1 %v1285_v6  ;;  %v1293_v14 = vld [vmem:[%s1618_s12 + $0xe0] sm:$0xff]   ;;  %v1297_v18 = vld [vmem:[%s1618_s12 + $0xd8] sm:$0xff]   ;;  %v1301_v22 = vld [vmem:[%s1618_s12 + $0xd0] sm:$0xff]  }
  0x5b   : > { %v1294_v15 = vld [vmem:[%s1618_s12 + $0x20] sm:$0xff]   ;;  %v1298_v19 = vld [vmem:[%s1618_s12 + $0x18] sm:$0xff]   ;;  %v1302_v23 = vld [vmem:[%s1618_s12 + $0x10] sm:$0xff]  }
  0x5c   : > { %1182 = vmatpush3.bf16.msra.mxu0 %v1286_v7  ;;  %v1295_v16 = vld [vmem:[%s1618_s12 + $0xa0] sm:$0xff]   ;;  %v1299_v20 = vld [vmem:[%s1618_s12 + $0x98] sm:$0xff]   ;;  %v1303_v24 = vld [vmem:[%s1618_s12 + $0x90] sm:$0xff]  }
  0x5d   : > { %1204 = vmatpush3.bf16.msra.mxu1 %v1287_v8  ;;  %1183 = vmatprep.subr.bf16.mxu0 %v1288_v9  ;;  %v1304_v25 = vld [vmem:[%s1618_s12 + $0x48] sm:$0xff]   ;;  %v1308_v29 = vld [vmem:[%s1618_s12 + $0x40] sm:$0xff]   ;;  %v614_v33 = vld [vmem:[%s1601_s27] sm:$0xff] }
  0x5e   : > { %1205 = vmatprep.subr.bf16.mxu1 %v1289_v10  ;;  %v1305_v26 = vld [vmem:[%s1618_s12 + $0xc8] sm:$0xff]   ;;  %v1309_v30 = vld [vmem:[%s1618_s12 + $0xc0] sm:$0xff]   ;;  %v1138_v35 = vcombine.low %v614_v33, %v614_v33  ;;  %v1139_v36 = vcombine.high %v614_v33, %v614_v33  ;;  %v613_v45 = vld [vmem:[#allocation2] sm:$0xff] }
  0x5f   : > { %v1306_v27 = vld [vmem:[%s1618_s12 + $0x8] sm:$0xff]   ;;  %v1310_v31 = vld [vmem:[%s1618_s12] sm:$0xff]  }
  0x60   : > { %1184 = vmatpush3.bf16.msra.mxu0 %v1290_v11  ;;  %v1307_v28 = vld [vmem:[%s1618_s12 + $0x88] sm:$0xff]   ;;  %v1311_v32 = vld [vmem:[%s1618_s12 + $0x80] sm:$0xff]   ;;  %918 = vmatprep.mubr.bf16.mxu0 %v1139_v36 }
  0x61   : > { %1206 = vmatpush3.bf16.msra.mxu1 %v1291_v12  ;;  %1185 = vmatprep.subr.bf16.mxu0 %v1292_v13  ;;  %v615_v34 = vld [vmem:[%s1601_s27 + $0x8] sm:$0xff] }
  0x62   : > { %1207 = vmatprep.subr.bf16.mxu1 %v1293_v14  ;;  %v1140_v37 = vcombine.low %v615_v34, %v615_v34  ;;  %v1141_v38 = vcombine.high %v615_v34, %v615_v34 }
  0x64   : > { %1186 = vmatpush3.bf16.msra.mxu0 %v1294_v15  ;;  %958 = vmatprep.mubr.bf16.mxu1 %v1141_v38 }
  0x65   : > { %1208 = vmatpush3.bf16.msra.mxu1 %v1295_v16  ;;  %1187 = vmatprep.subr.bf16.mxu0 %v1296_v17 }
  0x66   : > { %1209 = vmatprep.subr.bf16.mxu1 %v1297_v18 }
  0x68   : > { %1188 = vmatpush3.bf16.msra.mxu0 %v1298_v19 }
  0x69   : > { %1210 = vmatpush3.bf16.msra.mxu1 %v1299_v20  ;;  %1189 = vmatprep.subr.bf16.mxu0 %v1300_v21 }
  0x6a   : > { %1211 = vmatprep.subr.bf16.mxu1 %v1301_v22 }
  0x6c   : > { %1190 = vmatpush3.bf16.msra.mxu0 %v1302_v23 }
  0x6d   : > { %1212 = vmatpush3.bf16.msra.mxu1 %v1303_v24  ;;  %1191 = vmatprep.subr.bf16.mxu0 %v1304_v25 }
  0x6e   : > { %1213 = vmatprep.subr.bf16.mxu1 %v1305_v26 }
  0x70   : > { %1192 = vmatpush3.bf16.msra.mxu0 %v1306_v27 }
  0x71   : > { %1214 = vmatpush3.bf16.msra.mxu1 %v1307_v28  ;;  %1193 = vmatprep.subr.bf16.mxu0 %v1308_v29 }
  0x72   : > { %1215 = vmatprep.subr.bf16.mxu1 %v1309_v30 }
  0x74   : > { %1194 = vmatpush3.bf16.msra.mxu0 %v1310_v31 }
  0x75   : > { %1216 = vmatpush3.bf16.msra.mxu1 %v1311_v32 }
  0x77   : > { %919 = vmatmul.mubr.bf16.vlgmr.msra.gmra.mxu0 %v1138_v35 }
  0x78   : > { %959 = vmatmul.mubr.bf16.vlgmr.msra.gmra.mxu1 %v1140_v37 }
 0x137   : > { %v1195_v39 = vpop.f32.mrf.mxu0 }
 0x138   : > { %v1217_v40 = vpop.f32.mrf.mxu1 }
 0x139   : > { %v1196_v41 = vpop.f32.mrf.mxu0 }
 0x13a   : > { %v1218_v42 = vpop.f32.mrf.mxu1  ;;  %v1197_v43 = vadd.f32 %v1196_v41, %v1195_v39 }
 0x13b   : > { %v1219_v44 = vadd.f32 %v1218_v42, %v1217_v40  ;;  %v1198_v46 = vpop.f32.mrf.mxu0 }
 0x13c   : > { %v1220_v47 = vpop.f32.mrf.mxu1 }
 0x13d   : > { %v961_v48 = vadd.f32 %v1219_v44, %v1197_v43  ;;  %v1199_v49 = vpop.f32.mrf.mxu0  ;;  %971 = sbr.rel (%p1174_p13) target bundleno = 338 (0x152), region = 85 }
 0x13e   : > { %v1221_v50 = vpop.f32.mrf.mxu1 }
 0x13f   : > { %v966_v51 = vadd.f32 %v961_v48, %v613_v45 }
 0x141   : > { %967 = vst [vmem:[#allocation2] sm:$0xff] %v966_v51 }
 0x142   : > { %v1175_v53 = vld [vmem:[%s590_s5] ss:$0 sm:$0xff] }
 0x143   : > { %v981_v54 = vld [vmem:[%s1611_s8] sm:$0xf] }
 0x144   : > { %v982_v56 = vunpack.c.l.bf16 %v981_v54 }
 0x148   : > { %v972_v52 = vld [vmem:[#allocation2] sm:$0xff] }
 0x149   : > { %v980_v55 = vadd.f32 %v1175_v53, %v972_v52 }
 0x14b   : > { %v983_v57 = vadd.f32 %v982_v56, %v980_v55 }
 0x14d   : > { %v984_v58 = vmax.f32 %v983_v57, 0.0 }
 0x14f   : > { %v985_v59 = vpack.c.bf16 %v984_v58, %v984_v58 }
 0x151   : > { %986 = vst [vmem:[%s1616_s11] sm:$0xf] %v985_v59 }
 0x152 PF: > { %s14_s21 = sadd.s32 1, %s1370_s21   ;;  %s1689_s15 = smov %s1350_s16 }
 0x153   : > { %p11_p0 = scmp.ge.s32.totalorder %s14_s21, 38   ;;  %s1690_s16 = smov %s1449_s28 }
 0x154   : > { %s1691_s17 = smov %s1362_s19  ;;  %s1692_s18 = smov %s1366_s20 }
 0x155   : > { %s1693_s19 = smov %s1696_s22  ;;  %s1694_s20 = smov %s1700_s23 }
 0x156   :  { %13 = sbr.rel (!%p11_p0) target bundleno = 4 (0x4), region = 129 }

// kernel: _lambda_.41
= control target key start
LH: loop header
LB: loop body
LE: loop exit
PB: predicated region body
PF: predicated region fallthrough
CT: control target
= control target key end

     0   :  { %s1313_s12 = smov 0   ;;  %s1315_s13 = smov 0   ;;  %s1593_s0 = inlined_call_operand.vmem [shape: bf16[8,4608], index: 0, kind: input, shape index: {}]   ;;  %s1594_s1 = inlined_call_operand.vmem [shape: bf16[4608,512], index: 1, kind: input, shape index: {}]   ;;  %s1595_s2 = inlined_call_operand.vmem [shape: f32[1,512], index: 2, kind: input, shape index: {}]   ;;  %s1596_s3 = inlined_call_operand.vmem [shape: bf16[8,512], index: 3, kind: output, shape index: {}]  }
   0x1   :  { %s1317_s14 = smov 0   ;;  %s1319_s15 = smov 0  }
   0x2   :  { %s1321_s16 = smov 0   ;;  %s1323_s17 = smov 0  }
   0x3   :  { %s1325_s18 = smov 0  }
   0x4 LB: > { %s25_s19 = sadd.s32 1, %s1282_s16  ;;  %s28_s20 = sadd.s32 1, %s1286_s17  ;;  %s1290_s18 = sphi %s1325_s18, %s13_s18   ;;  %s1286_s17 = sphi %s1323_s17, %s1602_s17   ;;  %s1282_s16 = sphi %s1321_s16, %s1601_s16   ;;  %s1278_s15 = sphi %s1319_s15, %s1600_s15   ;;  %s1274_s14 = sphi %s1317_s14, %s1599_s14   ;;  %s1270_s13 = sphi %s1315_s13, %s1598_s13   ;;  %s1266_s12 = sphi %s1313_s12, %s1597_s12  }
   0x5   : > { %p26_p0 = scmp.ge.s32.totalorder %s25_s19, 9  ;;  %p76_p1 = scmp.ne.s32.totalorder %s1270_s13, %s1266_s12 }
   0x6   : > { %p77_p2 = scmp.eq.s32.totalorder %s1290_s18, 0  ;;  %s69_s24 = sadd.s32 1, %s1270_s13 }
   0x7   : > { %s1604_s19 = smov (%p26_p0, %s25_s19), 0  ;;  %s1606_s20 = smov (!%p26_p0, %s28_s20), %s1286_s17 }
   0x8   : > { %p78_p3 = por %p77_p2, %p76_p1  ;;  %p30_p4 = scmp.ge.s32.totalorder %s1606_s20, 4 }
   0x9   : > { %s64_s21 = ssub.s32 %s1282_s16, %s1604_s19  ;;  %p1047_p6 = scmp.ge.s32.totalorder %s1290_s18, 36 }
   0xa   : > { %s1608_s20 = smov (%p30_p4, %s1606_s20), 0 }
   0xb   : > { %s65_s22 = ssub.s32 %s1286_s17, %s1608_s20  ;;  %156 = sbr.rel (%p1047_p6) target bundleno = 65 (0x41), region = 16 }
   0xc   : > { %s66_s23 = sor.u32 %s65_s22, %s64_s21 }
   0xd   : > { %p67_p5 = scmp.eq.s32.totalorder %s66_s23, 0 }
   0xf   : > { %s1364_s25 = scalar_select %p67_p5, %s1270_s13, %s69_s24  }
  0x10   : > { %172 = sbr.rel (!%p78_p3) target bundleno = 65 (0x41), region = 24  ;;  %s174_s26 = sand.u32 (%p78_p3), 1, %s1270_s13  }
  0x11   : > { %s1098_s27 = sshll.u32 (%p78_p3), %s1282_s16, 8  ;;  %s1048_s28 = sshll.u32 (%p78_p3), %s174_s26, 8 }
  0x12   : > { %s179_s29 = sadd.s32 (%p78_p3), %s1286_s17, %s1098_s27  ;;  %s1378_s7 = scalar_lea.vmem (%p78_p3), [#allocation3], %s1048_s28 }
  0x13   : > { %s1051_s30 = sshll.u32 (%p78_p3), %s179_s29, 2 }
  0x14   : > { %s1373_s6 = scalar_lea.vmem (%p78_p3), %s1594_s1, %s1051_s30 }
  0x15   : > { %v198_v0 = vld [vmem:[%s1373_s6] sm:$0xf]  ;;  %v200_v1 = vld [vmem:[%s1373_s6 + $0x10] sm:$0xf] }
  0x16   : > { %v202_v2 = vld [vmem:[%s1373_s6 + $0x20] sm:$0xf]  ;;  %199 = vst [vmem:[%s1378_s7] sm:$0xf] %v198_v0  ;;  %201 = vst [vmem:[%s1378_s7 + $0x4] sm:$0xf] %v200_v1 }
  0x17   : > { %203 = vst [vmem:[%s1378_s7 + $0x8] sm:$0xf] %v202_v2  ;;  %v204_v3 = vld [vmem:[%s1373_s6 + $0x30] sm:$0xf]  ;;  %v206_v4 = vld [vmem:[%s1373_s6 + $0x40] sm:$0xf] }
  0x18   : > { %v208_v5 = vld [vmem:[%s1373_s6 + $0x50] sm:$0xf]  ;;  %205 = vst [vmem:[%s1378_s7 + $0xc] sm:$0xf] %v204_v3  ;;  %207 = vst [vmem:[%s1378_s7 + $0x10] sm:$0xf] %v206_v4 }
  0x19   : > { %209 = vst [vmem:[%s1378_s7 + $0x14] sm:$0xf] %v208_v5  ;;  %v210_v6 = vld [vmem:[%s1373_s6 + $0x60] sm:$0xf]  ;;  %v212_v7 = vld [vmem:[%s1373_s6 + $0x70] sm:$0xf] }
  0x1a   : > { %v214_v8 = vld [vmem:[%s1373_s6 + $0x80] sm:$0xf]  ;;  %211 = vst [vmem:[%s1378_s7 + $0x18] sm:$0xf] %v210_v6  ;;  %213 = vst [vmem:[%s1378_s7 + $0x1c] sm:$0xf] %v212_v7 }
  0x1b   : > { %215 = vst [vmem:[%s1378_s7 + $0x20] sm:$0xf] %v214_v8  ;;  %v216_v9 = vld [vmem:[%s1373_s6 + $0x90] sm:$0xf]  ;;  %v218_v10 = vld [vmem:[%s1373_s6 + $0xa0] sm:$0xf] }
  0x1c   : > { %v220_v11 = vld [vmem:[%s1373_s6 + $0xb0] sm:$0xf]  ;;  %217 = vst [vmem:[%s1378_s7 + $0x24] sm:$0xf] %v216_v9  ;;  %219 = vst [vmem:[%s1378_s7 + $0x28] sm:$0xf] %v218_v10 }
  0x1d   : > { %221 = vst [vmem:[%s1378_s7 + $0x2c] sm:$0xf] %v220_v11  ;;  %v222_v12 = vld [vmem:[%s1373_s6 + $0xc0] sm:$0xf]  ;;  %v224_v13 = vld [vmem:[%s1373_s6 + $0xd0] sm:$0xf] }
  0x1e   : > { %v226_v14 = vld [vmem:[%s1373_s6 + $0xe0] sm:$0xf]  ;;  %223 = vst [vmem:[%s1378_s7 + $0x30] sm:$0xf] %v222_v12  ;;  %225 = vst [vmem:[%s1378_s7 + $0x34] sm:$0xf] %v224_v13 }
  0x1f   : > { %227 = vst [vmem:[%s1378_s7 + $0x38] sm:$0xf] %v226_v14  ;;  %v228_v15 = vld [vmem:[%s1373_s6 + $0xf0] sm:$0xf]  ;;  %v230_v16 = vld [vmem:[%s1373_s6 + $0x100] sm:$0xf] }
  0x20   : > { %v232_v17 = vld [vmem:[%s1373_s6 + $0x110] sm:$0xf]  ;;  %229 = vst [vmem:[%s1378_s7 + $0x3c] sm:$0xf] %v228_v15  ;;  %231 = vst [vmem:[%s1378_s7 + $0x40] sm:$0xf] %v230_v16 }
  0x21   : > { %233 = vst [vmem:[%s1378_s7 + $0x44] sm:$0xf] %v232_v17  ;;  %v234_v18 = vld [vmem:[%s1373_s6 + $0x120] sm:$0xf]  ;;  %v236_v19 = vld [vmem:[%s1373_s6 + $0x130] sm:$0xf] }
  0x22   : > { %v238_v20 = vld [vmem:[%s1373_s6 + $0x140] sm:$0xf]  ;;  %235 = vst [vmem:[%s1378_s7 + $0x48] sm:$0xf] %v234_v18  ;;  %237 = vst [vmem:[%s1378_s7 + $0x4c] sm:$0xf] %v236_v19 }
  0x23   : > { %239 = vst [vmem:[%s1378_s7 + $0x50] sm:$0xf] %v238_v20  ;;  %v240_v21 = vld [vmem:[%s1373_s6 + $0x150] sm:$0xf]  ;;  %v242_v22 = vld [vmem:[%s1373_s6 + $0x160] sm:$0xf] }
  0x24   : > { %v244_v23 = vld [vmem:[%s1373_s6 + $0x170] sm:$0xf]  ;;  %241 = vst [vmem:[%s1378_s7 + $0x54] sm:$0xf] %v240_v21  ;;  %243 = vst [vmem:[%s1378_s7 + $0x58] sm:$0xf] %v242_v22 }
  0x25   : > { %245 = vst [vmem:[%s1378_s7 + $0x5c] sm:$0xf] %v244_v23  ;;  %v246_v24 = vld [vmem:[%s1373_s6 + $0x180] sm:$0xf]  ;;  %v248_v25 = vld [vmem:[%s1373_s6 + $0x190] sm:$0xf] }
  0x26   : > { %v250_v26 = vld [vmem:[%s1373_s6 + $0x1a0] sm:$0xf]  ;;  %247 = vst [vmem:[%s1378_s7 + $0x60] sm:$0xf] %v246_v24  ;;  %249 = vst [vmem:[%s1378_s7 + $0x64] sm:$0xf] %v248_v25 }
  0x27   : > { %251 = vst [vmem:[%s1378_s7 + $0x68] sm:$0xf] %v250_v26  ;;  %v252_v27 = vld [vmem:[%s1373_s6 + $0x1b0] sm:$0xf]  ;;  %v254_v28 = vld [vmem:[%s1373_s6 + $0x1c0] sm:$0xf] }
  0x28   : > { %v256_v29 = vld [vmem:[%s1373_s6 + $0x1d0] sm:$0xf]  ;;  %253 = vst [vmem:[%s1378_s7 + $0x6c] sm:$0xf] %v252_v27  ;;  %255 = vst [vmem:[%s1378_s7 + $0x70] sm:$0xf] %v254_v28 }
  0x29   : > { %257 = vst [vmem:[%s1378_s7 + $0x74] sm:$0xf] %v256_v29  ;;  %v258_v30 = vld [vmem:[%s1373_s6 + $0x1e0] sm:$0xf]  ;;  %v260_v31 = vld [vmem:[%s1373_s6 + $0x1f0] sm:$0xf] }
  0x2a   : > { %v262_v32 = vld [vmem:[%s1373_s6 + $0x200] sm:$0xf]  ;;  %259 = vst [vmem:[%s1378_s7 + $0x78] sm:$0xf] %v258_v30  ;;  %261 = vst [vmem:[%s1378_s7 + $0x7c] sm:$0xf] %v260_v31 }
  0x2b   : > { %263 = vst [vmem:[%s1378_s7 + $0x80] sm:$0xf] %v262_v32  ;;  %v264_v33 = vld [vmem:[%s1373_s6 + $0x210] sm:$0xf]  ;;  %v266_v34 = vld [vmem:[%s1373_s6 + $0x220] sm:$0xf] }
  0x2c   : > { %v268_v35 = vld [vmem:[%s1373_s6 + $0x230] sm:$0xf]  ;;  %265 = vst [vmem:[%s1378_s7 + $0x84] sm:$0xf] %v264_v33  ;;  %267 = vst [vmem:[%s1378_s7 + $0x88] sm:$0xf] %v266_v34 }
  0x2d   : > { %269 = vst [vmem:[%s1378_s7 + $0x8c] sm:$0xf] %v268_v35  ;;  %v270_v36 = vld [vmem:[%s1373_s6 + $0x240] sm:$0xf]  ;;  %v272_v37 = vld [vmem:[%s1373_s6 + $0x250] sm:$0xf] }
  0x2e   : > { %v274_v38 = vld [vmem:[%s1373_s6 + $0x260] sm:$0xf]  ;;  %271 = vst [vmem:[%s1378_s7 + $0x90] sm:$0xf] %v270_v36  ;;  %273 = vst [vmem:[%s1378_s7 + $0x94] sm:$0xf] %v272_v37 }
  0x2f   : > { %275 = vst [vmem:[%s1378_s7 + $0x98] sm:$0xf] %v274_v38  ;;  %v276_v39 = vld [vmem:[%s1373_s6 + $0x270] sm:$0xf]  ;;  %v278_v40 = vld [vmem:[%s1373_s6 + $0x280] sm:$0xf] }
  0x30   : > { %v280_v41 = vld [vmem:[%s1373_s6 + $0x290] sm:$0xf]  ;;  %277 = vst [vmem:[%s1378_s7 + $0x9c] sm:$0xf] %v276_v39  ;;  %279 = vst [vmem:[%s1378_s7 + $0xa0] sm:$0xf] %v278_v40 }
  0x31   : > { %281 = vst [vmem:[%s1378_s7 + $0xa4] sm:$0xf] %v280_v41  ;;  %v282_v42 = vld [vmem:[%s1373_s6 + $0x2a0] sm:$0xf]  ;;  %v284_v43 = vld [vmem:[%s1373_s6 + $0x2b0] sm:$0xf] }
  0x32   : > { %v286_v44 = vld [vmem:[%s1373_s6 + $0x2c0] sm:$0xf]  ;;  %283 = vst [vmem:[%s1378_s7 + $0xa8] sm:$0xf] %v282_v42  ;;  %285 = vst [vmem:[%s1378_s7 + $0xac] sm:$0xf] %v284_v43 }
  0x33   : > { %287 = vst [vmem:[%s1378_s7 + $0xb0] sm:$0xf] %v286_v44  ;;  %v288_v45 = vld [vmem:[%s1373_s6 + $0x2d0] sm:$0xf]  ;;  %v290_v46 = vld [vmem:[%s1373_s6 + $0x2e0] sm:$0xf] }
  0x34   : > { %v292_v47 = vld [vmem:[%s1373_s6 + $0x2f0] sm:$0xf]  ;;  %289 = vst [vmem:[%s1378_s7 + $0xb4] sm:$0xf] %v288_v45  ;;  %291 = vst [vmem:[%s1378_s7 + $0xb8] sm:$0xf] %v290_v46 }
  0x35   : > { %293 = vst [vmem:[%s1378_s7 + $0xbc] sm:$0xf] %v292_v47  ;;  %v294_v48 = vld [vmem:[%s1373_s6 + $0x300] sm:$0xf]  ;;  %v296_v49 = vld [vmem:[%s1373_s6 + $0x310] sm:$0xf] }
  0x36   : > { %v298_v50 = vld [vmem:[%s1373_s6 + $0x320] sm:$0xf]  ;;  %295 = vst [vmem:[%s1378_s7 + $0xc0] sm:$0xf] %v294_v48  ;;  %297 = vst [vmem:[%s1378_s7 + $0xc4] sm:$0xf] %v296_v49 }
  0x37   : > { %299 = vst [vmem:[%s1378_s7 + $0xc8] sm:$0xf] %v298_v50  ;;  %v300_v51 = vld [vmem:[%s1373_s6 + $0x330] sm:$0xf]  ;;  %v302_v52 = vld [vmem:[%s1373_s6 + $0x340] sm:$0xf] }
  0x38   : > { %v304_v53 = vld [vmem:[%s1373_s6 + $0x350] sm:$0xf]  ;;  %301 = vst [vmem:[%s1378_s7 + $0xcc] sm:$0xf] %v300_v51  ;;  %303 = vst [vmem:[%s1378_s7 + $0xd0] sm:$0xf] %v302_v52 }
  0x39   : > { %305 = vst [vmem:[%s1378_s7 + $0xd4] sm:$0xf] %v304_v53  ;;  %v306_v54 = vld [vmem:[%s1373_s6 + $0x360] sm:$0xf]  ;;  %v308_v55 = vld [vmem:[%s1373_s6 + $0x370] sm:$0xf] }
  0x3a   : > { %v310_v56 = vld [vmem:[%s1373_s6 + $0x380] sm:$0xf]  ;;  %307 = vst [vmem:[%s1378_s7 + $0xd8] sm:$0xf] %v306_v54  ;;  %309 = vst [vmem:[%s1378_s7 + $0xdc] sm:$0xf] %v308_v55 }
  0x3b   : > { %311 = vst [vmem:[%s1378_s7 + $0xe0] sm:$0xf] %v310_v56  ;;  %v312_v57 = vld [vmem:[%s1373_s6 + $0x390] sm:$0xf]  ;;  %v314_v58 = vld [vmem:[%s1373_s6 + $0x3a0] sm:$0xf] }
  0x3c   : > { %v316_v59 = vld [vmem:[%s1373_s6 + $0x3b0] sm:$0xf]  ;;  %313 = vst [vmem:[%s1378_s7 + $0xe4] sm:$0xf] %v312_v57  ;;  %315 = vst [vmem:[%s1378_s7 + $0xe8] sm:$0xf] %v314_v58 }
  0x3d   : > { %317 = vst [vmem:[%s1378_s7 + $0xec] sm:$0xf] %v316_v59  ;;  %v318_v60 = vld [vmem:[%s1373_s6 + $0x3c0] sm:$0xf]  ;;  %v320_v61 = vld [vmem:[%s1373_s6 + $0x3d0] sm:$0xf] }
  0x3e   : > { %v322_v62 = vld [vmem:[%s1373_s6 + $0x3e0] sm:$0xf]  ;;  %319 = vst [vmem:[%s1378_s7 + $0xf0] sm:$0xf] %v318_v60  ;;  %321 = vst [vmem:[%s1378_s7 + $0xf4] sm:$0xf] %v320_v61 }
  0x3f   : > { %323 = vst [vmem:[%s1378_s7 + $0xf8] sm:$0xf] %v322_v62  ;;  %v324_v63 = vld [vmem:[%s1373_s6 + $0x3f0] sm:$0xf] }
  0x40   : > { %325 = vst [vmem:[%s1378_s7 + $0xfc] sm:$0xf] %v324_v63 }
  0x41 PF: > { %p1052_p7 = scmp.ge.s32.totalorder %s1290_s18, 1  ;;  %p482_p8 = scmp.lt.s32.totalorder %s1290_s18, 37 }
  0x43   : > { %p483_p9 = pnand %p1052_p7, %p482_p8 }
  0x44   : > { %s489_s8 = sand.u32 (!%p483_p9), 1, %s1266_s12   ;;  %s1054_s9 = sshll.u32 (!%p483_p9), %s1274_s14, 2 }
  0x45   : > { %486 = sbr.rel (%p483_p9) target bundleno = 335 (0x14f), region = 69  ;;  %s1053_s10 = sshll.u32 (!%p483_p9), %s489_s8, 8 }
  0x46   : > { %p530_p10 = scmp.lt.s32.totalorder (!%p483_p9), %s1054_s9, 35  ;;  %p538_p11 = scmp.lt.s32.totalorder (!%p483_p9), %s1278_s15, 3 }
  0x47   : > { %s1528_s4 = scalar_lea.vmem (!%p483_p9), [#allocation3], %s1053_s10  ;;  %p1057_p12 = scmp.ne.s32.totalorder (!%p483_p9), %s1274_s14, 0 }
  0x4a   : > { %s1610_s9 = smov (!%p530_p10, %s1054_s9), 35  ;;  %s1612_s15 = smov (!%p538_p11, %s1278_s15), 3 }
  0x4b   : > { %s1055_s11 = sshll.u32 %s1610_s9, 2  ;;  %s540_s27 = scalar_lea.vmem %s1595_s2, %s1612_s15 }
  0x4c   : > { %s1516_s23 = scalar_lea.vmem %s1593_s0, %s1055_s11  ;;  %s1056_s12 = sshll.u32 %s1612_s15, 2 }
  0x4d   : > { %s1526_s30 = scalar_lea.vmem %s1596_s3, %s1056_s12  ;;  %553 = sbr.rel (%p1057_p12) target bundleno = 84 (0x54), region = 77 }
  0x52   : > { %v1292_v0 = vmov 0.0  }
  0x53   : > { %554 = vst [vmem:[#allocation2] sm:$0xff] %v1292_v0 }
  0x54 PF: > { %v1200_v1 = vld [vmem:[%s1528_s4 + $0x78] sm:$0xff]   ;;  %v1204_v5 = vld [vmem:[%s1528_s4 + $0x70] sm:$0xff]   ;;  %v1208_v9 = vld [vmem:[%s1528_s4 + $0x68] sm:$0xff]   ;;  %p1094_p13 = scmp.ne.s32.totalorder %s1274_s14, 8 }
  0x55   : > { %v1201_v2 = vld [vmem:[%s1528_s4 + $0xf8] sm:$0xff]   ;;  %1099 = vmatprep.subr.bf16.mxu0 %v1200_v1  ;;  %v1205_v6 = vld [vmem:[%s1528_s4 + $0xf0] sm:$0xff]   ;;  %v1209_v10 = vld [vmem:[%s1528_s4 + $0xe8] sm:$0xff]  }
  0x56   : > { %v1202_v3 = vld [vmem:[%s1528_s4 + $0x38] sm:$0xff]   ;;  %1121 = vmatprep.subr.bf16.mxu1 %v1201_v2  ;;  %v1206_v7 = vld [vmem:[%s1528_s4 + $0x30] sm:$0xff]   ;;  %v1210_v11 = vld [vmem:[%s1528_s4 + $0x28] sm:$0xff]  }
  0x57   : > { %v1203_v4 = vld [vmem:[%s1528_s4 + $0xb8] sm:$0xff]   ;;  %1100 = vmatpush3.bf16.msra.mxu0 %v1202_v3  ;;  %v1207_v8 = vld [vmem:[%s1528_s4 + $0xb0] sm:$0xff]   ;;  %v1211_v12 = vld [vmem:[%s1528_s4 + $0xa8] sm:$0xff]  }
  0x58   : > { %1122 = vmatpush3.bf16.msra.mxu1 %v1203_v4  ;;  %1101 = vmatprep.subr.bf16.mxu0 %v1204_v5  ;;  %v1212_v13 = vld [vmem:[%s1528_s4 + $0x60] sm:$0xff]   ;;  %v1216_v17 = vld [vmem:[%s1528_s4 + $0x58] sm:$0xff]   ;;  %v1220_v21 = vld [vmem:[%s1528_s4 + $0x50] sm:$0xff]  }
  0x59   : > { %1123 = vmatprep.subr.bf16.mxu1 %v1205_v6  ;;  %v1213_v14 = vld [vmem:[%s1528_s4 + $0xe0] sm:$0xff]   ;;  %v1217_v18 = vld [vmem:[%s1528_s4 + $0xd8] sm:$0xff]   ;;  %v1221_v22 = vld [vmem:[%s1528_s4 + $0xd0] sm:$0xff]  }
  0x5a   : > { %v1214_v15 = vld [vmem:[%s1528_s4 + $0x20] sm:$0xff]   ;;  %v1218_v19 = vld [vmem:[%s1528_s4 + $0x18] sm:$0xff]   ;;  %v1222_v23 = vld [vmem:[%s1528_s4 + $0x10] sm:$0xff]  }
  0x5b   : > { %1102 = vmatpush3.bf16.msra.mxu0 %v1206_v7  ;;  %v1215_v16 = vld [vmem:[%s1528_s4 + $0xa0] sm:$0xff]   ;;  %v1219_v20 = vld [vmem:[%s1528_s4 + $0x98] sm:$0xff]   ;;  %v1223_v24 = vld [vmem:[%s1528_s4 + $0x90] sm:$0xff]  }
  0x5c   : > { %1124 = vmatpush3.bf16.msra.mxu1 %v1207_v8  ;;  %1103 = vmatprep.subr.bf16.mxu0 %v1208_v9  ;;  %v1224_v25 = vld [vmem:[%s1528_s4 + $0x48] sm:$0xff]   ;;  %v1228_v29 = vld [vmem:[%s1528_s4 + $0x40] sm:$0xff]   ;;  %v556_v33 = vld [vmem:[%s1516_s23] sm:$0xff] }
  0x5d   : > { %1125 = vmatprep.subr.bf16.mxu1 %v1209_v10  ;;  %v1225_v26 = vld [vmem:[%s1528_s4 + $0xc8] sm:$0xff]   ;;  %v1229_v30 = vld [vmem:[%s1528_s4 + $0xc0] sm:$0xff]   ;;  %v1058_v35 = vcombine.low %v556_v33, %v556_v33  ;;  %v1059_v36 = vcombine.high %v556_v33, %v556_v33  ;;  %v555_v45 = vld [vmem:[#allocation2] sm:$0xff] }
  0x5e   : > { %v1226_v27 = vld [vmem:[%s1528_s4 + $0x8] sm:$0xff]   ;;  %v1230_v31 = vld [vmem:[%s1528_s4] sm:$0xff]  }
  0x5f   : > { %1104 = vmatpush3.bf16.msra.mxu0 %v1210_v11  ;;  %v1227_v28 = vld [vmem:[%s1528_s4 + $0x88] sm:$0xff]   ;;  %v1231_v32 = vld [vmem:[%s1528_s4 + $0x80] sm:$0xff]   ;;  %860 = vmatprep.mubr.bf16.mxu0 %v1059_v36 }
  0x60   : > { %1126 = vmatpush3.bf16.msra.mxu1 %v1211_v12  ;;  %1105 = vmatprep.subr.bf16.mxu0 %v1212_v13  ;;  %v557_v34 = vld [vmem:[%s1516_s23 + $0x8] sm:$0xff] }
  0x61   : > { %1127 = vmatprep.subr.bf16.mxu1 %v1213_v14  ;;  %v1060_v37 = vcombine.low %v557_v34, %v557_v34  ;;  %v1061_v38 = vcombine.high %v557_v34, %v557_v34 }
  0x63   : > { %1106 = vmatpush3.bf16.msra.mxu0 %v1214_v15  ;;  %900 = vmatprep.mubr.bf16.mxu1 %v1061_v38 }
  0x64   : > { %1128 = vmatpush3.bf16.msra.mxu1 %v1215_v16  ;;  %1107 = vmatprep.subr.bf16.mxu0 %v1216_v17 }
  0x65   : > { %1129 = vmatprep.subr.bf16.mxu1 %v1217_v18 }
  0x67   : > { %1108 = vmatpush3.bf16.msra.mxu0 %v1218_v19 }
  0x68   : > { %1130 = vmatpush3.bf16.msra.mxu1 %v1219_v20  ;;  %1109 = vmatprep.subr.bf16.mxu0 %v1220_v21 }
  0x69   : > { %1131 = vmatprep.subr.bf16.mxu1 %v1221_v22 }
  0x6b   : > { %1110 = vmatpush3.bf16.msra.mxu0 %v1222_v23 }
  0x6c   : > { %1132 = vmatpush3.bf16.msra.mxu1 %v1223_v24  ;;  %1111 = vmatprep.subr.bf16.mxu0 %v1224_v25 }
  0x6d   : > { %1133 = vmatprep.subr.bf16.mxu1 %v1225_v26 }
  0x6f   : > { %1112 = vmatpush3.bf16.msra.mxu0 %v1226_v27 }
  0x70   : > { %1134 = vmatpush3.bf16.msra.mxu1 %v1227_v28  ;;  %1113 = vmatprep.subr.bf16.mxu0 %v1228_v29 }
  0x71   : > { %1135 = vmatprep.subr.bf16.mxu1 %v1229_v30 }
  0x73   : > { %1114 = vmatpush3.bf16.msra.mxu0 %v1230_v31 }
  0x74   : > { %1136 = vmatpush3.bf16.msra.mxu1 %v1231_v32 }
  0x76   : > { %861 = vmatmul.mubr.bf16.vlgmr.msra.gmra.mxu0 %v1058_v35 }
  0x77   : > { %901 = vmatmul.mubr.bf16.vlgmr.msra.gmra.mxu1 %v1060_v37 }
 0x136   : > { %v1115_v39 = vpop.f32.mrf.mxu0 }
 0x137   : > { %v1137_v40 = vpop.f32.mrf.mxu1 }
 0x138   : > { %v1116_v41 = vpop.f32.mrf.mxu0 }
 0x139   : > { %v1138_v42 = vpop.f32.mrf.mxu1  ;;  %v1117_v43 = vadd.f32 %v1116_v41, %v1115_v39 }
 0x13a   : > { %v1139_v44 = vadd.f32 %v1138_v42, %v1137_v40  ;;  %v1118_v46 = vpop.f32.mrf.mxu0 }
 0x13b   : > { %v1140_v47 = vpop.f32.mrf.mxu1 }
 0x13c   : > { %v903_v48 = vadd.f32 %v1139_v44, %v1117_v43  ;;  %v1119_v49 = vpop.f32.mrf.mxu0  ;;  %913 = sbr.rel (%p1094_p13) target bundleno = 335 (0x14f), region = 81 }
 0x13d   : > { %v1141_v50 = vpop.f32.mrf.mxu1 }
 0x13e   : > { %v908_v51 = vadd.f32 %v903_v48, %v555_v45 }
 0x140   : > { %909 = vst [vmem:[#allocation2] sm:$0xff] %v908_v51 }
 0x141   : > { %v1095_v53 = vld [vmem:[%s540_s27] ss:$0 sm:$0xff] }
 0x147   : > { %v914_v52 = vld [vmem:[#allocation2] sm:$0xff] }
 0x148   : > { %v922_v54 = vadd.f32 %v1095_v53, %v914_v52 }
 0x14a   : > { %v923_v55 = vmax.f32 %v922_v54, 0.0 }
 0x14c   : > { %v924_v56 = vpack.c.bf16 %v923_v55, %v923_v55 }
 0x14e   : > { %925 = vst [vmem:[%s1526_s30] sm:$0xf] %v924_v56 }
 0x14f PF: > { %s13_s18 = sadd.s32 1, %s1290_s18   ;;  %s1597_s12 = smov %s1270_s13 }
 0x150   : > { %p10_p0 = scmp.ge.s32.totalorder %s13_s18, 38   ;;  %s1598_s13 = smov %s1364_s25 }
 0x151   : > { %s1599_s14 = smov %s1282_s16  ;;  %s1600_s15 = smov %s1286_s17 }
 0x152   : > { %s1601_s16 = smov %s1604_s19  ;;  %s1602_s17 = smov %s1608_s20 }
 0x153   :  { %12 = sbr.rel (!%p10_p0) target bundleno = 4 (0x4), region = 122 }

// kernel: _lambda_.43
= control target key start
LH: loop header
LB: loop body
LE: loop exit
PB: predicated region body
PF: predicated region fallthrough
CT: control target
= control target key end

     0   :  { %vm374_vm0 = vcmask 80896   ;;  %s625_s1 = inlined_call_operand.vmem [shape: bf16[512,10], index: 1, kind: input, shape index: {}]   ;;  %s626_s0 = inlined_call_operand.vmem [shape: bf16[8,512], index: 0, kind: input, shape index: {}]   ;;  %s627_s2 = inlined_call_operand.vmem [shape: f32[1,10], index: 2, kind: input, shape index: {}]   ;;  %s628_s3 = inlined_call_operand.vmem [shape: f32[8,10], index: 3, kind: output, shape index: {}]  }
   0x1   :  { %v461_v0 = vld [vmem:[%s625_s1 + $0x78] sm:$0xff]   ;;  %v465_v4 = vld [vmem:[%s625_s1 + $0x70] sm:$0xff]   ;;  %v469_v8 = vld [vmem:[%s625_s1 + $0x68] sm:$0xff]  }
   0x2   :  { %v462_v1 = vld [vmem:[%s625_s1 + $0xf8] sm:$0xff]   ;;  %417 = vmatprep.subr.bf16.mxu0 %v461_v0  ;;  %v466_v5 = vld [vmem:[%s625_s1 + $0xf0] sm:$0xff]   ;;  %v470_v9 = vld [vmem:[%s625_s1 + $0xe8] sm:$0xff]  }
   0x3   :  { %v463_v2 = vld [vmem:[%s625_s1 + $0x38] sm:$0xff]   ;;  %439 = vmatprep.subr.bf16.mxu1 %v462_v1  ;;  %v467_v6 = vld [vmem:[%s625_s1 + $0x30] sm:$0xff]   ;;  %v471_v10 = vld [vmem:[%s625_s1 + $0x28] sm:$0xff]  }
   0x4   :  { %v464_v3 = vld [vmem:[%s625_s1 + $0xb8] sm:$0xff]   ;;  %418 = vmatpush3.bf16.msra.mxu0 %v463_v2  ;;  %v468_v7 = vld [vmem:[%s625_s1 + $0xb0] sm:$0xff]   ;;  %v472_v11 = vld [vmem:[%s625_s1 + $0xa8] sm:$0xff]  }
   0x5   :  { %440 = vmatpush3.bf16.msra.mxu1 %v464_v3  ;;  %419 = vmatprep.subr.bf16.mxu0 %v465_v4  ;;  %v473_v12 = vld [vmem:[%s625_s1 + $0x60] sm:$0xff]   ;;  %v477_v16 = vld [vmem:[%s625_s1 + $0x58] sm:$0xff]   ;;  %v481_v20 = vld [vmem:[%s625_s1 + $0x50] sm:$0xff]  }
   0x6   :  { %441 = vmatprep.subr.bf16.mxu1 %v466_v5  ;;  %v474_v13 = vld [vmem:[%s625_s1 + $0xe0] sm:$0xff]   ;;  %v478_v17 = vld [vmem:[%s625_s1 + $0xd8] sm:$0xff]   ;;  %v482_v21 = vld [vmem:[%s625_s1 + $0xd0] sm:$0xff]  }
   0x7   :  { %v475_v14 = vld [vmem:[%s625_s1 + $0x20] sm:$0xff]   ;;  %v479_v18 = vld [vmem:[%s625_s1 + $0x18] sm:$0xff]   ;;  %v483_v22 = vld [vmem:[%s625_s1 + $0x10] sm:$0xff]  }
   0x8   :  { %420 = vmatpush3.bf16.msra.mxu0 %v467_v6  ;;  %v476_v15 = vld [vmem:[%s625_s1 + $0xa0] sm:$0xff]   ;;  %v480_v19 = vld [vmem:[%s625_s1 + $0x98] sm:$0xff]   ;;  %v484_v23 = vld [vmem:[%s625_s1 + $0x90] sm:$0xff]  }
   0x9   :  { %442 = vmatpush3.bf16.msra.mxu1 %v468_v7  ;;  %421 = vmatprep.subr.bf16.mxu0 %v469_v8  ;;  %v485_v24 = vld [vmem:[%s625_s1 + $0x48] sm:$0xff]   ;;  %v489_v28 = vld [vmem:[%s625_s1 + $0x40] sm:$0xff]  }
   0xa   :  { %443 = vmatprep.subr.bf16.mxu1 %v470_v9  ;;  %v486_v25 = vld [vmem:[%s625_s1 + $0xc8] sm:$0xff]   ;;  %v490_v29 = vld [vmem:[%s625_s1 + $0xc0] sm:$0xff]  }
   0xb   :  { %v487_v26 = vld [vmem:[%s625_s1 + $0x8] sm:$0xff]   ;;  %v491_v30 = vld [vmem:[%s625_s1] sm:$0xff]  }
   0xc   :  { %422 = vmatpush3.bf16.msra.mxu0 %v471_v10  ;;  %v488_v27 = vld [vmem:[%s625_s1 + $0x88] sm:$0xff]   ;;  %v492_v31 = vld [vmem:[%s625_s1 + $0x80] sm:$0xff]  }
   0xd   :  { %444 = vmatpush3.bf16.msra.mxu1 %v472_v11  ;;  %423 = vmatprep.subr.bf16.mxu0 %v473_v12  ;;  %v15_v32 = vld [vmem:[%s626_s0] sm:$0xff]  ;;  %v16_v33 = vld [vmem:[%s626_s0 + $0x8] sm:$0xff] }
   0xe   :  { %445 = vmatprep.subr.bf16.mxu1 %v474_v13  ;;  %v381_v34 = vcombine.low %v15_v32, %v15_v32  ;;  %v382_v35 = vcombine.high %v15_v32, %v15_v32  ;;  %v383_v36 = vcombine.low %v16_v33, %v16_v33  ;;  %v384_v37 = vcombine.high %v16_v33, %v16_v33  ;;  %v380_v40 = vld [vmem:[%s627_s2] ss:$0 sm:$0xff] }
  0x10   :  { %424 = vmatpush3.bf16.msra.mxu0 %v475_v14  ;;  %326 = vmatprep.mubr.bf16.mxu0 %v382_v35 }
  0x11   :  { %446 = vmatpush3.bf16.msra.mxu1 %v476_v15  ;;  %425 = vmatprep.subr.bf16.mxu0 %v477_v16 }
  0x12   :  { %447 = vmatprep.subr.bf16.mxu1 %v478_v17  ;;  %366 = vmatprep.mubr.bf16.mxu1 %v384_v37 }
  0x14   :  { %426 = vmatpush3.bf16.msra.mxu0 %v479_v18 }
  0x15   :  { %448 = vmatpush3.bf16.msra.mxu1 %v480_v19  ;;  %427 = vmatprep.subr.bf16.mxu0 %v481_v20 }
  0x16   :  { %449 = vmatprep.subr.bf16.mxu1 %v482_v21 }
  0x18   :  { %428 = vmatpush3.bf16.msra.mxu0 %v483_v22 }
  0x19   :  { %450 = vmatpush3.bf16.msra.mxu1 %v484_v23  ;;  %429 = vmatprep.subr.bf16.mxu0 %v485_v24 }
  0x1a   :  { %451 = vmatprep.subr.bf16.mxu1 %v486_v25 }
  0x1c   :  { %430 = vmatpush3.bf16.msra.mxu0 %v487_v26 }
  0x1d   :  { %452 = vmatpush3.bf16.msra.mxu1 %v488_v27  ;;  %431 = vmatprep.subr.bf16.mxu0 %v489_v28 }
  0x1e   :  { %453 = vmatprep.subr.bf16.mxu1 %v490_v29 }
  0x20   :  { %432 = vmatpush3.bf16.msra.mxu0 %v491_v30 }
  0x21   :  { %454 = vmatpush3.bf16.msra.mxu1 %v492_v31 }
  0x23   :  { %327 = vmatmul.mubr.bf16.vlgmr.msra.gmra.mxu0 %v381_v34 }
  0x24   :  { %367 = vmatmul.mubr.bf16.vlgmr.msra.gmra.mxu1 %v383_v36 }
  0xe3   :  { %v433_v38 = vpop.f32.mrf.mxu0 }
  0xe4   :  { %v455_v39 = vpop.f32.mrf.mxu1 }
  0xe5   :  { %v434_v41 = vpop.f32.mrf.mxu0 }
  0xe6   :  { %v456_v42 = vpop.f32.mrf.mxu1  ;;  %v435_v43 = vadd.f32 %v434_v41, %v433_v38 }
  0xe7   :  { %v436_v44 = vpop.f32.mrf.mxu0  ;;  %v457_v47 = vadd.f32 %v456_v42, %v455_v39 }
  0xe8   :  { %v458_v45 = vpop.f32.mrf.mxu1  ;;  %v329_v46 = vadd.f32 %v435_v43, %v380_v40 }
  0xe9   :  { %v437_v48 = vpop.f32.mrf.mxu0 }
  0xea   :  { %v459_v49 = vpop.f32.mrf.mxu1  ;;  %v369_v50 = vadd.f32 %v457_v47, %v329_v46 }
  0xec   :  { %375 = vst.msk [vmem:[%s628_s3] sm:$0xff] %vm374_vm0, %v369_v50 }

</bundles_post_ra>
